<compile_context>
chip_gen: v7x
topology: tpu7x:2x2x1
jax: 0.10.0
libtpu: 0.0.40
codegen_flags: <defaults>
</compile_context>

<pallas_src>
import functools

import jax
import jax.numpy as jnp
from jax.experimental import pallas as pl
from jax.experimental.pallas import tpu as pltpu


def _round_up(v, m):
    return (v + m - 1) // m * m


def _conv_block_kernel(x_ref, w1_ref, w2_ref, o_ref, xp_ref, pat_ref, *, H, W, CP):
    """One batch element per grid step.

    x_ref  : (1, H, W, CP)   channel-padded NHWC input (compute dtype, e.g. bf16)
    w1_ref : (9*CP, CP)      conv1 weights, im2col layout ((ky,kx,cin) x cout)
    w2_ref : (9*CP, CP)      conv2 weights, same layout
    o_ref  : (1, H, W, CP)   output tile (CP multiple of 128 -> lane-dense stores)
    xp_ref : (H+2, W+2, CP)  VMEM halo buffer, reused by both convs
    pat_ref: (H*W, 9*CP)     VMEM im2col patch matrix
    """
    cdt = xp_ref.dtype

    # ---- zero only the 1-wide halo border; interior is overwritten below and the
    #      same (already-zero) border serves both convs of this step. ----
    xp_ref[0:1, :, :] = jnp.zeros((1, W + 2, CP), cdt)
    xp_ref[H + 1:H + 2, :, :] = jnp.zeros((1, W + 2, CP), cdt)
    xp_ref[1:H + 1, 0:1, :] = jnp.zeros((H, 1, CP), cdt)
    xp_ref[1:H + 1, W + 1:W + 2, :] = jnp.zeros((H, 1, CP), cdt)

    def conv3x3(w_ref):
        # Build the (H*W, 9*CP) im2col patch matrix once (column blocks are
        # lane-aligned at multiples of CP=128), then a single MXU matmul with
        # K = 9*CP and f32 accumulation.
        for ky in range(3):
            for kx in range(3):
                t = ky * 3 + kx
                tap = xp_ref[ky:ky + H, kx:kx + W, :]          # (H, W, CP)
                pat_ref[:, t * CP:(t + 1) * CP] = tap.reshape(H * W, CP)
        return jnp.dot(pat_ref[...], w_ref[...],
                       preferred_element_type=jnp.float32)      # (H*W, CP) f32

    # ---- conv1 + ReLU (accumulate & activate in f32, intermediate kept bf16) ----
    xp_ref[1:H + 1, 1:W + 1, :] = x_ref[0]
    h = jnp.maximum(conv3x3(w1_ref), 0.0)

    # ---- conv2 + ReLU ----
    xp_ref[1:H + 1, 1:W + 1, :] = h.reshape(H, W, CP).astype(cdt)
    out = jnp.maximum(conv3x3(w2_ref), 0.0)

    o_ref[0] = out.reshape(H, W, CP).astype(o_ref.dtype)


def conv_block_pallas(x_nchw, w1_oihw, w2_oihw, *, compute_dtype=jnp.bfloat16):
    """Forward pass of ConvBlock.

    x_nchw : (B, Cin, H, W)   float32
    w1_oihw: (Cout, Cin, 3, 3)
    w2_oihw: (Cout, Cout, 3, 3)
    returns: (B, Cout, H, W)  float32
    """
    B, Cin, H, W = x_nchw.shape
    Cout = w1_oihw.shape[0]
    assert w1_oihw.shape == (Cout, Cin, 3, 3)
    assert w2_oihw.shape == (Cout, Cout, 3, 3)

    # Lane-dense channel dimension (shared by both convs; padded lanes are zero).
    CP = max(_round_up(Cin, 128), _round_up(Cout, 128))

    # Boundary glue: one fused relayout each way; no spatial pad is ever
    # materialized in HBM (halo handled in-kernel).
    # TODO(synk): accept/return NHWC at the op boundary to drop these transposes.
    x_nhwc = jnp.transpose(x_nchw, (0, 2, 3, 1))                       # (B,H,W,Cin)
    x_p = jnp.pad(x_nhwc, ((0, 0), (0, 0), (0, 0), (0, CP - Cin))
                  ).astype(compute_dtype)                              # (B,H,W,CP)

    def im2col_weights(w_oihw, ci, co):
        w = jnp.transpose(w_oihw, (2, 3, 1, 0))                        # (3,3,ci,co)
        w = jnp.pad(w, ((0, 0), (0, 0), (0, CP - ci), (0, CP - co)))   # (3,3,CP,CP)
        return w.reshape(9 * CP, CP).astype(compute_dtype)             # (9*CP,CP)

    w1_mat = im2col_weights(w1_oihw, Cin, Cout)
    w2_mat = im2col_weights(w2_oihw, Cout, Cout)

    kernel = functools.partial(_conv_block_kernel, H=H, W=W, CP=CP)

    out_p = pl.pallas_call(
        kernel,
        out_shape=jax.ShapeDtypeStruct((B, H, W, CP), x_nchw.dtype),
        grid_spec=pltpu.PrefetchScalarGridSpec(
            num_scalar_prefetch=0,
            grid=(B,),
            in_specs=[
                pl.BlockSpec((1, H, W, CP), lambda b: (b, 0, 0, 0)),
                pl.BlockSpec((9 * CP, CP), lambda b: (0, 0)),
                pl.BlockSpec((9 * CP, CP), lambda b: (0, 0)),
            ],
            out_specs=pl.BlockSpec((1, H, W, CP), lambda b: (b, 0, 0, 0)),
            scratch_shapes=[
                pltpu.VMEM((H + 2, W + 2, CP), compute_dtype),   # halo buffer
                pltpu.VMEM((H * W, 9 * CP), compute_dtype),      # im2col patches
            ],
        ),
        compiler_params=pltpu.CompilerParams(
            dimension_semantics=("parallel",),
            vmem_limit_bytes=64 * 1024 * 1024,
        ),
    )(x_p, w1_mat, w2_mat)

    out_nhwc = out_p[..., :Cout]                                       # (B,H,W,Cout)
    return jnp.transpose(out_nhwc, (0, 3, 1, 2))                       # (B,Cout,H,W)


def _reference(x_nchw, w1_oihw, w2_oihw, compute_dtype=jnp.bfloat16):
    """Plain-JAX reference with the same quantization choice as the kernel
    (bf16 conv operands, f32 accumulation, f32 ReLU)."""
    dn = ("NCHW", "OIHW", "NCHW")

    def conv(x, w):
        dims = jax.lax.conv_dimension_numbers(x.shape, w.shape, dn)
        return jax.lax.conv_general_dilated(
            x.astype(compute_dtype), w.astype(compute_dtype),
            window_strides=(1, 1), padding=((1, 1), (1, 1)),
            dimension_numbers=dims, preferred_element_type=jnp.float32)

    h = jnp.maximum(conv(x_nchw, w1_oihw), 0.0)
    return jnp.maximum(conv(h, w2_oihw), 0.0)


if __name__ == "__main__":
    # Small, module-consistent shapes.
    B, Cin, Cout, H, W = 2, 4, 8, 16, 16

    key = jax.random.PRNGKey(0)
    kx, k1, k2 = jax.random.split(key, 3)

    x = jax.random.normal(kx, (B, Cin, H, W), dtype=jnp.float32)
    # Deterministic kaiming-like init for Conv2d weights (bias=False).
    w1 = jax.random.normal(k1, (Cout, Cin, 3, 3), dtype=jnp.float32) * (
        2.0 / (Cin * 9)) ** 0.5
    w2 = jax.random.normal(k2, (Cout, Cout, 3, 3), dtype=jnp.float32) * (
        2.0 / (Cout * 9)) ** 0.5

    out = conv_block_pallas(x, w1, w2)
    out = jax.block_until_ready(out)

    ref = _reference(x, w1, w2)
    assert out.shape == (B, Cout, H, W)
    assert jnp.allclose(out, ref, atol=2e-3, rtol=2e-3), "mismatch vs reference"

    print("KERNEL_OK")
</pallas_src>

<mosaic_0001>
module attributes {stable_mosaic.version = 11 : i64} {
  func.func @_conv_block_kernel(%arg0: i32, %arg1: memref<1x16x16x128xbf16, #tpu.memory_space<vmem>>, %arg2: memref<1152x128xbf16, #tpu.memory_space<vmem>>, %arg3: memref<1152x128xbf16, #tpu.memory_space<vmem>>, %arg4: memref<1x16x16x128xf32, #tpu.memory_space<vmem>>, %arg5: memref<18x18x128xbf16, #tpu.memory_space<vmem>>, %arg6: memref<256x1152xbf16, #tpu.memory_space<vmem>>) attributes {dimension_semantics = [#tpu.dimension_semantics<parallel>], iteration_bounds = array<i64: 2>, scalar_prefetch = 0 : i64, scratch_operands = 2 : i64, tpu.core_type = #tpu.core_type<tc>, window_params = [{transform_indices = @transform_0, window_bounds = array<i64: 1, 16, 16, 128>}, {pipeline_mode = #tpu.pipeline_mode<synchronous>, transform_indices = @transform_1, window_bounds = array<i64: 1152, 128>}, {pipeline_mode = #tpu.pipeline_mode<synchronous>, transform_indices = @transform_2, window_bounds = array<i64: 1152, 128>}, {transform_indices = @transform_3, window_bounds = array<i64: 1, 16, 16, 128>}]} {
    %cst = arith.constant 0.000000e+00 : bf16
    %0 = vector.broadcast %cst : bf16 to vector<1x18x128xbf16>
    %c0 = arith.constant 0 : index
    %c0_0 = arith.constant 0 : index
    %c0_1 = arith.constant 0 : index
    %1 = vector.load %arg5[%c0, %c0_0, %c0_1] : memref<18x18x128xbf16, #tpu.memory_space<vmem>>, vector<1x18x128xbf16>
    tpu.vector_store %arg5[%c0, %c0_0, %c0_1], %0 {strides = array<i32>} : memref<18x18x128xbf16, #tpu.memory_space<vmem>>, vector<1x18x128xbf16>,
    %cst_2 = arith.constant 0.000000e+00 : bf16
    %2 = vector.broadcast %cst_2 : bf16 to vector<1x18x128xbf16>
    %c17 = arith.constant 17 : index
    %c0_3 = arith.constant 0 : index
    %c0_4 = arith.constant 0 : index
    %3 = vector.load %arg5[%c17, %c0_3, %c0_4] : memref<18x18x128xbf16, #tpu.memory_space<vmem>>, vector<1x18x128xbf16>
    tpu.vector_store %arg5[%c17, %c0_3, %c0_4], %2 {strides = array<i32>} : memref<18x18x128xbf16, #tpu.memory_space<vmem>>, vector<1x18x128xbf16>,
    %cst_5 = arith.constant 0.000000e+00 : bf16
    %4 = vector.broadcast %cst_5 : bf16 to vector<16x1x128xbf16>
    %c1 = arith.constant 1 : index
    %c0_6 = arith.constant 0 : index
    %c0_7 = arith.constant 0 : index
    %5 = vector.load %arg5[%c1, %c0_6, %c0_7] : memref<18x18x128xbf16, #tpu.memory_space<vmem>>, vector<16x1x128xbf16>
    tpu.vector_store %arg5[%c1, %c0_6, %c0_7], %4 {strides = array<i32>} : memref<18x18x128xbf16, #tpu.memory_space<vmem>>, vector<16x1x128xbf16>,
    %cst_8 = arith.constant 0.000000e+00 : bf16
    %6 = vector.broadcast %cst_8 : bf16 to vector<16x1x128xbf16>
    %c1_9 = arith.constant 1 : index
    %c17_10 = arith.constant 17 : index
    %c0_11 = arith.constant 0 : index
    %7 = vector.load %arg5[%c1_9, %c17_10, %c0_11] : memref<18x18x128xbf16, #tpu.memory_space<vmem>>, vector<16x1x128xbf16>
    tpu.vector_store %arg5[%c1_9, %c17_10, %c0_11], %6 {strides = array<i32>} : memref<18x18x128xbf16, #tpu.memory_space<vmem>>, vector<16x1x128xbf16>,
    %c0_12 = arith.constant 0 : index
    %c0_13 = arith.constant 0 : index
    %c0_14 = arith.constant 0 : index
    %c0_15 = arith.constant 0 : index
    %8 = vector.load %arg1[%c0_12, %c0_13, %c0_14, %c0_15] : memref<1x16x16x128xbf16, #tpu.memory_space<vmem>>, vector<1x16x16x128xbf16>
    %9 = vector.shape_cast %8 : vector<1x16x16x128xbf16> to vector<16x16x128xbf16>
    %c1_16 = arith.constant 1 : index
    %c1_17 = arith.constant 1 : index
    %c0_18 = arith.constant 0 : index
    %10 = vector.load %arg5[%c1_16, %c1_17, %c0_18] : memref<18x18x128xbf16, #tpu.memory_space<vmem>>, vector<16x16x128xbf16>
    tpu.vector_store %arg5[%c1_16, %c1_17, %c0_18], %9 {strides = array<i32>} : memref<18x18x128xbf16, #tpu.memory_space<vmem>>, vector<16x16x128xbf16>,
    %c0_19 = arith.constant 0 : index
    %c0_20 = arith.constant 0 : index
    %c0_21 = arith.constant 0 : index
    %11 = vector.load %arg5[%c0_19, %c0_20, %c0_21] : memref<18x18x128xbf16, #tpu.memory_space<vmem>>, vector<16x16x128xbf16>
    %12 = vector.shape_cast %11 : vector<16x16x128xbf16> to vector<256x128xbf16>
    %c0_22 = arith.constant 0 : index
    %c0_23 = arith.constant 0 : index
    %13 = vector.load %arg6[%c0_22, %c0_23] : memref<256x1152xbf16, #tpu.memory_space<vmem>>, vector<256x128xbf16>
    tpu.vector_store %arg6[%c0_22, %c0_23], %12 {strides = array<i32>} : memref<256x1152xbf16, #tpu.memory_space<vmem>>, vector<256x128xbf16>,
    %c0_24 = arith.constant 0 : index
    %c1_25 = arith.constant 1 : index
    %c0_26 = arith.constant 0 : index
    %14 = vector.load %arg5[%c0_24, %c1_25, %c0_26] : memref<18x18x128xbf16, #tpu.memory_space<vmem>>, vector<16x16x128xbf16>
    %15 = vector.shape_cast %14 : vector<16x16x128xbf16> to vector<256x128xbf16>
    %c0_27 = arith.constant 0 : index
    %c128 = arith.constant 128 : index
    %16 = vector.load %arg6[%c0_27, %c128] : memref<256x1152xbf16, #tpu.memory_space<vmem>>, vector<256x128xbf16>
    tpu.vector_store %arg6[%c0_27, %c128], %15 {strides = array<i32>} : memref<256x1152xbf16, #tpu.memory_space<vmem>>, vector<256x128xbf16>,
    %c0_28 = arith.constant 0 : index
    %c2 = arith.constant 2 : index
    %c0_29 = arith.constant 0 : index
    %17 = vector.load %arg5[%c0_28, %c2, %c0_29] : memref<18x18x128xbf16, #tpu.memory_space<vmem>>, vector<16x16x128xbf16>
    %18 = vector.shape_cast %17 : vector<16x16x128xbf16> to vector<256x128xbf16>
    %c0_30 = arith.constant 0 : index
    %c256 = arith.constant 256 : index
    %19 = vector.load %arg6[%c0_30, %c256] : memref<256x1152xbf16, #tpu.memory_space<vmem>>, vector<256x128xbf16>
    tpu.vector_store %arg6[%c0_30, %c256], %18 {strides = array<i32>} : memref<256x1152xbf16, #tpu.memory_space<vmem>>, vector<256x128xbf16>,
    %c1_31 = arith.constant 1 : index
    %c0_32 = arith.constant 0 : index
    %c0_33 = arith.constant 0 : index
    %20 = vector.load %arg5[%c1_31, %c0_32, %c0_33] : memref<18x18x128xbf16, #tpu.memory_space<vmem>>, vector<16x16x128xbf16>
    %21 = vector.shape_cast %20 : vector<16x16x128xbf16> to vector<256x128xbf16>
    %c0_34 = arith.constant 0 : index
    %c384 = arith.constant 384 : index
    %22 = vector.load %arg6[%c0_34, %c384] : memref<256x1152xbf16, #tpu.memory_space<vmem>>, vector<256x128xbf16>
    tpu.vector_store %arg6[%c0_34, %c384], %21 {strides = array<i32>} : memref<256x1152xbf16, #tpu.memory_space<vmem>>, vector<256x128xbf16>,
    %c1_35 = arith.constant 1 : index
    %c1_36 = arith.constant 1 : index
    %c0_37 = arith.constant 0 : index
    %23 = vector.load %arg5[%c1_35, %c1_36, %c0_37] : memref<18x18x128xbf16, #tpu.memory_space<vmem>>, vector<16x16x128xbf16>
    %24 = vector.shape_cast %23 : vector<16x16x128xbf16> to vector<256x128xbf16>
    %c0_38 = arith.constant 0 : index
    %c512 = arith.constant 512 : index
    %25 = vector.load %arg6[%c0_38, %c512] : memref<256x1152xbf16, #tpu.memory_space<vmem>>, vector<256x128xbf16>
    tpu.vector_store %arg6[%c0_38, %c512], %24 {strides = array<i32>} : memref<256x1152xbf16, #tpu.memory_space<vmem>>, vector<256x128xbf16>,
    %c1_39 = arith.constant 1 : index
    %c2_40 = arith.constant 2 : index
    %c0_41 = arith.constant 0 : index
    %26 = vector.load %arg5[%c1_39, %c2_40, %c0_41] : memref<18x18x128xbf16, #tpu.memory_space<vmem>>, vector<16x16x128xbf16>
    %27 = vector.shape_cast %26 : vector<16x16x128xbf16> to vector<256x128xbf16>
    %c0_42 = arith.constant 0 : index
    %c640 = arith.constant 640 : index
    %28 = vector.load %arg6[%c0_42, %c640] : memref<256x1152xbf16, #tpu.memory_space<vmem>>, vector<256x128xbf16>
    tpu.vector_store %arg6[%c0_42, %c640], %27 {strides = array<i32>} : memref<256x1152xbf16, #tpu.memory_space<vmem>>, vector<256x128xbf16>,
    %c2_43 = arith.constant 2 : index
    %c0_44 = arith.constant 0 : index
    %c0_45 = arith.constant 0 : index
    %29 = vector.load %arg5[%c2_43, %c0_44, %c0_45] : memref<18x18x128xbf16, #tpu.memory_space<vmem>>, vector<16x16x128xbf16>
    %30 = vector.shape_cast %29 : vector<16x16x128xbf16> to vector<256x128xbf16>
    %c0_46 = arith.constant 0 : index
    %c768 = arith.constant 768 : index
    %31 = vector.load %arg6[%c0_46, %c768] : memref<256x1152xbf16, #tpu.memory_space<vmem>>, vector<256x128xbf16>
    tpu.vector_store %arg6[%c0_46, %c768], %30 {strides = array<i32>} : memref<256x1152xbf16, #tpu.memory_space<vmem>>, vector<256x128xbf16>,
    %c2_47 = arith.constant 2 : index
    %c1_48 = arith.constant 1 : index
    %c0_49 = arith.constant 0 : index
    %32 = vector.load %arg5[%c2_47, %c1_48, %c0_49] : memref<18x18x128xbf16, #tpu.memory_space<vmem>>, vector<16x16x128xbf16>
    %33 = vector.shape_cast %32 : vector<16x16x128xbf16> to vector<256x128xbf16>
    %c0_50 = arith.constant 0 : index
    %c896 = arith.constant 896 : index
    %34 = vector.load %arg6[%c0_50, %c896] : memref<256x1152xbf16, #tpu.memory_space<vmem>>, vector<256x128xbf16>
    tpu.vector_store %arg6[%c0_50, %c896], %33 {strides = array<i32>} : memref<256x1152xbf16, #tpu.memory_space<vmem>>, vector<256x128xbf16>,
    %c2_51 = arith.constant 2 : index
    %c2_52 = arith.constant 2 : index
    %c0_53 = arith.constant 0 : index
    %35 = vector.load %arg5[%c2_51, %c2_52, %c0_53] : memref<18x18x128xbf16, #tpu.memory_space<vmem>>, vector<16x16x128xbf16>
    %36 = vector.shape_cast %35 : vector<16x16x128xbf16> to vector<256x128xbf16>
    %c0_54 = arith.constant 0 : index
    %c1024 = arith.constant 1024 : index
    %37 = vector.load %arg6[%c0_54, %c1024] : memref<256x1152xbf16, #tpu.memory_space<vmem>>, vector<256x128xbf16>
    tpu.vector_store %arg6[%c0_54, %c1024], %36 {strides = array<i32>} : memref<256x1152xbf16, #tpu.memory_space<vmem>>, vector<256x128xbf16>,
    %c0_55 = arith.constant 0 : index
    %c0_56 = arith.constant 0 : index
    %38 = vector.load %arg6[%c0_55, %c0_56] : memref<256x1152xbf16, #tpu.memory_space<vmem>>, vector<256x1152xbf16>
    %c0_57 = arith.constant 0 : index
    %c0_58 = arith.constant 0 : index
    %39 = vector.load %arg2[%c0_57, %c0_58] : memref<1152x128xbf16, #tpu.memory_space<vmem>>, vector<1152x128xbf16>
    %cst_59 = arith.constant dense<0.000000e+00> : vector<256x128xf32>
    %40 = tpu.matmul %38, %39, %cst_59 {dimension_numbers = #tpu.dot_dimension_numbers<[1], [0], [0], [1], [0, 0, 1, 1], [], []>} : vector<256x1152xbf16>, vector<1152x128xbf16>, vector<256x128xf32> -> vector<256x128xf32>
    %cst_60 = arith.constant 0.000000e+00 : f32
    %41 = vector.broadcast %cst_60 : f32 to vector<256x128xf32>
    %42 = arith.maximumf %40, %41 : vector<256x128xf32>
    %43 = vector.shape_cast %42 : vector<256x128xf32> to vector<16x16x128xf32>
    %44 = arith.truncf %43 : vector<16x16x128xf32> to vector<16x16x128xbf16>
    %c1_61 = arith.constant 1 : index
    %c1_62 = arith.constant 1 : index
    %c0_63 = arith.constant 0 : index
    %45 = vector.load %arg5[%c1_61, %c1_62, %c0_63] : memref<18x18x128xbf16, #tpu.memory_space<vmem>>, vector<16x16x128xbf16>
    tpu.vector_store %arg5[%c1_61, %c1_62, %c0_63], %44 {strides = array<i32>} : memref<18x18x128xbf16, #tpu.memory_space<vmem>>, vector<16x16x128xbf16>,
    %c0_64 = arith.constant 0 : index
    %c0_65 = arith.constant 0 : index
    %c0_66 = arith.constant 0 : index
    %46 = vector.load %arg5[%c0_64, %c0_65, %c0_66] : memref<18x18x128xbf16, #tpu.memory_space<vmem>>, vector<16x16x128xbf16>
    %47 = vector.shape_cast %46 : vector<16x16x128xbf16> to vector<256x128xbf16>
    %c0_67 = arith.constant 0 : index
    %c0_68 = arith.constant 0 : index
    %48 = vector.load %arg6[%c0_67, %c0_68] : memref<256x1152xbf16, #tpu.memory_space<vmem>>, vector<256x128xbf16>
    tpu.vector_store %arg6[%c0_67, %c0_68], %47 {strides = array<i32>} : memref<256x1152xbf16, #tpu.memory_space<vmem>>, vector<256x128xbf16>,
    %c0_69 = arith.constant 0 : index
    %c1_70 = arith.constant 1 : index
    %c0_71 = arith.constant 0 : index
    %49 = vector.load %arg5[%c0_69, %c1_70, %c0_71] : memref<18x18x128xbf16, #tpu.memory_space<vmem>>, vector<16x16x128xbf16>
    %50 = vector.shape_cast %49 : vector<16x16x128xbf16> to vector<256x128xbf16>
    %c0_72 = arith.constant 0 : index
    %c128_73 = arith.constant 128 : index
    %51 = vector.load %arg6[%c0_72, %c128_73] : memref<256x1152xbf16, #tpu.memory_space<vmem>>, vector<256x128xbf16>
    tpu.vector_store %arg6[%c0_72, %c128_73], %50 {strides = array<i32>} : memref<256x1152xbf16, #tpu.memory_space<vmem>>, vector<256x128xbf16>,
    %c0_74 = arith.constant 0 : index
    %c2_75 = arith.constant 2 : index
    %c0_76 = arith.constant 0 : index
    %52 = vector.load %arg5[%c0_74, %c2_75, %c0_76] : memref<18x18x128xbf16, #tpu.memory_space<vmem>>, vector<16x16x128xbf16>
    %53 = vector.shape_cast %52 : vector<16x16x128xbf16> to vector<256x128xbf16>
    %c0_77 = arith.constant 0 : index
    %c256_78 = arith.constant 256 : index
    %54 = vector.load %arg6[%c0_77, %c256_78] : memref<256x1152xbf16, #tpu.memory_space<vmem>>, vector<256x128xbf16>
    tpu.vector_store %arg6[%c0_77, %c256_78], %53 {strides = array<i32>} : memref<256x1152xbf16, #tpu.memory_space<vmem>>, vector<256x128xbf16>,
    %c1_79 = arith.constant 1 : index
    %c0_80 = arith.constant 0 : index
    %c0_81 = arith.constant 0 : index
    %55 = vector.load %arg5[%c1_79, %c0_80, %c0_81] : memref<18x18x128xbf16, #tpu.memory_space<vmem>>, vector<16x16x128xbf16>
    %56 = vector.shape_cast %55 : vector<16x16x128xbf16> to vector<256x128xbf16>
    %c0_82 = arith.constant 0 : index
    %c384_83 = arith.constant 384 : index
    %57 = vector.load %arg6[%c0_82, %c384_83] : memref<256x1152xbf16, #tpu.memory_space<vmem>>, vector<256x128xbf16>
    tpu.vector_store %arg6[%c0_82, %c384_83], %56 {strides = array<i32>} : memref<256x1152xbf16, #tpu.memory_space<vmem>>, vector<256x128xbf16>,
    %c1_84 = arith.constant 1 : index
    %c1_85 = arith.constant 1 : index
    %c0_86 = arith.constant 0 : index
    %58 = vector.load %arg5[%c1_84, %c1_85, %c0_86] : memref<18x18x128xbf16, #tpu.memory_space<vmem>>, vector<16x16x128xbf16>
    %59 = vector.shape_cast %58 : vector<16x16x128xbf16> to vector<256x128xbf16>
    %c0_87 = arith.constant 0 : index
    %c512_88 = arith.constant 512 : index
    %60 = vector.load %arg6[%c0_87, %c512_88] : memref<256x1152xbf16, #tpu.memory_space<vmem>>, vector<256x128xbf16>
    tpu.vector_store %arg6[%c0_87, %c512_88], %59 {strides = array<i32>} : memref<256x1152xbf16, #tpu.memory_space<vmem>>, vector<256x128xbf16>,
    %c1_89 = arith.constant 1 : index
    %c2_90 = arith.constant 2 : index
    %c0_91 = arith.constant 0 : index
    %61 = vector.load %arg5[%c1_89, %c2_90, %c0_91] : memref<18x18x128xbf16, #tpu.memory_space<vmem>>, vector<16x16x128xbf16>
    %62 = vector.shape_cast %61 : vector<16x16x128xbf16> to vector<256x128xbf16>
    %c0_92 = arith.constant 0 : index
    %c640_93 = arith.constant 640 : index
    %63 = vector.load %arg6[%c0_92, %c640_93] : memref<256x1152xbf16, #tpu.memory_space<vmem>>, vector<256x128xbf16>
    tpu.vector_store %arg6[%c0_92, %c640_93], %62 {strides = array<i32>} : memref<256x1152xbf16, #tpu.memory_space<vmem>>, vector<256x128xbf16>,
    %c2_94 = arith.constant 2 : index
    %c0_95 = arith.constant 0 : index
    %c0_96 = arith.constant 0 : index
    %64 = vector.load %arg5[%c2_94, %c0_95, %c0_96] : memref<18x18x128xbf16, #tpu.memory_space<vmem>>, vector<16x16x128xbf16>
    %65 = vector.shape_cast %64 : vector<16x16x128xbf16> to vector<256x128xbf16>
    %c0_97 = arith.constant 0 : index
    %c768_98 = arith.constant 768 : index
    %66 = vector.load %arg6[%c0_97, %c768_98] : memref<256x1152xbf16, #tpu.memory_space<vmem>>, vector<256x128xbf16>
    tpu.vector_store %arg6[%c0_97, %c768_98], %65 {strides = array<i32>} : memref<256x1152xbf16, #tpu.memory_space<vmem>>, vector<256x128xbf16>,
    %c2_99 = arith.constant 2 : index
    %c1_100 = arith.constant 1 : index
    %c0_101 = arith.constant 0 : index
    %67 = vector.load %arg5[%c2_99, %c1_100, %c0_101] : memref<18x18x128xbf16, #tpu.memory_space<vmem>>, vector<16x16x128xbf16>
    %68 = vector.shape_cast %67 : vector<16x16x128xbf16> to vector<256x128xbf16>
    %c0_102 = arith.constant 0 : index
    %c896_103 = arith.constant 896 : index
    %69 = vector.load %arg6[%c0_102, %c896_103] : memref<256x1152xbf16, #tpu.memory_space<vmem>>, vector<256x128xbf16>
    tpu.vector_store %arg6[%c0_102, %c896_103], %68 {strides = array<i32>} : memref<256x1152xbf16, #tpu.memory_space<vmem>>, vector<256x128xbf16>,
    %c2_104 = arith.constant 2 : index
    %c2_105 = arith.constant 2 : index
    %c0_106 = arith.constant 0 : index
    %70 = vector.load %arg5[%c2_104, %c2_105, %c0_106] : memref<18x18x128xbf16, #tpu.memory_space<vmem>>, vector<16x16x128xbf16>
    %71 = vector.shape_cast %70 : vector<16x16x128xbf16> to vector<256x128xbf16>
    %c0_107 = arith.constant 0 : index
    %c1024_108 = arith.constant 1024 : index
    %72 = vector.load %arg6[%c0_107, %c1024_108] : memref<256x1152xbf16, #tpu.memory_space<vmem>>, vector<256x128xbf16>
    tpu.vector_store %arg6[%c0_107, %c1024_108], %71 {strides = array<i32>} : memref<256x1152xbf16, #tpu.memory_space<vmem>>, vector<256x128xbf16>,
    %c0_109 = arith.constant 0 : index
    %c0_110 = arith.constant 0 : index
    %73 = vector.load %arg6[%c0_109, %c0_110] : memref<256x1152xbf16, #tpu.memory_space<vmem>>, vector<256x1152xbf16>
    %c0_111 = arith.constant 0 : index
    %c0_112 = arith.constant 0 : index
    %74 = vector.load %arg3[%c0_111, %c0_112] : memref<1152x128xbf16, #tpu.memory_space<vmem>>, vector<1152x128xbf16>
    %cst_113 = arith.constant dense<0.000000e+00> : vector<256x128xf32>
    %75 = tpu.matmul %73, %74, %cst_113 {dimension_numbers = #tpu.dot_dimension_numbers<[1], [0], [0], [1], [0, 0, 1, 1], [], []>} : vector<256x1152xbf16>, vector<1152x128xbf16>, vector<256x128xf32> -> vector<256x128xf32>
    %cst_114 = arith.constant 0.000000e+00 : f32
    %76 = vector.broadcast %cst_114 : f32 to vector<256x128xf32>
    %77 = arith.maximumf %75, %76 : vector<256x128xf32>
    %78 = vector.shape_cast %77 : vector<256x128xf32> to vector<16x16x128xf32>
    %c0_115 = arith.constant 0 : index
    %c0_116 = arith.constant 0 : index
    %c0_117 = arith.constant 0 : index
    %c0_118 = arith.constant 0 : index
    %79 = vector.load %arg4[%c0_115, %c0_116, %c0_117, %c0_118] : memref<1x16x16x128xf32, #tpu.memory_space<vmem>>, vector<1x16x16x128xf32>
    %80 = vector.shape_cast %79 : vector<1x16x16x128xf32> to vector<16x16x128xf32>
    %81 = vector.shape_cast %78 : vector<16x16x128xf32> to vector<1x16x16x128xf32>
    tpu.vector_store %arg4[%c0_115, %c0_116, %c0_117, %c0_118], %81 {strides = array<i32>} : memref<1x16x16x128xf32, #tpu.memory_space<vmem>>, vector<1x16x16x128xf32>,
    return
  }
  func.func @transform_0(%arg0: i32) -> (i32, i32, i32, i32) {
    %c0_i32 = arith.constant 0 : i32
    %c0_i32_0 = arith.constant 0 : i32
    %c0_i32_1 = arith.constant 0 : i32
    %c0_i32_2 = arith.constant 0 : i32
    return %arg0, %c0_i32, %c0_i32_0, %c0_i32_1 : i32, i32, i32, i32
  }
  func.func @transform_1(%arg0: i32) -> (i32, i32) {
    %c0_i32 = arith.constant 0 : i32
    %c0_i32_0 = arith.constant 0 : i32
    %c0_i32_1 = arith.constant 0 : i32
    return %c0_i32, %c0_i32_0 : i32, i32
  }
  func.func @transform_2(%arg0: i32) -> (i32, i32) {
    %c0_i32 = arith.constant 0 : i32
    %c0_i32_0 = arith.constant 0 : i32
    %c0_i32_1 = arith.constant 0 : i32
    return %c0_i32, %c0_i32_0 : i32, i32
  }
  func.func @transform_3(%arg0: i32) -> (i32, i32, i32, i32) {
    %c0_i32 = arith.constant 0 : i32
    %c0_i32_0 = arith.constant 0 : i32
    %c0_i32_1 = arith.constant 0 : i32
    %c0_i32_2 = arith.constant 0 : i32
    return %arg0, %c0_i32, %c0_i32_0, %c0_i32_1 : i32, i32, i32, i32
  }
}

</mosaic_0001>

<bundles_post_ra>
// kernel: tpu_custom_call.1
= control target key start
LH: loop header
LB: loop body
LE: loop exit
PB: predicated region body
PF: predicated region fallthrough
CT: control target
= control target key end

     0   :  { %8 = vsyncpa [#allocation5], 0  ;;  %s15240_s0 = inlined_call_operand.hbm [shape: bf16[2,16,16,128], index: 0, kind: input, shape index: {}]   ;;  %s15241_s1 = inlined_call_operand.hbm [shape: bf16[1152,128], index: 1, kind: input, shape index: {}]   ;;  %s15242_s2 = inlined_call_operand.hbm [shape: bf16[1152,128], index: 2, kind: input, shape index: {}]   ;;  %s15243_s3 = inlined_call_operand.hbm [shape: f32[2,16,16,128], index: 3, kind: output, shape index: {}]  }
   0x1   :  { %10 = vsyncpa [#allocation5 + $0x1], 0 }
   0x2   :  { %11 = vsyncpa [#allocation8], 0 }
   0x3   :  { %12 = vsyncpa [#allocation6], 0 }
   0x4   :  { %14 = vsyncpa [#allocation6 + $0x1], 0  ;;  %s12400_s12 = smov 0   ;;  %s12402_s13 = smov 0  }
   0x5   :  { %s12404_s14 = smov 0   ;;  %s12406_s15 = smov 0  }
   0x6 LB: > { %s12421_s16 = sadd.s32 4294967295, %s12369_s15   ;;  %s10247_s17 = sadd.s32 4294967294, %s12369_s15   ;;  %s12369_s15 = sphi %s12406_s15, %s15393_s15   ;;  %s12365_s14 = sphi %s12404_s14, %s15392_s14   ;;  %s12361_s13 = sphi %s12402_s13, %s15391_s13   ;;  %s12357_s12 = sphi %s12400_s12, %s15390_s12  }
   0x7   : > { %p40_p0 = scmp.ne.s32.totalorder %s12361_s13, %s12357_s12  ;;  %p15244_p1 = scmp.eq.s32.totalorder %s12421_s16, 0 }
   0x8   : > { %p112_p3 = scmp.eq.s32.totalorder %s10247_s17, 1  ;;  %p10248_p5 = scmp.ge.s32.totalorder %s12369_s15, 1 }
   0x9   : > { %p12430_p4 = por %p15244_p1, %p40_p0  ;;  %p119_p7 = scmp.lt.s32.totalorder %s12369_s15, 3 }
   0xa   : > { %p12435_p6 = por %p112_p3, %p40_p0  ;;  %s12371_s21 = smov [#allocation7]  }
   0xb   : > { %s15257_s18 = scalar_select %p12430_p4, 1, 0 }
   0xc   : > { %s15258_s19 = scalar_select %p12435_p6, 1, 0 }
   0xd   : > { %p12440_p8 = pnand %p10248_p5, %p119_p7  ;;  %s131_s22 = sshll.u32 %s12371_s21, 4  ;;  %s12444_s22 = int_to_ptr.vmem [resolvable:$true] %s131_s22 }
   0xe   : > { %s12372_s24 = smov [#allocation9]   ;;  %s12213_s28 = scalar_lea.hbm %s15241_s1, 9216 }
   0xf   : > { %p11911_p9 = pneg %p12440_p8  ;;  %s144_s25 = sshll.u32 %s12372_s24, 4  ;;  %s12455_s25 = int_to_ptr.vmem [resolvable:$true] %s144_s25 }
  0x10   : > { %p12214_p12 = scmp.ne.s32.totalorder %s15241_s1, %s12213_s28  ;;  %p12220_p5 = scmp.lt.u32.totalorder %s12213_s28, %s15241_s1 }
  0x11   : > { %p12451_p11 = pnand %p11911_p9, %p15244_p1 }
  0x13   : > { %p12215_p13 = pneg %p12451_p11 }
  0x15   : > { %p12216_p0 = pnand %p12215_p13, %p12214_p12 }
  0x17   : > { %p12217_p3 = pneg %p12216_p0 }
  0x19   : > { %p12222_p7 = pnand %p12220_p5, %p12217_p3 }
  0x1b   : > { %12225 = shalt.err (!%p12222_p7)
}
  0x1c   : > { %s12226_s6 = scalar_lea.vmem %s12444_s22, 9216  ;;  %p12234_p2 = scmp.lt.s32.totalorder %s12444_s22, %s12444_s22 }
  0x1d   : > { %p12227_p9 = scmp.ne.s32.totalorder %s12444_s22, %s12226_s6  ;;  %p12235_p12 = scmp.lt.s32.totalorder %s12226_s6, %s12226_s6 }
  0x1f   : > { %p12229_p10 = pnand %p12227_p9, %p12215_p13  ;;  %p12236_p0 = por %p12235_p12, %p12234_p2 }
  0x21   : > { %p12230_p1 = pneg %p12229_p10 }
  0x23   : > { %p12237_p6 = pnand %p12236_p0, %p12230_p1 }
  0x25   : > { %12240 = shalt.err (!%p12237_p6)
}
  0x26   : > { %s12373_s7 = smov 64   ;;  %s12374_s8 = smov 4  }
  0x27   : > { %11914 = dma.hbm_to_vmem [thread:$0]  (!%p12451_p11), %s15241_s1, 9216, %s12444_s22, [#allocation8], %s12373_s7, %s12373_s7, %s12374_s8  }
  0x28   : > { %s12241_s21 = scalar_lea.hbm %s15242_s2, 9216 }
  0x29   : > { %p12242_p1 = scmp.ne.s32.totalorder %s15242_s2, %s12241_s21  ;;  %p12248_p10 = scmp.lt.u32.totalorder %s12241_s21, %s15242_s2 }
  0x2b   : > { %p12244_p2 = pnand %p12242_p1, %p12215_p13 }
  0x2d   : > { %p12245_p6 = pneg %p12244_p2 }
  0x2f   : > { %p12250_p3 = pnand %p12248_p10, %p12245_p6 }
  0x31   : > { %12253 = shalt.err (!%p12250_p3)
}
  0x32   : > { %s12254_s22 = scalar_lea.vmem %s12455_s25, 9216  ;;  %p12262_p12 = scmp.lt.s32.totalorder %s12455_s25, %s12455_s25 }
  0x33   : > { %p12255_p5 = scmp.ne.s32.totalorder %s12455_s25, %s12254_s22  ;;  %p12263_p0 = scmp.lt.s32.totalorder %s12254_s22, %s12254_s22 }
  0x35   : > { %p12257_p7 = pnand %p12255_p5, %p12215_p13  ;;  %p12264_p1 = por %p12263_p0, %p12262_p12 }
  0x37   : > { %p12258_p9 = pneg %p12257_p7 }
  0x39   : > { %p12265_p2 = pnand %p12264_p1, %p12258_p9 }
  0x3b   : > { %12268 = shalt.err (!%p12265_p2)
}
  0x3c   : > { %11917 = dma.hbm_to_vmem [thread:$0]  (!%p12451_p11), %s15242_s2, 9216, %s12455_s25, [#allocation8], %s12373_s7, %s12373_s7, %s12374_s8  }
  0x3d   : > { %s12516_s23 = sadd.s32 1, %s12369_s15   ;;  %s27_s4 = sadd.s32 1, %s12365_s14 }
  0x3e   : > { %s24_s5 = ssub.s32 %s12369_s15, %s12516_s23  ;;  %p34_p13 = scmp.ne.s32.totalorder %s12365_s14, %s12361_s13 }
  0x3f   : > { %p25_p6 = scmp.eq.s32.totalorder %s24_s5, 0  ;;  %p35_p10 = scmp.eq.s32.totalorder %s12369_s15, 0 }
  0x40   : > { %p15261_p3 = scmp.eq.s32.totalorder %s12421_s16, 1  ;;  %p11928_p7 = scmp.lt.s32.totalorder %s12369_s15, 2 }
  0x41   : > { %s12532_s9 = scalar_select %p25_p6, %s12365_s14, %s27_s4  }
  0x42   : > { %p12526_p5 = por %p15261_p3, %p34_p13  ;;  %p36_p9 = por %p35_p10, %p34_p13 }
  0x43   : > { %s158_s10 = sand.u32 1, %s12365_s14   ;;  %s10825_s25 = sshll.u32 %s12369_s15, 11 }
  0x44   : > { %s15262_s6 = scalar_select %p12526_p5, 1, 0 }
  0x45   : > { %s10252_s11 = sshll.u32 %s158_s10, 7  ;;  %s12539_s24 = scalar_lea.hbm %s15240_s0, %s10825_s25 }
  0x46   : > { %s162_s26 = scalar_lea.vmem [#allocation4], %s10252_s11  ;;  %p12543_p11 = pnand %p11928_p7, %p36_p9 }
  0x47   : > { %s169_s27 = sshll.u32 %s162_s26, 4  ;;  %s12547_s22 = scalar_lea.sflag [#allocation5], %s158_s10  ;;  %s12541_s27 = int_to_ptr.vmem [resolvable:$true] %s169_s27 }
  0x48   : > { %s12269_s29 = scalar_lea.hbm %s12539_s24, 2048  ;;  %p12271_p0 = pneg %p12543_p11 }
  0x49   : > { %p12270_p12 = scmp.ne.s32.totalorder %s12539_s24, %s12269_s29  ;;  %s12274_s5 = scalar_lea.hbm %s15240_s0, 4096 }
  0x4a   : > { %p12275_p13 = scmp.lt.u32.totalorder %s12539_s24, %s15240_s0  ;;  %p12276_p6 = scmp.lt.u32.totalorder %s12274_s5, %s12269_s29 }
  0x4b   : > { %p12272_p1 = pnand %p12271_p0, %p12270_p12  ;;  %p12278_p3 = scmp.lt.u32.totalorder %s12269_s29, %s12539_s24 }
  0x4c   : > { %p12277_p10 = por %p12276_p6, %p12275_p13 }
  0x4d   : > { %p12273_p2 = pneg %p12272_p1 }
  0x4e   : > { %p12279_p7 = por %p12278_p3, %p12277_p10 }
  0x50   : > { %p12280_p9 = pnand %p12279_p7, %p12273_p2 }
  0x52   : > { %12283 = shalt.err (!%p12280_p9)
}
  0x53   : > { %s12284_s10 = scalar_lea.vmem %s12541_s27, 2048  ;;  %s12375_s17 = smov [#allocation4]  }
  0x54   : > { %p12285_p12 = scmp.ne.s32.totalorder %s12541_s27, %s12284_s10  ;;  %s12289_s21 = sshll.u32 %s12375_s17, 4  ;;  %s12290_s21 = int_to_ptr.vmem [resolvable:$false] %s12289_s21 }
  0x55   : > { %s12291_s26 = scalar_lea.vmem %s12290_s21, 4096  ;;  %p12292_p4 = scmp.lt.s32.totalorder %s12541_s27, %s12290_s21 }
  0x56   : > { %p12287_p1 = pnand %p12285_p12, %p12271_p0  ;;  %p12293_p13 = scmp.lt.s32.totalorder %s12291_s26, %s12284_s10 }
  0x58   : > { %p12288_p5 = pneg %p12287_p1  ;;  %p12294_p6 = por %p12293_p13, %p12292_p4 }
  0x5a   : > { %p12295_p10 = pnand %p12294_p6, %p12288_p5 }
  0x5c   : > { %12298 = shalt.err (!%p12295_p10)
}
  0x5d   : > { %11921 = dma.hbm_to_vmem [thread:$0]  (!%p12543_p11), %s12539_s24, 2048, %s12541_s27, %s12547_s22, %s12373_s7, %s12373_s7, %s12374_s8  }
  0x5e   : > { %181 = sbr.rel (%p12440_p8) target bundleno = 1352 (0x548), region = 32 }
  0x65   : > { %s12581_s29 = sand.u32 1, %s12361_s13   ;;  %p15264_p4 = scmp.ne.s32.totalorder %s15257_s18, 0 }
  0x66   : > { %s10256_s30 = sshll.u32 %s12581_s29, 7  ;;  %s184_s4 = scalar_lea.sflag [#allocation5], %s12581_s29 }
  0x67   : > { %s12585_s5 = scalar_lea.vmem [#allocation4], %s10256_s30 }
  0x68   : > { %12344 = dma.done.wait (%p15264_p4), %s184_s4, 2048  }
  0x69   : > { %12346 = vsyncadd (%p15264_p4), %s184_s4, 4294965248  ;;  %p15265_p5 = scmp.eq.s32.totalorder %s12421_s16, 0 }
  0x6b   : > { %12348 = dma.done.wait (%p15265_p5), [#allocation8], 18432   ;;  %p15266_p8 = pmov %p15265_p5 }
  0x6c   : > { %v12376_v0 = vmov 0   ;;  %v11971_v1 = vld [vmem:[#allocation7 + $0x40] sm:$0xff]   ;;  %v11975_v5 = vld [vmem:[#allocation7 + $0x48] sm:$0xff]   ;;  %v11979_v9 = vld [vmem:[#allocation7 + $0x50] sm:$0xff]   ;;  %vm228_vm0 = vsmask.f32 256 }
  0x6d   : > { %12350 = vsyncadd (%p15266_p8), [#allocation8], 4294948864  ;;  %219 = vst [vmem:[#allocation2] sm:$0xf] %v12376_v0  ;;  %v11972_v2 = vld [vmem:[#allocation7 + $0xc0] sm:$0xff]   ;;  %10859 = vmatprep.subr.bf16.mxu0 %v11971_v1  ;;  %v11976_v6 = vld [vmem:[#allocation7 + $0xc8] sm:$0xff]  }
  0x6e   : > { %220 = vst [vmem:[#allocation2 + $0x4] sm:$0xf] %v12376_v0  ;;  %221 = vst [vmem:[#allocation2 + $0x8] sm:$0x1] %v12376_v0  ;;  %v11973_v3 = vld [vmem:[#allocation7] sm:$0xff]   ;;  %10971 = vmatprep.subr.bf16.mxu1 %v11972_v2  ;;  %v11977_v7 = vld [vmem:[#allocation7 + $0x8] sm:$0xff]  }
  0x6f   : > { %223 = vst [vmem:[#allocation2 + $0xcc] sm:$0xf] %v12376_v0  ;;  %224 = vst [vmem:[#allocation2 + $0xd0] sm:$0xf] %v12376_v0  ;;  %v11974_v4 = vld [vmem:[#allocation7 + $0x80] sm:$0xff]   ;;  %10860 = vmatpush3.bf16.msra.mxu0 %v11973_v3  ;;  %v11978_v8 = vld [vmem:[#allocation7 + $0x88] sm:$0xff]  }
  0x70   : > { %225 = vst [vmem:[#allocation2 + $0xd4] sm:$0x1] %v12376_v0  ;;  %10972 = vmatpush3.bf16.msra.mxu1 %v11974_v4  ;;  %10861 = vmatprep.subr.bf16.mxu0 %v11975_v5  ;;  %v11980_v10 = vld [vmem:[#allocation7 + $0xd0] sm:$0xff]   ;;  %v11983_v13 = vld [vmem:[#allocation7 + $0x58] sm:$0xff]   ;;  %v11987_v17 = vld [vmem:[#allocation7 + $0x60] sm:$0xff]   ;;  %vm227_vm1 = vcmask 1040384  }
  0x71   : > { %10973 = vmatprep.subr.bf16.mxu1 %v11976_v6  ;;  %v11981_v11 = vld [vmem:[#allocation7 + $0x10] sm:$0xff]   ;;  %v11984_v14 = vld [vmem:[#allocation7 + $0xd8] sm:$0xff]   ;;  %v11988_v18 = vld [vmem:[#allocation7 + $0xe0] sm:$0xff]   ;;  %vm278_vm2 = vsmask.f32 7938  ;;  %v15267_v25 = vmov 0 }
  0x72   : > { %v11982_v12 = vld [vmem:[#allocation7 + $0x90] sm:$0xff]   ;;  %v11985_v15 = vld [vmem:[#allocation7 + $0x18] sm:$0xff]   ;;  %v11989_v19 = vld [vmem:[#allocation7 + $0x20] sm:$0xff]   ;;  %vm988_vm4 = vsmask.f32 3328  ;;  %vm682_vm7 = vcmask 1043456  }
  0x73   : > { %10862 = vmatpush3.bf16.msra.mxu0 %v11977_v7  ;;  %v11986_v16 = vld [vmem:[#allocation7 + $0x98] sm:$0xff]   ;;  %v11990_v20 = vld [vmem:[#allocation7 + $0xa0] sm:$0xff]   ;;  %v11991_v21 = vld [vmem:[#allocation7 + $0x68] sm:$0xff]   ;;  %vm989_vm5 = vsmask.f32 7440  ;;  %vm1551_vm8 = vcmask 1042432  }
  0x74   : > { %10974 = vmatpush3.bf16.msra.mxu1 %v11978_v8  ;;  %10863 = vmatprep.subr.bf16.mxu0 %v11979_v9  ;;  %v11992_v22 = vld [vmem:[#allocation7 + $0xe8] sm:$0xff]   ;;  %vm12597_vm3 = vmand %vm227_vm1, %vm228_vm0  ;;  %v11995_v26 = vld [vmem:[#allocation7 + $0x70] sm:$0xff]   ;;  %vm360_vm6 = vsmask.f32 4368  ;;  %vm1552_vm9 = vcmask 1046532   ;;  %v15272_v56 = vmov 0 }
  0x75   : > { %10975 = vmatprep.subr.bf16.mxu1 %v11980_v10  ;;  %v11993_v23 = vld [vmem:[#allocation7 + $0x28] sm:$0xff]   ;;  %v15268_v25 = vsel %vm12597_vm3, 4294967295, %v15267_v25  ;;  %v11996_v27 = vld [vmem:[#allocation7 + $0xf0] sm:$0xff]   ;;  %v11999_v30 = vld [vmem:[#allocation7 + $0x78] sm:$0xff]   ;;  %v15275_v62 = vmov 0  ;;  %v15278_v5 = vmov 0 }
  0x76   : > { %v11994_v24 = vld [vmem:[#allocation7 + $0xa8] sm:$0xff]   ;;  %15269 = vst [vmem:[#allocation14_spill] sm:$0xff] %v15268_v25  ;;  %v11997_v28 = vld [vmem:[#allocation7 + $0x30] sm:$0xff]   ;;  %v12000_v31 = vld [vmem:[#allocation7 + $0xf8] sm:$0xff]   ;;  %s10259_s18 = sshll.u32 %s12581_s29, 8  ;;  %s10858_s7 = sshll.u32 %s12421_s16, 12 }
  0x77   : > { %10864 = vmatpush3.bf16.msra.mxu0 %v11981_v11  ;;  %v11998_v29 = vld [vmem:[#allocation7 + $0xb0] sm:$0xff]   ;;  %v12001_v32 = vld [vmem:[#allocation7 + $0x38] sm:$0xff]   ;;  %v940_v34 = vld [vmem:[#allocation2] sm:$0xf]  ;;  %s15127_s20 = scalar_lea.vmem [#allocation10], %s10259_s18  ;;  %s15191_s28 = scalar_lea.hbm %s15243_s3, %s10858_s7 }
  0x78   : > { %10976 = vmatpush3.bf16.msra.mxu1 %v11982_v12  ;;  %10865 = vmatprep.subr.bf16.mxu0 %v11983_v13  ;;  %v12002_v33 = vld [vmem:[#allocation7 + $0xb8] sm:$0xff]   ;;  %v941_v35 = vld [vmem:[#allocation2 + $0x4] sm:$0xf]  ;;  %v942_v36 = vld [vmem:[#allocation2 + $0x8] sm:$0x1]  ;;  %v992_v37 = vshrl.u32 %v940_v34, 16 }
  0x79   : > { %10977 = vmatprep.subr.bf16.mxu1 %v11984_v14  ;;  %v995_v38 = vshll.u32 %v940_v34, 16  ;;  %v1001_v39 = vshll.u32 %v941_v35, 16  ;;  %v1005_v40 = vshrl.u32 %v941_v35, 16  ;;  %v230_v41 = vld [vmem:[#allocation2 + $0xc] sm:$0x1]  ;;  %vm12603_vm10 = vmand %vm227_vm1, %vm278_vm2  ;;  %v1011_v43 = vshll.u32 %v942_v36, 16 }
  0x7a   : > { %v231_v44 = vsel %vm12597_vm3, 0, %v230_v41  ;;  %v280_v45 = vld [vmem:[#allocation2 + $0x14] sm:$0x1]  ;;  %v328_v46 = vld [vmem:[%s12585_s5] sm:$0xf]  ;;  %v994_v47 = vrot.slane %v992_v37, 4  ;;  %vm12615_vm11 = vmor %vm988_vm4, %vm989_vm5 }
  0x7b   : > { %10866 = vmatpush3.bf16.msra.mxu0 %v11985_v15  ;;  %v997_v48 = vrot.slane %v995_v38, 5  ;;  %v1003_v49 = vrot.slane %v1001_v39, 5  ;;  %v1007_v50 = vrot.slane %v1005_v40, 4  ;;  %232 = vst [vmem:[#allocation2 + $0xc] sm:$0x1] %v231_v44  ;;  %v1013_v52 = vrot.slane %v1011_v43, 5  ;;  %vm12621_vm12 = vmor %vm228_vm0, %vm360_vm6 }
  0x7c   : > { %10978 = vmatpush3.bf16.msra.mxu1 %v11986_v16  ;;  %10867 = vmatprep.subr.bf16.mxu0 %v11987_v17  ;;  %v329_v51 = vld [vmem:[%s12585_s5 + $0x4] sm:$0xf]  ;;  %v281_v53 = vsel %vm12603_vm10, 0, %v280_v45  ;;  %v363_v54 = vshrl.u32 %v328_v46, 16  ;;  %v366_v55 = vshll.u32 %v328_v46, 16  ;;  %v15273_v56 = vsel %vm12615_vm11, 4294967295, %v15272_v56  ;;  %vm12627_vm13 = vmand %vm682_vm7, %vm278_vm2 }
  0x7d   : > { %10979 = vmatprep.subr.bf16.mxu1 %v11988_v18  ;;  %15274 = vst [vmem:[#allocation15_spill] sm:$0xff] %v15273_v56  ;;  %v998_v57 = vor.u32 %v997_v48, %v994_v47  ;;  %v1008_v58 = vor.u32 %v1007_v50, %v1003_v49  ;;  %282 = vst [vmem:[#allocation2 + $0x14] sm:$0x1] %v281_v53  ;;  %v371_v59 = vshrl.u32 %v329_v51, 16  ;;  %v374_v60 = vshll.u32 %v329_v51, 16  ;;  %v12005_v61 = vld [vmem:[#allocation7 + $0x140] sm:$0xff]  }
  0x7e   : > { %v15276_v62 = vsel %vm12621_vm12, 4294967295, %v15275_v62  ;;  %v365_v63 = vrot.slane %v363_v54, 7  ;;  %v1455_v0 = vld [vmem:[#allocation2] sm:$0xe]  ;;  %v1456_v1 = vld [vmem:[#allocation2 + $0x4] sm:$0xf]  ;;  %vm12633_vm14 = vmor %vm1551_vm8, %vm1552_vm9 }
  0x7f   : > { %10868 = vmatpush3.bf16.msra.mxu0 %v11989_v19  ;;  %15277 = vst [vmem:[#allocation16_spill] sm:$0xff] %v15276_v62  ;;  %v999_v2 = vrot.slane %v998_v57, 4  ;;  %v1009_v3 = vrot.slane %v1008_v58, 4  ;;  %v373_v4 = vrot.slane %v371_v59, 7  ;;  %v15279_v5 = vsel %vm12627_vm13, 4294967295, %v15278_v5  ;;  %v12004_v10 = vld [vmem:[#allocation2] sm:$0xff]  }
  0x80   : > { %10980 = vmatpush3.bf16.msra.mxu1 %v11990_v20  ;;  %10869 = vmatprep.subr.bf16.mxu0 %v11991_v21  ;;  %15280 = vst [vmem:[#allocation17_spill] sm:$0xff] %v15279_v5  ;;  %v1457_v6 = vld [vmem:[#allocation2 + $0x8] sm:$0x1]  ;;  %v10292_v7 = vrot.slane %v1455_v0, 9  ;;  %v368_v8 = vor.u32 %v366_v55, %v365_v63  ;;  %v369_v9 = vrot.slane %v365_v63, 4  ;;  %v1556_v12 = vrot.slane %v1456_v1, 5 }
  0x81   : > { %10981 = vmatprep.subr.bf16.mxu1 %v11992_v22  ;;  %v1559_v13 = vrot.slane %v1457_v6, 5  ;;  %v1004_v14 = vsel %vm12615_vm11, %v999_v2, %v1003_v49  ;;  %v1014_v15 = vsel %vm12615_vm11, %v1009_v3, %v1013_v52  ;;  %v376_v16 = vor.u32 %v374_v60, %v373_v4  ;;  %v12006_v18 = vld [vmem:[#allocation7 + $0x100] sm:$0xff]   ;;  %v12011_v22 = vld [vmem:[#allocation7 + $0x148] sm:$0xff]   ;;  %v332_v45 = vld [vmem:[%s12585_s5 + $0x10] sm:$0xf]  ;;  %s10155_s8 = sshll.u32 %s15127_s20, 4  ;;  %s15193_s8 = int_to_ptr.vmem [resolvable:$true] %s10155_s8 }
  0x82   : > { %v378_v17 = vrot.slane %v373_v4, 4  ;;  %v10276_v19 = vcombine.low %v1004_v14, %v1014_v15  ;;  %v684_v20 = vld [vmem:[#allocation2 + $0xc] sm:$0xf]  ;;  %v1558_v21 = vrot.slane %v1556_v12, 4  ;;  %v283_v38 = vld [vmem:[#allocation2 + $0x20] sm:$0x1] }
  0x83   : > { %10870 = vmatpush3.bf16.msra.mxu0 %v11993_v23  ;;  %v377_v23 = vsel %vm12621_vm12, %v369_v9, %v376_v16  ;;  %v236_v39 = vld [vmem:[#allocation2 + $0x24] sm:$0x1]  ;;  %v284_v43 = vsel %vm12603_vm10, 0, %v283_v38  ;;  %v333_v47 = vld [vmem:[%s12585_s5 + $0x14] sm:$0xf]  ;;  %v397_v48 = vshrl.u32 %v332_v45, 16 }
  0x84   : > { %10982 = vmatpush3.bf16.msra.mxu1 %v11994_v24  ;;  %10871 = vmatprep.subr.bf16.mxu0 %v11995_v26  ;;  %v685_v24 = vsel %vm12627_vm13, %v368_v8, %v684_v20  ;;  %v233_v26 = vld [vmem:[#allocation2 + $0x18] sm:$0x1]  ;;  %687 = vst [vmem:[#allocation2 + $0x10] sm:$0xf] %v377_v23  ;;  %v1560_v35 = vsel %vm12633_vm14, %v1558_v21, %v1559_v13  ;;  %v237_v44 = vsel %vm12597_vm3, 0, %v236_v39  ;;  %v12017_v49 = vld [vmem:[#allocation7 + $0x150] sm:$0xff]  }
  0x85   : > { %10983 = vmatprep.subr.bf16.mxu1 %v11996_v27  ;;  %v330_v27 = vld [vmem:[%s12585_s5 + $0x8] sm:$0xf]  ;;  %4387 = vmatprep.mubr.bf16.mxu0 %v10276_v19  ;;  %686 = vst [vmem:[#allocation2 + $0xc] sm:$0xf] %v685_v24  ;;  %285 = vst [vmem:[#allocation2 + $0x20] sm:$0x1] %v284_v43 }
  0x86   : > { %v383_v41 = vshll.u32 %v330_v27, 16  ;;  %238 = vst [vmem:[#allocation2 + $0x24] sm:$0x1] %v237_v44  ;;  %v405_v51 = vshrl.u32 %v333_v47, 16  ;;  %v408_v52 = vshll.u32 %v333_v47, 16  ;;  %v399_v55 = vrot.slane %v397_v48, 7 }
  0x87   : > { %10872 = vmatpush3.bf16.msra.mxu0 %v11997_v28  ;;  %v331_v28 = vld [vmem:[%s12585_s5 + $0xc] sm:$0xf]  ;;  %v12018_v57 = vld [vmem:[#allocation7 + $0x110] sm:$0xff]   ;;  %v400_v60 = vshll.u32 %v332_v45, 16  ;;  %v12023_v63 = vld [vmem:[#allocation7 + $0x158] sm:$0xff]   ;;  %s10142_s16 = scalar_lea.sflag [#allocation6], %s12581_s29 }
  0x88   : > { %10984 = vmatpush3.bf16.msra.mxu1 %v11998_v29  ;;  %10873 = vmatprep.subr.bf16.mxu0 %v11999_v30  ;;  %v688_v29 = vld [vmem:[#allocation2 + $0x14] sm:$0x1]  ;;  %v1557_v30 = vsel %vm12633_vm14, %v10292_v7, %v1556_v12  ;;  %v388_v36 = vshrl.u32 %v331_v28, 16  ;;  %v391_v37 = vshll.u32 %v331_v28, 16  ;;  %v403_v2 = vrot.slane %v399_v55, 4  ;;  %v12029_v20 = vld [vmem:[#allocation7 + $0x160] sm:$0xff]  }
  0x89   : > { %10985 = vmatprep.subr.bf16.mxu1 %v12000_v31  ;;  %v234_v31 = vsel %vm12597_vm3, 0, %v233_v26  ;;  %v689_v34 = vsel %vm12597_vm3, %v378_v17, %v688_v29  ;;  %v10308_v53 = vcombine.low %v1557_v30, %v1560_v35  ;;  %v12024_v8 = vld [vmem:[#allocation7 + $0x118] sm:$0xff]   ;;  %v286_v15 = vld [vmem:[#allocation2 + $0x2c] sm:$0x1]  ;;  %s12299_s22 = scalar_lea.vmem %s15193_s8, 4096  ;;  %p15387_p0 = scmp.ne.s32.totalorder %s15262_s6, 0 }
  0x8a   : > { %235 = vst [vmem:[#allocation2 + $0x18] sm:$0x1] %v234_v31  ;;  %690 = vst [vmem:[#allocation2 + $0x14] sm:$0x1] %v689_v34  ;;  %v12660_v46 = vrot.slane %v388_v36, 7  ;;  %v287_v39 = vsel %vm12603_vm10, 0, %v286_v15  ;;  %p12300_p11 = scmp.ne.s32.totalorder %s15193_s8, %s12299_s22 }
  0x8b   : > { %10874 = vmatpush3.bf16.msra.mxu0 %v12001_v32  ;;  %v380_v32 = vshrl.u32 %v330_v27, 16  ;;  %v944_v4 = vld [vmem:[#allocation2 + $0x10] sm:$0xf]  ;;  %288 = vst [vmem:[#allocation2 + $0x2c] sm:$0x1] %v287_v39  ;;  %s12377_s11 = smov [#allocation10]  }
  0x8c   : > { %10986 = vmatpush3.bf16.msra.mxu1 %v12002_v33  ;;  %11083 = vmatprep.subr.bf16.mxu0 %v12005_v61  ;;  %v12012_v33 = vld [vmem:[#allocation7 + $0x108] sm:$0xff]   ;;  %v393_v54 = vor.u32 %v391_v37, %v12660_v46  ;;  %v395_v59 = vrot.slane %v12660_v46, 4  ;;  %v12665_v61 = vrot.slane %v405_v51, 7  ;;  %v12003_v0 = vld [vmem:[#allocation2 + $0xc] sm:$0xff]   ;;  %v1025_v13 = vshll.u32 %v944_v4, 16  ;;  %p12301_p2 = pnand %p12300_p11, %p15387_p0  ;;  %s12303_s25 = sshll.u32 %s12377_s11, 4  ;;  %s12304_s25 = int_to_ptr.vmem [resolvable:$false] %s12303_s25 }
  0x8d   : > { %v382_v40 = vrot.slane %v380_v32, 7  ;;  %v943_v3 = vld [vmem:[#allocation2 + $0xc] sm:$0xf]  ;;  %4548 = vmatprep.mubr.bf16.mxu1 %v12003_v0  ;;  %v1029_v14 = vshrl.u32 %v944_v4, 16  ;;  %v1459_v28 = vld [vmem:[#allocation2 + $0x10] sm:$0xf]  ;;  %p12306_p7 = scmp.lt.s32.totalorder %s15193_s8, %s12304_s25 }
  0x8e   : > { %4388 = vmatmul.mubr.bf16.vlgmr.msra.gmra.mrb[0].mxu0 %v12004_v10  ;;  %v410_v7 = vor.u32 %v408_v52, %v12665_v61  ;;  %v1016_v10 = vshrl.u32 %v943_v3, 16  ;;  %v1019_v12 = vshll.u32 %v943_v3, 16  ;;  %v1027_v23 = vrot.slane %v1025_v13, 5  ;;  %v1458_v26 = vld [vmem:[#allocation2 + $0xc] sm:$0xe]  ;;  %v12035_v46 = vld [vmem:[#allocation7 + $0x168] sm:$0xff]   ;;  %p12302_p3 = pneg %p12301_p2 }
  0x8f   : > { %11084 = vmatpush3.bf16.msra.mxu0 %v12006_v18  ;;  %v386_v50 = vrot.slane %v382_v40, 4  ;;  %v385_v58 = vor.u32 %v383_v41, %v382_v40  ;;  %4549 = vmatmul.mubr.bf16.vlgmr.msra.gmra.mrb[0].mxu1 %v10308_v53  ;;  %v402_v18 = vor.u32 %v400_v60, %v399_v55  ;;  %v1031_v24 = vrot.slane %v1029_v14, 4  ;;  %v695_v35 = vld [vmem:[#allocation2 + $0x20] sm:$0x1]  ;;  %v698_v36 = vld [vmem:[#allocation2 + $0x24] sm:$0xf] }
  0x90   : > { %11085 = vmatprep.subr.bf16.mxu0 %v12011_v22  ;;  %v411_v19 = vsel %vm12621_vm12, %v403_v2, %v410_v7  ;;  %v1018_v21 = vrot.slane %v1016_v10, 4  ;;  %v1021_v22 = vrot.slane %v1019_v12, 5  ;;  %v10293_v30 = vrot.slane %v1458_v26, 9  ;;  %v12030_v40 = vld [vmem:[#allocation7 + $0x120] sm:$0xff]   ;;  %v12008_v47 = vld [vmem:[#allocation2 + $0xc] sm:$0xff]   ;;  %v12036_v55 = vld [vmem:[#allocation7 + $0x128] sm:$0xff]  }
  0x91   : > { %v394_v1 = vsel %vm12621_vm12, %v386_v50, %v393_v54  ;;  %v691_v6 = vld [vmem:[#allocation2 + $0x18] sm:$0xf]  ;;  %v945_v9 = vld [vmem:[#allocation2 + $0x14] sm:$0x1]  ;;  %701 = vst [vmem:[#allocation2 + $0x28] sm:$0xf] %v411_v19  ;;  %v1032_v32 = vor.u32 %v1031_v24, %v1027_v23  ;;  %v696_v37 = vsel %vm12597_vm3, %v395_v59, %v695_v35  ;;  %v699_v38 = vsel %vm12627_vm13, %v402_v18, %v698_v36 }
  0x92   : > { %694 = vst [vmem:[#allocation2 + $0x1c] sm:$0xf] %v394_v1  ;;  %v1035_v16 = vshll.u32 %v945_v9, 16  ;;  %v692_v17 = vsel %vm12627_vm13, %v385_v58, %v691_v6  ;;  %v1460_v29 = vld [vmem:[#allocation2 + $0x14] sm:$0x1]  ;;  %v1022_v31 = vor.u32 %v1021_v22, %v1018_v21  ;;  %v412_v3 = vrot.slane %v12665_v61, 4 }
  0x93   : > { %11086 = vmatpush3.bf16.msra.mxu0 %v12012_v33  ;;  %693 = vst [vmem:[#allocation2 + $0x18] sm:$0xf] %v692_v17  ;;  %v1563_v33 = vrot.slane %v1459_v28, 5  ;;  %v1566_v34 = vrot.slane %v1460_v29, 5  ;;  %v1033_v43 = vrot.slane %v1032_v32, 4  ;;  %s12305_s10 = scalar_lea.vmem %s12304_s25, 8192 }
  0x94   : > { %11087 = vmatprep.subr.bf16.mxu0 %v12017_v49  ;;  %v1037_v27 = vrot.slane %v1035_v16, 5  ;;  %v1023_v41 = vrot.slane %v1022_v31, 4  ;;  %697 = vst [vmem:[#allocation2 + $0x20] sm:$0x1] %v696_v37  ;;  %700 = vst [vmem:[#allocation2 + $0x24] sm:$0xf] %v699_v38  ;;  %p12307_p9 = scmp.lt.s32.totalorder %s12305_s10, %s12299_s22 }
  0x95   : > { %v1564_v44 = vsel %vm12633_vm14, %v10293_v30, %v1563_v33  ;;  %v1565_v45 = vrot.slane %v1563_v33, 4  ;;  %v239_v54 = vld [vmem:[#allocation2 + $0x30] sm:$0x1]  ;;  %v702_v22 = vld [vmem:[#allocation2 + $0x2c] sm:$0x1] }
  0x96   : > { %v1028_v49 = vsel %vm12615_vm11, %v1023_v41, %v1027_v23  ;;  %v1038_v50 = vsel %vm12615_vm11, %v1033_v43, %v1037_v27  ;;  %v240_v13 = vsel %vm12597_vm3, 0, %v239_v54  ;;  %v334_v14 = vld [vmem:[%s12585_s5 + $0x18] sm:$0xf]  ;;  %v703_v27 = vsel %vm12597_vm3, %v412_v3, %v702_v22  ;;  %v335_v30 = vld [vmem:[%s12585_s5 + $0x1c] sm:$0xf]  ;;  %p12308_p12 = por %p12307_p9, %p12306_p7 }
  0x97   : > { %11088 = vmatpush3.bf16.msra.mxu0 %v12018_v57  ;;  %v1567_v51 = vsel %vm12633_vm14, %v1565_v45, %v1566_v34  ;;  %v10277_v57 = vcombine.low %v1028_v49, %v1038_v50  ;;  %241 = vst [vmem:[#allocation2 + $0x30] sm:$0x1] %v240_v13  ;;  %704 = vst [vmem:[#allocation2 + $0x2c] sm:$0x1] %v703_v27  ;;  %v414_v39 = vshrl.u32 %v334_v14, 16 }
  0x98   : > { %11089 = vmatprep.subr.bf16.mxu0 %v12023_v63  ;;  %v10309_v59 = vcombine.low %v1564_v44, %v1567_v51  ;;  %v950_v12 = vld [vmem:[#allocation2 + $0x28] sm:$0xf]  ;;  %v242_v54 = vld [vmem:[#allocation2 + $0x3c] sm:$0x1]  ;;  %p12309_p1 = pnand %p12308_p12, %p12302_p3 }
  0x99   : > { %v947_v48 = vld [vmem:[#allocation2 + $0x1c] sm:$0xf]  ;;  %4395 = vmatprep.mubr.bf16.mxu0 %v10277_v57  ;;  %v1073_v23 = vshll.u32 %v950_v12, 16  ;;  %v1077_v29 = vshrl.u32 %v950_v12, 16  ;;  %v422_v57 = vshrl.u32 %v335_v30, 16 }
  0x9a   : > { %v1049_v52 = vshll.u32 %v947_v48, 16  ;;  %v1462_v53 = vld [vmem:[#allocation2 + $0x1c] sm:$0xf]  ;;  %v946_v60 = vld [vmem:[#allocation2 + $0x18] sm:$0xf]  ;;  %v1053_v63 = vshrl.u32 %v947_v48, 16  ;;  %4396 = vmatmul.mubr.bf16.gmra.mrb[4].mxu0 %v12008_v47 }
  0x9b   : > { %11090 = vmatpush3.bf16.msra.mxu0 %v12024_v8  ;;  %v12007_v58 = vld [vmem:[#allocation2 + $0x18] sm:$0xff]   ;;  %v1040_v0 = vshrl.u32 %v946_v60, 16  ;;  %v1043_v1 = vshll.u32 %v946_v60, 16  ;;  %v1570_v7 = vrot.slane %v1462_v53, 5  ;;  %v948_v15 = vld [vmem:[#allocation2 + $0x20] sm:$0x1] }
  0x9c   : > { %11091 = vmatprep.subr.bf16.mxu0 %v12029_v20  ;;  %v1051_v2 = vrot.slane %v1049_v52, 5  ;;  %4556 = vmatprep.mubr.bf16.mxu1 %v12007_v58  ;;  %v1055_v4 = vrot.slane %v1053_v63, 4  ;;  %v1461_v6 = vld [vmem:[#allocation2 + $0x18] sm:$0xe]  ;;  %v12009_v17 = vld [vmem:[#allocation2 + $0x24] sm:$0xff]   ;;  %v1059_v19 = vshll.u32 %v948_v15, 16 }
  0x9d   : > { %4557 = vmatmul.mubr.bf16.gmra.mrb[4].mxu1 %v10309_v59  ;;  %v1042_v8 = vrot.slane %v1040_v0, 4  ;;  %v1045_v9 = vrot.slane %v1043_v1, 5  ;;  %v10294_v10 = vrot.slane %v1461_v6, 9  ;;  %v1572_v61 = vrot.slane %v1570_v7, 4  ;;  %v1463_v20 = vld [vmem:[#allocation2 + $0x20] sm:$0x1] }
  0x9e   : > { %v1056_v16 = vor.u32 %v1055_v4, %v1051_v2  ;;  %4564 = vmatprep.mubr.bf16.mxu1 %v12009_v17  ;;  %v1573_v26 = vrot.slane %v1463_v20, 5  ;;  %v949_v28 = vld [vmem:[#allocation2 + $0x24] sm:$0xf]  ;;  %v1061_v32 = vrot.slane %v1059_v19, 5  ;;  %v12010_v33 = vld [vmem:[#allocation2 + $0x18] sm:$0xff]   ;;  %v12699_v37 = vrot.slane %v1073_v23, 5 }
  0x9f   : > { %11092 = vmatpush3.bf16.msra.mxu0 %v12030_v40  ;;  %v1046_v18 = vor.u32 %v1045_v9, %v1042_v8  ;;  %v1571_v21 = vsel %vm12633_vm14, %v10294_v10, %v1570_v7  ;;  %v1064_v34 = vshrl.u32 %v949_v28, 16  ;;  %v1067_v35 = vshll.u32 %v949_v28, 16  ;;  %v12041_v40 = vld [vmem:[#allocation7 + $0x170] sm:$0xff]   ;;  %v289_v53 = vld [vmem:[#allocation2 + $0x38] sm:$0x1] }
  0xa0   : > { %11093 = vmatprep.subr.bf16.mxu0 %v12035_v46  ;;  %v1057_v24 = vrot.slane %v1056_v16, 4  ;;  %v1574_v36 = vsel %vm12633_vm14, %v1572_v61, %v1573_v26  ;;  %v1079_v38 = vrot.slane %v1077_v29, 4  ;;  %v12705_v46 = vld [vmem:[#allocation2 + $0x24] sm:$0xe]  ;;  %v12707_v47 = vld [vmem:[#allocation2 + $0x28] sm:$0xf] }
  0xa1   : > { %v1047_v31 = vrot.slane %v1046_v18, 4  ;;  %v10310_v44 = vcombine.low %v1571_v21, %v1574_v36  ;;  %v1066_v45 = vrot.slane %v1064_v34, 4  ;;  %v12042_v48 = vld [vmem:[#allocation7 + $0x130] sm:$0xff]   ;;  %v1069_v50 = vrot.slane %v1067_v35, 5  ;;  %v705_v59 = vld [vmem:[#allocation2 + $0x30] sm:$0xf] }
  0xa2   : > { %v1062_v43 = vsel %vm12615_vm11, %v1057_v24, %v1061_v32  ;;  %v1080_v51 = vor.u32 %v1079_v38, %v12699_v37  ;;  %v416_v52 = vrot.slane %v414_v39, 7  ;;  %v425_v58 = vshll.u32 %v335_v30, 16  ;;  %v336_v63 = vld [vmem:[%s12585_s5 + $0x20] sm:$0xf]  ;;  %v337_v4 = vld [vmem:[%s12585_s5 + $0x24] sm:$0xf] }
  0xa3   : > { %11094 = vmatpush3.bf16.msra.mxu0 %v12036_v55  ;;  %v1052_v41 = vsel %vm12615_vm11, %v1047_v31, %v1051_v2  ;;  %v417_v55 = vshll.u32 %v334_v14, 16  ;;  %v10295_v60 = vrot.slane %v12705_v46, 9  ;;  %v1070_v0 = vor.u32 %v1069_v50, %v1066_v45  ;;  %v12043_v6 = vld [vmem:[#allocation7 + $0x1c0] sm:$0xff]   ;;  %v951_v13 = vld [vmem:[#allocation2 + $0x2c] sm:$0x1]  ;;  %v12045_v24 = vld [vmem:[#allocation7 + $0x1c8] sm:$0xff]  }
  0xa4   : > { %v10278_v49 = vcombine.low %v1052_v41, %v1062_v43  ;;  %11095 = vmatprep.subr.bf16.mxu0 %v12041_v40  ;;  %v1081_v1 = vrot.slane %v1080_v51, 4  ;;  %v420_v2 = vrot.slane %v416_v52, 4  ;;  %v1577_v3 = vrot.slane %v12707_v47, 5  ;;  %v12044_v12 = vld [vmem:[#allocation7 + $0x180] sm:$0xff]   ;;  %v1466_v15 = vld [vmem:[#allocation2 + $0x2c] sm:$0x1]  ;;  %11195 = vmatprep.subr.bf16.mxu1 %v12043_v6 }
  0xa5   : > { %4565 = vmatmul.mubr.bf16.gmra.mrb[8].mxu1 %v10310_v44  ;;  %v419_v7 = vor.u32 %v417_v55, %v416_v52  ;;  %v424_v8 = vrot.slane %v422_v57, 7  ;;  %v290_v9 = vsel %vm12603_vm10, 0, %v289_v53  ;;  %v243_v10 = vsel %vm12597_vm3, 0, %v242_v54  ;;  %v292_v30 = vld [vmem:[#allocation2 + $0x44] sm:$0x1] }
  0xa6   : > { %4403 = vmatprep.mubr.bf16.mxu0 %v10278_v49  ;;  %v1071_v14 = vrot.slane %v1070_v0, 4  ;;  %v1579_v16 = vrot.slane %v1577_v3, 4  ;;  %291 = vst [vmem:[#allocation2 + $0x38] sm:$0x1] %v290_v9  ;;  %244 = vst [vmem:[#allocation2 + $0x3c] sm:$0x1] %v243_v10  ;;  %11196 = vmatpush3.bf16.msra.mxu1 %v12044_v12  ;;  %v1578_v46 = vsel %vm12633_vm14, %v10295_v60, %v1577_v3 }
  0xa7   : > { %11096 = vmatpush3.bf16.msra.mxu0 %v12042_v48  ;;  %v1083_v17 = vshll.u32 %v951_v13, 16  ;;  %v427_v61 = vor.u32 %v425_v58, %v424_v8  ;;  %v429_v18 = vrot.slane %v424_v8, 4  ;;  %v706_v19 = vsel %vm12627_vm13, %v419_v7, %v705_v59  ;;  %v12047_v31 = vld [vmem:[#allocation7 + $0x188] sm:$0xff]   ;;  %v245_v34 = vld [vmem:[#allocation2 + $0x48] sm:$0x1]  ;;  %11197 = vmatprep.subr.bf16.mxu1 %v12045_v24 }
  0xa8   : > { %4404 = vmatmul.mubr.bf16.gmra.mrb[8].mxu0 %v12010_v33  ;;  %v1076_v20 = vsel %vm12615_vm11, %v1071_v14, %v12699_v37  ;;  %707 = vst [vmem:[#allocation2 + $0x30] sm:$0xf] %v706_v19  ;;  %v1580_v21 = vrot.slane %v1466_v15, 5  ;;  %v431_v22 = vshrl.u32 %v336_v63, 16  ;;  %v434_v23 = vshll.u32 %v336_v63, 16  ;;  %v12014_v37 = vld [vmem:[#allocation2 + $0x24] sm:$0xff]  }
  0xa9   : > { %v1085_v26 = vrot.slane %v1083_v17, 5  ;;  %v428_v27 = vsel %vm12621_vm12, %v420_v2, %v427_v61  ;;  %v439_v28 = vshrl.u32 %v337_v4, 16  ;;  %v442_v29 = vshll.u32 %v337_v4, 16  ;;  %v338_v35 = vld [vmem:[%s12585_s5 + $0x28] sm:$0xf] }
  0xaa   : > { %708 = vst [vmem:[#allocation2 + $0x34] sm:$0xf] %v428_v27  ;;  %v433_v32 = vrot.slane %v431_v22, 7  ;;  %v293_v33 = vsel %vm12603_vm10, 0, %v292_v30  ;;  %v246_v39 = vsel %vm12597_vm3, 0, %v245_v34  ;;  %11198 = vmatpush3.bf16.msra.mxu1 %v12047_v31  ;;  %v448_v45 = vshrl.u32 %v338_v35, 16 }
  0xab   : > { %v1086_v36 = vsel %vm12615_vm11, %v1081_v1, %v1085_v26  ;;  %v441_v38 = vrot.slane %v439_v28, 7  ;;  %294 = vst [vmem:[#allocation2 + $0x44] sm:$0x1] %v293_v33  ;;  %v12733_v40 = vld [vmem:[%s12585_s5 + $0x2c] sm:$0xf]  ;;  %v1581_v47 = vsel %vm12633_vm14, %v1579_v16, %v1580_v21  ;;  %v451_v51 = vshll.u32 %v338_v35, 16 }
  0xac   : > { %v10279_v41 = vcombine.low %v1076_v20, %v1086_v36  ;;  %v436_v43 = vor.u32 %v434_v23, %v433_v32  ;;  %v437_v44 = vrot.slane %v433_v32, 4  ;;  %247 = vst [vmem:[#allocation2 + $0x48] sm:$0x1] %v246_v39  ;;  %v12743_v54 = vrot.slane %v448_v45, 7  ;;  %v12049_v1 = vld [vmem:[#allocation7 + $0x1d0] sm:$0xff]  }
  0xad   : > { %v709_v48 = vld [vmem:[#allocation2 + $0x38] sm:$0x1]  ;;  %v444_v49 = vor.u32 %v442_v29, %v441_v38  ;;  %v712_v50 = vld [vmem:[#allocation2 + $0x3c] sm:$0xf]  ;;  %v456_v55 = vshrl.u32 %v12733_v40, 16  ;;  %v10311_v59 = vcombine.low %v1578_v46, %v1581_v47  ;;  %v446_v4 = vrot.slane %v441_v38, 4  ;;  %11199 = vmatprep.subr.bf16.mxu1 %v12049_v1 }
  0xae   : > { %4411 = vmatprep.mubr.bf16.mxu0 %v10279_v41  ;;  %v710_v52 = vsel %vm12597_vm3, %v429_v18, %v709_v48  ;;  %v713_v53 = vsel %vm12627_vm13, %v436_v43, %v712_v50  ;;  %v453_v6 = vor.u32 %v451_v51, %v12743_v54  ;;  %v12050_v20 = vld [vmem:[#allocation7 + $0x190] sm:$0xff]   ;;  %v454_v22 = vrot.slane %v12743_v54, 4  ;;  %v295_v51 = vld [vmem:[#allocation2 + $0x50] sm:$0x1] }
  0xaf   : > { %711 = vst [vmem:[#allocation2 + $0x38] sm:$0x1] %v710_v52  ;;  %v952_v57 = vld [vmem:[#allocation2 + $0x30] sm:$0xf]  ;;  %v445_v58 = vsel %vm12621_vm12, %v437_v44, %v444_v49  ;;  %714 = vst [vmem:[#allocation2 + $0x3c] sm:$0xf] %v713_v53  ;;  %11200 = vmatpush3.bf16.msra.mxu1 %v12050_v20 }
  0xb0   : > { %4412 = vmatmul.mubr.bf16.gmra.mrb[12].mxu0 %v12014_v37  ;;  %v1088_v60 = vshrl.u32 %v952_v57, 16  ;;  %v1091_v63 = vshll.u32 %v952_v57, 16  ;;  %715 = vst [vmem:[#allocation2 + $0x40] sm:$0xf] %v445_v58  ;;  %v1467_v0 = vld [vmem:[#allocation2 + $0x30] sm:$0xe] }
  0xb1   : > { %v12013_v2 = vld [vmem:[#allocation2 + $0x30] sm:$0xff]   ;;  %v10296_v13 = vrot.slane %v1467_v0, 9  ;;  %v12749_v15 = vrot.slane %v456_v55, 7  ;;  %v459_v23 = vshll.u32 %v12733_v40, 16 }
  0xb2   : > { %v953_v3 = vld [vmem:[#allocation2 + $0x34] sm:$0xf]  ;;  %v1090_v7 = vrot.slane %v1088_v60, 4  ;;  %v1093_v8 = vrot.slane %v1091_v63, 5  ;;  %4572 = vmatprep.mubr.bf16.mxu1 %v12013_v2  ;;  %v716_v14 = vld [vmem:[#allocation2 + $0x44] sm:$0x1] }
  0xb3   : > { %v1097_v9 = vshll.u32 %v953_v3, 16  ;;  %v1101_v10 = vshrl.u32 %v953_v3, 16  ;;  %v1468_v12 = vld [vmem:[#allocation2 + $0x34] sm:$0xf]  ;;  %4573 = vmatmul.mubr.bf16.gmra.mrb[12].mxu1 %v10311_v59  ;;  %v719_v19 = vld [vmem:[#allocation2 + $0x48] sm:$0xf]  ;;  %v717_v21 = vsel %vm12597_vm3, %v446_v4, %v716_v14  ;;  %v461_v33 = vor.u32 %v459_v23, %v12749_v15 }
  0xb4   : > { %v1094_v16 = vor.u32 %v1093_v8, %v1090_v7  ;;  %v1584_v18 = vrot.slane %v1468_v12, 5  ;;  %v720_v24 = vsel %vm12627_vm13, %v453_v6, %v719_v19  ;;  %718 = vst [vmem:[#allocation2 + $0x44] sm:$0x1] %v717_v21  ;;  %v12016_v41 = vld [vmem:[#allocation2 + $0x30] sm:$0xff]   ;;  %v463_v49 = vrot.slane %v12749_v15, 4 }
  0xb5   : > { %v1099_v17 = vrot.slane %v1097_v9, 5  ;;  %v1103_v61 = vrot.slane %v1101_v10, 4  ;;  %721 = vst [vmem:[#allocation2 + $0x48] sm:$0xf] %v720_v24  ;;  %v462_v48 = vsel %vm12621_vm12, %v454_v22, %v461_v33  ;;  %v248_v0 = vld [vmem:[#allocation2 + $0x54] sm:$0x1] }
  0xb6   : > { %v954_v26 = vld [vmem:[#allocation2 + $0x38] sm:$0x1]  ;;  %v1095_v27 = vrot.slane %v1094_v16, 4  ;;  %v1586_v29 = vrot.slane %v1584_v18, 4  ;;  %v1585_v36 = vsel %vm12633_vm14, %v10296_v13, %v1584_v18  ;;  %v955_v38 = vld [vmem:[#allocation2 + $0x3c] sm:$0xf] }
  0xb7   : > { %v1104_v28 = vor.u32 %v1103_v61, %v1099_v17  ;;  %v1107_v30 = vshll.u32 %v954_v26, 16  ;;  %v12015_v31 = vld [vmem:[#allocation2 + $0x3c] sm:$0xff]   ;;  %v1469_v32 = vld [vmem:[#allocation2 + $0x38] sm:$0x1]  ;;  %v1112_v43 = vshrl.u32 %v955_v38, 16  ;;  %v1115_v44 = vshll.u32 %v955_v38, 16 }
  0xb8   : > { %v1100_v34 = vsel %vm12615_vm11, %v1095_v27, %v1099_v17  ;;  %v1587_v37 = vrot.slane %v1469_v32, 5  ;;  %v956_v39 = vld [vmem:[#allocation2 + $0x40] sm:$0xf]  ;;  %4580 = vmatprep.mubr.bf16.mxu1 %v12015_v31  ;;  %v1470_v50 = vld [vmem:[#allocation2 + $0x3c] sm:$0xe]  ;;  %v12051_v1 = vld [vmem:[#allocation7 + $0x1d8] sm:$0xff]  }
  0xb9   : > { %v1105_v35 = vrot.slane %v1104_v28, 4  ;;  %v1109_v40 = vrot.slane %v1107_v30, 5  ;;  %v1121_v45 = vshll.u32 %v956_v39, 16  ;;  %v1125_v47 = vshrl.u32 %v956_v39, 16  ;;  %722 = vst [vmem:[#allocation2 + $0x4c] sm:$0xf] %v462_v48  ;;  %11201 = vmatprep.subr.bf16.mxu1 %v12051_v1 }
  0xba   : > { %v1588_v46 = vsel %vm12633_vm14, %v1586_v29, %v1587_v37  ;;  %v1114_v54 = vrot.slane %v1112_v43, 4  ;;  %v1117_v55 = vrot.slane %v1115_v44, 5  ;;  %v1471_v57 = vld [vmem:[#allocation2 + $0x40] sm:$0xf]  ;;  %v10297_v63 = vrot.slane %v1470_v50, 9  ;;  %v12053_v13 = vld [vmem:[#allocation7 + $0x198] sm:$0xff]  }
  0xbb   : > { %v1110_v52 = vsel %vm12615_vm11, %v1105_v35, %v1109_v40  ;;  %v10312_v53 = vcombine.low %v1585_v36, %v1588_v46  ;;  %v1123_v59 = vrot.slane %v1121_v45, 5  ;;  %v1127_v60 = vrot.slane %v1125_v47, 4  ;;  %v957_v2 = vld [vmem:[#allocation2 + $0x44] sm:$0x1]  ;;  %v340_v6 = vld [vmem:[%s12585_s5 + $0x30] sm:$0xf]  ;;  %11202 = vmatpush3.bf16.msra.mxu1 %v12053_v13 }
  0xbc   : > { %v10280_v58 = vcombine.low %v1100_v34, %v1110_v52  ;;  %v1118_v3 = vor.u32 %v1117_v55, %v1114_v54  ;;  %v1472_v4 = vld [vmem:[#allocation2 + $0x44] sm:$0x1]  ;;  %v1131_v8 = vshll.u32 %v957_v2, 16  ;;  %v1591_v9 = vrot.slane %v1471_v57, 5  ;;  %v958_v12 = vld [vmem:[#allocation2 + $0x48] sm:$0xf] }
  0xbd   : > { %4581 = vmatmul.mubr.bf16.gmra.mrb[16].mxu1 %v10312_v53  ;;  %v1128_v7 = vor.u32 %v1127_v60, %v1123_v59  ;;  %v1594_v10 = vrot.slane %v1472_v4, 5  ;;  %v296_v16 = vsel %vm12603_vm10, 0, %v295_v51  ;;  %v1136_v17 = vshrl.u32 %v958_v12, 16  ;;  %v12055_v22 = vld [vmem:[#allocation7 + $0x178] sm:$0xff]   ;;  %v341_v28 = vld [vmem:[%s12585_s5 + $0x34] sm:$0xf] }
  0xbe   : > { %4419 = vmatprep.mubr.bf16.mxu0 %v10280_v58  ;;  %v1119_v14 = vrot.slane %v1118_v3, 4  ;;  %v1139_v61 = vshll.u32 %v958_v12, 16  ;;  %v1133_v19 = vrot.slane %v1131_v8, 5  ;;  %v1592_v20 = vsel %vm12633_vm14, %v10297_v63, %v1591_v9  ;;  %297 = vst [vmem:[#allocation2 + $0x50] sm:$0x1] %v296_v16  ;;  %v12056_v29 = vld [vmem:[#allocation7 + $0x138] sm:$0xff]   ;;  %11097 = vmatprep.subr.bf16.mxu0 %v12055_v22 }
  0xbf   : > { %4420 = vmatmul.mubr.bf16.gmra.mrb[16].mxu0 %v12016_v41  ;;  %v1129_v18 = vrot.slane %v1128_v7, 4  ;;  %v1593_v21 = vrot.slane %v1591_v9, 4  ;;  %v1138_v24 = vrot.slane %v1136_v17, 4  ;;  %v249_v27 = vsel %vm12597_vm3, 0, %v248_v0  ;;  %v298_v35 = vld [vmem:[#allocation2 + $0x5c] sm:$0x1] }
  0xc0   : > { %v1124_v23 = vsel %vm12615_vm11, %v1119_v14, %v1123_v59  ;;  %v1141_v26 = vrot.slane %v1139_v61, 5  ;;  %v12019_v31 = vld [vmem:[#allocation2 + $0x48] sm:$0xff]   ;;  %250 = vst [vmem:[#allocation2 + $0x54] sm:$0x1] %v249_v27  ;;  %v465_v34 = vshrl.u32 %v340_v6, 16  ;;  %v12020_v37 = vld [vmem:[#allocation2 + $0x3c] sm:$0xff]   ;;  %11098 = vmatpush3.bf16.msra.mxu0 %v12056_v29 }
  0xc1   : > { %v1134_v30 = vsel %vm12615_vm11, %v1129_v18, %v1133_v19  ;;  %v1595_v32 = vsel %vm12633_vm14, %v1593_v21, %v1594_v10  ;;  %v959_v33 = vld [vmem:[#allocation2 + $0x4c] sm:$0xf]  ;;  %v12783_v41 = vld [vmem:[#allocation2 + $0x48] sm:$0xe]  ;;  %v251_v43 = vld [vmem:[#allocation2 + $0x60] sm:$0x1]  ;;  %4588 = vmatprep.mubr.bf16.mxu1 %v12019_v31 }
  0xc2   : > { %v10281_v36 = vcombine.low %v1124_v23, %v1134_v30  ;;  %v10313_v38 = vcombine.low %v1592_v20, %v1595_v32  ;;  %v1142_v39 = vor.u32 %v1141_v26, %v1138_v24  ;;  %v1145_v40 = vshll.u32 %v959_v33, 16  ;;  %v12785_v48 = vld [vmem:[#allocation2 + $0x4c] sm:$0xf]  ;;  %v342_v52 = vld [vmem:[%s12585_s5 + $0x38] sm:$0xf]  ;;  %v12057_v60 = vld [vmem:[#allocation7 + $0x1e0] sm:$0xff]  }
  0xc3   : > { %v1149_v44 = vshrl.u32 %v959_v33, 16  ;;  %v467_v45 = vrot.slane %v465_v34, 7  ;;  %v468_v46 = vshll.u32 %v340_v6, 16  ;;  %v473_v47 = vshrl.u32 %v341_v28, 16  ;;  %v343_v53 = vld [vmem:[%s12585_s5 + $0x3c] sm:$0xf]  ;;  %11203 = vmatprep.subr.bf16.mxu1 %v12057_v60 }
  0xc4   : > { %4427 = vmatprep.mubr.bf16.mxu0 %v10281_v36  ;;  %v12787_v50 = vrot.slane %v1145_v40, 5  ;;  %v476_v51 = vshll.u32 %v341_v28, 16  ;;  %v301_v59 = vld [vmem:[#allocation2 + $0x68] sm:$0x1]  ;;  %v12795_v0 = vrot.slane %v1142_v39, 4  ;;  %v299_v1 = vsel %vm12603_vm10, 0, %v298_v35 }
  0xc5   : > { %4589 = vmatmul.mubr.bf16.gmra.mrb[20].mxu1 %v10313_v38  ;;  %v12791_v54 = vrot.slane %v1149_v44, 4  ;;  %v470_v55 = vor.u32 %v468_v46, %v467_v45  ;;  %v471_v57 = vrot.slane %v467_v45, 4  ;;  %v12793_v58 = vrot.slane %v473_v47, 7  ;;  %v723_v63 = vld [vmem:[#allocation2 + $0x50] sm:$0x1]  ;;  %v12058_v3 = vld [vmem:[#allocation7 + $0x1a0] sm:$0xff]  }
  0xc6   : > { %v252_v2 = vsel %vm12597_vm3, 0, %v251_v43  ;;  %v724_v4 = vsel %vm12597_vm3, %v463_v49, %v723_v63  ;;  %v10298_v7 = vrot.slane %v12783_v41, 9  ;;  %300 = vst [vmem:[#allocation2 + $0x5c] sm:$0x1] %v299_v1  ;;  %v254_v8 = vld [vmem:[#allocation2 + $0x6c] sm:$0x1]  ;;  %11204 = vmatpush3.bf16.msra.mxu1 %v12058_v3  ;;  %v1148_v60 = vsel %vm12615_vm11, %v12795_v0, %v12787_v50 }
  0xc7   : > { %4428 = vmatmul.mubr.bf16.gmra.mrb[20].mxu0 %v12020_v37  ;;  %v478_v6 = vor.u32 %v476_v51, %v12793_v58  ;;  %253 = vst [vmem:[#allocation2 + $0x60] sm:$0x1] %v252_v2  ;;  %v12808_v9 = vld [vmem:[%s12585_s5 + $0x40] sm:$0xf]  ;;  %v12059_v10 = vld [vmem:[#allocation7 + $0x1e8] sm:$0xff]   ;;  %v1598_v13 = vrot.slane %v12785_v48, 5  ;;  %v1152_v16 = vor.u32 %v12791_v54, %v12787_v50 }
  0xc8   : > { %725 = vst [vmem:[#allocation2 + $0x50] sm:$0x1] %v724_v4  ;;  %v726_v12 = vld [vmem:[#allocation2 + $0x54] sm:$0xf]  ;;  %v482_v15 = vshrl.u32 %v342_v52, 16  ;;  %v485_v14 = vshll.u32 %v342_v52, 16  ;;  %11205 = vmatprep.subr.bf16.mxu1 %v12059_v10 }
  0xc9   : > { %v12061_v49 = vld [vmem:[#allocation7 + $0x1a8] sm:$0xff]   ;;  %v479_v17 = vsel %vm12621_vm12, %v471_v57, %v478_v6  ;;  %v727_v61 = vsel %vm12627_vm13, %v470_v55, %v726_v12  ;;  %v490_v18 = vshrl.u32 %v343_v53, 16  ;;  %v345_v19 = vld [vmem:[%s12585_s5 + $0x44] sm:$0xf]  ;;  %v493_v21 = vshll.u32 %v343_v53, 16  ;;  %v12063_v38 = vld [vmem:[#allocation7 + $0x1f0] sm:$0xff]  }
  0xca   : > { %728 = vst [vmem:[#allocation2 + $0x54] sm:$0xf] %v727_v61  ;;  %729 = vst [vmem:[#allocation2 + $0x58] sm:$0xf] %v479_v17  ;;  %v484_v20 = vrot.slane %v482_v15, 7  ;;  %v302_v22 = vsel %vm12603_vm10, 0, %v301_v59  ;;  %11206 = vmatpush3.bf16.msra.mxu1 %v12061_v49  ;;  %v1599_v39 = vsel %vm12633_vm14, %v10298_v7, %v1598_v13 }
  0xcb   : > { %v255_v23 = vsel %vm12597_vm3, 0, %v254_v8  ;;  %v480_v24 = vrot.slane %v12793_v58, 4  ;;  %v12823_v26 = vrot.slane %v490_v18, 7  ;;  %303 = vst [vmem:[#allocation2 + $0x68] sm:$0x1] %v302_v22  ;;  %v499_v27 = vshrl.u32 %v12808_v9, 16  ;;  %11207 = vmatprep.subr.bf16.mxu1 %v12063_v38 }
  0xcc   : > { %256 = vst [vmem:[#allocation2 + $0x6c] sm:$0x1] %v255_v23  ;;  %v507_v28 = vshrl.u32 %v345_v19, 16  ;;  %v487_v29 = vor.u32 %v485_v14, %v484_v20  ;;  %v488_v30 = vrot.slane %v484_v20, 4  ;;  %v510_v31 = vshll.u32 %v345_v19, 16  ;;  %v12064_v59 = vld [vmem:[#allocation7 + $0x1b0] sm:$0xff]  }
  0xcd   : > { %v304_v32 = vld [vmem:[#allocation2 + $0x74] sm:$0x1]  ;;  %v1600_v33 = vrot.slane %v1598_v13, 4  ;;  %v495_v34 = vor.u32 %v493_v21, %v12823_v26  ;;  %v12827_v35 = vrot.slane %v499_v27, 7  ;;  %v257_v37 = vld [vmem:[#allocation2 + $0x78] sm:$0x1] }
  0xce   : > { %v12829_v36 = vrot.slane %v507_v28, 7  ;;  %v730_v40 = vld [vmem:[#allocation2 + $0x5c] sm:$0x1]  ;;  %v733_v41 = vld [vmem:[#allocation2 + $0x60] sm:$0xf]  ;;  %v305_v43 = vsel %vm12603_vm10, 0, %v304_v32  ;;  %11208 = vmatpush3.bf16.msra.mxu1 %v12064_v59 }
  0xcf   : > { %v258_v44 = vsel %vm12597_vm3, 0, %v257_v37  ;;  %v960_v45 = vld [vmem:[#allocation2 + $0x50] sm:$0x1]  ;;  %v1153_v46 = vrot.slane %v1152_v16, 4  ;;  %v731_v48 = vsel %vm12597_vm3, %v480_v24, %v730_v40  ;;  %v496_v51 = vsel %vm12621_vm12, %v488_v30, %v495_v34  ;;  %306 = vst [vmem:[#allocation2 + $0x74] sm:$0x1] %v305_v43 }
  0xd0   : > { %v1475_v47 = vld [vmem:[#allocation2 + $0x50] sm:$0x1]  ;;  %v734_v52 = vsel %vm12627_vm13, %v487_v29, %v733_v41  ;;  %259 = vst [vmem:[#allocation2 + $0x78] sm:$0x1] %v258_v44  ;;  %v1155_v53 = vshll.u32 %v960_v45, 16  ;;  %v505_v55 = vrot.slane %v12827_v35, 4  ;;  %v512_v57 = vor.u32 %v510_v31, %v12829_v36 }
  0xd1   : > { %v1601_v54 = vrot.slane %v1475_v47, 5  ;;  %732 = vst [vmem:[#allocation2 + $0x5c] sm:$0x1] %v731_v48  ;;  %735 = vst [vmem:[#allocation2 + $0x60] sm:$0xf] %v734_v52  ;;  %v12021_v63 = vld [vmem:[#allocation2 + $0x54] sm:$0xff]  }
  0xd2   : > { %736 = vst [vmem:[#allocation2 + $0x64] sm:$0xf] %v496_v51  ;;  %v12846_v58 = vld [vmem:[%s12585_s5 + $0x48] sm:$0xf]  ;;  %v502_v1 = vshll.u32 %v12808_v9, 16  ;;  %v1157_v2 = vrot.slane %v1155_v53, 5  ;;  %v513_v10 = vsel %vm12621_vm12, %v505_v55, %v512_v57  ;;  %4596 = vmatprep.mubr.bf16.mxu1 %v12021_v63 }
  0xd3   : > { %v12022_v3 = vld [vmem:[#allocation2 + $0x48] sm:$0xff]   ;;  %v1602_v4 = vsel %vm12633_vm14, %v1600_v33, %v1601_v54  ;;  %v961_v6 = vld [vmem:[#allocation2 + $0x54] sm:$0xf]  ;;  %v962_v7 = vld [vmem:[#allocation2 + $0x58] sm:$0xf]  ;;  %v497_v8 = vrot.slane %v12823_v26, 4 }
  0xd4   : > { %v10314_v12 = vcombine.low %v1599_v39, %v1602_v4  ;;  %v1160_v13 = vshrl.u32 %v961_v6, 16  ;;  %v1163_v50 = vshll.u32 %v961_v6, 16  ;;  %v1169_v0 = vshll.u32 %v962_v7, 16  ;;  %743 = vst [vmem:[#allocation2 + $0x70] sm:$0xf] %v513_v10  ;;  %v12065_v9 = vld [vmem:[#allocation7 + $0x1f8] sm:$0xff]  }
  0xd5   : > { %v1158_v15 = vsel %vm12615_vm11, %v1153_v46, %v1157_v2  ;;  %v1173_v14 = vshrl.u32 %v962_v7, 16  ;;  %v1476_v49 = vld [vmem:[#allocation2 + $0x54] sm:$0xe]  ;;  %v516_v16 = vshrl.u32 %v12846_v58, 16  ;;  %v1477_v20 = vld [vmem:[#allocation2 + $0x58] sm:$0xf]  ;;  %11209 = vmatprep.subr.bf16.mxu1 %v12065_v9  ;;  %v504_v44 = vor.u32 %v502_v1, %v12827_v35 }
  0xd6   : > { %v10282_v17 = vcombine.low %v1148_v60, %v1158_v15  ;;  %4597 = vmatmul.mubr.bf16.gmra.mrb[24].mxu1 %v10314_v12  ;;  %v1162_v61 = vrot.slane %v1160_v13, 4  ;;  %v1165_v18 = vrot.slane %v1163_v50, 5  ;;  %v1171_v19 = vrot.slane %v1169_v0, 5  ;;  %v12066_v21 = vld [vmem:[#allocation7 + $0x1b8] sm:$0xff]   ;;  %v737_v26 = vld [vmem:[#allocation2 + $0x68] sm:$0x1] }
  0xd7   : > { %v1175_v22 = vrot.slane %v1173_v14, 4  ;;  %v10299_v23 = vrot.slane %v1476_v49, 9  ;;  %v1605_v24 = vrot.slane %v1477_v20, 5  ;;  %v514_v27 = vrot.slane %v12829_v36, 4  ;;  %11210 = vmatpush3.bf16.msra.mxu1 %v12066_v21  ;;  %v12026_v47 = vld [vmem:[#allocation2 + $0x54] sm:$0xff]  }
  0xd8   : > { %4435 = vmatprep.mubr.bf16.mxu0 %v10282_v17  ;;  %v963_v28 = vld [vmem:[#allocation2 + $0x5c] sm:$0x1]  ;;  %v1166_v29 = vor.u32 %v1165_v18, %v1162_v61  ;;  %v738_v30 = vsel %vm12597_vm3, %v497_v8, %v737_v26  ;;  %v12864_v38 = vrot.slane %v516_v16, 7  ;;  %v964_v41 = vld [vmem:[#allocation2 + $0x60] sm:$0xf] }
  0xd9   : > { %4436 = vmatmul.mubr.bf16.gmra.mrb[24].mxu0 %v12022_v3  ;;  %v1176_v31 = vor.u32 %v1175_v22, %v1171_v19  ;;  %v1179_v32 = vshll.u32 %v963_v28, 16  ;;  %v12025_v33 = vld [vmem:[#allocation2 + $0x60] sm:$0xff]   ;;  %v1478_v34 = vld [vmem:[#allocation2 + $0x5c] sm:$0x1]  ;;  %v1607_v37 = vrot.slane %v1605_v24, 4  ;;  %v1606_v36 = vsel %vm12633_vm14, %v10299_v23, %v1605_v24 }
  0xda   : > { %739 = vst [vmem:[#allocation2 + $0x68] sm:$0x1] %v738_v30  ;;  %v1167_v39 = vrot.slane %v1166_v29, 4  ;;  %v1608_v40 = vrot.slane %v1478_v34, 5  ;;  %v965_v43 = vld [vmem:[#allocation2 + $0x64] sm:$0xf]  ;;  %4604 = vmatprep.mubr.bf16.mxu1 %v12025_v33 }
  0xdb   : > { %v1177_v45 = vrot.slane %v1176_v31, 4  ;;  %v1181_v46 = vrot.slane %v1179_v32, 5  ;;  %v1184_v48 = vshrl.u32 %v964_v41, 16  ;;  %v1187_v51 = vshll.u32 %v964_v41, 16  ;;  %v740_v52 = vld [vmem:[#allocation2 + $0x6c] sm:$0xf] }
  0xdc   : > { %v1172_v53 = vsel %vm12615_vm11, %v1167_v39, %v1171_v19  ;;  %v1609_v54 = vsel %vm12633_vm14, %v1607_v37, %v1608_v40  ;;  %v1193_v55 = vshll.u32 %v965_v43, 16  ;;  %v1197_v57 = vshrl.u32 %v965_v43, 16  ;;  %v1479_v1 = vld [vmem:[#allocation2 + $0x60] sm:$0xe]  ;;  %v1480_v7 = vld [vmem:[#allocation2 + $0x64] sm:$0xf] }
  0xdd   : > { %v1182_v59 = vsel %vm12615_vm11, %v1177_v45, %v1181_v46  ;;  %v10315_v60 = vcombine.low %v1606_v36, %v1609_v54  ;;  %v1186_v35 = vrot.slane %v1184_v48, 4  ;;  %v1189_v63 = vrot.slane %v1187_v51, 5  ;;  %v744_v8 = vld [vmem:[#allocation2 + $0x74] sm:$0x1]  ;;  %v968_v0 = vld [vmem:[#allocation2 + $0x70] sm:$0xf] }
  0xde   : > { %v10283_v2 = vcombine.low %v1172_v53, %v1182_v59  ;;  %v1195_v3 = vrot.slane %v1193_v55, 5  ;;  %v1199_v4 = vrot.slane %v1197_v57, 4  ;;  %v741_v6 = vsel %vm12627_vm13, %v504_v44, %v740_v52  ;;  %v347_v9 = vld [vmem:[%s12585_s5 + $0x4c] sm:$0xf]  ;;  %v12067_v21 = vld [vmem:[#allocation7 + $0x200] sm:$0xff]  }
  0xdf   : > { %4605 = vmatmul.mubr.bf16.gmra.mrb[28].mxu1 %v10315_v60  ;;  %v1190_v10 = vor.u32 %v1189_v63, %v1186_v35  ;;  %742 = vst [vmem:[#allocation2 + $0x6c] sm:$0xf] %v741_v6  ;;  %v10300_v12 = vrot.slane %v1479_v1, 9  ;;  %v1612_v13 = vrot.slane %v1480_v7, 5  ;;  %v745_v50 = vsel %vm12597_vm3, %v514_v27, %v744_v8  ;;  %v1483_v27 = vld [vmem:[#allocation2 + $0x70] sm:$0xf]  ;;  %11803 = vmatprep.subr.bf16.mxu0 %v12067_v21 }
  0xe0   : > { %4443 = vmatprep.mubr.bf16.mxu0 %v10283_v2  ;;  %v1200_v14 = vor.u32 %v1199_v4, %v1195_v3  ;;  %746 = vst [vmem:[#allocation2 + $0x74] sm:$0x1] %v745_v50  ;;  %v1217_v16 = vshll.u32 %v968_v0, 16  ;;  %v1221_v17 = vshrl.u32 %v968_v0, 16  ;;  %v519_v30 = vshll.u32 %v12846_v58, 16  ;;  %v12028_v40 = vld [vmem:[#allocation2 + $0x60] sm:$0xff]  }
  0xe1   : > { %v966_v15 = vld [vmem:[#allocation2 + $0x68] sm:$0x1]  ;;  %4444 = vmatmul.mubr.bf16.gmra.mrb[28].mxu0 %v12026_v47  ;;  %v1191_v61 = vrot.slane %v1190_v10, 4  ;;  %v1613_v19 = vsel %vm12633_vm14, %v10300_v12, %v1612_v13  ;;  %v1614_v20 = vrot.slane %v1612_v13, 4  ;;  %v522_v31 = vrot.slane %v12864_v38, 4 }
  0xe2   : > { %v1481_v49 = vld [vmem:[#allocation2 + $0x68] sm:$0x1]  ;;  %v1203_v18 = vshll.u32 %v966_v15, 16  ;;  %v1201_v22 = vrot.slane %v1200_v14, 4  ;;  %v12882_v24 = vrot.slane %v1217_v16, 5  ;;  %v1223_v26 = vrot.slane %v1221_v17, 4 }
  0xe3   : > { %v1615_v23 = vrot.slane %v1481_v49, 5  ;;  %v1196_v28 = vsel %vm12615_vm11, %v1191_v61, %v1195_v3  ;;  %v524_v34 = vshrl.u32 %v347_v9, 16  ;;  %v527_v37 = vshll.u32 %v347_v9, 16  ;;  %v747_v39 = vld [vmem:[#allocation2 + $0x78] sm:$0xf] }
  0xe4   : > { %v1205_v29 = vrot.slane %v1203_v18, 5  ;;  %v1224_v33 = vor.u32 %v1223_v26, %v12882_v24  ;;  %v521_v43 = vor.u32 %v519_v30, %v12864_v38  ;;  %v1619_v58 = vrot.slane %v1483_v27, 5  ;;  %v307_v44 = vld [vmem:[#allocation2 + $0x80] sm:$0x1]  ;;  %v260_v51 = vld [vmem:[#allocation2 + $0x84] sm:$0x1] }
  0xe5   : > { %v1616_v32 = vsel %vm12633_vm14, %v1614_v20, %v1615_v23  ;;  %v348_v52 = vld [vmem:[%s12585_s5 + $0x50] sm:$0xf]  ;;  %v12895_v57 = vrot.slane %v524_v34, 7  ;;  %v349_v4 = vld [vmem:[%s12585_s5 + $0x54] sm:$0xf]  ;;  %v308_v10 = vsel %vm12603_vm10, 0, %v307_v44 }
  0xe6   : > { %v1206_v36 = vsel %vm12615_vm11, %v1201_v22, %v1205_v29  ;;  %v10316_v41 = vcombine.low %v1613_v19, %v1616_v32  ;;  %v12027_v46 = vld [vmem:[#allocation2 + $0x6c] sm:$0xff]   ;;  %v1225_v48 = vrot.slane %v1224_v33, 4  ;;  %v748_v59 = vsel %vm12627_vm13, %v521_v43, %v747_v39  ;;  %309 = vst [vmem:[#allocation2 + $0x80] sm:$0x1] %v308_v10  ;;  %v313_v44 = vld [vmem:[#allocation2 + $0x98] sm:$0x1] }
  0xe7   : > { %v10284_v45 = vcombine.low %v1196_v28, %v1206_v36  ;;  %v967_v47 = vld [vmem:[#allocation2 + $0x6c] sm:$0xf]  ;;  %v969_v53 = vld [vmem:[#allocation2 + $0x74] sm:$0x1]  ;;  %4612 = vmatprep.mubr.bf16.mxu1 %v12027_v46  ;;  %749 = vst [vmem:[#allocation2 + $0x78] sm:$0xf] %v748_v59  ;;  %v529_v2 = vor.u32 %v527_v37, %v12895_v57 }
  0xe8   : > { %v1208_v54 = vshrl.u32 %v967_v47, 16  ;;  %v1211_v55 = vshll.u32 %v967_v47, 16  ;;  %v1227_v38 = vshll.u32 %v969_v53, 16  ;;  %v1482_v60 = vld [vmem:[#allocation2 + $0x6c] sm:$0xe]  ;;  %v1621_v35 = vrot.slane %v1619_v58, 4  ;;  %4613 = vmatmul.mubr.bf16.gmra.mrb[32].mxu1 %v10316_v41 }
  0xe9   : > { %4451 = vmatprep.mubr.bf16.mxu0 %v10284_v45  ;;  %v1484_v3 = vld [vmem:[#allocation2 + $0x74] sm:$0x1]  ;;  %v10301_v7 = vrot.slane %v1482_v60, 9  ;;  %v530_v13 = vsel %vm12621_vm12, %v522_v31, %v529_v2  ;;  %v261_v50 = vsel %vm12597_vm3, 0, %v260_v51  ;;  %v533_v0 = vshrl.u32 %v348_v52, 16  ;;  %v12032_v18 = vld [vmem:[#allocation2 + $0x6c] sm:$0xff]  }
  0xea   : > { %4452 = vmatmul.mubr.bf16.gmra.mrb[32].mxu0 %v12028_v40  ;;  %v1210_v63 = vrot.slane %v1208_v54, 4  ;;  %v1213_v1 = vrot.slane %v1211_v55, 5  ;;  %v1229_v6 = vrot.slane %v1227_v38, 5  ;;  %v1622_v8 = vrot.slane %v1484_v3, 5  ;;  %750 = vst [vmem:[#allocation2 + $0x7c] sm:$0xf] %v530_v13 }
  0xeb   : > { %v531_v15 = vrot.slane %v12895_v57, 4  ;;  %v1620_v14 = vsel %vm12633_vm14, %v10301_v7, %v1619_v58  ;;  %262 = vst [vmem:[#allocation2 + $0x84] sm:$0x1] %v261_v50  ;;  %v310_v16 = vld [vmem:[#allocation2 + $0x8c] sm:$0x1]  ;;  %v535_v19 = vrot.slane %v533_v0, 7 }
  0xec   : > { %v1214_v12 = vor.u32 %v1213_v1, %v1210_v63  ;;  %v1230_v9 = vsel %vm12615_vm11, %v1225_v48, %v1229_v6  ;;  %v1623_v49 = vsel %vm12633_vm14, %v1621_v35, %v1622_v8  ;;  %v263_v17 = vld [vmem:[#allocation2 + $0x90] sm:$0x1]  ;;  %v536_v20 = vshll.u32 %v348_v52, 16  ;;  %v351_v28 = vld [vmem:[%s12585_s5 + $0x5c] sm:$0xf] }
  0xed   : > { %v541_v21 = vshrl.u32 %v349_v4, 16  ;;  %v350_v22 = vld [vmem:[%s12585_s5 + $0x58] sm:$0xf]  ;;  %v544_v23 = vshll.u32 %v349_v4, 16  ;;  %v311_v26 = vsel %vm12603_vm10, 0, %v310_v16  ;;  %v264_v27 = vsel %vm12597_vm3, 0, %v263_v17 }
  0xee   : > { %v1215_v61 = vrot.slane %v1214_v12, 4  ;;  %v550_v29 = vshrl.u32 %v350_v22, 16  ;;  %v970_v31 = vld [vmem:[#allocation2 + $0x78] sm:$0xf]  ;;  %v539_v32 = vrot.slane %v535_v19, 4  ;;  %v10317_v37 = vcombine.low %v1620_v14, %v1623_v49 }
  0xef   : > { %v543_v33 = vrot.slane %v541_v21, 7  ;;  %312 = vst [vmem:[#allocation2 + $0x8c] sm:$0x1] %v311_v26  ;;  %265 = vst [vmem:[#allocation2 + $0x90] sm:$0x1] %v264_v27  ;;  %v1232_v39 = vshrl.u32 %v970_v31, 16  ;;  %v538_v40 = vor.u32 %v536_v20, %v535_v19 }
  0xf0   : > { %v1220_v30 = vsel %vm12615_vm11, %v1215_v61, %v12882_v24  ;;  %v1235_v36 = vshll.u32 %v970_v31, 16  ;;  %v552_v58 = vrot.slane %v550_v29, 7  ;;  %v751_v45 = vld [vmem:[#allocation2 + $0x80] sm:$0x1]  ;;  %v1485_v48 = vld [vmem:[#allocation2 + $0x78] sm:$0xe] }
  0xf1   : > { %v10285_v34 = vcombine.low %v1220_v30, %v1230_v9  ;;  %v546_v41 = vor.u32 %v544_v23, %v543_v33  ;;  %v548_v43 = vrot.slane %v543_v33, 4  ;;  %v1234_v46 = vrot.slane %v1232_v39, 4  ;;  %v12031_v52 = vld [vmem:[#allocation2 + $0x78] sm:$0xff]   ;;  %v3358_v56 = vld [vmem:[#allocation2 + $0x44] sm:$0x1] }
  0xf2   : > { %v1237_v47 = vrot.slane %v1235_v36, 5  ;;  %v553_v24 = vshll.u32 %v350_v22, 16  ;;  %v558_v51 = vshrl.u32 %v351_v28, 16  ;;  %v752_v53 = vsel %vm12597_vm3, %v531_v15, %v751_v45  ;;  %v971_v54 = vld [vmem:[#allocation2 + $0x7c] sm:$0xf]  ;;  %4620 = vmatprep.mubr.bf16.mxu1 %v12031_v52 }
  0xf3   : > { %4459 = vmatprep.mubr.bf16.mxu0 %v10285_v34  ;;  %v547_v55 = vsel %vm12621_vm12, %v539_v32, %v546_v41  ;;  %v556_v57 = vrot.slane %v552_v58, 4  ;;  %753 = vst [vmem:[#allocation2 + $0x80] sm:$0x1] %v752_v53  ;;  %v1241_v38 = vshll.u32 %v971_v54, 16  ;;  %v1245_v60 = vshrl.u32 %v971_v54, 16  ;;  %4621 = vmatmul.mubr.bf16.gmra.mrb[36].mxu1 %v10317_v37  ;;  %v12034_v52 = vld [vmem:[#allocation2 + $0x78] sm:$0xff]  }
  0xf4   : > { %4460 = vmatmul.mubr.bf16.gmra.mrb[36].mxu0 %v12032_v18  ;;  %v1238_v59 = vor.u32 %v1237_v47, %v1234_v46  ;;  %v754_v35 = vld [vmem:[#allocation2 + $0x84] sm:$0xf]  ;;  %757 = vst [vmem:[#allocation2 + $0x88] sm:$0xf] %v547_v55  ;;  %v555_v63 = vor.u32 %v553_v24, %v552_v58  ;;  %v1486_v2 = vld [vmem:[#allocation2 + $0x7c] sm:$0xf] }
  0xf5   : > { %v755_v1 = vsel %vm12627_vm13, %v538_v40, %v754_v35  ;;  %v12929_v3 = vrot.slane %v558_v51, 7  ;;  %v561_v4 = vshll.u32 %v351_v28, 16  ;;  %v314_v6 = vsel %vm12603_vm10, 0, %v313_v44  ;;  %v266_v14 = vld [vmem:[#allocation2 + $0x9c] sm:$0x1] }
  0xf6   : > { %v1243_v7 = vrot.slane %v1241_v38, 5  ;;  %v1247_v8 = vrot.slane %v1245_v60, 4  ;;  %756 = vst [vmem:[#allocation2 + $0x84] sm:$0xf] %v755_v1  ;;  %v1626_v10 = vrot.slane %v1486_v2, 5  ;;  %v1239_v13 = vrot.slane %v1238_v59, 4 }
  0xf7   : > { %v758_v12 = vld [vmem:[#allocation2 + $0x8c] sm:$0x1]  ;;  %315 = vst [vmem:[#allocation2 + $0x98] sm:$0x1] %v314_v6  ;;  %v10302_v50 = vrot.slane %v1485_v48, 9  ;;  %v563_v9 = vor.u32 %v561_v4, %v12929_v3  ;;  %v565_v17 = vrot.slane %v12929_v3, 4 }
  0xf8   : > { %v759_v0 = vsel %vm12597_vm3, %v548_v43, %v758_v12  ;;  %v761_v15 = vld [vmem:[#allocation2 + $0x90] sm:$0xf]  ;;  %v1248_v49 = vor.u32 %v1247_v8, %v1243_v7  ;;  %v1628_v16 = vrot.slane %v1626_v10, 4  ;;  %v12938_v61 = vld [vmem:[%s12585_s5 + $0x60] sm:$0xf]  ;;  %v267_v21 = vsel %vm12597_vm3, 0, %v266_v14 }
  0xf9   : > { %760 = vst [vmem:[#allocation2 + $0x8c] sm:$0x1] %v759_v0  ;;  %v12941_v18 = vld [vmem:[%s12585_s5 + $0x64] sm:$0xf]  ;;  %v564_v19 = vsel %vm12621_vm12, %v556_v57, %v563_v9  ;;  %v762_v20 = vsel %vm12627_vm13, %v555_v63, %v761_v15  ;;  %v567_v22 = vshrl.u32 %v12938_v61, 16  ;;  %v570_v26 = vshll.u32 %v12938_v61, 16 }
  0xfa   : > { %v1249_v23 = vrot.slane %v1248_v49, 4  ;;  %763 = vst [vmem:[#allocation2 + $0x90] sm:$0xf] %v762_v20  ;;  %764 = vst [vmem:[#allocation2 + $0x94] sm:$0xf] %v564_v19  ;;  %v575_v27 = vshrl.u32 %v12941_v18, 16  ;;  %v1627_v32 = vsel %vm12633_vm14, %v10302_v50, %v1626_v10  ;;  %v1244_v37 = vsel %vm12615_vm11, %v1239_v13, %v1243_v7 }
  0xfb   : > { %268 = vst [vmem:[#allocation2 + $0x9c] sm:$0x1] %v267_v21  ;;  %v578_v28 = vshll.u32 %v12941_v18, 16  ;;  %v972_v29 = vld [vmem:[#allocation2 + $0x80] sm:$0x1]  ;;  %v569_v10 = vrot.slane %v567_v22, 7 }
  0xfc   : > { %v1487_v30 = vld [vmem:[#allocation2 + $0x80] sm:$0x1]  ;;  %v1251_v31 = vshll.u32 %v972_v29, 16  ;;  %v974_v34 = vld [vmem:[#allocation2 + $0x88] sm:$0xf] }
  0xfd   : > { %v1629_v33 = vrot.slane %v1487_v30, 5  ;;  %v12033_v39 = vld [vmem:[#allocation2 + $0x84] sm:$0xff]   ;;  %v1265_v40 = vshll.u32 %v974_v34, 16  ;;  %v1269_v48 = vshrl.u32 %v974_v34, 16  ;;  %v572_v22 = vor.u32 %v570_v26, %v569_v10 }
  0xfe   : > { %v973_v36 = vld [vmem:[#allocation2 + $0x84] sm:$0xf]  ;;  %v1253_v41 = vrot.slane %v1251_v31, 5  ;;  %4628 = vmatprep.mubr.bf16.mxu1 %v12033_v39  ;;  %v1489_v57 = vld [vmem:[#allocation2 + $0x88] sm:$0xf] }
  0xff   : > { %v1630_v43 = vsel %vm12633_vm14, %v1628_v16, %v1629_v33  ;;  %v1256_v58 = vshrl.u32 %v973_v36, 16  ;;  %v1259_v44 = vshll.u32 %v973_v36, 16  ;;  %v1267_v47 = vrot.slane %v1265_v40, 5  ;;  %v1488_v24 = vld [vmem:[#allocation2 + $0x84] sm:$0xe] }
 0x100   : > { %v10318_v45 = vcombine.low %v1627_v32, %v1630_v43  ;;  %v975_v46 = vld [vmem:[#allocation2 + $0x8c] sm:$0x1]  ;;  %v1254_v51 = vsel %vm12615_vm11, %v1249_v23, %v1253_v41  ;;  %v1271_v38 = vrot.slane %v1269_v48, 4  ;;  %v10303_v2 = vrot.slane %v1488_v24, 9  ;;  %v765_v7 = vld [vmem:[#allocation2 + $0x98] sm:$0x1] }
 0x101   : > { %v1258_v53 = vrot.slane %v1256_v58, 4  ;;  %v1261_v54 = vrot.slane %v1259_v44, 5  ;;  %v1275_v55 = vshll.u32 %v975_v46, 16  ;;  %v10286_v59 = vcombine.low %v1244_v37, %v1254_v51  ;;  %v12037_v60 = vld [vmem:[#allocation2 + $0x90] sm:$0xff]   ;;  %v1490_v1 = vld [vmem:[#allocation2 + $0x8c] sm:$0x1] }
 0x102   : > { %4629 = vmatmul.mubr.bf16.gmra.mrb[40].mxu1 %v10318_v45  ;;  %v1633_v3 = vrot.slane %v1489_v57, 5  ;;  %v1272_v4 = vor.u32 %v1271_v38, %v1267_v47  ;;  %v1636_v6 = vrot.slane %v1490_v1, 5  ;;  %v976_v8 = vld [vmem:[#allocation2 + $0x90] sm:$0xf]  ;;  %v766_v0 = vsel %vm12597_vm3, %v565_v17, %v765_v7  ;;  %v977_v9 = vld [vmem:[#allocation2 + $0x94] sm:$0xf] }
 0x103   : > { %v1262_v35 = vor.u32 %v1261_v54, %v1258_v53  ;;  %v1277_v63 = vrot.slane %v1275_v55, 5  ;;  %4467 = vmatprep.mubr.bf16.mxu0 %v10286_v59  ;;  %4636 = vmatprep.mubr.bf16.mxu1 %v12037_v60  ;;  %767 = vst [vmem:[#allocation2 + $0x98] sm:$0x1] %v766_v0  ;;  %v1280_v14 = vshrl.u32 %v976_v8, 16  ;;  %v1283_v49 = vshll.u32 %v976_v8, 16  ;;  %v12038_v19 = vld [vmem:[#allocation2 + $0x84] sm:$0xff]  }
 0x104   : > { %4468 = vmatmul.mubr.bf16.gmra.mrb[40].mxu0 %v12034_v52  ;;  %v1634_v13 = vsel %vm12633_vm14, %v10303_v2, %v1633_v3  ;;  %v1635_v50 = vrot.slane %v1633_v3, 4  ;;  %v1273_v15 = vrot.slane %v1272_v4, 4  ;;  %v1289_v16 = vshll.u32 %v977_v9, 16  ;;  %v768_v23 = vld [vmem:[#allocation2 + $0x9c] sm:$0xf] }
 0x105   : > { %v1263_v12 = vrot.slane %v1262_v35, 4  ;;  %v1293_v21 = vshrl.u32 %v977_v9, 16  ;;  %v1282_v30 = vrot.slane %v1280_v14, 4  ;;  %v1285_v31 = vrot.slane %v1283_v49, 5  ;;  %v1492_v32 = vld [vmem:[#allocation2 + $0x94] sm:$0xf] }
 0x106   : > { %v1637_v20 = vsel %vm12633_vm14, %v1635_v50, %v1636_v6  ;;  %v1278_v29 = vsel %vm12615_vm11, %v1273_v15, %v1277_v63  ;;  %v1291_v34 = vrot.slane %v1289_v16, 5  ;;  %v1491_v39 = vld [vmem:[#allocation2 + $0x90] sm:$0xe]  ;;  %v573_v40 = vrot.slane %v569_v10, 4  ;;  %v269_v55 = vld [vmem:[#allocation2 + $0xa8] sm:$0x1] }
 0x107   : > { %v1268_v61 = vsel %vm12615_vm11, %v1263_v12, %v1267_v47  ;;  %v10319_v17 = vcombine.low %v1634_v13, %v1637_v20  ;;  %v1295_v37 = vrot.slane %v1293_v21, 4  ;;  %v1286_v36 = vor.u32 %v1285_v31, %v1282_v30  ;;  %v316_v47 = vld [vmem:[#allocation2 + $0xa4] sm:$0x1]  ;;  %v354_v57 = vld [vmem:[%s12585_s5 + $0x68] sm:$0xf]  ;;  %v12040_v6 = vld [vmem:[#allocation2 + $0x90] sm:$0xff]  }
 0x108   : > { %v10287_v33 = vcombine.low %v1268_v61, %v1278_v29  ;;  %v577_v41 = vrot.slane %v575_v27, 7  ;;  %v769_v26 = vsel %vm12627_vm13, %v572_v22, %v768_v23  ;;  %v1640_v58 = vrot.slane %v1492_v32, 5  ;;  %v355_v38 = vld [vmem:[%s12585_s5 + $0x6c] sm:$0xf]  ;;  %v2866_v62 = vld [vmem:[#allocation2 + $0x94] sm:$0xf] }
 0x109   : > { %v1296_v43 = vor.u32 %v1295_v37, %v1291_v34  ;;  %770 = vst [vmem:[#allocation2 + $0x9c] sm:$0xf] %v769_v26  ;;  %v1287_v44 = vrot.slane %v1286_v36, 4  ;;  %v10304_v46 = vrot.slane %v1491_v39, 9  ;;  %v317_v18 = vsel %vm12603_vm10, 0, %v316_v47 }
 0x10a   : > { %4637 = vmatmul.mubr.bf16.gmra.mrb[44].mxu1 %v10319_v17  ;;  %4475 = vmatprep.mubr.bf16.mxu0 %v10287_v33  ;;  %v580_v45 = vor.u32 %v578_v28, %v577_v41  ;;  %v978_v48 = vld [vmem:[#allocation2 + $0x98] sm:$0x1]  ;;  %v1642_v27 = vrot.slane %v1640_v58, 4  ;;  %v270_v28 = vsel %vm12597_vm3, 0, %v269_v55  ;;  %v584_v60 = vshrl.u32 %v354_v57, 16 }
 0x10b   : > { %v1297_v24 = vrot.slane %v1296_v43, 4  ;;  %v1493_v51 = vld [vmem:[#allocation2 + $0x98] sm:$0x1]  ;;  %v1299_v52 = vshll.u32 %v978_v48, 16  ;;  %v1292_v59 = vsel %vm12615_vm11, %v1287_v44, %v1291_v34  ;;  %318 = vst [vmem:[#allocation2 + $0xa4] sm:$0x1] %v317_v18  ;;  %v1641_v7 = vsel %vm12633_vm14, %v10304_v46, %v1640_v58 }
 0x10c   : > { %4476 = vmatmul.mubr.bf16.gmra.mrb[44].mxu0 %v12038_v19  ;;  %v581_v53 = vsel %vm12621_vm12, %v573_v40, %v580_v45  ;;  %v1643_v54 = vrot.slane %v1493_v51, 5  ;;  %271 = vst [vmem:[#allocation2 + $0xa8] sm:$0x1] %v270_v28  ;;  %v587_v63 = vshll.u32 %v354_v57, 16  ;;  %v592_v1 = vshrl.u32 %v355_v38, 16 }
 0x10d   : > { %771 = vst [vmem:[#allocation2 + $0xa0] sm:$0xf] %v581_v53  ;;  %v1301_v35 = vrot.slane %v1299_v52, 5  ;;  %v595_v2 = vshll.u32 %v355_v38, 16  ;;  %v586_v3 = vrot.slane %v584_v60, 7  ;;  %v582_v9 = vrot.slane %v577_v41, 4 }
 0x10e   : > { %v1644_v8 = vsel %vm12633_vm14, %v1642_v27, %v1643_v54  ;;  %v12993_v12 = vrot.slane %v592_v1, 7  ;;  %v319_v41 = vld [vmem:[#allocation2 + $0xb0] sm:$0x1]  ;;  %v272_v26 = vld [vmem:[#allocation2 + $0xb4] sm:$0x1]  ;;  %v3133_v5 = vshll.u32 %v2866_v62, 16 }
 0x10f   : > { %v1302_v4 = vsel %vm12615_vm11, %v1297_v24, %v1301_v35  ;;  %v589_v15 = vor.u32 %v587_v63, %v586_v3  ;;  %v590_v14 = vrot.slane %v586_v3, 4  ;;  %v10320_v16 = vcombine.low %v1641_v7, %v1644_v8  ;;  %v356_v44 = vld [vmem:[%s12585_s5 + $0x70] sm:$0xf]  ;;  %v357_v45 = vld [vmem:[%s12585_s5 + $0x74] sm:$0xf] }
 0x110   : > { %v979_v10 = vld [vmem:[#allocation2 + $0x9c] sm:$0xf]  ;;  %v10288_v13 = vcombine.low %v1292_v59, %v1302_v4  ;;  %v597_v49 = vor.u32 %v595_v2, %v12993_v12  ;;  %v599_v58 = vrot.slane %v12993_v12, 4  ;;  %v320_v47 = vsel %vm12603_vm10, 0, %v319_v41  ;;  %v2435_v25 = vld [vmem:[#allocation2 + $0x90] sm:$0xe] }
 0x111   : > { %v1304_v50 = vshrl.u32 %v979_v10, 16  ;;  %v1307_v0 = vshll.u32 %v979_v10, 16  ;;  %v1494_v33 = vld [vmem:[#allocation2 + $0x9c] sm:$0xe]  ;;  %v273_v48 = vsel %vm12597_vm3, 0, %v272_v26  ;;  %v601_v24 = vshrl.u32 %v356_v44, 16 }
 0x112   : > { %4483 = vmatprep.mubr.bf16.mxu0 %v10288_v13  ;;  %v598_v22 = vsel %vm12621_vm12, %v590_v14, %v597_v49  ;;  %v772_v23 = vld [vmem:[#allocation2 + $0xa4] sm:$0x1]  ;;  %v10305_v46 = vrot.slane %v1494_v33, 9  ;;  %321 = vst [vmem:[#allocation2 + $0xb0] sm:$0x1] %v320_v47  ;;  %v604_v27 = vshll.u32 %v356_v44, 16 }
 0x113   : > { %v1306_v61 = vrot.slane %v1304_v50, 4  ;;  %v1309_v19 = vrot.slane %v1307_v0, 5  ;;  %v775_v30 = vld [vmem:[#allocation2 + $0xa8] sm:$0xf]  ;;  %778 = vst [vmem:[#allocation2 + $0xac] sm:$0xf] %v598_v22  ;;  %v773_v31 = vsel %vm12597_vm3, %v582_v9, %v772_v23 }
 0x114   : > { %v12039_v20 = vld [vmem:[#allocation2 + $0x9c] sm:$0xff]   ;;  %4484 = vmatmul.mubr.bf16.gmra.mrb[48].mxu0 %v12040_v6  ;;  %v776_v32 = vsel %vm12627_vm13, %v589_v15, %v775_v30  ;;  %774 = vst [vmem:[#allocation2 + $0xa4] sm:$0x1] %v773_v31  ;;  %274 = vst [vmem:[#allocation2 + $0xb4] sm:$0x1] %v273_v48  ;;  %v609_v52 = vshrl.u32 %v357_v45, 16 }
 0x115   : > { %v980_v21 = vld [vmem:[#allocation2 + $0xa0] sm:$0xf]  ;;  %4644 = vmatprep.mubr.bf16.mxu1 %v12039_v20  ;;  %v1310_v37 = vor.u32 %v1309_v19, %v1306_v61  ;;  %777 = vst [vmem:[#allocation2 + $0xa8] sm:$0xf] %v776_v32  ;;  %v612_v53 = vshll.u32 %v357_v45, 16  ;;  %v603_v57 = vrot.slane %v601_v24, 7 }
 0x116   : > { %v1313_v29 = vshll.u32 %v980_v21, 16  ;;  %v1317_v17 = vshrl.u32 %v980_v21, 16  ;;  %v1495_v34 = vld [vmem:[#allocation2 + $0xa0] sm:$0xf]  ;;  %4645 = vmatmul.mubr.bf16.gmra.mrb[48].mxu1 %v10320_v16  ;;  %v13009_v38 = vrot.slane %v609_v52, 7 }
 0x117   : > { %v1647_v40 = vrot.slane %v1495_v34, 5  ;;  %v1311_v51 = vrot.slane %v1310_v37, 4  ;;  %v607_v1 = vrot.slane %v603_v57, 4  ;;  %v606_v7 = vor.u32 %v604_v27, %v603_v57  ;;  %v12048_v15 = vld [vmem:[#allocation2 + $0x9c] sm:$0xff]   ;;  %v359_v24 = vld [vmem:[%s12585_s5 + $0x7c] sm:$0xf] }
 0x118   : > { %v1315_v39 = vrot.slane %v1313_v29, 5  ;;  %v1319_v36 = vrot.slane %v1317_v17, 4  ;;  %v614_v8 = vor.u32 %v612_v53, %v13009_v38  ;;  %v616_v34 = vrot.slane %v13009_v38, 4  ;;  %v322_v26 = vld [vmem:[#allocation2 + $0xbc] sm:$0x1] }
 0x119   : > { %v1649_v54 = vrot.slane %v1647_v40, 4  ;;  %v1648_v63 = vsel %vm12633_vm14, %v10305_v46, %v1647_v40  ;;  %v779_v61 = vld [vmem:[#allocation2 + $0xb0] sm:$0x1]  ;;  %v323_v44 = vsel %vm12603_vm10, 0, %v322_v26 }
 0x11a   : > { %v1320_v43 = vor.u32 %v1319_v36, %v1315_v39  ;;  %v983_v55 = vld [vmem:[#allocation2 + $0xac] sm:$0xf]  ;;  %v1316_v0 = vsel %vm12615_vm11, %v1311_v51, %v1315_v39  ;;  %v615_v14 = vsel %vm12621_vm12, %v607_v1, %v614_v8  ;;  %v780_v17 = vsel %vm12597_vm3, %v599_v58, %v779_v61  ;;  %v358_v58 = vld [vmem:[%s12585_s5 + $0x78] sm:$0xf]  ;;  %324 = vst [vmem:[#allocation2 + $0xbc] sm:$0x1] %v323_v44 }
 0x11b   : > { %v1337_v18 = vshll.u32 %v983_v55, 16  ;;  %v1341_v28 = vshrl.u32 %v983_v55, 16  ;;  %v981_v60 = vld [vmem:[#allocation2 + $0xa4] sm:$0x1]  ;;  %v782_v22 = vld [vmem:[#allocation2 + $0xb4] sm:$0xf] }
 0x11c   : > { %v1321_v59 = vrot.slane %v1320_v43, 4  ;;  %v12046_v35 = vld [vmem:[#allocation2 + $0xa8] sm:$0xff]   ;;  %v1323_v2 = vshll.u32 %v981_v60, 16  ;;  %v1496_v3 = vld [vmem:[#allocation2 + $0xa4] sm:$0x1]  ;;  %v783_v30 = vsel %vm12627_vm13, %v606_v7, %v782_v22  ;;  %v618_v51 = vshrl.u32 %v358_v58, 16 }
 0x11d   : > { %v982_v4 = vld [vmem:[#allocation2 + $0xa8] sm:$0xf]  ;;  %v13013_v6 = vrot.slane %v1337_v18, 5  ;;  %4652 = vmatprep.mubr.bf16.mxu1 %v12046_v35  ;;  %v1650_v10 = vrot.slane %v1496_v3, 5  ;;  %v1343_v50 = vrot.slane %v1341_v28, 4  ;;  %v621_v27 = vshll.u32 %v358_v58, 16 }
 0x11e   : > { %v1328_v12 = vshrl.u32 %v982_v4, 16  ;;  %v1331_v13 = vshll.u32 %v982_v4, 16  ;;  %v1325_v9 = vrot.slane %v1323_v2, 5  ;;  %v1497_v49 = vld [vmem:[#allocation2 + $0xa8] sm:$0xe]  ;;  %v620_v3 = vrot.slane %v618_v51, 7 }
 0x11f   : > { %v1651_v16 = vsel %vm12633_vm14, %v1649_v54, %v1650_v10  ;;  %v1344_v21 = vor.u32 %v1343_v50, %v13013_v6  ;;  %785 = vst [vmem:[#allocation2 + $0xb8] sm:$0xf] %v615_v14  ;;  %v1498_v31 = vld [vmem:[#allocation2 + $0xac] sm:$0xf]  ;;  %781 = vst [vmem:[#allocation2 + $0xb0] sm:$0x1] %v780_v17 }
 0x120   : > { %v1330_v19 = vrot.slane %v1328_v12, 4  ;;  %v1333_v20 = vrot.slane %v1331_v13, 5  ;;  %v1326_v23 = vsel %vm12615_vm11, %v1321_v59, %v1325_v9  ;;  %v10321_v29 = vcombine.low %v1648_v63, %v1651_v16  ;;  %784 = vst [vmem:[#allocation2 + $0xb4] sm:$0xf] %v783_v30  ;;  %v275_v43 = vld [vmem:[#allocation2 + $0xc0] sm:$0x1] }
 0x121   : > { %v10289_v32 = vcombine.low %v1316_v0, %v1326_v23  ;;  %v1654_v37 = vrot.slane %v1498_v31, 5  ;;  %v1345_v39 = vrot.slane %v1344_v21, 4  ;;  %v10306_v36 = vrot.slane %v1497_v49, 9  ;;  %v12054_v50 = vld [vmem:[#allocation2 + $0xa8] sm:$0xff]   ;;  %v786_v16 = vld [vmem:[#allocation2 + $0xbc] sm:$0x1] }
 0x122   : > { %v1334_v33 = vor.u32 %v1333_v20, %v1330_v19  ;;  %4653 = vmatmul.mubr.bf16.gmra.mrb[52].mxu1 %v10321_v29  ;;  %v276_v46 = vsel %vm12597_vm3, 0, %v275_v43  ;;  %v626_v54 = vshrl.u32 %v359_v24, 16  ;;  %v629_v7 = vshll.u32 %v359_v24, 16  ;;  %v1891_v26 = vld [vmem:[#allocation2 + $0x10] sm:$0xf] }
 0x123   : > { %4491 = vmatprep.mubr.bf16.mxu0 %v10289_v32  ;;  %v1656_v41 = vrot.slane %v1654_v37, 4  ;;  %277 = vst [vmem:[#allocation2 + $0xc0] sm:$0x1] %v276_v46  ;;  %v1655_v18 = vsel %vm12633_vm14, %v10306_v36, %v1654_v37  ;;  %v623_v9 = vor.u32 %v621_v27, %v620_v3  ;;  %v787_v22 = vsel %vm12597_vm3, %v616_v34, %v786_v16  ;;  %v2402_v32 = vld [vmem:[#allocation2 + $0xc] sm:$0xe] }
 0x124   : > { %4492 = vmatmul.mubr.bf16.gmra.mrb[52].mxu0 %v12048_v15  ;;  %v1335_v40 = vrot.slane %v1334_v33, 4  ;;  %v13043_v4 = vrot.slane %v626_v54, 7  ;;  %v624_v15 = vrot.slane %v620_v3, 4  ;;  %788 = vst [vmem:[#allocation2 + $0xbc] sm:$0x1] %v787_v22  ;;  %v10356_v36 = vrot.slane %v2402_v32, 9 }
 0x125   : > { %v2403_v37 = vld [vmem:[#allocation2 + $0x10] sm:$0xf]  ;;  %v1892_v43 = vld [vmem:[#allocation2 + $0x14] sm:$0x1]  ;;  %v1952_v24 = vshrl.u32 %v1891_v26, 16 }
 0x126   : > { %v986_v45 = vld [vmem:[#allocation2 + $0xb8] sm:$0xf]  ;;  %v984_v52 = vld [vmem:[#allocation2 + $0xb0] sm:$0x1]  ;;  %v1340_v55 = vsel %vm12615_vm11, %v1335_v40, %v13013_v6  ;;  %15283 = vst [vmem:[#allocation18_spill] sm:$0xff] %v13043_v4  ;;  %v631_v19 = vor.u32 %v629_v7, %v13043_v4  ;;  %v2500_v34 = vrot.slane %v2403_v37, 5 }
 0x127   : > { %v1361_v47 = vshll.u32 %v986_v45, 16  ;;  %v1365_v48 = vshrl.u32 %v986_v45, 16  ;;  %v12052_v53 = vld [vmem:[#allocation2 + $0xb4] sm:$0xff]   ;;  %v1347_v57 = vshll.u32 %v984_v52, 16  ;;  %v1499_v59 = vld [vmem:[#allocation2 + $0xb0] sm:$0x1] }
 0x128   : > { %v985_v28 = vld [vmem:[#allocation2 + $0xb4] sm:$0xf]  ;;  %4660 = vmatprep.mubr.bf16.mxu1 %v12052_v53  ;;  %v1657_v60 = vrot.slane %v1499_v59, 5  ;;  %v1501_v21 = vld [vmem:[#allocation2 + $0xb8] sm:$0xf]  ;;  %v632_v30 = vsel %vm12621_vm12, %v624_v15, %v631_v19  ;;  %v2502_v44 = vrot.slane %v2500_v34, 4  ;;  %v2501_v54 = vsel %vm12633_vm14, %v10356_v36, %v2500_v34 }
 0x129   : > { %v13041_v38 = vrot.slane %v1361_v47, 5  ;;  %v1352_v35 = vshrl.u32 %v985_v28, 16  ;;  %v1355_v63 = vshll.u32 %v985_v28, 16  ;;  %v1367_v1 = vrot.slane %v1365_v48, 4  ;;  %v1500_v14 = vld [vmem:[#allocation2 + $0xb4] sm:$0xe] }
 0x12a   : > { %v1349_v2 = vrot.slane %v1347_v57, 5  ;;  %v1658_v6 = vsel %vm12633_vm14, %v1656_v41, %v1657_v60  ;;  %v789_v20 = vld [vmem:[#allocation2 + $0xc0] sm:$0xf]  ;;  %v10307_v31 = vrot.slane %v1500_v14, 9  ;;  %792 = vst [vmem:[#allocation2 + $0xc4] sm:$0xf] %v632_v30 }
 0x12b   : > { %v1354_v8 = vrot.slane %v1352_v35, 4  ;;  %v1357_v10 = vrot.slane %v1355_v63, 5  ;;  %v1368_v12 = vor.u32 %v1367_v1, %v13041_v38  ;;  %v10322_v0 = vcombine.low %v1655_v18, %v1658_v6  ;;  %v1890_v41 = vld [vmem:[#allocation2 + $0xc] sm:$0xf]  ;;  %v987_v27 = vld [vmem:[#allocation2 + $0xbc] sm:$0x1] }
 0x12c   : > { %v1350_v13 = vsel %vm12615_vm11, %v1345_v39, %v1349_v2  ;;  %v790_v29 = vsel %vm12627_vm13, %v623_v9, %v789_v20  ;;  %v1661_v33 = vrot.slane %v1501_v21, 5  ;;  %v2404_v39 = vld [vmem:[#allocation2 + $0x14] sm:$0x1]  ;;  %v1939_v45 = vshrl.u32 %v1890_v41, 16  ;;  %v1502_v53 = vld [vmem:[#allocation2 + $0xbc] sm:$0x1] }
 0x12d   : > { %v10290_v49 = vcombine.low %v1340_v55, %v1350_v13  ;;  %v1358_v61 = vor.u32 %v1357_v10, %v1354_v8  ;;  %4661 = vmatmul.mubr.bf16.gmra.mrb[56].mxu1 %v10322_v0  ;;  %v1369_v23 = vrot.slane %v1368_v12, 4  ;;  %791 = vst [vmem:[#allocation2 + $0xc0] sm:$0xf] %v790_v29  ;;  %v2503_v40 = vrot.slane %v2404_v39, 5  ;;  %v2835_v3 = vld [vmem:[#allocation2 + $0x18] sm:$0xf] }
 0x12e   : > { %v1942_v46 = vshll.u32 %v1890_v41, 16  ;;  %v1663_v47 = vrot.slane %v1661_v33, 4  ;;  %v1948_v48 = vshll.u32 %v1891_v26, 16  ;;  %v1958_v51 = vshll.u32 %v1892_v43, 16  ;;  %v2836_v8 = vld [vmem:[#allocation2 + $0x1c] sm:$0xf] }
 0x12f   : > { %4499 = vmatprep.mubr.bf16.mxu0 %v10290_v49  ;;  %v1359_v17 = vrot.slane %v1358_v61, 4  ;;  %v2504_v55 = vsel %vm12633_vm14, %v2502_v44, %v2503_v40  ;;  %v1371_v57 = vshll.u32 %v987_v27, 16  ;;  %v1662_v18 = vsel %vm12633_vm14, %v10307_v31, %v1661_v33  ;;  %v2837_v10 = vld [vmem:[#allocation2 + $0x20] sm:$0x1]  ;;  %v12062_v14 = vld [vmem:[#allocation2 + $0xb4] sm:$0xff]  }
 0x130   : > { %4500 = vmatmul.mubr.bf16.gmra.mrb[56].mxu0 %v12054_v50  ;;  %v1664_v28 = vrot.slane %v1502_v53, 5  ;;  %v1941_v60 = vrot.slane %v1939_v45, 4  ;;  %v1944_v35 = vrot.slane %v1942_v46, 5  ;;  %v1950_v63 = vrot.slane %v1948_v48, 5  ;;  %v2405_v19 = vld [vmem:[#allocation2 + $0x18] sm:$0xe] }
 0x131   : > { %v1364_v52 = vsel %vm12615_vm11, %v1359_v17, %v13041_v38  ;;  %v1954_v1 = vrot.slane %v1952_v24, 4  ;;  %v1960_v2 = vrot.slane %v1958_v51, 5  ;;  %v1373_v38 = vrot.slane %v1371_v57, 5  ;;  %v2406_v17 = vld [vmem:[#allocation2 + $0x1c] sm:$0xf] }
 0x132   : > { %v1665_v7 = vsel %vm12633_vm14, %v1663_v47, %v1664_v28  ;;  %v10372_v6 = vcombine.low %v2501_v54, %v2504_v55  ;;  %v2884_v12 = vshrl.u32 %v2835_v3, 16  ;;  %v1945_v50 = vor.u32 %v1944_v35, %v1941_v60  ;;  %v2407_v33 = vld [vmem:[#allocation2 + $0x20] sm:$0x1]  ;;  %v1893_v40 = vld [vmem:[#allocation2 + $0x18] sm:$0xf] }
 0x133   : > { %v10323_v13 = vcombine.low %v1662_v18, %v1665_v7  ;;  %v1955_v0 = vor.u32 %v1954_v1, %v1950_v63  ;;  %v2887_v9 = vshll.u32 %v2835_v3, 16  ;;  %v1374_v15 = vsel %vm12615_vm11, %v1369_v23, %v1373_v38  ;;  %v1894_v41 = vld [vmem:[#allocation2 + $0x1c] sm:$0xf]  ;;  %v1895_v46 = vld [vmem:[#allocation2 + $0x20] sm:$0x1] }
 0x134   : > { %v12060_v59 = vld [vmem:[#allocation2 + $0xc0] sm:$0xff]   ;;  %v2886_v49 = vrot.slane %v2884_v12, 4  ;;  %v2893_v16 = vshll.u32 %v2836_v8, 16  ;;  %v2897_v61 = vshrl.u32 %v2836_v8, 16  ;;  %v10291_v20 = vcombine.low %v1364_v52, %v1374_v15  ;;  %v12068_v53 = vld [vmem:[#allocation2 + $0x18] sm:$0xff]  }
 0x135   : > { %4668 = vmatprep.mubr.bf16.mxu1 %v12060_v59  ;;  %v1946_v21 = vrot.slane %v1945_v50, 4  ;;  %v1956_v22 = vrot.slane %v1955_v0, 4  ;;  %v2889_v29 = vrot.slane %v2887_v9, 5  ;;  %v2903_v32 = vshll.u32 %v2837_v10, 16  ;;  %v2838_v27 = vld [vmem:[#allocation2 + $0x24] sm:$0xf] }
 0x136   : > { %4669 = vmatmul.mubr.bf16.gmra.mrb[60].mxu1 %v10323_v13  ;;  %v2895_v30 = vrot.slane %v2893_v16, 5  ;;  %v2899_v31 = vrot.slane %v2897_v61, 4  ;;  %v10357_v37 = vrot.slane %v2405_v19, 9  ;;  %4507 = vmatprep.mubr.bf16.mxu0 %v10291_v20  ;;  %v2507_v34 = vrot.slane %v2406_v17, 5  ;;  %v2839_v59 = vld [vmem:[#allocation2 + $0x28] sm:$0xf] }
 0x137   : > { %v1951_v23 = vsel %vm12615_vm11, %v1946_v21, %v1950_v63  ;;  %v1961_v39 = vsel %vm12615_vm11, %v1956_v22, %v1960_v2  ;;  %v2890_v36 = vor.u32 %v2889_v29, %v2886_v49  ;;  %v2905_v44 = vrot.slane %v2903_v32, 5  ;;  %v2840_v38 = vld [vmem:[#allocation2 + $0x2c] sm:$0x1]  ;;  %v2408_v7 = vld [vmem:[#allocation2 + $0x24] sm:$0xe]  ;;  %v12211_v32 = vld [vmem:[#allocation7 + $0x200] sm:$0xff]  }
 0x138   : > { %4508 = vmatmul.mubr.bf16.gmra.mrb[60].mxu0 %v12062_v14  ;;  %v10340_v26 = vcombine.low %v1951_v23, %v1961_v39  ;;  %v2900_v43 = vor.u32 %v2899_v31, %v2895_v30  ;;  %v2510_v45 = vrot.slane %v2407_v33, 5  ;;  %v2508_v48 = vsel %vm12633_vm14, %v10357_v37, %v2507_v34  ;;  %v2409_v13 = vld [vmem:[#allocation2 + $0x28] sm:$0xf]  ;;  %v2410_v14 = vld [vmem:[#allocation2 + $0x2c] sm:$0x1]  ;;  %v12070_v49 = vld [vmem:[#allocation7 + $0x208] sm:$0xff]  }
 0x139   : > { %4709 = vmatprep.mubr.bf16.mxu0 %v10372_v6  ;;  %v2891_v47 = vrot.slane %v2890_v36, 4  ;;  %v2509_v24 = vrot.slane %v2507_v34, 4  ;;  %v1963_v51 = vshrl.u32 %v1893_v40, 16  ;;  %v1966_v54 = vshll.u32 %v1893_v40, 16  ;;  %v1896_v21 = vld [vmem:[#allocation2 + $0x24] sm:$0xf] }
 0x13a   : > { %v2901_v52 = vrot.slane %v2900_v43, 4  ;;  %v1972_v55 = vshll.u32 %v1894_v41, 16  ;;  %v1976_v57 = vshrl.u32 %v1894_v41, 16  ;;  %v1982_v35 = vshll.u32 %v1895_v46, 16  ;;  %v1897_v31 = vld [vmem:[#allocation2 + $0x28] sm:$0xf] }
 0x13b   : > { %v2896_v18 = vsel %vm12615_vm11, %v2891_v47, %v2895_v30  ;;  %v2511_v28 = vsel %vm12633_vm14, %v2509_v24, %v2510_v45  ;;  %v1965_v60 = vrot.slane %v1963_v51, 4  ;;  %v1968_v2 = vrot.slane %v1966_v54, 5  ;;  %v1898_v41 = vld [vmem:[#allocation2 + $0x2c] sm:$0x1]  ;;  %v2842_v24 = vld [vmem:[#allocation2 + $0x34] sm:$0xf] }
 0x13c   : > { %v2906_v63 = vsel %vm12615_vm11, %v2901_v52, %v2905_v44  ;;  %v10373_v1 = vcombine.low %v2508_v48, %v2511_v28  ;;  %v1974_v3 = vrot.slane %v1972_v55, 5  ;;  %v1978_v8 = vrot.slane %v1976_v57, 4  ;;  %v12073_v43 = vld [vmem:[#allocation7 + $0x210] sm:$0xff]   ;;  %v2841_v48 = vld [vmem:[#allocation2 + $0x30] sm:$0xf] }
 0x13d   : > { %v10404_v6 = vcombine.low %v2896_v18, %v2906_v63  ;;  %v1984_v10 = vrot.slane %v1982_v35, 5  ;;  %v2908_v12 = vshrl.u32 %v2838_v27, 16  ;;  %v1969_v50 = vor.u32 %v1968_v2, %v1965_v60  ;;  %v12069_v60 = vld [vmem:[#allocation2 + $0x24] sm:$0xff]   ;;  %v12076_v2 = vld [vmem:[#allocation7 + $0x218] sm:$0xff]  }
 0x13e   : > { %v2911_v0 = vshll.u32 %v2838_v27, 16  ;;  %v2917_v9 = vshll.u32 %v2839_v59, 16  ;;  %v2921_v15 = vshrl.u32 %v2839_v59, 16  ;;  %v1979_v16 = vor.u32 %v1978_v8, %v1974_v3  ;;  %v2411_v8 = vld [vmem:[#allocation2 + $0x30] sm:$0xe] }
 0x13f   : > { %4870 = vmatprep.mubr.bf16.mxu1 %v10404_v6  ;;  %v2910_v61 = vrot.slane %v2908_v12, 4  ;;  %v2927_v19 = vshll.u32 %v2840_v38, 16  ;;  %v10358_v20 = vrot.slane %v2408_v7, 9  ;;  %v1970_v22 = vrot.slane %v1969_v50, 4 }
 0x140   : > { %4710 = vmatmul.mubr.bf16.vlgmr.msra.gmra.mrb[64].mxu0 %v10340_v26  ;;  %4871 = vmatmul.mubr.bf16.vlgmr.msra.gmra.mrb[64].mxu1 %v12068_v53  ;;  %v2913_v29 = vrot.slane %v2911_v0, 5  ;;  %v2919_v17 = vrot.slane %v2917_v9, 5  ;;  %v2923_v30 = vrot.slane %v2921_v15, 4  ;;  %v1980_v33 = vrot.slane %v1979_v16, 4  ;;  %v2413_v9 = vld [vmem:[#allocation2 + $0x38] sm:$0x1] }
 0x141   : > { %11804 = vmatpush3.bf16.msra.mxu0 %v12211_v32  ;;  %4717 = vmatprep.mubr.bf16.mxu0 %v10373_v1  ;;  %v2929_v37 = vrot.slane %v2927_v19, 5  ;;  %v2514_v23 = vrot.slane %v2409_v13, 5  ;;  %v2517_v39 = vrot.slane %v2410_v14, 5  ;;  %v1975_v36 = vsel %vm12615_vm11, %v1970_v22, %v1974_v3  ;;  %v2843_v1 = vld [vmem:[#allocation2 + $0x38] sm:$0x1] }
 0x142   : > { %v2914_v34 = vor.u32 %v2913_v29, %v2910_v61  ;;  %v2924_v40 = vor.u32 %v2923_v30, %v2919_v17  ;;  %v1987_v26 = vshrl.u32 %v1896_v21, 16  ;;  %11805 = vmatprep.subr.bf16.mxu0 %v12070_v49  ;;  %v1985_v44 = vsel %vm12615_vm11, %v1980_v33, %v1984_v10  ;;  %v2412_v10 = vld [vmem:[#allocation2 + $0x34] sm:$0xf]  ;;  %v1899_v61 = vld [vmem:[#allocation2 + $0x30] sm:$0xf]  ;;  %v12079_v33 = vld [vmem:[#allocation7 + $0x220] sm:$0xff]  }
 0x143   : > { %v2515_v45 = vsel %vm12633_vm14, %v10358_v20, %v2514_v23  ;;  %v2516_v46 = vrot.slane %v2514_v23, 4  ;;  %v1990_v47 = vshll.u32 %v1896_v21, 16  ;;  %v10341_v51 = vcombine.low %v1975_v36, %v1985_v44  ;;  %v1900_v29 = vld [vmem:[#allocation2 + $0x34] sm:$0xf]  ;;  %v1901_v36 = vld [vmem:[#allocation2 + $0x38] sm:$0x1] }
 0x144   : > { %v2915_v27 = vrot.slane %v2914_v34, 4  ;;  %v2925_v52 = vrot.slane %v2924_v40, 4  ;;  %v1989_v53 = vrot.slane %v1987_v26, 4  ;;  %v1996_v57 = vshll.u32 %v1897_v31, 16 }
 0x145   : > { %v2518_v54 = vsel %vm12633_vm14, %v2516_v46, %v2517_v39  ;;  %v1992_v55 = vrot.slane %v1990_v47, 5  ;;  %v2000_v59 = vshrl.u32 %v1897_v31, 16  ;;  %11806 = vmatpush3.bf16.msra.mxu0 %v12070_v49  ;;  %v2006_v63 = vshll.u32 %v1898_v41, 16 }
 0x146   : > { %v2920_v18 = vsel %vm12615_vm11, %v2915_v27, %v2919_v17  ;;  %v2930_v28 = vsel %vm12615_vm11, %v2925_v52, %v2929_v37  ;;  %v10374_v35 = vcombine.low %v2515_v45, %v2518_v54  ;;  %11807 = vmatprep.subr.bf16.mxu0 %v12073_v43  ;;  %v1998_v7 = vrot.slane %v1996_v57, 5  ;;  %v12071_v27 = vld [vmem:[#allocation2 + $0x30] sm:$0xff]  }
 0x147   : > { %v10405_v3 = vcombine.low %v2920_v18, %v2930_v28  ;;  %v1993_v38 = vor.u32 %v1992_v55, %v1989_v53  ;;  %v2002_v6 = vrot.slane %v2000_v59, 4  ;;  %v2008_v12 = vrot.slane %v2006_v63, 5  ;;  %v2845_v55 = vld [vmem:[#allocation2 + $0x40] sm:$0xf] }
 0x148   : > { %4718 = vmatmul.mubr.bf16.gmra.mrb[68].mxu0 %v10341_v51  ;;  %v2932_v13 = vshrl.u32 %v2841_v48, 16  ;;  %v2935_v50 = vshll.u32 %v2841_v48, 16  ;;  %v2941_v0 = vshll.u32 %v2842_v24, 16  ;;  %v2945_v49 = vshrl.u32 %v2842_v24, 16  ;;  %v2844_v48 = vld [vmem:[#allocation2 + $0x3c] sm:$0xf] }
 0x149   : > { %4878 = vmatprep.mubr.bf16.mxu1 %v10405_v3  ;;  %4725 = vmatprep.mubr.bf16.mxu0 %v10374_v35  ;;  %v1994_v15 = vrot.slane %v1993_v38, 4  ;;  %v2003_v14 = vor.u32 %v2002_v6, %v1998_v7  ;;  %v2951_v16 = vshll.u32 %v2843_v1, 16  ;;  %v10359_v22 = vrot.slane %v2411_v8, 9  ;;  %v12082_v24 = vld [vmem:[#allocation7 + $0x228] sm:$0xff]   ;;  %v2414_v35 = vld [vmem:[#allocation2 + $0x3c] sm:$0xe] }
 0x14a   : > { %4879 = vmatmul.mubr.bf16.gmra.mrb[68].mxu1 %v12069_v60  ;;  %v2934_v19 = vrot.slane %v2932_v13, 4  ;;  %v2937_v20 = vrot.slane %v2935_v50, 5  ;;  %v2943_v21 = vrot.slane %v2941_v0, 5  ;;  %11808 = vmatpush3.bf16.msra.mxu0 %v12073_v43  ;;  %v2947_v31 = vrot.slane %v2945_v49, 4  ;;  %v2846_v60 = vld [vmem:[#allocation2 + $0x44] sm:$0x1] }
 0x14b   : > { %v1999_v17 = vsel %vm12615_vm11, %v1994_v15, %v1998_v7  ;;  %v2004_v30 = vrot.slane %v2003_v14, 4  ;;  %v2953_v32 = vrot.slane %v2951_v16, 5  ;;  %11809 = vmatprep.subr.bf16.mxu0 %v12076_v2  ;;  %v2521_v23 = vrot.slane %v2412_v10, 5  ;;  %v2415_v38 = vld [vmem:[#allocation2 + $0x40] sm:$0xf]  ;;  %v12085_v6 = vld [vmem:[#allocation7 + $0x230] sm:$0xff]  }
 0x14c   : > { %v2938_v37 = vor.u32 %v2937_v20, %v2934_v19  ;;  %v2524_v39 = vrot.slane %v2413_v9, 5  ;;  %v2011_v34 = vshrl.u32 %v1899_v61, 16  ;;  %v2948_v41 = vor.u32 %v2947_v31, %v2943_v21  ;;  %v2416_v49 = vld [vmem:[#allocation2 + $0x44] sm:$0x1] }
 0x14d   : > { %v2009_v40 = vsel %vm12615_vm11, %v2004_v30, %v2008_v12  ;;  %v2014_v26 = vshll.u32 %v1899_v61, 16  ;;  %v2020_v44 = vshll.u32 %v1900_v29, 16  ;;  %v2522_v46 = vsel %vm12633_vm14, %v10359_v22, %v2521_v23 }
 0x14e   : > { %v10342_v43 = vcombine.low %v1999_v17, %v2009_v40  ;;  %v2939_v45 = vrot.slane %v2938_v37, 4  ;;  %v2523_v47 = vrot.slane %v2521_v23, 4  ;;  %11810 = vmatpush3.bf16.msra.mxu0 %v12076_v2  ;;  %v2949_v51 = vrot.slane %v2948_v41, 4 }
 0x14f   : > { %v2013_v52 = vrot.slane %v2011_v34, 4  ;;  %v2016_v53 = vrot.slane %v2014_v26, 5  ;;  %v13101_v54 = vrot.slane %v2020_v44, 5  ;;  %11811 = vmatprep.subr.bf16.mxu0 %v12079_v33  ;;  %v2024_v18 = vshrl.u32 %v1900_v29, 16  ;;  %v1904_v34 = vld [vmem:[#allocation2 + $0x44] sm:$0x1] }
 0x150   : > { %4726 = vmatmul.mubr.bf16.gmra.mrb[72].mxu0 %v10342_v43  ;;  %v2944_v57 = vsel %vm12615_vm11, %v2939_v45, %v2943_v21  ;;  %v2525_v59 = vsel %vm12633_vm14, %v2523_v47, %v2524_v39  ;;  %v2030_v28 = vshll.u32 %v1901_v36, 16  ;;  %v2954_v63 = vsel %vm12615_vm11, %v2949_v51, %v2953_v32  ;;  %v1902_v21 = vld [vmem:[#allocation2 + $0x3c] sm:$0xf]  ;;  %v1903_v32 = vld [vmem:[#allocation2 + $0x40] sm:$0xf]  ;;  %v12088_v43 = vld [vmem:[#allocation7 + $0x238] sm:$0xff]  }
 0x151   : > { %v10375_v1 = vcombine.low %v2522_v46, %v2525_v59  ;;  %v2017_v2 = vor.u32 %v2016_v53, %v2013_v52  ;;  %v2956_v3 = vshrl.u32 %v2844_v48, 16  ;;  %v10406_v8 = vcombine.low %v2944_v57, %v2954_v63  ;;  %v2847_v51 = vld [vmem:[#allocation2 + $0x48] sm:$0xf]  ;;  %v12072_v59 = vld [vmem:[#allocation2 + $0x3c] sm:$0xff]  }
 0x152   : > { %v2026_v10 = vrot.slane %v2024_v18, 4  ;;  %v2032_v12 = vrot.slane %v2030_v28, 5  ;;  %v2959_v13 = vshll.u32 %v2844_v48, 16  ;;  %11812 = vmatpush3.bf16.msra.mxu0 %v12079_v33  ;;  %v2965_v15 = vshll.u32 %v2845_v55, 16 }
 0x153   : > { %4733 = vmatprep.mubr.bf16.mxu0 %v10375_v1  ;;  %v2018_v0 = vrot.slane %v2017_v2, 4  ;;  %v2958_v9 = vrot.slane %v2956_v3, 4  ;;  %v2969_v14 = vshrl.u32 %v2845_v55, 16  ;;  %11813 = vmatprep.subr.bf16.mxu0 %v12082_v24  ;;  %v2975_v19 = vshll.u32 %v2846_v60, 16  ;;  %v2848_v55 = vld [vmem:[#allocation2 + $0x4c] sm:$0xf] }
 0x154   : > { %4886 = vmatprep.mubr.bf16.mxu1 %v10406_v8  ;;  %v2027_v16 = vor.u32 %v2026_v10, %v13101_v54  ;;  %v2961_v61 = vrot.slane %v2959_v13, 5  ;;  %v10360_v20 = vrot.slane %v2414_v35, 9  ;;  %v2967_v17 = vrot.slane %v2965_v15, 5  ;;  %v2849_v35 = vld [vmem:[#allocation2 + $0x50] sm:$0x1] }
 0x155   : > { %4887 = vmatmul.mubr.bf16.gmra.mrb[72].mxu1 %v12071_v27  ;;  %v2023_v29 = vsel %vm12615_vm11, %v2018_v0, %v13101_v54  ;;  %v2971_v30 = vrot.slane %v2969_v14, 4  ;;  %v2528_v31 = vrot.slane %v2415_v38, 5  ;;  %v2977_v39 = vrot.slane %v2975_v19, 5  ;;  %v2417_v38 = vld [vmem:[#allocation2 + $0x48] sm:$0xe] }
 0x156   : > { %v2028_v37 = vrot.slane %v2027_v16, 4  ;;  %v2962_v23 = vor.u32 %v2961_v61, %v2958_v9  ;;  %v2531_v36 = vrot.slane %v2416_v49, 5  ;;  %11814 = vmatpush3.bf16.msra.mxu0 %v12082_v24  ;;  %v2035_v44 = vshrl.u32 %v1902_v21, 16  ;;  %v2418_v9 = vld [vmem:[#allocation2 + $0x4c] sm:$0xf] }
 0x157   : > { %v2972_v40 = vor.u32 %v2971_v30, %v2967_v17  ;;  %v2529_v41 = vsel %vm12633_vm14, %v10360_v20, %v2528_v31  ;;  %v2530_v26 = vrot.slane %v2528_v31, 4  ;;  %11815 = vmatprep.subr.bf16.mxu0 %v12085_v6  ;;  %v2038_v47 = vshll.u32 %v1902_v21, 16  ;;  %v2419_v15 = vld [vmem:[#allocation2 + $0x50] sm:$0x1]  ;;  %v1905_v61 = vld [vmem:[#allocation2 + $0x48] sm:$0xf] }
 0x158   : > { %v2033_v45 = vsel %vm12615_vm11, %v2028_v37, %v2032_v12  ;;  %v2963_v46 = vrot.slane %v2962_v23, 4  ;;  %v2044_v48 = vshll.u32 %v1903_v32, 16  ;;  %v2037_v54 = vrot.slane %v2035_v44, 4  ;;  %v1906_v37 = vld [vmem:[#allocation2 + $0x4c] sm:$0xf] }
 0x159   : > { %v10343_v52 = vcombine.low %v2023_v29, %v2033_v45  ;;  %v2973_v53 = vrot.slane %v2972_v40, 4  ;;  %v2532_v24 = vsel %vm12633_vm14, %v2530_v26, %v2531_v36  ;;  %v2040_v28 = vrot.slane %v2038_v47, 5  ;;  %v1907_v45 = vld [vmem:[#allocation2 + $0x50] sm:$0x1] }
 0x15a   : > { %v2968_v57 = vsel %vm12615_vm11, %v2963_v46, %v2967_v17  ;;  %v10376_v18 = vcombine.low %v2529_v41, %v2532_v24  ;;  %v2046_v60 = vrot.slane %v2044_v48, 5  ;;  %11816 = vmatpush3.bf16.msra.mxu0 %v12085_v6  ;;  %v2048_v1 = vshrl.u32 %v1903_v32, 16 }
 0x15b   : > { %4734 = vmatmul.mubr.bf16.gmra.mrb[76].mxu0 %v10343_v52  ;;  %v2978_v63 = vsel %vm12615_vm11, %v2973_v53, %v2977_v39  ;;  %v2054_v2 = vshll.u32 %v1904_v34, 16  ;;  %v2980_v3 = vshrl.u32 %v2847_v51, 16  ;;  %11817 = vmatprep.subr.bf16.mxu0 %v12088_v43  ;;  %v2041_v12 = vor.u32 %v2040_v28, %v2037_v54  ;;  %v2850_v52 = vld [vmem:[#allocation2 + $0x54] sm:$0xf]  ;;  %v12074_v54 = vld [vmem:[#allocation2 + $0x48] sm:$0xff]  }
 0x15c   : > { %v10407_v10 = vcombine.low %v2968_v57, %v2978_v63  ;;  %4741 = vmatprep.mubr.bf16.mxu0 %v10376_v18  ;;  %v2983_v13 = vshll.u32 %v2847_v51, 16  ;;  %v2989_v0 = vshll.u32 %v2848_v55, 16  ;;  %v2050_v14 = vrot.slane %v2048_v1, 4  ;;  %v2852_v63 = vld [vmem:[#allocation2 + $0x5c] sm:$0x1] }
 0x15d   : > { %v2056_v6 = vrot.slane %v2054_v2, 5  ;;  %v2982_v49 = vrot.slane %v2980_v3, 4  ;;  %v2993_v16 = vshrl.u32 %v2848_v55, 16  ;;  %v2042_v19 = vrot.slane %v2041_v12, 4  ;;  %v2420_v12 = vld [vmem:[#allocation2 + $0x54] sm:$0xe] }
 0x15e   : > { %4894 = vmatprep.mubr.bf16.mxu1 %v10407_v10  ;;  %v2985_v20 = vrot.slane %v2983_v13, 5  ;;  %v2991_v21 = vrot.slane %v2989_v0, 5  ;;  %v2999_v29 = vshll.u32 %v2849_v35, 16  ;;  %11818 = vmatpush3.bf16.msra.mxu0 %v12088_v43  ;;  %v2051_v17 = vor.u32 %v2050_v14, %v2046_v60  ;;  %v2851_v35 = vld [vmem:[#allocation2 + $0x58] sm:$0xf] }
 0x15f   : > { %4895 = vmatmul.mubr.bf16.gmra.mrb[76].mxu1 %v12072_v59  ;;  %v2995_v30 = vrot.slane %v2993_v16, 4  ;;  %v10361_v31 = vrot.slane %v2417_v38, 9  ;;  %v2535_v32 = vrot.slane %v2418_v9, 5  ;;  %v2047_v39 = vsel %vm12615_vm11, %v2042_v19, %v2046_v60 }
 0x160   : > { %v2986_v36 = vor.u32 %v2985_v20, %v2982_v49  ;;  %v3001_v34 = vrot.slane %v2999_v29, 5  ;;  %v2538_v40 = vrot.slane %v2419_v15, 5  ;;  %v2052_v41 = vrot.slane %v2051_v17, 4  ;;  %v2421_v20 = vld [vmem:[#allocation2 + $0x58] sm:$0xf] }
 0x161   : > { %v13109_v7 = vpop.f32.mrb[0].mxu0  ;;  %v2996_v26 = vor.u32 %v2995_v30, %v2991_v21  ;;  %v2536_v44 = vsel %vm12633_vm14, %v10361_v31, %v2535_v32  ;;  %v2537_v43 = vrot.slane %v2535_v32, 4  ;;  %v2059_v47 = vshrl.u32 %v1905_v61, 16  ;;  %v2422_v31 = vld [vmem:[#allocation2 + $0x5c] sm:$0x1] }
 0x162   : > { %v13111_v50 = vpop.f32.mrb[1].mxu0  ;;  %v13125_v27 = vpop.f32.mrb[0].mxu1  ;;  %v2987_v46 = vrot.slane %v2986_v36, 4  ;;  %v2062_v48 = vshll.u32 %v1905_v61, 16  ;;  %v2068_v51 = vshll.u32 %v1906_v37, 16  ;;  %v2057_v53 = vsel %vm12615_vm11, %v2052_v41, %v2056_v6 }
 0x163   : > { %v13114_v22 = vpop.f32.mrb[2].mxu0  ;;  %v13133_v8 = vpop.f32.mrb[1].mxu1  ;;  %v2997_v24 = vrot.slane %v2996_v26, 4  ;;  %v2539_v55 = vsel %vm12633_vm14, %v2537_v43, %v2538_v40  ;;  %v2072_v57 = vshrl.u32 %v1906_v37, 16  ;;  %v10344_v59 = vcombine.low %v2047_v39, %v2057_v53  ;;  %v1909_v43 = vld [vmem:[#allocation2 + $0x58] sm:$0xf] }
 0x164   : > { %v13119_v33 = vpop.f32.mrb[3].mxu0  ;;  %v13135_v23 = vpop.f32.mrb[2].mxu1  ;;  %v2992_v18 = vsel %vm12615_vm11, %v2987_v46, %v2991_v21  ;;  %v10377_v28 = vcombine.low %v2536_v44, %v2539_v55  ;;  %v2061_v60 = vrot.slane %v2059_v47, 4  ;;  %v2064_v3 = vrot.slane %v2062_v48, 5 }
 0x165   : > { %v13147_v1 = vpop.f32.mrb[3].mxu1  ;;  %v3002_v2 = vsel %vm12615_vm11, %v2997_v24, %v3001_v34  ;;  %v2070_v38 = vrot.slane %v2068_v51, 5  ;;  %v2074_v10 = vrot.slane %v2072_v57, 4  ;;  %4742 = vmatmul.mubr.bf16.gmra.mrb[80].mxu0 %v10344_v59  ;;  %v2078_v9 = vshll.u32 %v1907_v45, 16  ;;  %v1908_v34 = vld [vmem:[#allocation2 + $0x54] sm:$0xf] }
 0x166   : > { %v10408_v0 = vcombine.low %v2992_v18, %v3002_v2  ;;  %v3004_v15 = vshrl.u32 %v2850_v52, 16  ;;  %v3007_v14 = vshll.u32 %v2850_v52, 16  ;;  %4749 = vmatprep.mubr.bf16.mxu0 %v10377_v28  ;;  %v2065_v49 = vor.u32 %v2064_v3, %v2061_v60  ;;  %v1910_v52 = vld [vmem:[#allocation2 + $0x5c] sm:$0x1]  ;;  %v2853_v59 = vld [vmem:[#allocation2 + $0x60] sm:$0xf] }
 0x167   : > { %v2075_v16 = vor.u32 %v2074_v10, %v2070_v38  ;;  %v3013_v61 = vshll.u32 %v2851_v35, 16  ;;  %v3017_v19 = vshrl.u32 %v2851_v35, 16  ;;  %v2080_v21 = vrot.slane %v2078_v9, 5  ;;  %v12075_v28 = vld [vmem:[#allocation2 + $0x54] sm:$0xff]   ;;  %v2854_v2 = vld [vmem:[#allocation2 + $0x64] sm:$0xf] }
 0x168   : > { %4902 = vmatprep.mubr.bf16.mxu1 %v10408_v0  ;;  %v3006_v29 = vrot.slane %v3004_v15, 4  ;;  %v3009_v17 = vrot.slane %v3007_v14, 5  ;;  %v3023_v30 = vshll.u32 %v2852_v63, 16  ;;  %v2066_v32 = vrot.slane %v2065_v49, 4  ;;  %v2855_v49 = vld [vmem:[#allocation2 + $0x68] sm:$0x1] }
 0x169   : > { %4903 = vmatmul.mubr.bf16.gmra.mrb[80].mxu1 %v12074_v54  ;;  %v2076_v37 = vrot.slane %v2075_v16, 4  ;;  %v3015_v39 = vrot.slane %v3013_v61, 5  ;;  %v3019_v36 = vrot.slane %v3017_v19, 4  ;;  %v10362_v26 = vrot.slane %v2420_v12, 9  ;;  %v2423_v16 = vld [vmem:[#allocation2 + $0x60] sm:$0xe] }
 0x16a   : > { %v3010_v40 = vor.u32 %v3009_v17, %v3006_v29  ;;  %v3025_v41 = vrot.slane %v3023_v30, 5  ;;  %v2542_v44 = vrot.slane %v2421_v20, 5  ;;  %v2071_v46 = vsel %vm12615_vm11, %v2066_v32, %v2070_v38  ;;  %v2424_v29 = vld [vmem:[#allocation2 + $0x64] sm:$0xf] }
 0x16b   : > { %v2081_v47 = vsel %vm12615_vm11, %v2076_v37, %v2080_v21  ;;  %v3020_v48 = vor.u32 %v3019_v36, %v3015_v39  ;;  %v2545_v51 = vrot.slane %v2422_v31, 5  ;;  %v2083_v60 = vshrl.u32 %v1908_v34, 16 }
 0x16c   : > { %v10345_v24 = vcombine.low %v2071_v46, %v2081_v47  ;;  %v3011_v54 = vrot.slane %v3010_v40, 4  ;;  %v2543_v55 = vsel %vm12633_vm14, %v10362_v26, %v2542_v44  ;;  %v2544_v57 = vrot.slane %v2542_v44, 4  ;;  %v1911_v44 = vld [vmem:[#allocation2 + $0x60] sm:$0xf] }
 0x16d   : > { %v13151_v13 = vpop.f32.mrb[4].mxu0  ;;  %v3021_v18 = vrot.slane %v3020_v48, 4  ;;  %v2086_v35 = vshll.u32 %v1908_v34, 16  ;;  %v2092_v63 = vshll.u32 %v1909_v43, 16  ;;  %v2096_v10 = vshrl.u32 %v1909_v43, 16 }
 0x16e   : > { %v13155_v45 = vpop.f32.mrb[5].mxu0  ;;  %4750 = vmatmul.mubr.bf16.gmra.mrb[84].mxu0 %v10345_v24  ;;  %v3016_v3 = vsel %vm12615_vm11, %v3011_v54, %v3015_v39  ;;  %v2546_v38 = vsel %vm12633_vm14, %v2544_v57, %v2545_v51  ;;  %v2102_v12 = vshll.u32 %v1910_v52, 16  ;;  %v2085_v15 = vrot.slane %v2083_v60, 4  ;;  %v2425_v39 = vld [vmem:[#allocation2 + $0x68] sm:$0x1] }
 0x16f   : > { %v3026_v0 = vsel %vm12615_vm11, %v3021_v18, %v3025_v41  ;;  %v10378_v9 = vcombine.low %v2543_v55, %v2546_v38  ;;  %v2088_v14 = vrot.slane %v2086_v35, 5  ;;  %v2094_v19 = vrot.slane %v2092_v63, 5  ;;  %v13171_v17 = vpop.f32.mrb[6].mxu0  ;;  %v1912_v60 = vld [vmem:[#allocation2 + $0x64] sm:$0xf] }
 0x170   : > { %v13153_v6 = vpop.f32.mrb[4].mxu1  ;;  %v10409_v61 = vcombine.low %v3016_v3, %v3026_v0  ;;  %v2098_v20 = vrot.slane %v2096_v10, 4  ;;  %v2104_v21 = vrot.slane %v2102_v12, 5  ;;  %v3028_v31 = vshrl.u32 %v2853_v59, 16  ;;  %v13175_v43 = vpop.f32.mrb[7].mxu0 }
 0x171   : > { %v13161_v53 = vpop.f32.mrb[5].mxu1  ;;  %4757 = vmatprep.mubr.bf16.mxu0 %v10378_v9  ;;  %v2089_v30 = vor.u32 %v2088_v14, %v2085_v15  ;;  %v3031_v32 = vshll.u32 %v2853_v59, 16  ;;  %v3037_v37 = vshll.u32 %v2854_v2, 16  ;;  %v3041_v40 = vshrl.u32 %v2854_v2, 16  ;;  %v1913_v38 = vld [vmem:[#allocation2 + $0x68] sm:$0x1] }
 0x172   : > { %v13173_v36 = vpop.f32.mrb[6].mxu1  ;;  %4910 = vmatprep.mubr.bf16.mxu1 %v10409_v61  ;;  %v2099_v34 = vor.u32 %v2098_v20, %v2094_v19  ;;  %v3047_v41 = vshll.u32 %v2855_v49, 16  ;;  %v10363_v26 = vrot.slane %v2423_v16, 9  ;;  %v3030_v47 = vrot.slane %v3028_v31, 4  ;;  %v2856_v10 = vld [vmem:[#allocation2 + $0x6c] sm:$0xf] }
 0x173   : > { %4911 = vmatmul.mubr.bf16.gmra.mrb[84].mxu1 %v12075_v28  ;;  %v2090_v46 = vrot.slane %v2089_v30, 4  ;;  %v3033_v48 = vrot.slane %v3031_v32, 5  ;;  %v3039_v51 = vrot.slane %v3037_v37, 5  ;;  %v3043_v24 = vrot.slane %v3041_v40, 4  ;;  %v13183_v12 = vpop.f32.mrb[7].mxu1  ;;  %v12077_v61 = vld [vmem:[#allocation2 + $0x60] sm:$0xff]  }
 0x174   : > { %v2100_v52 = vrot.slane %v2099_v34, 4  ;;  %v3049_v54 = vrot.slane %v3047_v41, 5  ;;  %v2549_v55 = vrot.slane %v2424_v29, 5  ;;  %v2552_v18 = vrot.slane %v2425_v39, 5  ;;  %v2857_v39 = vld [vmem:[#allocation2 + $0x70] sm:$0xf] }
 0x175   : > { %v2095_v57 = vsel %vm12615_vm11, %v2090_v46, %v2094_v19  ;;  %v3034_v59 = vor.u32 %v3033_v48, %v3030_v47  ;;  %v2107_v35 = vshrl.u32 %v1911_v44, 16  ;;  %v3044_v2 = vor.u32 %v3043_v24, %v3039_v51  ;;  %v2858_v34 = vld [vmem:[#allocation2 + $0x74] sm:$0x1]  ;;  %v2426_v46 = vld [vmem:[#allocation2 + $0x6c] sm:$0xe] }
 0x176   : > { %v2105_v63 = vsel %vm12615_vm11, %v2100_v52, %v2104_v21  ;;  %v2550_v28 = vsel %vm12633_vm14, %v10363_v26, %v2549_v55  ;;  %v2551_v3 = vrot.slane %v2549_v55, 4  ;;  %v2110_v14 = vshll.u32 %v1911_v44, 16 }
 0x177   : > { %v10346_v0 = vcombine.low %v2095_v57, %v2105_v63  ;;  %v3035_v9 = vrot.slane %v3034_v59, 4  ;;  %v2109_v15 = vrot.slane %v2107_v35, 4  ;;  %v3045_v16 = vrot.slane %v3044_v2, 4  ;;  %v2428_v35 = vld [vmem:[#allocation2 + $0x74] sm:$0x1] }
 0x178   : > { %v2553_v19 = vsel %vm12633_vm14, %v2551_v3, %v2552_v18  ;;  %v2116_v20 = vshll.u32 %v1912_v60, 16  ;;  %v2120_v21 = vshrl.u32 %v1912_v60, 16  ;;  %v13189_v29 = vpop.f32.mrb[8].mxu1  ;;  %v2112_v32 = vrot.slane %v2110_v14, 5  ;;  %v1914_v14 = vld [vmem:[#allocation2 + $0x6c] sm:$0xf] }
 0x179   : > { %4758 = vmatmul.mubr.bf16.gmra.mrb[88].mxu0 %v10346_v0  ;;  %v3040_v30 = vsel %vm12615_vm11, %v3035_v9, %v3039_v51  ;;  %v10379_v31 = vcombine.low %v2550_v28, %v2553_v19  ;;  %v2126_v37 = vshll.u32 %v1913_v38, 16  ;;  %v3050_v40 = vsel %vm12615_vm11, %v3045_v16, %v3049_v54  ;;  %v2427_v51 = vld [vmem:[#allocation2 + $0x70] sm:$0xf]  ;;  %v13197_v63 = vpop.f32.mrb[9].mxu1 }
 0x17a   : > { %v2118_v41 = vrot.slane %v2116_v20, 5  ;;  %v2122_v26 = vrot.slane %v2120_v21, 4  ;;  %v3052_v44 = vshrl.u32 %v2856_v10, 16  ;;  %v10410_v48 = vcombine.low %v3040_v30, %v3050_v40  ;;  %v1915_v21 = vld [vmem:[#allocation2 + $0x70] sm:$0xf] }
 0x17b   : > { %v13185_v49 = vpop.f32.mrb[8].mxu0  ;;  %4765 = vmatprep.mubr.bf16.mxu0 %v10379_v31  ;;  %v2113_v52 = vor.u32 %v2112_v32, %v2109_v15  ;;  %v2128_v24 = vrot.slane %v2126_v37, 5  ;;  %v3055_v55 = vshll.u32 %v2856_v10, 16  ;;  %v3061_v18 = vshll.u32 %v2857_v39, 16  ;;  %v1916_v37 = vld [vmem:[#allocation2 + $0x74] sm:$0x1] }
 0x17c   : > { %v13195_v47 = vpop.f32.mrb[9].mxu0  ;;  %v2123_v57 = vor.u32 %v2122_v26, %v2118_v41  ;;  %v3054_v59 = vrot.slane %v3052_v44, 4  ;;  %v3065_v60 = vshrl.u32 %v2857_v39, 16  ;;  %4918 = vmatprep.mubr.bf16.mxu1 %v10410_v48  ;;  %v3071_v28 = vshll.u32 %v2858_v34, 16 }
 0x17d   : > { %v2114_v54 = vrot.slane %v2113_v52, 4  ;;  %v3057_v2 = vrot.slane %v3055_v55, 5  ;;  %v10364_v3 = vrot.slane %v2426_v46, 9  ;;  %4919 = vmatmul.mubr.bf16.gmra.mrb[88].mxu1 %v12077_v61  ;;  %v3063_v0 = vrot.slane %v3061_v18, 5  ;;  %v13205_v39 = vpop.f32.mrb[10].mxu0  ;;  %v13207_v46 = vpop.f32.mrb[10].mxu1 }
 0x17e   : > { %v2124_v38 = vrot.slane %v2123_v57, 4  ;;  %v3067_v9 = vrot.slane %v3065_v60, 4  ;;  %v2556_v15 = vrot.slane %v2427_v51, 5  ;;  %v3073_v19 = vrot.slane %v3071_v28, 5  ;;  %v12078_v52 = vld [vmem:[#allocation2 + $0x6c] sm:$0xff]  }
 0x17f   : > { %v2119_v10 = vsel %vm12615_vm11, %v2114_v54, %v2118_v41  ;;  %v3058_v16 = vor.u32 %v3057_v2, %v3054_v59  ;;  %v2559_v20 = vrot.slane %v2428_v35, 5  ;;  %v2131_v26 = vshrl.u32 %v1914_v14, 16  ;;  %v2859_v41 = vld [vmem:[#allocation2 + $0x78] sm:$0xf]  ;;  %v2860_v57 = vld [vmem:[#allocation2 + $0x7c] sm:$0xf] }
 0x180   : > { %v2129_v30 = vsel %vm12615_vm11, %v2124_v38, %v2128_v24  ;;  %v3068_v31 = vor.u32 %v3067_v9, %v3063_v0  ;;  %v2557_v32 = vsel %vm12633_vm14, %v10364_v3, %v2556_v15  ;;  %v2558_v61 = vrot.slane %v2556_v15, 4  ;;  %v13211_v59 = vpop.f32.mrb[11].mxu0  ;;  %v2861_v2 = vld [vmem:[#allocation2 + $0x80] sm:$0x1]  ;;  %v2429_v28 = vld [vmem:[#allocation2 + $0x78] sm:$0xe] }
 0x181   : > { %v10347_v34 = vcombine.low %v2119_v10, %v2129_v30  ;;  %v3059_v40 = vrot.slane %v3058_v16, 4  ;;  %v2134_v44 = vshll.u32 %v1914_v14, 16  ;;  %v2140_v55 = vshll.u32 %v1915_v21, 16  ;;  %v2430_v14 = vld [vmem:[#allocation2 + $0x7c] sm:$0xf]  ;;  %v13217_v10 = vpop.f32.mrb[11].mxu1 }
 0x182   : > { %v3069_v48 = vrot.slane %v3068_v31, 4  ;;  %v2560_v24 = vsel %vm12633_vm14, %v2558_v61, %v2559_v20  ;;  %v2144_v51 = vshrl.u32 %v1915_v21, 16  ;;  %v2133_v35 = vrot.slane %v2131_v26, 4 }
 0x183   : > { %4766 = vmatmul.mubr.bf16.gmra.mrb[92].mxu0 %v10347_v34  ;;  %v3064_v18 = vsel %vm12615_vm11, %v3059_v40, %v3063_v0  ;;  %v10380_v60 = vcombine.low %v2557_v32, %v2560_v24  ;;  %v2136_v54 = vrot.slane %v2134_v44, 5  ;;  %v2142_v38 = vrot.slane %v2140_v55, 5  ;;  %v2431_v34 = vld [vmem:[#allocation2 + $0x80] sm:$0x1]  ;;  %v13219_v40 = vpop.f32.mrb[12].mxu0 }
 0x184   : > { %v3074_v3 = vsel %vm12615_vm11, %v3069_v48, %v3073_v19  ;;  %v2146_v9 = vrot.slane %v2144_v51, 4  ;;  %v2150_v15 = vshll.u32 %v1916_v37, 16  ;;  %v3076_v21 = vshrl.u32 %v2859_v41, 16  ;;  %v1917_v48 = vld [vmem:[#allocation2 + $0x78] sm:$0xf] }
 0x185   : > { %v10411_v16 = vcombine.low %v3064_v18, %v3074_v3  ;;  %4773 = vmatprep.mubr.bf16.mxu0 %v10380_v60  ;;  %v2137_v20 = vor.u32 %v2136_v54, %v2133_v35  ;;  %v3079_v30 = vshll.u32 %v2859_v41, 16  ;;  %v3085_v32 = vshll.u32 %v2860_v57, 16  ;;  %v1918_v60 = vld [vmem:[#allocation2 + $0x7c] sm:$0xf] }
 0x186   : > { %v2147_v0 = vor.u32 %v2146_v9, %v2142_v38  ;;  %v2152_v31 = vrot.slane %v2150_v15, 5  ;;  %v3089_v61 = vshrl.u32 %v2860_v57, 16  ;;  %v3078_v26 = vrot.slane %v3076_v21, 4 }
 0x187   : > { %4926 = vmatprep.mubr.bf16.mxu1 %v10411_v16  ;;  %v2138_v19 = vrot.slane %v2137_v20, 4  ;;  %v3081_v44 = vrot.slane %v3079_v30, 5  ;;  %v3095_v37 = vshll.u32 %v2861_v2, 16  ;;  %v3087_v55 = vrot.slane %v3085_v32, 5  ;;  %v1919_v16 = vld [vmem:[#allocation2 + $0x80] sm:$0x1] }
 0x188   : > { %4927 = vmatmul.mubr.bf16.gmra.mrb[92].mxu1 %v12078_v52  ;;  %v2148_v24 = vrot.slane %v2147_v0, 4  ;;  %v3091_v51 = vrot.slane %v3089_v61, 4  ;;  %v10365_v18 = vrot.slane %v2429_v28, 9  ;;  %v2563_v54 = vrot.slane %v2430_v14, 5  ;;  %v2862_v30 = vld [vmem:[#allocation2 + $0x84] sm:$0xf] }
 0x189   : > { %v2143_v41 = vsel %vm12615_vm11, %v2138_v19, %v2142_v38  ;;  %v3082_v35 = vor.u32 %v3081_v44, %v3078_v26  ;;  %v3097_v57 = vrot.slane %v3095_v37, 5  ;;  %v2566_v15 = vrot.slane %v2431_v34, 5  ;;  %v12080_v32 = vld [vmem:[#allocation2 + $0x78] sm:$0xff]   ;;  %v2863_v14 = vld [vmem:[#allocation2 + $0x88] sm:$0xf] }
 0x18a   : > { %v2153_v3 = vsel %vm12615_vm11, %v2148_v24, %v2152_v31  ;;  %v3092_v9 = vor.u32 %v3091_v51, %v3087_v55  ;;  %v2155_v2 = vshrl.u32 %v1917_v48, 16  ;;  %v2564_v21 = vsel %vm12633_vm14, %v10365_v18, %v2563_v54  ;;  %v2864_v37 = vld [vmem:[#allocation2 + $0x8c] sm:$0x1]  ;;  %v2432_v24 = vld [vmem:[#allocation2 + $0x84] sm:$0xe] }
 0x18b   : > { %v10348_v20 = vcombine.low %v2143_v41, %v2153_v3  ;;  %v3083_v52 = vrot.slane %v3082_v35, 4  ;;  %v2565_v28 = vrot.slane %v2563_v54, 4  ;;  %v2158_v61 = vshll.u32 %v1917_v48, 16  ;;  %v2433_v48 = vld [vmem:[#allocation2 + $0x88] sm:$0xf] }
 0x18c   : > { %v3093_v0 = vrot.slane %v3092_v9, 4  ;;  %v2157_v38 = vrot.slane %v2155_v2, 4  ;;  %v2164_v19 = vshll.u32 %v1918_v60, 16  ;;  %v2168_v26 = vshrl.u32 %v1918_v60, 16  ;;  %v2434_v54 = vld [vmem:[#allocation2 + $0x8c] sm:$0x1] }
 0x18d   : > { %4774 = vmatmul.mubr.bf16.gmra.mrb[96].mxu0 %v10348_v20  ;;  %v3088_v31 = vsel %vm12615_vm11, %v3083_v52, %v3087_v55  ;;  %v2567_v34 = vsel %vm12633_vm14, %v2565_v28, %v2566_v15  ;;  %v2174_v44 = vshll.u32 %v1919_v16, 16  ;;  %v2160_v41 = vrot.slane %v2158_v61, 5  ;;  %v13233_v55 = vpop.f32.mrb[12].mxu1  ;;  %v13235_v28 = vpop.f32.mrb[13].mxu0 }
 0x18e   : > { %v3098_v51 = vsel %vm12615_vm11, %v3093_v0, %v3097_v57  ;;  %v10381_v18 = vcombine.low %v2564_v21, %v2567_v34  ;;  %v2166_v35 = vrot.slane %v2164_v19, 5  ;;  %v2170_v9 = vrot.slane %v2168_v26, 4  ;;  %v1920_v19 = vld [vmem:[#allocation2 + $0x84] sm:$0xf]  ;;  %v13237_v34 = vpop.f32.mrb[13].mxu1  ;;  %v13241_v58 = vpop.f32.mrb[14].mxu0 }
 0x18f   : > { %v10412_v3 = vcombine.low %v3088_v31, %v3098_v51  ;;  %v2176_v2 = vrot.slane %v2174_v44, 5  ;;  %v3100_v20 = vshrl.u32 %v2862_v30, 16  ;;  %v2161_v15 = vor.u32 %v2160_v41, %v2157_v38 }
 0x190   : > { %4781 = vmatprep.mubr.bf16.mxu0 %v10381_v18  ;;  %v3103_v60 = vshll.u32 %v2862_v30, 16  ;;  %v3109_v16 = vshll.u32 %v2863_v14, 16  ;;  %v3113_v52 = vshrl.u32 %v2863_v14, 16  ;;  %v2171_v57 = vor.u32 %v2170_v9, %v2166_v35 }
 0x191   : > { %4934 = vmatprep.mubr.bf16.mxu1 %v10412_v3  ;;  %v3102_v21 = vrot.slane %v3100_v20, 4  ;;  %v3119_v0 = vshll.u32 %v2864_v37, 16  ;;  %v10366_v61 = vrot.slane %v2432_v24, 9  ;;  %v2162_v31 = vrot.slane %v2161_v15, 4  ;;  %v1921_v20 = vld [vmem:[#allocation2 + $0x88] sm:$0xf] }
 0x192   : > { %4935 = vmatmul.mubr.bf16.gmra.mrb[96].mxu1 %v12080_v32  ;;  %v3105_v26 = vrot.slane %v3103_v60, 5  ;;  %v3111_v44 = vrot.slane %v3109_v16, 5  ;;  %v3115_v51 = vrot.slane %v3113_v52, 4  ;;  %v2172_v18 = vrot.slane %v2171_v57, 4  ;;  %v1922_v37 = vld [vmem:[#allocation2 + $0x8c] sm:$0x1] }
 0x193   : > { %v3121_v38 = vrot.slane %v3119_v0, 5  ;;  %v2570_v30 = vrot.slane %v2433_v48, 5  ;;  %v2573_v41 = vrot.slane %v2434_v54, 5  ;;  %v2167_v14 = vsel %vm12615_vm11, %v2162_v31, %v2166_v35  ;;  %v2865_v48 = vld [vmem:[#allocation2 + $0x90] sm:$0xf] }
 0x194   : > { %v3106_v3 = vor.u32 %v3105_v26, %v3102_v21  ;;  %v3116_v9 = vor.u32 %v3115_v51, %v3111_v44  ;;  %v2179_v24 = vshrl.u32 %v1920_v19, 16  ;;  %v2177_v32 = vsel %vm12615_vm11, %v2172_v18, %v2176_v2  ;;  %v13247_v21 = vpop.f32.mrb[14].mxu1  ;;  %v13251_v2 = vpop.f32.mrb[15].mxu0  ;;  %v12081_v18 = vld [vmem:[#allocation2 + $0x84] sm:$0xff]  }
 0x195   : > { %v2571_v15 = vsel %vm12633_vm14, %v10366_v61, %v2570_v30  ;;  %v2572_v60 = vrot.slane %v2570_v30, 4  ;;  %v2182_v16 = vshll.u32 %v1920_v19, 16  ;;  %v10349_v54 = vcombine.low %v2167_v14, %v2177_v32 }
 0x196   : > { %v3107_v52 = vrot.slane %v3106_v3, 4  ;;  %v3117_v57 = vrot.slane %v3116_v9, 4  ;;  %v2181_v35 = vrot.slane %v2179_v24, 4  ;;  %v2188_v26 = vshll.u32 %v1921_v20, 16  ;;  %v2867_v3 = vld [vmem:[#allocation2 + $0x98] sm:$0x1] }
 0x197   : > { %v2574_v0 = vsel %vm12633_vm14, %v2572_v60, %v2573_v41  ;;  %v2184_v31 = vrot.slane %v2182_v16, 5  ;;  %v2192_v51 = vshrl.u32 %v1921_v20, 16  ;;  %4782 = vmatmul.mubr.bf16.gmra.mrb[100].mxu0 %v10349_v54  ;;  %v2198_v14 = vshll.u32 %v1922_v37, 16  ;;  %v13257_v9 = vpop.f32.mrb[15].mxu1 }
 0x198   : > { %v3112_v61 = vsel %vm12615_vm11, %v3107_v52, %v3111_v44  ;;  %v3122_v19 = vsel %vm12615_vm11, %v3117_v57, %v3121_v38  ;;  %v10382_v30 = vcombine.low %v2571_v15, %v2574_v0  ;;  %v2190_v32 = vrot.slane %v2188_v26, 5  ;;  %v2436_v15 = vld [vmem:[#allocation2 + $0x94] sm:$0xf]  ;;  %v13263_v26 = vpop.f32.mrb[16].mxu0 }
 0x199   : > { %v10413_v41 = vcombine.low %v3112_v61, %v3122_v19  ;;  %v2185_v24 = vor.u32 %v2184_v31, %v2181_v35  ;;  %v2194_v20 = vrot.slane %v2192_v51, 4  ;;  %v2200_v60 = vrot.slane %v2198_v14, 5  ;;  %v2437_v31 = vld [vmem:[#allocation2 + $0x98] sm:$0x1] }
 0x19a   : > { %4789 = vmatprep.mubr.bf16.mxu0 %v10382_v30  ;;  %v3124_v16 = vshrl.u32 %v2865_v48, 16  ;;  %v3127_v54 = vshll.u32 %v2865_v48, 16  ;;  %v3137_v38 = vshrl.u32 %v2866_v62, 16  ;;  %v3143_v57 = vshll.u32 %v2867_v3, 16  ;;  %v1923_v62 = vld [vmem:[#allocation2 + $0x90] sm:$0xf] }
 0x19b   : > { %4942 = vmatprep.mubr.bf16.mxu1 %v10413_v41  ;;  %v2186_v44 = vrot.slane %v2185_v24, 4  ;;  %v2195_v52 = vor.u32 %v2194_v20, %v2190_v32  ;;  %v3135_v4 = vrot.slane %v3133_v5, 5  ;;  %v13261_v35 = vadd.f32 %v13111_v50, %v13109_v7  ;;  %v13267_v30 = vpop.f32.mrb[16].mxu1  ;;  %v1925_v20 = vld [vmem:[#allocation2 + $0x98] sm:$0x1] }
 0x19c   : > { %4943 = vmatmul.mubr.bf16.gmra.mrb[100].mxu1 %v12081_v18  ;;  %v3126_v37 = vrot.slane %v3124_v16, 4  ;;  %v3129_v0 = vrot.slane %v3127_v54, 5  ;;  %v3139_v61 = vrot.slane %v3137_v38, 4  ;;  %v3145_v19 = vrot.slane %v3143_v57, 5  ;;  %v13287_v38 = vpop.f32.mrb[17].mxu1 }
 0x19d   : > { %15284 = vst [vmem:[#allocation19_spill] sm:$0xff] %v13261_v35  ;;  %v2191_v48 = vsel %vm12615_vm11, %v2186_v44, %v2190_v32  ;;  %v2196_v51 = vrot.slane %v2195_v52, 4  ;;  %v13271_v5 = vadd.f32 %v13133_v8, %v13125_v27  ;;  %v13275_v7 = vadd.f32 %v13119_v33, %v13114_v22  ;;  %v1924_v32 = vld [vmem:[#allocation2 + $0x94] sm:$0xf]  ;;  %v13283_v44 = vpop.f32.mrb[17].mxu0 }
 0x19e   : > { %v3130_v18 = vor.u32 %v3129_v0, %v3126_v37  ;;  %v13279_v50 = vadd.f32 %v13147_v1, %v13135_v23  ;;  %v3140_v3 = vor.u32 %v3139_v61, %v3135_v4  ;;  %v10367_v41 = vrot.slane %v2435_v25, 9  ;;  %v12083_v33 = vld [vmem:[#allocation2 + $0x90] sm:$0xff]   ;;  %v2868_v37 = vld [vmem:[#allocation2 + $0x9c] sm:$0xf]  ;;  %v13291_v0 = vpop.f32.mrb[18].mxu0 }
 0x19f   : > { %15285 = vst [vmem:[#allocation20_spill] sm:$0xff] %v13271_v5  ;;  %15286 = vst [vmem:[#allocation21_spill] sm:$0xff] %v13275_v7  ;;  %v2201_v14 = vsel %vm12615_vm11, %v2196_v51, %v2200_v60  ;;  %v2577_v24 = vrot.slane %v2436_v15, 5  ;;  %v2580_v27 = vrot.slane %v2437_v31, 5  ;;  %v2203_v8 = vshrl.u32 %v1923_v62, 16 }
 0x1a0   : > { %15287 = vst [vmem:[#allocation22_spill] sm:$0xff] %v13279_v50  ;;  %v10350_v16 = vcombine.low %v2191_v48, %v2201_v14  ;;  %v3131_v54 = vrot.slane %v3130_v18, 4  ;;  %v3141_v22 = vrot.slane %v3140_v3, 4  ;;  %v2206_v52 = vshll.u32 %v1923_v62, 16  ;;  %v2869_v62 = vld [vmem:[#allocation2 + $0xa0] sm:$0xf] }
 0x1a1   : > { %v2578_v23 = vsel %vm12633_vm14, %v10367_v41, %v2577_v24  ;;  %v2579_v1 = vrot.slane %v2577_v24, 4  ;;  %v2205_v60 = vrot.slane %v2203_v8, 4  ;;  %v2212_v57 = vshll.u32 %v1924_v32, 16  ;;  %v2870_v18 = vld [vmem:[#allocation2 + $0xa4] sm:$0x1]  ;;  %v13297_v50 = vpop.f32.mrb[18].mxu1 }
 0x1a2   : > { %4790 = vmatmul.mubr.bf16.gmra.mrb[104].mxu0 %v10350_v16  ;;  %v3136_v25 = vsel %vm12615_vm11, %v3131_v54, %v3135_v4  ;;  %v2216_v15 = vshrl.u32 %v1924_v32, 16  ;;  %v3146_v31 = vsel %vm12615_vm11, %v3141_v22, %v3145_v19  ;;  %v2208_v51 = vrot.slane %v2206_v52, 5  ;;  %v2438_v8 = vld [vmem:[#allocation2 + $0x9c] sm:$0xe]  ;;  %v13299_v52 = vpop.f32.mrb[19].mxu0 }
 0x1a3   : > { %v2581_v48 = vsel %vm12633_vm14, %v2579_v1, %v2580_v27  ;;  %v2222_v61 = vshll.u32 %v1925_v20, 16  ;;  %v10414_v14 = vcombine.low %v3136_v25, %v3146_v31  ;;  %v2214_v41 = vrot.slane %v2212_v57, 5  ;;  %v2439_v20 = vld [vmem:[#allocation2 + $0xa0] sm:$0xf] }
 0x1a4   : > { %v10383_v3 = vcombine.low %v2578_v23, %v2581_v48  ;;  %v2218_v4 = vrot.slane %v2216_v15, 4  ;;  %v2209_v24 = vor.u32 %v2208_v51, %v2205_v60  ;;  %v3148_v32 = vshrl.u32 %v2868_v37, 16  ;;  %v13305_v15 = vpop.f32.mrb[19].mxu1 }
 0x1a5   : > { %v2224_v16 = vrot.slane %v2222_v61, 5  ;;  %v3151_v54 = vshll.u32 %v2868_v37, 16  ;;  %4950 = vmatprep.mubr.bf16.mxu1 %v10414_v14  ;;  %v3157_v22 = vshll.u32 %v2869_v62, 16  ;;  %v3161_v27 = vshrl.u32 %v2869_v62, 16  ;;  %v2440_v61 = vld [vmem:[#allocation2 + $0xa4] sm:$0x1] }
 0x1a6   : > { %4797 = vmatprep.mubr.bf16.mxu0 %v10383_v3  ;;  %v2219_v19 = vor.u32 %v2218_v4, %v2214_v41  ;;  %v3167_v1 = vshll.u32 %v2870_v18, 16  ;;  %4951 = vmatmul.mubr.bf16.gmra.mrb[104].mxu1 %v12083_v33  ;;  %v2210_v23 = vrot.slane %v2209_v24, 4  ;;  %v3150_v25 = vrot.slane %v3148_v32, 4 }
 0x1a7   : > { %v3153_v57 = vrot.slane %v3151_v54, 5  ;;  %v13303_v60 = vadd.f32 %v13155_v45, %v13151_v13  ;;  %v3159_v31 = vrot.slane %v3157_v22, 5  ;;  %v3163_v48 = vrot.slane %v3161_v27, 4  ;;  %v1926_v13 = vld [vmem:[#allocation2 + $0x9c] sm:$0xf] }
 0x1a8   : > { %v2220_v37 = vrot.slane %v2219_v19, 4  ;;  %v3169_v51 = vrot.slane %v3167_v1, 5  ;;  %v2215_v62 = vsel %vm12615_vm11, %v2210_v23, %v2214_v41  ;;  %v13311_v33 = vadd.f32 %v13161_v53, %v13153_v6  ;;  %v1927_v45 = vld [vmem:[#allocation2 + $0xa0] sm:$0xf]  ;;  %v13323_v53 = vpop.f32.mrb[20].mxu0 }
 0x1a9   : > { %15288 = vst [vmem:[#allocation23_spill] sm:$0xff] %v13303_v60  ;;  %v3154_v18 = vor.u32 %v3153_v57, %v3150_v25  ;;  %v13315_v14 = vadd.f32 %v13175_v43, %v13171_v17  ;;  %v3164_v4 = vor.u32 %v3163_v48, %v3159_v31  ;;  %v13321_v24 = vadd.f32 %v13183_v12, %v13173_v36  ;;  %v1928_v17 = vld [vmem:[#allocation2 + $0xa4] sm:$0x1]  ;;  %v12084_v23 = vld [vmem:[#allocation2 + $0x9c] sm:$0xff]   ;;  %v2871_v25 = vld [vmem:[#allocation2 + $0xa8] sm:$0xf] }
 0x1aa   : > { %15289 = vst [vmem:[#allocation24_spill] sm:$0xff] %v13311_v33  ;;  %v2225_v3 = vsel %vm12615_vm11, %v2220_v37, %v2224_v16  ;;  %v10368_v41 = vrot.slane %v2438_v8, 9  ;;  %v2584_v19 = vrot.slane %v2439_v20, 5  ;;  %v2587_v6 = vrot.slane %v2440_v61, 5  ;;  %v2872_v61 = vld [vmem:[#allocation2 + $0xac] sm:$0xf] }
 0x1ab   : > { %15290 = vst [vmem:[#allocation25_spill] sm:$0xff] %v13315_v14  ;;  %15291 = vst [vmem:[#allocation26_spill] sm:$0xff] %v13321_v24  ;;  %v10351_v32 = vcombine.low %v2215_v62, %v2225_v3  ;;  %v3155_v54 = vrot.slane %v3154_v18, 4  ;;  %v3165_v22 = vrot.slane %v3164_v4, 4  ;;  %v2227_v43 = vshrl.u32 %v1926_v13, 16  ;;  %v13331_v62 = vpop.f32.mrb[20].mxu1 }
 0x1ac   : > { %v2230_v27 = vshll.u32 %v1926_v13, 16  ;;  %v2236_v1 = vshll.u32 %v1927_v45, 16  ;;  %v2585_v36 = vsel %vm12633_vm14, %v10368_v41, %v2584_v19  ;;  %v2586_v12 = vrot.slane %v2584_v19, 4  ;;  %v2873_v4 = vld [vmem:[#allocation2 + $0xb0] sm:$0x1]  ;;  %v13335_v19 = vpop.f32.mrb[21].mxu0 }
 0x1ad   : > { %4798 = vmatmul.mubr.bf16.gmra.mrb[108].mxu0 %v10351_v32  ;;  %v3160_v16 = vsel %vm12615_vm11, %v3155_v54, %v3159_v31  ;;  %v2240_v8 = vshrl.u32 %v1927_v45, 16  ;;  %v3170_v20 = vsel %vm12615_vm11, %v3165_v22, %v3169_v51  ;;  %v2229_v57 = vrot.slane %v2227_v43, 4  ;;  %v13337_v51 = vpop.f32.mrb[21].mxu1  ;;  %v2875_v24 = vld [vmem:[#allocation2 + $0xb8] sm:$0xf] }
 0x1ae   : > { %v2232_v37 = vrot.slane %v2230_v27, 5  ;;  %v2238_v48 = vrot.slane %v2236_v1, 5  ;;  %v10415_v18 = vcombine.low %v3160_v16, %v3170_v20  ;;  %v2588_v31 = vsel %vm12633_vm14, %v2586_v12, %v2587_v6  ;;  %v2441_v16 = vld [vmem:[#allocation2 + $0xa8] sm:$0xe]  ;;  %v13339_v20 = vpop.f32.mrb[22].mxu0  ;;  %v13341_v6 = vpop.f32.mrb[22].mxu1 }
 0x1af   : > { %v2242_v13 = vrot.slane %v2240_v8, 4  ;;  %v2246_v3 = vshll.u32 %v1928_v17, 16  ;;  %v10384_v41 = vcombine.low %v2585_v36, %v2588_v31  ;;  %v3172_v45 = vshrl.u32 %v2871_v25, 16  ;;  %v2876_v33 = vld [vmem:[#allocation2 + $0xbc] sm:$0x1] }
 0x1b0   : > { %v2233_v32 = vor.u32 %v2232_v37, %v2229_v57  ;;  %v3175_v54 = vshll.u32 %v2871_v25, 16  ;;  %4958 = vmatprep.mubr.bf16.mxu1 %v10415_v18  ;;  %v3181_v27 = vshll.u32 %v2872_v61, 16  ;;  %v3185_v1 = vshrl.u32 %v2872_v61, 16  ;;  %v13343_v25 = vpop.f32.mrb[23].mxu0  ;;  %v13345_v57 = vpop.f32.mrb[23].mxu1 }
 0x1b1   : > { %v2243_v22 = vor.u32 %v2242_v13, %v2238_v48  ;;  %v2248_v43 = vrot.slane %v2246_v3, 5  ;;  %4959 = vmatmul.mubr.bf16.gmra.mrb[108].mxu1 %v12084_v23  ;;  %4805 = vmatprep.mubr.bf16.mxu0 %v10384_v41  ;;  %v3174_v36 = vrot.slane %v3172_v45, 4  ;;  %v3191_v8 = vshll.u32 %v2873_v4, 16  ;;  %v2442_v13 = vld [vmem:[#allocation2 + $0xac] sm:$0xf]  ;;  %v13351_v3 = vpop.f32.mrb[24].mxu0 }
 0x1b2   : > { %v2234_v17 = vrot.slane %v2233_v32, 4  ;;  %v3177_v12 = vrot.slane %v3175_v54, 5  ;;  %v3183_v18 = vrot.slane %v3181_v27, 5  ;;  %v3187_v31 = vrot.slane %v3185_v1, 4  ;;  %v2443_v45 = vld [vmem:[#allocation2 + $0xb0] sm:$0x1] }
 0x1b3   : > { %v2244_v37 = vrot.slane %v2243_v22, 4  ;;  %v13349_v61 = vadd.f32 %v13195_v47, %v13185_v49  ;;  %v3193_v32 = vrot.slane %v3191_v8, 5  ;;  %v13357_v4 = vadd.f32 %v13197_v63, %v13189_v29  ;;  %v1929_v54 = vld [vmem:[#allocation2 + $0xa8] sm:$0xf]  ;;  %v13359_v22 = vpop.f32.mrb[24].mxu1  ;;  %v13371_v8 = vpop.f32.mrb[25].mxu0 }
 0x1b4   : > { %v2239_v23 = vsel %vm12615_vm11, %v2234_v17, %v2238_v48  ;;  %v3178_v41 = vor.u32 %v3177_v12, %v3174_v36  ;;  %v3188_v47 = vor.u32 %v3187_v31, %v3183_v18  ;;  %v13365_v27 = vadd.f32 %v13211_v59, %v13205_v39  ;;  %v1930_v1 = vld [vmem:[#allocation2 + $0xac] sm:$0xf]  ;;  %v1931_v17 = vld [vmem:[#allocation2 + $0xb0] sm:$0x1] }
 0x1b5   : > { %15292 = vst [vmem:[#allocation27_spill] sm:$0xff] %v13349_v61  ;;  %15293 = vst [vmem:[#allocation28_spill] sm:$0xff] %v13357_v4  ;;  %v2249_v49 = vsel %vm12615_vm11, %v2244_v37, %v2248_v43  ;;  %v13369_v48 = vadd.f32 %v13217_v10, %v13207_v46  ;;  %v10369_v36 = vrot.slane %v2441_v16, 9  ;;  %v2591_v12 = vrot.slane %v2442_v13, 5  ;;  %v13373_v4 = vpop.f32.mrb[25].mxu1  ;;  %v12091_v43 = vld [vmem:[#allocation9 + $0x40] sm:$0xff]  }
 0x1b6   : > { %15294 = vst [vmem:[#allocation29_spill] sm:$0xff] %v13365_v27  ;;  %v10352_v29 = vcombine.low %v2239_v23, %v2249_v49  ;;  %v3179_v63 = vrot.slane %v3178_v41, 4  ;;  %v3189_v37 = vrot.slane %v3188_v47, 4  ;;  %v12086_v31 = vld [vmem:[#allocation2 + $0xa8] sm:$0xff]   ;;  %v2594_v61 = vrot.slane %v2443_v45, 5  ;;  %v13375_v27 = vpop.f32.mrb[26].mxu0  ;;  %11331 = vmatprep.subr.bf16.mxu1 %v12091_v43 }
 0x1b7   : > { %15295 = vst [vmem:[#allocation30_spill] sm:$0xff] %v13369_v48  ;;  %v2251_v39 = vshrl.u32 %v1929_v54, 16  ;;  %v2254_v59 = vshll.u32 %v1929_v54, 16  ;;  %v13377_v46 = vpop.f32.mrb[26].mxu1  ;;  %v2592_v16 = vsel %vm12633_vm14, %v10369_v36, %v2591_v12  ;;  %v2593_v13 = vrot.slane %v2591_v12, 4  ;;  %v13383_v49 = vpop.f32.mrb[27].mxu0 }
 0x1b8   : > { %4806 = vmatmul.mubr.bf16.gmra.mrb[112].mxu0 %v10352_v29  ;;  %v3184_v10 = vsel %vm12615_vm11, %v3179_v63, %v3183_v18  ;;  %v2260_v23 = vshll.u32 %v1930_v1, 16  ;;  %v2874_v41 = vld [vmem:[#allocation2 + $0xb4] sm:$0xf]  ;;  %v13385_v47 = vpop.f32.mrb[27].mxu1  ;;  %v3194_v45 = vsel %vm12615_vm11, %v3189_v37, %v3193_v32  ;;  %v2264_v29 = vshrl.u32 %v1930_v1, 16  ;;  %v13389_v14 = vpop.f32.mrb[28].mxu0 }
 0x1b9   : > { %15296 = vst [vmem:[#allocation31_spill] sm:$0xff] %v13385_v47  ;;  %v2253_v54 = vrot.slane %v2251_v39, 4  ;;  %v2256_v48 = vrot.slane %v2254_v59, 5  ;;  %15297 = vst [vmem:[#allocation32_spill] sm:$0xff] %v13389_v14  ;;  %v10416_v18 = vcombine.low %v3184_v10, %v3194_v45  ;;  %v2595_v63 = vsel %vm12633_vm14, %v2593_v13, %v2594_v61  ;;  %v2444_v1 = vld [vmem:[#allocation2 + $0xb4] sm:$0xe] }
 0x1ba   : > { %v2262_v36 = vrot.slane %v2260_v23, 5  ;;  %v2270_v12 = vshll.u32 %v1931_v17, 16  ;;  %v10385_v60 = vcombine.low %v2592_v16, %v2595_v63  ;;  %v2266_v5 = vrot.slane %v2264_v29, 4  ;;  %v2445_v59 = vld [vmem:[#allocation2 + $0xb8] sm:$0xf]  ;;  %v13393_v14 = vpop.f32.mrb[28].mxu1 }
 0x1bb   : > { %v2257_v7 = vor.u32 %v2256_v48, %v2253_v54  ;;  %v3196_v43 = vshrl.u32 %v2874_v41, 16  ;;  %4966 = vmatprep.mubr.bf16.mxu1 %v10416_v18  ;;  %v3199_v32 = vshll.u32 %v2874_v41, 16  ;;  %v3205_v37 = vshll.u32 %v2875_v24, 16  ;;  %v2446_v47 = vld [vmem:[#allocation2 + $0xbc] sm:$0x1]  ;;  %v13395_v10 = vpop.f32.mrb[29].mxu0 }
 0x1bc   : > { %v2272_v35 = vrot.slane %v2270_v12, 5  ;;  %v3209_v39 = vshrl.u32 %v2875_v24, 16  ;;  %4967 = vmatmul.mubr.bf16.gmra.mrb[112].mxu1 %v12086_v31  ;;  %4813 = vmatprep.mubr.bf16.mxu0 %v10385_v60  ;;  %v2267_v17 = vor.u32 %v2266_v5, %v2262_v36  ;;  %v3215_v48 = vshll.u32 %v2876_v33, 16  ;;  %v13397_v13 = vpop.f32.mrb[29].mxu1  ;;  %v13399_v23 = vpop.f32.mrb[30].mxu0  ;;  %v12092_v41 = vld [vmem:[#allocation9] sm:$0xff]  }
 0x1bd   : > { %v2258_v61 = vrot.slane %v2257_v7, 4  ;;  %v3198_v16 = vrot.slane %v3196_v43, 4  ;;  %v3201_v45 = vrot.slane %v3199_v32, 5  ;;  %v3207_v24 = vrot.slane %v3205_v37, 5  ;;  %v13405_v18 = vpop.f32.mrb[30].mxu1  ;;  %v13407_v31 = vpop.f32.mrb[31].mxu0  ;;  %11332 = vmatpush3.bf16.msra.mxu1 %v12092_v41 }
 0x1be   : > { %v3211_v54 = vrot.slane %v3209_v39, 4  ;;  %v13403_v29 = vadd.f32 %v13235_v28, %v13219_v40  ;;  %v2268_v7 = vrot.slane %v2267_v17, 4  ;;  %v3217_v60 = vrot.slane %v3215_v48, 5  ;;  %v1932_v63 = vld [vmem:[#allocation2 + $0xb4] sm:$0xf]  ;;  %v13415_v12 = vpop.f32.mrb[31].mxu1 }
 0x1bf   : > { %v2263_v5 = vsel %vm12615_vm11, %v2258_v61, %v2262_v36  ;;  %v13413_v33 = vadd.f32 %v13237_v34, %v13233_v55  ;;  %v13417_v43 = vpop.f32.mrb[32].mxu0  ;;  %v3202_v40 = vor.u32 %v3201_v45, %v3198_v16  ;;  %v13421_v32 = vadd.f32 %v13251_v2, %v13241_v58  ;;  %v1933_v37 = vld [vmem:[#allocation2 + $0xb8] sm:$0xf]  ;;  %v1934_v17 = vld [vmem:[#allocation2 + $0xbc] sm:$0x1]  ;;  %v13429_v41 = vpop.f32.mrb[32].mxu1 }
 0x1c0   : > { %15298 = vst [vmem:[#allocation33_spill] sm:$0xff] %v13403_v29  ;;  %v3212_v28 = vor.u32 %v3211_v54, %v3207_v24  ;;  %v13425_v36 = vadd.f32 %v13257_v9, %v13247_v21  ;;  %v2273_v55 = vsel %vm12615_vm11, %v2268_v7, %v2272_v35  ;;  %v10370_v34 = vrot.slane %v2444_v1, 9  ;;  %v325_v48 = vld [vmem:[#allocation2 + $0xc8] sm:$0x1]  ;;  %v2877_v2 = vld [vmem:[#allocation2 + $0xc0] sm:$0xf] }
 0x1c1   : > { %15299 = vst [vmem:[#allocation34_spill] sm:$0xff] %v13413_v33  ;;  %15300 = vst [vmem:[#allocation35_spill] sm:$0xff] %v13421_v32  ;;  %v2598_v39 = vrot.slane %v2445_v59, 5  ;;  %v2601_v61 = vrot.slane %v2446_v47, 5  ;;  %v10353_v16 = vcombine.low %v2263_v5, %v2273_v55  ;;  %v3203_v45 = vrot.slane %v3202_v40, 4  ;;  %v13431_v32 = vpop.f32.mrb[33].mxu0 }
 0x1c2   : > { %15301 = vst [vmem:[#allocation36_spill] sm:$0xff] %v13425_v36  ;;  %v3213_v54 = vrot.slane %v3212_v28, 4  ;;  %v2275_v58 = vshrl.u32 %v1932_v63, 16  ;;  %v12087_v21 = vld [vmem:[#allocation2 + $0xb4] sm:$0xff]   ;;  %v2278_v35 = vshll.u32 %v1932_v63, 16  ;;  %v2284_v1 = vshll.u32 %v1933_v37, 16 }
 0x1c3   : > { %v2599_v9 = vsel %vm12633_vm14, %v10370_v34, %v2598_v39  ;;  %v2600_v36 = vrot.slane %v2598_v39, 4  ;;  %v13435_v59 = vpop.f32.mrb[33].mxu1  ;;  %v13437_v47 = vpop.f32.mrb[34].mxu0  ;;  %4814 = vmatmul.mubr.bf16.gmra.mrb[116].mxu0 %v10353_v16  ;;  %v3208_v5 = vsel %vm12615_vm11, %v3203_v45, %v3207_v24  ;;  %v2288_v28 = vshrl.u32 %v1933_v37, 16  ;;  %v2878_v55 = vld [vmem:[#allocation2 + $0xc4] sm:$0xf] }
 0x1c4   : > { %15302 = vst [vmem:[#allocation37_spill] sm:$0xff] %v13435_v59  ;;  %15303 = vst [vmem:[#allocation38_spill] sm:$0xff] %v13437_v47  ;;  %v3218_v7 = vsel %vm12615_vm11, %v3213_v54, %v3217_v60  ;;  %v2277_v40 = vrot.slane %v2275_v58, 4  ;;  %v13443_v33 = vpop.f32.mrb[34].mxu1  ;;  %v13445_v34 = vpop.f32.mrb[35].mxu0  ;;  %v2280_v29 = vrot.slane %v2278_v35, 5  ;;  %v13461_v42 = vadd.f32 %v13283_v44, %v13263_v26 }
 0x1c5   : > { %v10417_v63 = vcombine.low %v3208_v5, %v3218_v7  ;;  %v2602_v39 = vsel %vm12633_vm14, %v2600_v36, %v2601_v61  ;;  %v2286_v47 = vrot.slane %v2284_v1, 5  ;;  %v13449_v16 = vpop.f32.mrb[35].mxu1  ;;  %v2290_v45 = vrot.slane %v2288_v28, 4  ;;  %v2447_v61 = vld [vmem:[#allocation2 + $0xc0] sm:$0xe] }
 0x1c6   : > { %v10386_v24 = vcombine.low %v2599_v9, %v2602_v39  ;;  %v2294_v60 = vshll.u32 %v1934_v17, 16  ;;  %v326_v37 = vsel %vm12603_vm10, 0, %v325_v48  ;;  %v13455_v54 = vpop.f32.mrb[36].mxu1  ;;  %v2281_v58 = vor.u32 %v2280_v29, %v2277_v40  ;;  %15304 = vst [vmem:[#allocation39_spill] sm:$0xff] %v13461_v42  ;;  %v2448_v17 = vld [vmem:[#allocation2 + $0xc4] sm:$0xf] }
 0x1c7   : > { %v13451_v59 = vpop.f32.mrb[36].mxu0  ;;  %4974 = vmatprep.mubr.bf16.mxu1 %v10417_v63  ;;  %327 = vst [vmem:[#allocation2 + $0xc8] sm:$0x1] %v326_v37  ;;  %v3220_v5 = vshrl.u32 %v2877_v2, 16  ;;  %v3223_v7 = vshll.u32 %v2877_v2, 16  ;;  %v3229_v36 = vshll.u32 %v2878_v55, 16  ;;  %v2291_v1 = vor.u32 %v2290_v45, %v2286_v47 }
 0x1c8   : > { %v13457_v35 = vpop.f32.mrb[37].mxu0  ;;  %4975 = vmatmul.mubr.bf16.gmra.mrb[116].mxu1 %v12087_v21  ;;  %4821 = vmatprep.mubr.bf16.mxu0 %v10386_v24  ;;  %v2296_v9 = vrot.slane %v2294_v60, 5  ;;  %v3233_v28 = vshrl.u32 %v2878_v55, 16  ;;  %v1935_v48 = vld [vmem:[#allocation2 + $0xc0] sm:$0xf]  ;;  %v2282_v63 = vrot.slane %v2281_v58, 4  ;;  %v13471_v55 = vadd.f32 %v13287_v38, %v13267_v30 }
 0x1c9   : > { %v3222_v29 = vrot.slane %v3220_v5, 4  ;;  %v3225_v40 = vrot.slane %v3223_v7, 5  ;;  %v13463_v39 = vrot.slane %v3229_v36, 5  ;;  %v13465_v2 = vpop.f32.mrb[37].mxu1  ;;  %v13467_v37 = vpop.f32.mrb[38].mxu0  ;;  %v2292_v21 = vrot.slane %v2291_v1, 4 }
 0x1ca   : > { %v3235_v24 = vrot.slane %v3233_v28, 4  ;;  %15305 = vst [vmem:[#allocation40_spill] sm:$0xff] %v13471_v55  ;;  %v13475_v26 = vadd.f32 %v13299_v52, %v13291_v0  ;;  %v1936_v44 = vld [vmem:[#allocation2 + $0xc4] sm:$0xf]  ;;  %v13477_v45 = vpop.f32.mrb[38].mxu1  ;;  %v13479_v60 = vpop.f32.mrb[39].mxu0  ;;  %v2287_v58 = vsel %vm12615_vm11, %v2282_v63, %v2286_v47  ;;  %v13485_v7 = vadd.f32 %v13305_v15, %v13297_v50 }
 0x1cb   : > { %15307 = vst [vmem:[#allocation42_spill] sm:$0xff] %v13477_v45  ;;  %15308 = vst [vmem:[#allocation43_spill] sm:$0xff] %v13479_v60  ;;  %v3226_v5 = vor.u32 %v3225_v40, %v3222_v29  ;;  %v10371_v36 = vrot.slane %v2447_v61, 9  ;;  %v13487_v30 = vpop.f32.mrb[39].mxu1  ;;  %v2297_v38 = vsel %vm12615_vm11, %v2292_v21, %v2296_v9  ;;  %v2605_v52 = vrot.slane %v2448_v17, 5  ;;  %v15313_v21 = vld [vmem:[#allocation18_spill] sm:$0xff] }
 0x1cc   : > { %15306 = vst [vmem:[#allocation41_spill] sm:$0xff] %v13475_v26  ;;  %15309 = vst [vmem:[#allocation44_spill] sm:$0xff] %v13485_v7  ;;  %v3236_v0 = vor.u32 %v3235_v24, %v13463_v39  ;;  %v2299_v1 = vshrl.u32 %v1935_v48, 16  ;;  %v2880_v28 = vld [vmem:[#allocation2 + $0xcc] sm:$0xf]  ;;  %v10354_v55 = vcombine.low %v2287_v58, %v2297_v38  ;;  %v2302_v42 = vshll.u32 %v1935_v48, 16 }
 0x1cd   : > { %15310 = vst [vmem:[#allocation45_spill] sm:$0xff] %v13487_v30  ;;  %v2881_v26 = vld [vmem:[#allocation2 + $0xd0] sm:$0xf]  ;;  %v2308_v47 = vshll.u32 %v1936_v44, 16  ;;  %v2882_v63 = vld [vmem:[#allocation2 + $0xd4] sm:$0x1]  ;;  %v13500_v9 = vsel %vm12633_vm14, %v10371_v36, %v2605_v52 }
 0x1ce   : > { %v793_v50 = vld [vmem:[#allocation2 + $0xc8] sm:$0x1]  ;;  %v13494_v15 = vrot.slane %v3226_v5, 4  ;;  %v13496_v61 = vrot.slane %v3236_v0, 4  ;;  %v2301_v40 = vrot.slane %v2299_v1, 4  ;;  %4822 = vmatmul.mubr.bf16.gmra.mrb[120].mxu0 %v10354_v55  ;;  %v15314_v24 = vrot.slane %v15313_v21, 4 }
 0x1cf   : > { %v13508_v38 = vrot.slane %v2605_v52, 4  ;;  %v2304_v7 = vrot.slane %v2302_v42, 5  ;;  %v13510_v5 = vrot.slane %v2308_v47, 5  ;;  %v2312_v36 = vshrl.u32 %v1936_v44, 16  ;;  %v3347_v55 = vld [vmem:[#allocation2 + $0x18] sm:$0xe] }
 0x1d0   : > { %v794_v58 = vsel %vm12597_vm3, %v15314_v24, %v793_v50  ;;  %v3244_v1 = vshrl.u32 %v2880_v28, 16  ;;  %v3247_v30 = vshll.u32 %v2880_v28, 16  ;;  %v3257_v52 = vshrl.u32 %v2881_v26, 16  ;;  %v3348_v47 = vld [vmem:[#allocation2 + $0x1c] sm:$0xf] }
 0x1d1   : > { %795 = vst [vmem:[#allocation2 + $0xc8] sm:$0x1] %v794_v58  ;;  %v2305_v50 = vor.u32 %v2304_v7, %v2301_v40  ;;  %v3263_v24 = vshll.u32 %v2882_v63, 16  ;;  %v13522_v42 = vadd.f32 %v13335_v19, %v13323_v53  ;;  %v2314_v44 = vrot.slane %v2312_v36, 4  ;;  %v3349_v60 = vld [vmem:[#allocation2 + $0x20] sm:$0x1] }
 0x1d2   : > { %v3246_v28 = vrot.slane %v3244_v1, 4  ;;  %v3259_v63 = vrot.slane %v3257_v52, 4  ;;  %v13536_v53 = vadd.f32 %v13337_v51, %v13331_v62  ;;  %v13538_v19 = vld [vmem:[#allocation2 + $0x24] sm:$0xe]  ;;  %v13545_v36 = vadd.f32 %v13343_v25, %v13339_v20 }
 0x1d3   : > { %15318 = vst [vmem:[#allocation49_spill] sm:$0xff] %v13522_v42  ;;  %v13532_v7 = vrot.slane %v2305_v50, 4  ;;  %v3265_v50 = vrot.slane %v3263_v24, 5  ;;  %v10420_v52 = vrot.slane %v3347_v55, 9  ;;  %v13572_v24 = vadd.f32 %v13371_v8, %v13351_v3 }
 0x1d4   : > { %15319 = vst [vmem:[#allocation50_spill] sm:$0xff] %v13536_v53  ;;  %15320 = vst [vmem:[#allocation51_spill] sm:$0xff] %v13545_v36  ;;  %v3445_v53 = vrot.slane %v3348_v47, 5  ;;  %v13580_v47 = vadd.f32 %v13383_v49, %v13375_v27 }
 0x1d5   : > { %v13502_v17 = vpop.f32.mrb[40].mxu1  ;;  %v2311_v55 = vsel %vm12615_vm11, %v13532_v7, %v13510_v5 }
 0x1d6   : > { %15312 = vst [vmem:[#allocation47_spill] sm:$0xff] %v13502_v17  ;;  %v3253_v17 = vshll.u32 %v2881_v26, 16  ;;  %v3232_v26 = vsel %vm12615_vm11, %v13494_v15, %v13463_v39  ;;  %v13549_v39 = vadd.f32 %v13345_v57, %v13341_v6  ;;  %v13551_v15 = vld [vmem:[#allocation2 + $0x28] sm:$0xf]  ;;  %15324 = vst [vmem:[#allocation55_spill] sm:$0xff] %v13580_v47  ;;  %v3446_v6 = vsel %vm12633_vm14, %v10420_v52, %v3445_v53 }
 0x1d7   : > { %v13492_v29 = vpop.f32.mrb[40].mxu0  ;;  %v3447_v7 = vrot.slane %v3445_v53, 4 }
 0x1d8   : > { %15311 = vst [vmem:[#allocation46_spill] sm:$0xff] %v13492_v29  ;;  %v13512_v0 = vpop.f32.mrb[41].mxu0  ;;  %v13514_v29 = vpop.f32.mrb[41].mxu1  ;;  %15321 = vst [vmem:[#allocation52_spill] sm:$0xff] %v13549_v39  ;;  %v2879_v36 = vld [vmem:[#allocation2 + $0xc8] sm:$0x1] }
 0x1d9   : > { %15316 = vst [vmem:[#allocation18_spill] sm:$0xff] %v13512_v0  ;;  %15317 = vst [vmem:[#allocation48_spill] sm:$0xff] %v13514_v29  ;;  %v13516_v45 = vpop.f32.mrb[42].mxu0  ;;  %v13518_v21 = vpop.f32.mrb[42].mxu1  ;;  %v3249_v29 = vrot.slane %v3247_v30, 5  ;;  %v3255_v0 = vrot.slane %v3253_v17, 5  ;;  %v2315_v30 = vor.u32 %v2314_v44, %v13510_v5 }
 0x1da   : > { %v13524_v48 = vpop.f32.mrb[43].mxu0  ;;  %v13526_v58 = vpop.f32.mrb[43].mxu1  ;;  %v2449_v42 = vld [vmem:[#allocation2 + $0xc8] sm:$0x1] }
 0x1db   : > { %v3250_v17 = vor.u32 %v3249_v29, %v3246_v28  ;;  %v3260_v51 = vor.u32 %v3259_v63, %v3255_v0  ;;  %v2316_v20 = vrot.slane %v2315_v30, 4  ;;  %v3448_v28 = vrot.slane %v3349_v60, 5 }
 0x1dc   : > { %v13576_v60 = vadd.f32 %v13373_v4, %v13359_v22  ;;  %v3239_v63 = vshll.u32 %v2879_v36, 16  ;;  %v2608_v30 = vrot.slane %v2449_v42, 5  ;;  %v3452_v4 = vrot.slane %v13551_v15, 5  ;;  %v15325_v42 = vld [vmem:[#allocation31_spill] sm:$0xff] }
 0x1dd   : > { %v13553_v1 = vpop.f32.mrb[44].mxu1  ;;  %v3251_v25 = vrot.slane %v3250_v17, 4  ;;  %v3261_v8 = vrot.slane %v3260_v51, 4  ;;  %v13594_v36 = vadd.f32 %v15325_v42, %v13377_v46  ;;  %v3449_v53 = vsel %vm12633_vm14, %v3447_v7, %v3448_v28  ;;  %v3354_v51 = vld [vmem:[#allocation2 + $0x34] sm:$0xf] }
 0x1de   : > { %15322 = vst [vmem:[#allocation53_spill] sm:$0xff] %v13553_v1  ;;  %v13557_v44 = vpop.f32.mrb[45].mxu1  ;;  %v1937_v1 = vld [vmem:[#allocation2 + $0xc8] sm:$0x1]  ;;  %v3241_v22 = vrot.slane %v3239_v63, 5  ;;  %v2609_v27 = vsel %vm12633_vm14, %v13508_v38, %v2608_v30  ;;  %v12089_v63 = vld [vmem:[#allocation2 + $0xc0] sm:$0xff]  }
 0x1df   : > { %v13540_v40 = vpop.f32.mrb[44].mxu0  ;;  %v13562_v57 = vpop.f32.mrb[46].mxu1  ;;  %v2318_v17 = vshll.u32 %v1937_v1, 16  ;;  %v3256_v3 = vsel %vm12615_vm11, %v3251_v25, %v3255_v0  ;;  %15326 = vst [vmem:[#allocation31_spill] sm:$0xff] %v13594_v36  ;;  %v3353_v1 = vld [vmem:[#allocation2 + $0x30] sm:$0xe]  ;;  %v10387_v52 = vcombine.low %v13500_v9, %v2609_v27  ;;  %v3266_v0 = vsel %vm12615_vm11, %v3261_v8, %v3265_v50 }
 0x1e0   : > { %v13555_v62 = vpop.f32.mrb[45].mxu0  ;;  %15323 = vst [vmem:[#allocation54_spill] sm:$0xff] %v13562_v57  ;;  %v3352_v57 = vld [vmem:[#allocation2 + $0x2c] sm:$0x1]  ;;  %v13584_v5 = vpop.f32.mrb[47].mxu1  ;;  %v3242_v38 = vsel %vm12615_vm11, %v13496_v61, %v3241_v22  ;;  %v10419_v30 = vcombine.low %v3256_v3, %v3266_v0  ;;  %v12093_v50 = vld [vmem:[#allocation9 + $0x48] sm:$0xff]  }
 0x1e1   : > { %v13559_v29 = vpop.f32.mrb[46].mxu0  ;;  %v2320_v49 = vrot.slane %v2318_v17, 5  ;;  %v3455_v15 = vrot.slane %v3352_v57, 5  ;;  %v3355_v25 = vld [vmem:[#allocation2 + $0x38] sm:$0x1]  ;;  %v10436_v17 = vcombine.low %v3446_v6, %v3449_v53  ;;  %v10418_v8 = vcombine.low %v3232_v26, %v3242_v38  ;;  %4829 = vmatprep.mubr.bf16.mxu0 %v10387_v52  ;;  %v12094_v61 = vld [vmem:[#allocation9 + $0x8] sm:$0xff]   ;;  %11333 = vmatprep.subr.bf16.mxu1 %v12093_v50 }
 0x1e2   : > { %v13564_v39 = vpop.f32.mrb[47].mxu0  ;;  %v13606_v9 = vld [vmem:[#allocation2 + $0x40] sm:$0xf]  ;;  %v3454_v57 = vrot.slane %v3452_v4, 4  ;;  %v10422_v7 = vrot.slane %v3353_v1, 9  ;;  %v3459_v22 = vrot.slane %v3354_v51, 5  ;;  %11334 = vmatpush3.bf16.msra.mxu1 %v12094_v61  ;;  %v10925_v61 = vadd.f32 %v13431_v32, %v13417_v43 }
 0x1e3   : > { %v2321_v46 = vsel %vm12615_vm11, %v2316_v20, %v2320_v49  ;;  %v3356_v42 = vld [vmem:[#allocation2 + $0x3c] sm:$0xe]  ;;  %v3462_v47 = vrot.slane %v3355_v25, 5  ;;  %v3360_v20 = vld [vmem:[#allocation2 + $0x4c] sm:$0xf]  ;;  %4982 = vmatprep.mubr.bf16.mxu1 %v10418_v8  ;;  %v3466_v6 = vrot.slane %v13606_v9, 5  ;;  %v13621_v49 = vadd.f32 %v13397_v13, %v13393_v14 }
 0x1e4   : > { %v10355_v28 = vcombine.low %v2311_v55, %v2321_v46  ;;  %v15327_v26 = vld [vmem:[#allocation32_spill] sm:$0xff]  ;;  %v3361_v52 = vld [vmem:[#allocation2 + $0x50] sm:$0x1]  ;;  %4983 = vmatmul.mubr.bf16.gmra.mrb[120].mxu1 %v12089_v63  ;;  %v15329_v25 = vrot.slane %v13538_v19, 9  ;;  %v3461_v46 = vrot.slane %v3459_v22, 4  ;;  %v3460_v13 = vsel %vm12633_vm14, %v10422_v7, %v3459_v22 }
 0x1e5   : > { %v13617_v55 = vadd.f32 %v13395_v10, %v15327_v26  ;;  %15328 = vst [vmem:[#allocation32_spill] sm:$0xff] %v13621_v49  ;;  %v3359_v1 = vld [vmem:[#allocation2 + $0x48] sm:$0xe]  ;;  %v3456_v10 = vsel %vm12633_vm14, %v3454_v57, %v3455_v15  ;;  %4990 = vmatprep.mubr.bf16.mxu1 %v10419_v30  ;;  %v13639_v9 = vadd.f32 %v13407_v31, %v13399_v23  ;;  %v3363_v63 = vld [vmem:[#allocation2 + $0x58] sm:$0xf]  ;;  %v10423_v50 = vrot.slane %v3356_v42, 9 }
 0x1e6   : > { %4830 = vmatmul.mubr.bf16.gmra.mrb[124].mxu0 %v10355_v28  ;;  %v12095_v51 = vld [vmem:[#allocation9 + $0x50] sm:$0xff]   ;;  %v3453_v38 = vsel %vm12633_vm14, %v15329_v25, %v3452_v4  ;;  %v13643_v19 = vadd.f32 %v13415_v12, %v13405_v18  ;;  %v3463_v30 = vsel %vm12633_vm14, %v3461_v46, %v3462_v47  ;;  %v3473_v8 = vrot.slane %v3360_v20, 5  ;;  %v3362_v28 = vld [vmem:[#allocation2 + $0x54] sm:$0xe]  ;;  %v3366_v57 = vld [vmem:[#allocation2 + $0x64] sm:$0xf] }
 0x1e7   : > { %v13608_v27 = vpop.f32.mrb[48].mxu0  ;;  %11819 = vmatprep.mubr.bf16.mxu0 %v10436_v17  ;;  %15330 = vst [vmem:[#allocation56_spill] sm:$0xff] %v13639_v9  ;;  %v12096_v15 = vld [vmem:[#allocation9 + $0x10] sm:$0xff]   ;;  %11335 = vmatprep.subr.bf16.mxu1 %v12095_v51  ;;  %v10437_v23 = vcombine.low %v3453_v38, %v3456_v10  ;;  %v3468_v31 = vrot.slane %v3466_v6, 4  ;;  %v3469_v18 = vrot.slane %v3358_v56, 5  ;;  %v10438_v22 = vcombine.low %v3460_v13, %v3463_v30  ;;  %v15332_v42 = vld [vmem:[#allocation37_spill] sm:$0xff] }
 0x1e8   : > { %v13610_v36 = vpop.f32.mrb[49].mxu0  ;;  %15331 = vst [vmem:[#allocation57_spill] sm:$0xff] %v13643_v19  ;;  %v12090_v17 = vld [vmem:[#allocation2 + $0xcc] sm:$0xff]   ;;  %v3364_v12 = vld [vmem:[#allocation2 + $0x5c] sm:$0x1]  ;;  %v10424_v26 = vrot.slane %v3359_v1, 9  ;;  %v11037_v20 = vadd.f32 %v15332_v42, %v13429_v41  ;;  %11336 = vmatpush3.bf16.msra.mxu1 %v12096_v15  ;;  %v11040_v56 = vadd.f32 %v13449_v16, %v13443_v33  ;;  %v3467_v1 = vsel %vm12633_vm14, %v10423_v50, %v3466_v6 }
 0x1e9   : > { %v13612_v3 = vpop.f32.mrb[50].mxu0  ;;  %v13623_v0 = vpop.f32.mrb[48].mxu1  ;;  %v3476_v25 = vrot.slane %v3361_v52, 5  ;;  %v3365_v19 = vld [vmem:[#allocation2 + $0x60] sm:$0xe]  ;;  %v3475_v9 = vrot.slane %v3473_v8, 4  ;;  %v3470_v41 = vsel %vm12633_vm14, %v3468_v31, %v3469_v18  ;;  %v10931_v15 = vadd.f32 %v13457_v35, %v13451_v59 }
 0x1ea   : > { %v13625_v53 = vpop.f32.mrb[51].mxu0  ;;  %v13633_v14 = vpop.f32.mrb[49].mxu1  ;;  %v3480_v47 = vrot.slane %v3363_v63, 5  ;;  %v15333_v46 = vld [vmem:[#allocation38_spill] sm:$0xff]  ;;  %v3367_v51 = vld [vmem:[#allocation2 + $0x68] sm:$0x1]  ;;  %v13661_v43 = vadd.f32 %v11037_v20, %v10925_v61 }
 0x1eb   : > { %v13645_v4 = vpop.f32.mrb[50].mxu1  ;;  %v10928_v49 = vadd.f32 %v13445_v34, %v15333_v46  ;;  %v10425_v52 = vrot.slane %v3362_v28, 9  ;;  %v3487_v32 = vrot.slane %v3366_v57, 5  ;;  %v3474_v34 = vsel %vm12633_vm14, %v10424_v26, %v3473_v8  ;;  %v3368_v13 = vld [vmem:[#allocation2 + $0x6c] sm:$0xe]  ;;  %v15334_v30 = vld [vmem:[#allocation43_spill] sm:$0xff] }
 0x1ec   : > { %v13649_v7 = vpop.f32.mrb[51].mxu1  ;;  %4991 = vmatmul.mubr.bf16.gmra.mrb[124].mxu1 %v12090_v17  ;;  %v3483_v38 = vrot.slane %v3364_v12, 5  ;;  %v3477_v33 = vsel %vm12633_vm14, %v3475_v9, %v3476_v25  ;;  %v3482_v16 = vrot.slane %v3480_v47, 4  ;;  %v10426_v6 = vrot.slane %v3365_v19, 9  ;;  %v3369_v63 = vld [vmem:[#allocation2 + $0x70] sm:$0xf] }
 0x1ed   : > { %v13667_v10 = vadd.f32 %v11040_v56, %v10928_v49  ;;  %v11043_v17 = vadd.f32 %v13465_v2, %v13455_v54  ;;  %v10934_v50 = vadd.f32 %v15334_v30, %v13467_v37  ;;  %v15335_v8 = vld [vmem:[#allocation42_spill] sm:$0xff]  ;;  %v15336_v28 = vld [vmem:[#allocation45_spill] sm:$0xff]  ;;  %v3489_v9 = vrot.slane %v3487_v32, 4  ;;  %v13689_v2 = vld [vmem:[#allocation2 + $0x80] sm:$0x1] }
 0x1ee   : > { %11820 = vmatmul.mubr.bf16.vlgmr.msra.gmra.mrb[128].mxu0 %v10437_v23  ;;  %v11046_v49 = vadd.f32 %v15336_v28, %v15335_v8  ;;  %v13679_v57 = vld [vmem:[#allocation2 + $0x7c] sm:$0xf]  ;;  %v10439_v23 = vcombine.low %v3467_v1, %v3470_v41  ;;  %v3490_v31 = vrot.slane %v3367_v51, 5  ;;  %v3370_v19 = vld [vmem:[#allocation2 + $0x74] sm:$0x1]  ;;  %v10440_v18 = vcombine.low %v3474_v34, %v3477_v33  ;;  %v15339_v41 = vld [vmem:[#allocation47_spill] sm:$0xff] }
 0x1ef   : > { %11823 = vmatprep.mubr.bf16.mxu0 %v10438_v22  ;;  %v3494_v12 = vrot.slane %v3369_v63, 5  ;;  %v13681_v22 = vadd.f32 %v11043_v17, %v10931_v15  ;;  %v13685_v35 = vld [vmem:[#allocation2 + $0x78] sm:$0xe]  ;;  %v3481_v54 = vsel %vm12633_vm14, %v10425_v52, %v3480_v47  ;;  %v3484_v26 = vsel %vm12633_vm14, %v3482_v16, %v3483_v38  ;;  %v13697_v42 = vld [vmem:[#allocation2 + $0x88] sm:$0xf] }
 0x1f0   : > { %v13683_v59 = vadd.f32 %v11046_v49, %v10934_v50  ;;  %v3488_v25 = vsel %vm12633_vm14, %v10426_v6, %v3487_v32  ;;  %v10427_v61 = vrot.slane %v3368_v13, 9  ;;  %v15337_v20 = vld [vmem:[#allocation46_spill] sm:$0xff]  ;;  %v13701_v51 = vld [vmem:[#allocation2 + $0x94] sm:$0xf]  ;;  %v3491_v47 = vsel %vm12633_vm14, %v3489_v9, %v3490_v31  ;;  %v15340_v34 = vld [vmem:[#allocation48_spill] sm:$0xff] }
 0x1f1   : > { %v15338_v46 = vld [vmem:[#allocation18_spill] sm:$0xff]  ;;  %v3501_v52 = vrot.slane %v13679_v57, 5  ;;  %v11049_v38 = vadd.f32 %v15340_v34, %v15339_v41  ;;  %v10940_v32 = vadd.f32 %v13524_v48, %v13516_v45  ;;  %v3496_v6 = vrot.slane %v3494_v12, 4  ;;  %v13716_v63 = vld [vmem:[#allocation2 + $0x84] sm:$0xe] }
 0x1f2   : > { %v10937_v56 = vadd.f32 %v15338_v46, %v15337_v20  ;;  %v3497_v13 = vrot.slane %v3370_v19, 5  ;;  %v11052_v15 = vadd.f32 %v13526_v58, %v13518_v21  ;;  %v10441_v50 = vcombine.low %v3481_v54, %v3484_v26  ;;  %v13725_v45 = vld [vmem:[#allocation2 + $0x8c] sm:$0x1]  ;;  %v13729_v28 = vld [vmem:[#allocation2 + $0xa0] sm:$0xf] }
 0x1f3   : > { %v10428_v8 = vrot.slane %v13685_v35, 9  ;;  %v10442_v57 = vcombine.low %v3488_v25, %v3491_v47  ;;  %v3504_v21 = vrot.slane %v13689_v2, 5  ;;  %v13740_v9 = vld [vmem:[#allocation2 + $0x90] sm:$0xe]  ;;  %v3503_v19 = vrot.slane %v3501_v52, 4 }
 0x1f4   : > { %v13727_v48 = vadd.f32 %v11049_v38, %v10937_v56  ;;  %v13738_v58 = vadd.f32 %v11052_v15, %v10940_v32  ;;  %v13745_v35 = vld [vmem:[#allocation2 + $0x98] sm:$0x1]  ;;  %v3515_v54 = vrot.slane %v13701_v51, 5  ;;  %v10943_v26 = vadd.f32 %v13555_v62, %v13540_v40  ;;  %v12098_v25 = vld [vmem:[#allocation9 + $0x18] sm:$0xff]   ;;  %v13758_v47 = vld [vmem:[#allocation2 + $0xac] sm:$0xf] }
 0x1f5   : > { %v13691_v37 = vpop.f32.mrb[52].mxu1  ;;  %v3498_v2 = vsel %vm12633_vm14, %v3496_v6, %v3497_v13  ;;  %v10946_v46 = vadd.f32 %v13564_v39, %v13559_v29  ;;  %v15342_v56 = vld [vmem:[#allocation54_spill] sm:$0xff]  ;;  %v10429_v40 = vrot.slane %v13716_v63, 9  ;;  %v13765_v34 = vld [vmem:[#allocation2 + $0xa4] sm:$0x1]  ;;  %v3511_v38 = vrot.slane %v13725_v45, 5 }
 0x1f6   : > { %v13703_v1 = vpop.f32.mrb[53].mxu1  ;;  %11824 = vmatmul.mubr.bf16.gmra.mrb[132].mxu0 %v10439_v23  ;;  %v13735_v23 = vsel %vm12633_vm14, %v10427_v61, %v3494_v12  ;;  %v12097_v12 = vld [vmem:[#allocation9 + $0x58] sm:$0xff]   ;;  %v13760_v41 = vld [vmem:[#allocation2 + $0xb8] sm:$0xf]  ;;  %v13763_v62 = vld [vmem:[#allocation2 + $0x9c] sm:$0xe]  ;;  %v3502_v6 = vsel %vm12633_vm14, %v10428_v8, %v3501_v52  ;;  %v10949_v52 = vadd.f32 %v13610_v36, %v13608_v27  ;;  %v11064_v27 = vadd.f32 %v13649_v7, %v13645_v4 }
 0x1f7   : > { %v13712_v33 = vpop.f32.mrb[52].mxu0  ;;  %v13714_v16 = vpop.f32.mrb[54].mxu1  ;;  %11827 = vmatprep.mubr.bf16.mxu0 %v10440_v18  ;;  %v3508_v18 = vrot.slane %v13697_v42, 5  ;;  %v15341_v61 = vld [vmem:[#allocation53_spill] sm:$0xff]  ;;  %v11058_v42 = vadd.f32 %v13584_v5, %v15342_v56  ;;  %11337 = vmatprep.subr.bf16.mxu1 %v12097_v12  ;;  %v13773_v29 = vld [vmem:[#allocation2 + $0xa8] sm:$0xe]  ;;  %v10443_v5 = vcombine.low %v13735_v23, %v3498_v2 }
 0x1f8   : > { %v13720_v17 = vpop.f32.mrb[53].mxu0  ;;  %v13722_v30 = vpop.f32.mrb[55].mxu1  ;;  %v11055_v20 = vadd.f32 %v13557_v44, %v15341_v61  ;;  %v3522_v44 = vrot.slane %v13729_v28, 5  ;;  %11338 = vmatpush3.bf16.msra.mxu1 %v12098_v25  ;;  %v10430_v63 = vrot.slane %v13740_v9, 9  ;;  %v13779_v15 = vld [vmem:[#allocation2 + $0xb0] sm:$0x1] }
 0x1f9   : > { %v13731_v49 = vpop.f32.mrb[54].mxu0  ;;  %v13771_v39 = vadd.f32 %v11058_v42, %v10946_v46  ;;  %v3510_v13 = vrot.slane %v3508_v18, 4  ;;  %v13781_v45 = vld [vmem:[#allocation2 + $0xb4] sm:$0xe]  ;;  %v3517_v12 = vrot.slane %v3515_v54, 4  ;;  %v3529_v8 = vrot.slane %v13758_v47, 5 }
 0x1fa   : > { %v13742_v31 = vpop.f32.mrb[55].mxu0  ;;  %v13769_v32 = vadd.f32 %v11055_v20, %v10943_v26  ;;  %v3505_v26 = vsel %vm12633_vm14, %v3503_v19, %v3504_v21  ;;  %v13788_v23 = vld [vmem:[#allocation2 + $0xbc] sm:$0x1]  ;;  %v15256_v9 = vrot.slane %v13760_v41, 5  ;;  %v10952_v21 = vadd.f32 %v13625_v53, %v13612_v3  ;;  %v13798_v19 = vld [vmem:[#allocation2 + $0xc0] sm:$0xe] }
 0x1fb   : > { %v10431_v25 = vrot.slane %v13763_v62, 9  ;;  %v13808_v2 = vld [vmem:[#allocation2 + $0xc4] sm:$0xf]  ;;  %v3509_v3 = vsel %vm12633_vm14, %v10429_v40, %v3508_v18  ;;  %v10432_v53 = vrot.slane %v13773_v29, 9  ;;  %v3512_v46 = vsel %vm12633_vm14, %v3510_v13, %v3511_v38  ;;  %v15344_v42 = vld [vmem:[#allocation20_spill] sm:$0xff] }
 0x1fc   : > { %v3532_v56 = vrot.slane %v13779_v15, 5  ;;  %v13819_v4 = vadd.f32 %v11064_v27, %v10952_v21  ;;  %v13825_v18 = vrot.slane %v15256_v9, 4  ;;  %v10955_v38 = vadd.f32 %v13720_v17, %v13712_v33  ;;  %v15343_v51 = vld [vmem:[#allocation19_spill] sm:$0xff] }
 0x1fd   : > { %v11070_v21 = vadd.f32 %v13722_v30, %v13714_v16  ;;  %v3516_v33 = vsel %vm12633_vm14, %v10430_v63, %v3515_v54  ;;  %v13850_v9 = vadd.f32 %v15344_v42, %v15343_v51  ;;  %v15345_v54 = vld [vmem:[#allocation21_spill] sm:$0xff]  ;;  %v15346_v63 = vld [vmem:[#allocation22_spill] sm:$0xff]  ;;  %v15354_v42 = vld [vmem:[#allocation28_spill] sm:$0xff]  ;;  %v3530_v28 = vsel %vm12633_vm14, %v10432_v53, %v3529_v8 }
 0x1fe   : > { %11828 = vmatmul.mubr.bf16.gmra.mrb[136].mxu0 %v10441_v50  ;;  %v3518_v50 = vrot.slane %v13745_v35, 5  ;;  %v13803_v35 = vrot.slane %v3522_v44, 4 }
 0x1ff   : > { %11831 = vmatprep.mubr.bf16.mxu0 %v10442_v57  ;;  %v11061_v57 = vadd.f32 %v13633_v14, %v13623_v0  ;;  %v10444_v0 = vcombine.low %v3502_v6, %v3505_v26  ;;  %v3531_v6 = vrot.slane %v3529_v8, 4  ;;  %v3392_v26 = vld [vmem:[#allocation2 + $0xcc] sm:$0xe] }
 0x200   : > { %v11071_v61 = vpop.f32.mrb[56].mxu1  ;;  %v3519_v17 = vsel %vm12633_vm14, %v3517_v12, %v3518_v50  ;;  %v13854_v12 = vadd.f32 %v15346_v63, %v15345_v54  ;;  %v15361_v54 = vld [vmem:[#allocation39_spill] sm:$0xff]  ;;  %v15362_v63 = vld [vmem:[#allocation40_spill] sm:$0xff] }
 0x201   : > { %v13813_v14 = vadd.f32 %v11061_v57, %v10949_v52  ;;  %v11072_v20 = vpop.f32.mrb[57].mxu1  ;;  %v11067_v52 = vadd.f32 %v13703_v1, %v13691_v37  ;;  %v10958_v57 = vadd.f32 %v13742_v31, %v13731_v49  ;;  %v10445_v31 = vcombine.low %v3509_v3, %v3512_v46  ;;  %v15353_v46 = vld [vmem:[#allocation27_spill] sm:$0xff] }
 0x202   : > { %v11074_v36 = vpop.f32.mrb[58].mxu1  ;;  %v11073_v16 = vadd.f32 %v11072_v20, %v11071_v61  ;;  %v10446_v50 = vcombine.low %v3516_v33, %v3519_v17  ;;  %v15351_v61 = vld [vmem:[#allocation26_spill] sm:$0xff]  ;;  %v3533_v62 = vsel %vm12633_vm14, %v3531_v6, %v3532_v56 }
 0x203   : > { %v10959_v7 = vpop.f32.mrb[56].mxu0  ;;  %v11075_v15 = vpop.f32.mrb[59].mxu1  ;;  %v13844_v1 = vadd.f32 %v11067_v52, %v10955_v38  ;;  %v13846_v49 = vadd.f32 %v11070_v21, %v10958_v57  ;;  %v15349_v38 = vld [vmem:[#allocation24_spill] sm:$0xff]  ;;  %v15350_v52 = vld [vmem:[#allocation25_spill] sm:$0xff]  ;;  %v15356_v21 = vld [vmem:[#allocation30_spill] sm:$0xff]  ;;  %v10448_v29 = vcombine.low %v3530_v28, %v3533_v62  ;;  %v15379_v28 = vrot.slane %v13808_v2, 5 }
 0x204   : > { %v10960_v13 = vpop.f32.mrb[57].mxu0  ;;  %v13864_v20 = vadd.f32 %v15351_v61, %v15350_v52  ;;  %v15355_v57 = vld [vmem:[#allocation29_spill] sm:$0xff]  ;;  %v15358_v33 = vld [vmem:[#allocation34_spill] sm:$0xff]  ;;  %v15380_v62 = vrot.slane %v13798_v19, 9 }
 0x205   : > { %v10962_v27 = vpop.f32.mrb[58].mxu0  ;;  %v10961_v40 = vadd.f32 %v10960_v13, %v10959_v7  ;;  %v15365_v52 = vld [vmem:[#allocation49_spill] sm:$0xff]  ;;  %v15366_v61 = vld [vmem:[#allocation50_spill] sm:$0xff] }
 0x206   : > { %11832 = vmatmul.mubr.bf16.gmra.mrb[140].mxu0 %v10443_v5  ;;  %v10963_v37 = vpop.f32.mrb[59].mxu0  ;;  %v11076_v5 = vadd.f32 %v11075_v15, %v11074_v36  ;;  %v3391_v36 = vld [vmem:[#allocation2 + $0xc8] sm:$0x1]  ;;  %v13870_v15 = vadd.f32 %v15354_v42, %v15353_v46  ;;  %v13894_v46 = vadd.f32 %v15366_v61, %v15365_v52  ;;  %v13896_v42 = vld [vmem:[#allocation2 + $0xd0] sm:$0xf] }
 0x207   : > { %11835 = vmatprep.mubr.bf16.mxu0 %v10444_v0  ;;  %v10964_v30 = vadd.f32 %v10963_v37, %v10962_v27  ;;  %v13856_v7 = vadd.f32 %v11073_v16, %v10961_v40  ;;  %v15348_v0 = vld [vmem:[#allocation23_spill] sm:$0xff]  ;;  %v13874_v27 = vadd.f32 %v15356_v21, %v15355_v57  ;;  %v15357_v40 = vld [vmem:[#allocation33_spill] sm:$0xff]  ;;  %v15360_v16 = vld [vmem:[#allocation36_spill] sm:$0xff] }
 0x208   : > { %v13860_v13 = vadd.f32 %v15349_v38, %v15348_v0  ;;  %v13878_v17 = vadd.f32 %v15358_v33, %v15357_v40  ;;  %v15359_v37 = vld [vmem:[#allocation35_spill] sm:$0xff]  ;;  %v15364_v0 = vld [vmem:[#allocation44_spill] sm:$0xff]  ;;  %v13904_v33 = vadd.f32 %v13576_v60, %v13572_v24  ;;  %v15373_v52 = vld [vmem:[#allocation57_spill] sm:$0xff]  ;;  %v3523_v24 = vsel %vm12633_vm14, %v10431_v25, %v3522_v44 }
 0x209   : > { %15347 = vst [vmem:[#allocation37_spill] sm:$0xff] %v13856_v7  ;;  %v13866_v3 = vadd.f32 %v11076_v5, %v10964_v30  ;;  %v13882_v51 = vadd.f32 %v15360_v16, %v15359_v37  ;;  %v13886_v30 = vadd.f32 %v15362_v63, %v15361_v54  ;;  %v15363_v5 = vld [vmem:[#allocation41_spill] sm:$0xff]  ;;  %v15367_v57 = vld [vmem:[#allocation51_spill] sm:$0xff]  ;;  %v15368_v21 = vld [vmem:[#allocation52_spill] sm:$0xff]  ;;  %v15374_v60 = vrot.slane %v13765_v34, 5 }
 0x20a   : > { %v13890_v38 = vadd.f32 %v15364_v0, %v15363_v5  ;;  %v13900_v40 = vadd.f32 %v15368_v21, %v15367_v57  ;;  %v15369_v37 = vld [vmem:[#allocation55_spill] sm:$0xff]  ;;  %v15371_v63 = vld [vmem:[#allocation32_spill] sm:$0xff]  ;;  %v3546_v57 = vrot.slane %v3391_v36, 5  ;;  %v3394_v21 = vld [vmem:[#allocation2 + $0xd4] sm:$0x1]  ;;  %v15375_v44 = vrot.slane %v13808_v2, 5 }
 0x20b   : > { %15352 = vst [vmem:[#allocation38_spill] sm:$0xff] %v13866_v3  ;;  %v15370_v16 = vld [vmem:[#allocation31_spill] sm:$0xff]  ;;  %v13912_v5 = vadd.f32 %v15371_v63, %v13617_v55  ;;  %v15372_v0 = vld [vmem:[#allocation56_spill] sm:$0xff]  ;;  %v3526_v55 = vsel %vm12633_vm14, %v13803_v35, %v15374_v60  ;;  %v3550_v35 = vrot.slane %v13896_v42, 5  ;;  %v10965_v47 = vpop.f32.mrb[60].mxu0  ;;  %v3553_v56 = vrot.slane %v3394_v21, 5 }
 0x20c   : > { %v13908_v54 = vadd.f32 %v15370_v16, %v15369_v37  ;;  %v13916_v61 = vadd.f32 %v15373_v52, %v15372_v0  ;;  %v11077_v37 = vpop.f32.mrb[60].mxu1  ;;  %v3545_v34 = vrot.slane %v15375_v44, 4  ;;  %v10447_v63 = vcombine.low %v3523_v24, %v3526_v55  ;;  %v10966_v8 = vpop.f32.mrb[61].mxu0 }
 0x20d   : > { %v11078_v25 = vpop.f32.mrb[61].mxu1  ;;  %v10435_v52 = vrot.slane %v3392_v26, 9  ;;  %v10967_v6 = vadd.f32 %v10966_v8, %v10965_v47  ;;  %v10968_v60 = vpop.f32.mrb[62].mxu0  ;;  %v3552_v44 = vrot.slane %v3550_v35, 4  ;;  %v15376_v24 = vrot.slane %v13760_v41, 5 }
 0x20e   : > { %11836 = vmatmul.mubr.bf16.gmra.mrb[144].mxu0 %v10445_v31  ;;  %v12099_v31 = vld [vmem:[#allocation9 + $0x60] sm:$0xff]   ;;  %v11079_v36 = vadd.f32 %v11078_v25, %v11077_v37  ;;  %v11080_v16 = vpop.f32.mrb[62].mxu1  ;;  %v10969_v3 = vpop.f32.mrb[63].mxu0  ;;  %v15377_v55 = vrot.slane %v13781_v45, 9  ;;  %v15378_v37 = vrot.slane %v13788_v23, 5  ;;  %v3547_v41 = vsel %vm12633_vm14, %v3545_v34, %v3546_v57 }
 0x20f   : > { %11839 = vmatprep.mubr.bf16.mxu0 %v10446_v50  ;;  %v12100_v50 = vld [vmem:[#allocation9 + $0x20] sm:$0xff]   ;;  %v11081_v0 = vpop.f32.mrb[63].mxu1  ;;  %11339 = vmatprep.subr.bf16.mxu1 %v12099_v31  ;;  %v10970_v42 = vadd.f32 %v10969_v3, %v10968_v60  ;;  %v3544_v3 = vsel %vm12633_vm14, %v15380_v62, %v15379_v28  ;;  %v3551_v57 = vsel %vm12633_vm14, %v10435_v52, %v3550_v35 }
 0x210   : > { %v11082_v53 = vadd.f32 %v11081_v0, %v11080_v16  ;;  %11340 = vmatpush3.bf16.msra.mxu1 %v12100_v50  ;;  %v13940_v7 = vadd.f32 %v11079_v36, %v10967_v6  ;;  %v3537_v26 = vsel %vm12633_vm14, %v15377_v55, %v15376_v24  ;;  %v3540_v21 = vsel %vm12633_vm14, %v13825_v18, %v15378_v37 }
 0x211   : > { %v10449_v25 = vcombine.low %v3537_v26, %v3540_v21  ;;  %v10450_v23 = vcombine.low %v3544_v3, %v3547_v41  ;;  %v3554_v34 = vsel %vm12633_vm14, %v3552_v44, %v3553_v56  ;;  %v12101_v44 = vld [vmem:[#allocation9 + $0x68] sm:$0xff]  }
 0x212   : > { %v13961_v45 = vadd.f32 %v11082_v53, %v10970_v42  ;;  %v10451_v42 = vcombine.low %v3551_v57, %v3554_v34  ;;  %11341 = vmatprep.subr.bf16.mxu1 %v12101_v44 }
 0x213   : > { %v11099_v31 = vpop.f32.mrb[64].mxu0  ;;  %v11211_v50 = vpop.f32.mrb[64].mxu1 }
 0x214   : > { %v11100_v36 = vpop.f32.mrb[65].mxu0  ;;  %v11212_v16 = vpop.f32.mrb[65].mxu1 }
 0x215   : > { %v11102_v18 = vpop.f32.mrb[66].mxu0  ;;  %v11213_v47 = vadd.f32 %v11212_v16, %v11211_v50  ;;  %v11214_v2 = vpop.f32.mrb[66].mxu1 }
 0x216   : > { %11840 = vmatmul.mubr.bf16.gmra.mrb[148].mxu0 %v10447_v63  ;;  %v11101_v63 = vadd.f32 %v11100_v36, %v11099_v31  ;;  %v11103_v0 = vpop.f32.mrb[67].mxu0  ;;  %v11215_v19 = vpop.f32.mrb[67].mxu1 }
 0x217   : > { %11843 = vmatprep.mubr.bf16.mxu0 %v10448_v29  ;;  %v11104_v8 = vadd.f32 %v11103_v0, %v11102_v18  ;;  %v11216_v6 = vadd.f32 %v11215_v19, %v11214_v2 }
 0x218   : > { %v4712_v29 = vadd.f32 %v11101_v63, %v13850_v9 }
 0x219   : > { %v4715_v53 = vadd.f32 %v11104_v8, %v13854_v12  ;;  %v12102_v12 = vld [vmem:[#allocation9 + $0x28] sm:$0xff]  }
 0x21a   : > { %v13969_v60 = vadd.f32 %v11213_v47, %v4712_v29  ;;  %11342 = vmatpush3.bf16.msra.mxu1 %v12102_v12 }
 0x21b   : > { %v11105_v24 = vpop.f32.mrb[68].mxu0  ;;  %v13971_v55 = vadd.f32 %v11216_v6, %v4715_v53 }
 0x21c   : > { %v11106_v26 = vpop.f32.mrb[69].mxu0 }
 0x21d   : > { %v11107_v37 = vadd.f32 %v11106_v26, %v11105_v24  ;;  %v11108_v9 = vpop.f32.mrb[70].mxu0  ;;  %v11217_v21 = vpop.f32.mrb[68].mxu1 }
 0x21e   : > { %11844 = vmatmul.mubr.bf16.gmra.mrb[152].mxu0 %v10449_v25  ;;  %v11109_v28 = vpop.f32.mrb[71].mxu0  ;;  %v11218_v62 = vpop.f32.mrb[69].mxu1 }
 0x21f   : > { %11847 = vmatprep.mubr.bf16.mxu0 %v10450_v23  ;;  %v4720_v35 = vadd.f32 %v11107_v37, %v13860_v13  ;;  %v11110_v52 = vadd.f32 %v11109_v28, %v11108_v9  ;;  %v11219_v3 = vadd.f32 %v11218_v62, %v11217_v21  ;;  %v11220_v56 = vpop.f32.mrb[70].mxu1 }
 0x220   : > { %v11221_v41 = vpop.f32.mrb[71].mxu1 }
 0x221   : > { %v4723_v25 = vadd.f32 %v11110_v52, %v13864_v20  ;;  %v11222_v31 = vadd.f32 %v11221_v41, %v11220_v56  ;;  %v13975_v50 = vadd.f32 %v11219_v3, %v4720_v35 }
 0x223   : > { %v11111_v23 = vpop.f32.mrb[72].mxu0  ;;  %v13977_v36 = vadd.f32 %v11222_v31, %v4723_v25 }
 0x224   : > { %v11112_v16 = vpop.f32.mrb[73].mxu0 }
 0x225   : > { %v11113_v63 = vadd.f32 %v11112_v16, %v11111_v23  ;;  %v11114_v18 = vpop.f32.mrb[74].mxu0 }
 0x226   : > { %11848 = vmatmul.mubr.bf16.gmra.mrb[156].mxu0 %v10451_v42  ;;  %v11115_v13 = vpop.f32.mrb[75].mxu0 }
 0x227   : > { %v4728_v47 = vadd.f32 %v11113_v63, %v13870_v15  ;;  %v11116_v2 = vadd.f32 %v11115_v13, %v11114_v18 }
 0x228   : > { %v11223_v0 = vpop.f32.mrb[72].mxu1 }
 0x229   : > { %v4731_v19 = vadd.f32 %v11116_v2, %v13874_v27  ;;  %v11224_v29 = vpop.f32.mrb[73].mxu1 }
 0x22a   : > { %v11225_v20 = vadd.f32 %v11224_v29, %v11223_v0  ;;  %v11226_v8 = vpop.f32.mrb[74].mxu1  ;;  %v12104_v29 = vld [vmem:[#allocation9 + $0x70] sm:$0xff]  }
 0x22b   : > { %v11227_v6 = vpop.f32.mrb[75].mxu1  ;;  %11343 = vmatprep.subr.bf16.mxu1 %v12104_v29 }
 0x22c   : > { %v11228_v57 = vadd.f32 %v11227_v6, %v11226_v8  ;;  %v13981_v34 = vadd.f32 %v11225_v20, %v4728_v47  ;;  %v12103_v47 = vld [vmem:[#allocation9 + $0xc0] sm:$0xff]   ;;  %v12106_v8 = vld [vmem:[#allocation9 + $0x30] sm:$0xff]  }
 0x22d   : > { %11443 = vmatprep.subr.bf16.mxu0 %v12103_v47  ;;  %v12105_v20 = vld [vmem:[#allocation9 + $0x80] sm:$0xff]   ;;  %11344 = vmatpush3.bf16.msra.mxu1 %v12106_v8 }
 0x22e   : > { %v11117_v53 = vpop.f32.mrb[76].mxu0  ;;  %v13983_v42 = vadd.f32 %v11228_v57, %v4731_v19  ;;  %11444 = vmatpush3.bf16.msra.mxu0 %v12105_v20 }
 0x22f   : > { %v11118_v24 = vpop.f32.mrb[77].mxu0 }
 0x230   : > { %v11119_v26 = vadd.f32 %v11118_v24, %v11117_v53  ;;  %v11120_v37 = vpop.f32.mrb[78].mxu0 }
 0x231   : > { %v11121_v9 = vpop.f32.mrb[79].mxu0 }
 0x232   : > { %v4736_v15 = vadd.f32 %v11119_v26, %v13878_v17  ;;  %v11229_v21 = vpop.f32.mrb[76].mxu1  ;;  %v11122_v28 = vadd.f32 %v11121_v9, %v11120_v37 }
 0x233   : > { %v11230_v62 = vpop.f32.mrb[77].mxu1 }
 0x234   : > { %v4739_v27 = vadd.f32 %v11122_v28, %v13882_v51  ;;  %v11231_v35 = vadd.f32 %v11230_v62, %v11229_v21  ;;  %v11232_v52 = vpop.f32.mrb[78].mxu1 }
 0x235   : > { %v11233_v3 = vpop.f32.mrb[79].mxu1 }
 0x236   : > { %v11234_v56 = vadd.f32 %v11233_v3, %v11232_v52  ;;  %v13987_v44 = vadd.f32 %v11231_v35, %v4736_v15  ;;  %v12107_v52 = vld [vmem:[#allocation9 + $0xc8] sm:$0xff]  }
 0x237   : > { %11445 = vmatprep.subr.bf16.mxu0 %v12107_v52  ;;  %v12117_v52 = vld [vmem:[#allocation9 + $0xe8] sm:$0xff]  }
 0x238   : > { %v13989_v12 = vadd.f32 %v11234_v56, %v4739_v27  ;;  %v11123_v41 = vpop.f32.mrb[80].mxu0  ;;  %v12108_v56 = vld [vmem:[#allocation9 + $0x88] sm:$0xff]  }
 0x239   : > { %v11124_v25 = vpop.f32.mrb[81].mxu0  ;;  %11446 = vmatpush3.bf16.msra.mxu0 %v12108_v56  ;;  %v12118_v56 = vld [vmem:[#allocation9 + $0xa8] sm:$0xff]  }
 0x23a   : > { %v11125_v31 = vadd.f32 %v11124_v25, %v11123_v41  ;;  %v11126_v23 = vpop.f32.mrb[82].mxu0 }
 0x23b   : > { %v11127_v63 = vpop.f32.mrb[83].mxu0 }
 0x23c   : > { %v11235_v16 = vpop.f32.mrb[80].mxu1  ;;  %v4744_v17 = vadd.f32 %v11125_v31, %v13886_v30  ;;  %v11128_v18 = vadd.f32 %v11127_v63, %v11126_v23  ;;  %v12109_v31 = vld [vmem:[#allocation9 + $0xd0] sm:$0xff]  }
 0x23d   : > { %v11236_v13 = vpop.f32.mrb[81].mxu1  ;;  %v12110_v23 = vld [vmem:[#allocation9 + $0x90] sm:$0xff]   ;;  %11447 = vmatprep.subr.bf16.mxu0 %v12109_v31 }
 0x23e   : > { %v11237_v51 = vadd.f32 %v11236_v13, %v11235_v16  ;;  %v11238_v2 = vpop.f32.mrb[82].mxu1  ;;  %v4747_v0 = vadd.f32 %v11128_v18, %v13890_v38  ;;  %11448 = vmatpush3.bf16.msra.mxu0 %v12110_v23 }
 0x23f   : > { %v11239_v19 = vpop.f32.mrb[83].mxu1 }
 0x240   : > { %v11240_v6 = vadd.f32 %v11239_v19, %v11238_v2  ;;  %v13993_v57 = vadd.f32 %v11237_v51, %v4744_v17  ;;  %v12111_v51 = vld [vmem:[#allocation9 + $0xd8] sm:$0xff]  }
 0x241   : > { %v11129_v53 = vpop.f32.mrb[84].mxu0  ;;  %11449 = vmatprep.subr.bf16.mxu0 %v12111_v51 }
 0x242   : > { %v11130_v24 = vpop.f32.mrb[85].mxu0  ;;  %v13995_v30 = vadd.f32 %v11240_v6, %v4747_v0  ;;  %v12112_v0 = vld [vmem:[#allocation9 + $0x98] sm:$0xff]  }
 0x243   : > { %v11131_v26 = vadd.f32 %v11130_v24, %v11129_v53  ;;  %v11132_v37 = vpop.f32.mrb[86].mxu0  ;;  %11450 = vmatpush3.bf16.msra.mxu0 %v12112_v0 }
 0x244   : > { %v11133_v9 = vpop.f32.mrb[87].mxu0 }
 0x245   : > { %v4752_v38 = vadd.f32 %v11131_v26, %v13894_v46  ;;  %v11134_v15 = vadd.f32 %v11133_v9, %v11132_v37 }
 0x246   : > { %v11241_v21 = vpop.f32.mrb[84].mxu1 }
 0x247   : > { %v4755_v28 = vadd.f32 %v11134_v15, %v13900_v40  ;;  %v11242_v62 = vpop.f32.mrb[85].mxu1  ;;  %v12113_v15 = vld [vmem:[#allocation9 + $0xe0] sm:$0xff]  }
 0x248   : > { %v11243_v27 = vadd.f32 %v11242_v62, %v11241_v21  ;;  %v11244_v35 = vpop.f32.mrb[86].mxu1  ;;  %v12114_v21 = vld [vmem:[#allocation9 + $0x78] sm:$0xff]   ;;  %v12115_v62 = vld [vmem:[#allocation9 + $0xa0] sm:$0xff]   ;;  %11451 = vmatprep.subr.bf16.mxu0 %v12113_v15 }
 0x249   : > { %v11245_v3 = vpop.f32.mrb[87].mxu1  ;;  %11345 = vmatprep.subr.bf16.mxu1 %v12114_v21  ;;  %11452 = vmatpush3.bf16.msra.mxu0 %v12115_v62  ;;  %v5864_v21 = vld [vmem:[#allocation2] sm:$0xf]  ;;  %v5866_v62 = vld [vmem:[#allocation2 + $0x8] sm:$0x1] }
 0x24a   : > { %v11246_v41 = vadd.f32 %v11245_v3, %v11244_v35  ;;  %v13999_v25 = vadd.f32 %v11243_v27, %v4752_v38  ;;  %11453 = vmatprep.subr.bf16.mxu0 %v12117_v52 }
 0x24c   : > { %v11135_v16 = vpop.f32.mrb[88].mxu0  ;;  %v14001_v63 = vadd.f32 %v11246_v41, %v4755_v28 }
 0x24d   : > { %v11136_v46 = vpop.f32.mrb[89].mxu0  ;;  %11454 = vmatpush3.bf16.msra.mxu0 %v12118_v56  ;;  %v5932_v56 = vshll.u32 %v5866_v62, 16 }
 0x24e   : > { %v11137_v17 = vadd.f32 %v11136_v46, %v11135_v16  ;;  %v11138_v40 = vpop.f32.mrb[90].mxu0 }
 0x24f   : > { %v11139_v18 = vpop.f32.mrb[91].mxu0 }
 0x250   : > { %v4760_v13 = vadd.f32 %v11137_v17, %v13904_v33  ;;  %v11140_v47 = vadd.f32 %v11139_v18, %v11138_v40  ;;  %v11247_v2 = vpop.f32.mrb[88].mxu1 }
 0x251   : > { %v11248_v29 = vpop.f32.mrb[89].mxu1 }
 0x252   : > { %v4763_v19 = vadd.f32 %v11140_v47, %v13908_v54  ;;  %v11249_v20 = vadd.f32 %v11248_v29, %v11247_v2  ;;  %v11250_v8 = vpop.f32.mrb[90].mxu1  ;;  %v12116_v54 = vld [vmem:[#allocation9 + $0x38] sm:$0xff]   ;;  %v12120_v47 = vld [vmem:[#allocation9 + $0xb0] sm:$0xff]  }
 0x253   : > { %v11251_v6 = vpop.f32.mrb[91].mxu1  ;;  %11346 = vmatpush3.bf16.msra.mxu1 %v12116_v54 }
 0x254   : > { %v11252_v53 = vadd.f32 %v11251_v6, %v11250_v8  ;;  %v14005_v24 = vadd.f32 %v11249_v20, %v4760_v13  ;;  %v12119_v13 = vld [vmem:[#allocation9 + $0xf0] sm:$0xff]   ;;  %v12121_v20 = vld [vmem:[#allocation9 + $0xf8] sm:$0xff]  }
 0x255   : > { %11455 = vmatprep.subr.bf16.mxu0 %v12119_v13  ;;  %v12122_v8 = vld [vmem:[#allocation9 + $0xb8] sm:$0xff]  }
 0x256   : > { %v11141_v26 = vpop.f32.mrb[92].mxu0  ;;  %v14007_v9 = vadd.f32 %v11252_v53, %v4763_v19  ;;  %11456 = vmatpush3.bf16.msra.mxu0 %v12120_v47 }
 0x257   : > { %v11142_v37 = vpop.f32.mrb[93].mxu0  ;;  %11457 = vmatprep.subr.bf16.mxu0 %v12121_v20 }
 0x258   : > { %v11143_v33 = vadd.f32 %v11142_v37, %v11141_v26  ;;  %v11144_v38 = vpop.f32.mrb[94].mxu0 }
 0x259   : > { %v11145_v28 = vpop.f32.mrb[95].mxu0 }
 0x25a   : > { %v4768_v27 = vadd.f32 %v11143_v33, %v13912_v5  ;;  %v11146_v35 = vadd.f32 %v11145_v28, %v11144_v38  ;;  %11458 = vmatpush3.bf16.msra.mxu0 %v12122_v8  ;;  %v5865_v28 = vld [vmem:[#allocation2 + $0x4] sm:$0xf] }
 0x25b   : > { %v11253_v3 = vpop.f32.mrb[92].mxu1  ;;  %v5926_v52 = vshrl.u32 %v5865_v28, 16 }
 0x25c   : > { %v4771_v41 = vadd.f32 %v11146_v35, %v13916_v61  ;;  %v11254_v31 = vpop.f32.mrb[93].mxu1  ;;  %v5922_v35 = vshll.u32 %v5865_v28, 16  ;;  %v12123_v28 = vld [vmem:[#allocation2] sm:$0xff]  }
 0x25d   : > { %v11255_v23 = vadd.f32 %v11254_v31, %v11253_v3  ;;  %v11256_v16 = vpop.f32.mrb[94].mxu1 }
 0x25e   : > { %v11257_v46 = vpop.f32.mrb[95].mxu1 }
 0x25f   : > { %v11258_v17 = vadd.f32 %v11257_v46, %v11256_v16  ;;  %v14011_v40 = vadd.f32 %v11255_v23, %v4768_v27  ;;  %v5916_v27 = vshll.u32 %v5864_v21, 16  ;;  %v5924_v46 = vrot.slane %v5922_v35, 5 }
 0x260   : > { %v11147_v5 = vpop.f32.mrb[96].mxu0 }
 0x261   : > { %v11148_v18 = vpop.f32.mrb[97].mxu0  ;;  %v14013_v51 = vadd.f32 %v11258_v17, %v4771_v41  ;;  %v12126_v41 = vld [vmem:[#allocation9 + $0x140] sm:$0xff]   ;;  %v5918_v16 = vrot.slane %v5916_v27, 5  ;;  %v5928_v17 = vrot.slane %v5926_v52, 4 }
 0x262   : > { %v11149_v2 = vadd.f32 %v11148_v18, %v11147_v5  ;;  %v11150_v0 = vpop.f32.mrb[98].mxu0  ;;  %11555 = vmatprep.subr.bf16.mxu1 %v12126_v41 }
 0x263   : > { %v11151_v19 = vpop.f32.mrb[99].mxu0 }
 0x264   : > { %v4776_v61 = vadd.f32 %v11149_v2, %v13661_v43  ;;  %v11152_v29 = vadd.f32 %v11151_v19, %v11150_v0  ;;  %v5913_v43 = vshrl.u32 %v5864_v21, 16  ;;  %v5929_v2 = vor.u32 %v5928_v17, %v5924_v46 }
 0x265   : > { %v11259_v6 = vpop.f32.mrb[96].mxu1  ;;  %v5934_v0 = vrot.slane %v5932_v56, 5 }
 0x266   : > { %v4779_v53 = vadd.f32 %v11152_v29, %v13667_v10  ;;  %v11260_v26 = vpop.f32.mrb[97].mxu1  ;;  %v5915_v23 = vrot.slane %v5913_v43, 4 }
 0x267   : > { %v11261_v37 = vadd.f32 %v11260_v26, %v11259_v6  ;;  %v11262_v33 = vpop.f32.mrb[98].mxu1  ;;  %v5930_v6 = vrot.slane %v5929_v2, 4 }
 0x268   : > { %v11263_v38 = vpop.f32.mrb[99].mxu1  ;;  %v5919_v47 = vor.u32 %v5918_v16, %v5915_v23 }
 0x269   : > { %v11264_v15 = vadd.f32 %v11263_v38, %v11262_v33  ;;  %v14017_v54 = vadd.f32 %v11261_v37, %v4776_v61  ;;  %v5935_v21 = vsel %vm12615_vm11, %v5930_v6, %v5934_v0 }
 0x26a   : > { %v11153_v3 = vpop.f32.mrb[100].mxu0  ;;  %v5920_v8 = vrot.slane %v5919_v47, 4 }
 0x26b   : > { %v14019_v10 = vadd.f32 %v11264_v15, %v4779_v53  ;;  %v11154_v31 = vpop.f32.mrb[101].mxu0 }
 0x26c   : > { %v11155_v5 = vadd.f32 %v11154_v31, %v11153_v3  ;;  %v11156_v18 = vpop.f32.mrb[102].mxu0  ;;  %v5925_v15 = vsel %vm12615_vm11, %v5920_v8, %v5924_v46 }
 0x26d   : > { %v11157_v13 = vpop.f32.mrb[103].mxu0  ;;  %v10572_v43 = vcombine.low %v5925_v15, %v5935_v21 }
 0x26e   : > { %v4784_v19 = vadd.f32 %v11155_v5, %v13681_v22  ;;  %v11158_v29 = vadd.f32 %v11157_v13, %v11156_v18  ;;  %v12127_v22 = vld [vmem:[#allocation9 + $0x100] sm:$0xff]  }
 0x26f   : > { %v11265_v61 = vpop.f32.mrb[100].mxu1  ;;  %9304 = vmatprep.mubr.bf16.mxu1 %v10572_v43 }
 0x270   : > { %v11266_v20 = vpop.f32.mrb[101].mxu1  ;;  %v4787_v53 = vadd.f32 %v11158_v29, %v13683_v59  ;;  %9305 = vmatmul.mubr.bf16.vlgmr.msra.gmra.mrb[128].mxu1 %v12123_v28 }
 0x271   : > { %v11267_v26 = vadd.f32 %v11266_v20, %v11265_v61  ;;  %v11268_v37 = vpop.f32.mrb[102].mxu1  ;;  %11556 = vmatpush3.bf16.msra.mxu1 %v12127_v22 }
 0x272   : > { %v11269_v33 = vpop.f32.mrb[103].mxu1 }
 0x273   : > { %v11270_v62 = vadd.f32 %v11269_v33, %v11268_v37  ;;  %v14027_v27 = vadd.f32 %v11267_v26, %v4784_v19  ;;  %v12132_v37 = vld [vmem:[#allocation9 + $0x148] sm:$0xff]  }
 0x274   : > { %11557 = vmatprep.subr.bf16.mxu1 %v12132_v37 }
 0x275   : > { %v11159_v35 = vpop.f32.mrb[104].mxu0  ;;  %v14029_v52 = vadd.f32 %v11270_v62, %v4787_v53 }
 0x276   : > { %v11160_v59 = vpop.f32.mrb[105].mxu0 }
 0x277   : > { %v11161_v3 = vadd.f32 %v11160_v59, %v11159_v35  ;;  %v11162_v56 = vpop.f32.mrb[106].mxu0 }
 0x278   : > { %v11163_v41 = vpop.f32.mrb[107].mxu0 }
 0x279   : > { %v4792_v31 = vadd.f32 %v11161_v3, %v13727_v48  ;;  %v11164_v23 = vadd.f32 %v11163_v41, %v11162_v56  ;;  %v11271_v16 = vpop.f32.mrb[104].mxu1 }
 0x27a   : > { %v11272_v17 = vpop.f32.mrb[105].mxu1 }
 0x27b   : > { %v4795_v46 = vadd.f32 %v11164_v23, %v13738_v58  ;;  %v11273_v5 = vadd.f32 %v11272_v17, %v11271_v16  ;;  %v11274_v18 = vpop.f32.mrb[106].mxu1 }
 0x27c   : > { %v11275_v13 = vpop.f32.mrb[107].mxu1 }
 0x27d   : > { %v11276_v47 = vadd.f32 %v11275_v13, %v11274_v18  ;;  %v14033_v2 = vadd.f32 %v11273_v5, %v4792_v31  ;;  %v12133_v31 = vld [vmem:[#allocation9 + $0x108] sm:$0xff]  }
 0x27e   : > { %11558 = vmatpush3.bf16.msra.mxu1 %v12133_v31  ;;  %v12139_v31 = vld [vmem:[#allocation9 + $0x110] sm:$0xff]  }
 0x27f   : > { %v14035_v19 = vadd.f32 %v11276_v47, %v4795_v46 }
 0x280   : > { %v11165_v0 = vpop.f32.mrb[108].mxu0 }
 0x281   : > { %v11166_v61 = vpop.f32.mrb[109].mxu0 }
 0x282   : > { %v11167_v29 = vadd.f32 %v11166_v61, %v11165_v0  ;;  %v11168_v20 = vpop.f32.mrb[110].mxu0 }
 0x283   : > { %v11169_v8 = vpop.f32.mrb[111].mxu0 }
 0x284   : > { %v4800_v48 = vadd.f32 %v11167_v29, %v13769_v32  ;;  %v11170_v6 = vadd.f32 %v11169_v8, %v11168_v20  ;;  %v11277_v53 = vpop.f32.mrb[108].mxu1 }
 0x285   : > { %v11278_v26 = vpop.f32.mrb[109].mxu1 }
 0x286   : > { %v4803_v58 = vadd.f32 %v11170_v6, %v13771_v39  ;;  %v11279_v33 = vadd.f32 %v11278_v26, %v11277_v53  ;;  %v11280_v15 = vpop.f32.mrb[110].mxu1 }
 0x287   : > { %v11281_v21 = vpop.f32.mrb[111].mxu1 }
 0x288   : > { %v11282_v28 = vadd.f32 %v11281_v21, %v11280_v15  ;;  %v14039_v62 = vadd.f32 %v11279_v33, %v4800_v48 }
 0x28a   : > { %v14041_v22 = vadd.f32 %v11282_v28, %v4803_v58 }
 0x28b   : > { %v11171_v43 = vpop.f32.mrb[112].mxu0 }
 0x28c   : > { %v11172_v35 = vpop.f32.mrb[113].mxu0 }
 0x28d   : > { %v11173_v59 = vadd.f32 %v11172_v35, %v11171_v43  ;;  %v11174_v3 = vpop.f32.mrb[114].mxu0 }
 0x28e   : > { %v11175_v32 = vpop.f32.mrb[115].mxu0 }
 0x28f   : > { %v4808_v56 = vadd.f32 %v11173_v59, %v13813_v14  ;;  %v11176_v41 = vadd.f32 %v11175_v32, %v11174_v3  ;;  %v11283_v39 = vpop.f32.mrb[112].mxu1  ;;  %v12138_v32 = vld [vmem:[#allocation9 + $0x150] sm:$0xff]  }
 0x290   : > { %v11284_v16 = vpop.f32.mrb[113].mxu1  ;;  %11559 = vmatprep.subr.bf16.mxu1 %v12138_v32 }
 0x291   : > { %v4811_v23 = vadd.f32 %v11176_v41, %v13819_v4  ;;  %v11285_v46 = vadd.f32 %v11284_v16, %v11283_v39  ;;  %v11286_v17 = vpop.f32.mrb[114].mxu1  ;;  %v15383_v39 = vld [vmem:[#allocation38_spill] sm:$0xff]  ;;  %11560 = vmatpush3.bf16.msra.mxu1 %v12139_v31  ;;  %v14066_v31 = vld [vmem:[#allocation2 + $0x8] sm:$0x1] }
 0x292   : > { %v11287_v5 = vpop.f32.mrb[115].mxu1 }
 0x293   : > { %v11288_v18 = vadd.f32 %v11287_v5, %v11286_v17  ;;  %v14045_v13 = vadd.f32 %v11285_v46, %v4808_v56 }
 0x295   : > { %v14047_v47 = vadd.f32 %v11288_v18, %v4811_v23 }
 0x296   : > { %v11177_v0 = vpop.f32.mrb[116].mxu0 }
 0x297   : > { %v11178_v61 = vpop.f32.mrb[117].mxu0 }
 0x298   : > { %v11179_v29 = vadd.f32 %v11178_v61, %v11177_v0  ;;  %v11180_v20 = vpop.f32.mrb[118].mxu0 }
 0x299   : > { %v11181_v14 = vpop.f32.mrb[119].mxu0 }
 0x29a   : > { %v4816_v8 = vadd.f32 %v11179_v29, %v13844_v1  ;;  %v11182_v6 = vadd.f32 %v11181_v14, %v11180_v20  ;;  %v15382_v1 = vld [vmem:[#allocation37_spill] sm:$0xff] }
 0x29b   : > { %v11289_v48 = vpop.f32.mrb[116].mxu1 }
 0x29c   : > { %v11290_v4 = vpop.f32.mrb[117].mxu1  ;;  %v4819_v53 = vadd.f32 %v11182_v6, %v13846_v49 }
 0x29d   : > { %v11291_v58 = vadd.f32 %v11290_v4, %v11289_v48  ;;  %v11292_v26 = vpop.f32.mrb[118].mxu1 }
 0x29e   : > { %v11293_v37 = vpop.f32.mrb[119].mxu1 }
 0x29f   : > { %v11294_v33 = vadd.f32 %v11293_v37, %v11292_v26  ;;  %v14051_v15 = vadd.f32 %v11291_v58, %v4816_v8  ;;  %v6376_v58 = vld [vmem:[#allocation2] sm:$0xe] }
 0x2a1   : > { %v14053_v21 = vadd.f32 %v11294_v33, %v4819_v53  ;;  %v11183_v28 = vpop.f32.mrb[120].mxu0  ;;  %v12144_v53 = vld [vmem:[#allocation9 + $0x158] sm:$0xff]   ;;  %v6377_v33 = vld [vmem:[#allocation2 + $0x4] sm:$0xf] }
 0x2a2   : > { %v11184_v43 = vpop.f32.mrb[121].mxu0  ;;  %11561 = vmatprep.subr.bf16.mxu1 %v12144_v53 }
 0x2a3   : > { %v11185_v35 = vadd.f32 %v11184_v43, %v11183_v28  ;;  %v11186_v59 = vpop.f32.mrb[122].mxu0  ;;  %v12145_v28 = vld [vmem:[#allocation9 + $0x118] sm:$0xff]  }
 0x2a4   : > { %v11187_v3 = vpop.f32.mrb[123].mxu0  ;;  %11562 = vmatpush3.bf16.msra.mxu1 %v12145_v28 }
 0x2a5   : > { %v4824_v56 = vadd.f32 %v11185_v35, %v15382_v1  ;;  %v11188_v41 = vadd.f32 %v11187_v3, %v11186_v59  ;;  %v10588_v1 = vrot.slane %v6376_v58, 9  ;;  %v12148_v58 = vld [vmem:[#allocation9 + $0x1c0] sm:$0xff]  }
 0x2a6   : > { %11667 = vmatprep.subr.bf16.mxu0 %v12148_v58  ;;  %v5612_v58 = vld [vmem:[#allocation2 + $0x14] sm:$0x1] }
 0x2a7   : > { %v4827_v49 = vadd.f32 %v11188_v41, %v15383_v39 }
 0x2b7   : > { %v11295_v16 = vpop.f32.mrb[120].mxu1 }
 0x2b8   : > { %v11296_v17 = vpop.f32.mrb[121].mxu1 }
 0x2b9   : > { %v11189_v23 = vpop.f32.mrb[124].mxu0  ;;  %v11297_v0 = vadd.f32 %v11296_v17, %v11295_v16  ;;  %v11298_v61 = vpop.f32.mrb[122].mxu1 }
 0x2ba   : > { %v11190_v46 = vpop.f32.mrb[125].mxu0  ;;  %v11299_v20 = vpop.f32.mrb[123].mxu1 }
 0x2bb   : > { %v11191_v5 = vadd.f32 %v11190_v46, %v11189_v23  ;;  %v11192_v18 = vpop.f32.mrb[126].mxu0  ;;  %v11300_v48 = vadd.f32 %v11299_v20, %v11298_v61  ;;  %v14058_v6 = vadd.f32 %v11297_v0, %v4824_v56  ;;  %v6474_v23 = vrot.slane %v6377_v33, 5 }
 0x2bc   : > { %v11193_v29 = vpop.f32.mrb[127].mxu0 }
 0x2bd   : > { %v4832_v14 = vadd.f32 %v11191_v5, %v13940_v7  ;;  %v11194_v8 = vadd.f32 %v11193_v29, %v11192_v18  ;;  %v14061_v26 = vadd.f32 %v11300_v48, %v4827_v49  ;;  %v14073_v29 = vsel %vm12633_vm14, %v10588_v1, %v6474_v23 }
 0x2be   : > { %v6476_v48 = vrot.slane %v6474_v23, 4 }
 0x2bf   : > { %v4835_v4 = vadd.f32 %v11194_v8, %v13961_v45  ;;  %v11301_v43 = vpop.f32.mrb[124].mxu1 }
 0x2c0   : > { %v11302_v3 = vpop.f32.mrb[125].mxu1 }
 0x2c1   : > { %v11821_v37 = vpop.f32.mrb[128].mxu0  ;;  %v11303_v56 = vadd.f32 %v11302_v3, %v11301_v43  ;;  %v11304_v45 = vpop.f32.mrb[126].mxu1 }
 0x2c2   : > { %v5042_v35 = vadd.f32 %v11821_v37, %v13975_v50  ;;  %v5033_v59 = vpop.f32.mrb[129].mxu0  ;;  %v11305_v16 = vpop.f32.mrb[127].mxu1 }
 0x2c3   : > { %v5034_v7 = vadd.f32 %v5033_v59, %v13969_v60  ;;  %v11822_v32 = vpop.f32.mrb[130].mxu0  ;;  %v11306_v17 = vadd.f32 %v11305_v16, %v11304_v45  ;;  %v14069_v60 = vadd.f32 %v11303_v56, %v4832_v14 }
 0x2c4   : > { %v5162_v41 = vmax.f32 %v5042_v35, 0.0  ;;  %v5045_v39 = vadd.f32 %v11822_v32, %v13977_v36  ;;  %v5036_v49 = vpop.f32.mrb[131].mxu0  ;;  %v6477_v36 = vrot.slane %v14066_v31, 5  ;;  %v5615_v32 = vld [vmem:[#allocation2 + $0x18] sm:$0xf] }
 0x2c5   : > { %v5160_v46 = vmax.f32 %v5034_v7, 0.0  ;;  %v5037_v50 = vadd.f32 %v5036_v49, %v13971_v55  ;;  %v14076_v53 = vadd.f32 %v11306_v17, %v4835_v4  ;;  %v5608_v31 = vld [vmem:[#allocation2 + $0xc] sm:$0xf] }
 0x2c6   : > { %v10828_v5 = vpack.c.bf16 %v5162_v41, %v5162_v41  ;;  %v5163_v18 = vmax.f32 %v5045_v39, 0.0 }
 0x2c7   : > { %v10826_v0 = vpack.c.bf16 %v5160_v46, %v5160_v46  ;;  %v5161_v61 = vmax.f32 %v5037_v50, 0.0 }
 0x2c8   : > { %v5306_v20 = vshrl.u32 %v10828_v5, 16  ;;  %v10829_v8 = vpack.c.bf16 %v5163_v18, %v5163_v18  ;;  %v5309_v55 = vshll.u32 %v10828_v5, 16  ;;  %v5619_v5 = vld [vmem:[#allocation2 + $0x20] sm:$0x1] }
 0x2c9   : > { %v5289_v37 = vshrl.u32 %v10826_v0, 16  ;;  %v5292_v33 = vshll.u32 %v10826_v0, 16  ;;  %v10827_v28 = vpack.c.bf16 %v5161_v61, %v5161_v61  ;;  %v11825_v14 = vpop.f32.mrb[132].mxu0 }
 0x2ca   : > { %v5308_v43 = vrot.slane %v5306_v20, 7  ;;  %v5314_v35 = vshrl.u32 %v10829_v8, 16  ;;  %v5317_v59 = vshll.u32 %v10829_v8, 16  ;;  %v5058_v3 = vadd.f32 %v11825_v14, %v13987_v44  ;;  %v5049_v7 = vpop.f32.mrb[133].mxu0 }
 0x2cb   : > { %v5291_v1 = vrot.slane %v5289_v37, 7  ;;  %v5297_v56 = vshrl.u32 %v10827_v28, 16  ;;  %v5300_v45 = vshll.u32 %v10827_v28, 16  ;;  %v5050_v4 = vadd.f32 %v5049_v7, %v13981_v34  ;;  %v11826_v41 = vpop.f32.mrb[134].mxu0 }
 0x2cc   : > { %v5311_v39 = vor.u32 %v5309_v55, %v5308_v43  ;;  %v5312_v49 = vrot.slane %v5308_v43, 4  ;;  %v5316_v23 = vrot.slane %v5314_v35, 7  ;;  %v5166_v16 = vmax.f32 %v5058_v3, 0.0  ;;  %v5052_v46 = vpop.f32.mrb[135].mxu0  ;;  %v12152_v43 = vld [vmem:[#allocation9 + $0x160] sm:$0xff]  }
 0x2cd   : > { %v5294_v50 = vor.u32 %v5292_v33, %v5291_v1  ;;  %v5295_v17 = vrot.slane %v5291_v1, 4  ;;  %v5299_v18 = vrot.slane %v5297_v56, 7  ;;  %v5164_v44 = vmax.f32 %v5050_v4, 0.0  ;;  %v12153_v1 = vld [vmem:[#allocation9 + $0x120] sm:$0xff]   ;;  %11563 = vmatprep.subr.bf16.mxu1 %v12152_v43 }
 0x2ce   : > { %v5616_v61 = vsel %vm12627_vm13, %v5311_v39, %v5615_v32  ;;  %v5319_v20 = vor.u32 %v5317_v59, %v5316_v23  ;;  %v5321_v8 = vrot.slane %v5316_v23, 4  ;;  %v10832_v37 = vpack.c.bf16 %v5166_v16, %v5166_v16  ;;  %11564 = vmatpush3.bf16.msra.mxu1 %v12153_v1 }
 0x2cf   : > { %5617 = vst [vmem:[#allocation2 + $0x18] sm:$0xf] %v5616_v61  ;;  %v5609_v34 = vsel %vm12627_vm13, %v5294_v50, %v5608_v31  ;;  %v5302_v55 = vor.u32 %v5300_v45, %v5299_v18  ;;  %v5304_v28 = vrot.slane %v5299_v18, 4  ;;  %v10830_v14 = vpack.c.bf16 %v5164_v44, %v5164_v44  ;;  %v5629_v50 = vld [vmem:[#allocation2 + $0x30] sm:$0xf] }
 0x2d0   : > { %5610 = vst [vmem:[#allocation2 + $0xc] sm:$0xf] %v5609_v34  ;;  %v5320_v35 = vsel %vm12621_vm12, %v5312_v49, %v5319_v20  ;;  %v5620_v7 = vsel %vm12597_vm3, %v5321_v8, %v5619_v5  ;;  %v5340_v32 = vshrl.u32 %v10832_v37, 16  ;;  %v14090_v59 = vsel %vm12633_vm14, %v6476_v48, %v6477_v36 }
 0x2d1   : > { %5618 = vst [vmem:[#allocation2 + $0x1c] sm:$0xf] %v5320_v35  ;;  %5621 = vst [vmem:[#allocation2 + $0x20] sm:$0x1] %v5620_v7  ;;  %v5303_v56 = vsel %vm12621_vm12, %v5295_v17, %v5302_v55  ;;  %v5613_v45 = vsel %vm12597_vm3, %v5304_v28, %v5612_v58  ;;  %v5343_v4 = vshll.u32 %v10832_v37, 16  ;;  %v5323_v39 = vshrl.u32 %v10830_v14, 16 }
 0x2d2   : > { %v11829_v49 = vpop.f32.mrb[136].mxu0  ;;  %5611 = vst [vmem:[#allocation2 + $0x10] sm:$0xf] %v5303_v56  ;;  %5614 = vst [vmem:[#allocation2 + $0x14] sm:$0x1] %v5613_v45  ;;  %v14096_v31 = vrot.slane %v5340_v32, 7  ;;  %v5061_v36 = vadd.f32 %v11826_v41, %v13989_v12  ;;  %v5053_v48 = vadd.f32 %v5052_v46, %v13983_v42  ;;  %v10604_v61 = vcombine.low %v14073_v29, %v14090_v59 }
 0x2d3   : > { %v5074_v23 = vadd.f32 %v11829_v49, %v13999_v25  ;;  %v5065_v16 = vpop.f32.mrb[137].mxu0  ;;  %v14101_v17 = vrot.slane %v5323_v39, 7  ;;  %v5326_v5 = vshll.u32 %v10830_v14, 16  ;;  %v5622_v41 = vld [vmem:[#allocation2 + $0x24] sm:$0xf]  ;;  %v12149_v32 = vld [vmem:[#allocation9 + $0x180] sm:$0xff]  }
 0x2d4   : > { %v5066_v18 = vadd.f32 %v5065_v16, %v13993_v57  ;;  %v11830_v44 = vpop.f32.mrb[138].mxu0  ;;  %v5345_v20 = vor.u32 %v5343_v4, %v14096_v31  ;;  %v5346_v12 = vrot.slane %v14096_v31, 4  ;;  %v5167_v42 = vmax.f32 %v5061_v36, 0.0  ;;  %v5633_v4 = vld [vmem:[#allocation2 + $0x38] sm:$0x1] }
 0x2d5   : > { %v5165_v46 = vmax.f32 %v5053_v48, 0.0  ;;  %v5068_v25 = vpop.f32.mrb[139].mxu0  ;;  %v5328_v8 = vor.u32 %v5326_v5, %v14101_v17  ;;  %v5329_v58 = vrot.slane %v14101_v17, 4  ;;  %v5170_v37 = vmax.f32 %v5074_v23, 0.0  ;;  %v5626_v39 = vld [vmem:[#allocation2 + $0x2c] sm:$0x1] }
 0x2d6   : > { %v5168_v34 = vmax.f32 %v5066_v18, 0.0  ;;  %v5630_v57 = vsel %vm12627_vm13, %v5345_v20, %v5629_v50  ;;  %v10833_v55 = vpack.c.bf16 %v5167_v42, %v5167_v42  ;;  %v5077_v29 = vadd.f32 %v11830_v44, %v14001_v63  ;;  %v5643_v17 = vld [vmem:[#allocation2 + $0x48] sm:$0xf] }
 0x2d7   : > { %v10831_v28 = vpack.c.bf16 %v5165_v46, %v5165_v46  ;;  %5631 = vst [vmem:[#allocation2 + $0x30] sm:$0xf] %v5630_v57  ;;  %v5623_v14 = vsel %vm12627_vm13, %v5328_v8, %v5622_v41  ;;  %v10836_v43 = vpack.c.bf16 %v5170_v37, %v5170_v37  ;;  %v5069_v7 = vadd.f32 %v5068_v25, %v13995_v30 }
 0x2d8   : > { %v10834_v35 = vpack.c.bf16 %v5168_v34, %v5168_v34  ;;  %5624 = vst [vmem:[#allocation2 + $0x24] sm:$0xf] %v5623_v14  ;;  %v5348_v59 = vshrl.u32 %v10833_v55, 16  ;;  %v5351_v1 = vshll.u32 %v10833_v55, 16  ;;  %v5171_v5 = vmax.f32 %v5077_v29, 0.0  ;;  %v12125_v25 = vld [vmem:[#allocation2 + $0x18] sm:$0xff]  }
 0x2d9   : > { %v5331_v56 = vshrl.u32 %v10831_v28, 16  ;;  %v5334_v45 = vshll.u32 %v10831_v28, 16  ;;  %v5374_v49 = vshrl.u32 %v10836_v43, 16  ;;  %v5377_v31 = vshll.u32 %v10836_v43, 16  ;;  %v11833_v48 = vpop.f32.mrb[140].mxu0  ;;  %v12124_v23 = vld [vmem:[#allocation2 + $0xc] sm:$0xff]  }
 0x2da   : > { %v5357_v36 = vshrl.u32 %v10834_v35, 16  ;;  %v5360_v63 = vshll.u32 %v10834_v35, 16  ;;  %v5350_v16 = vrot.slane %v5348_v59, 7  ;;  %v5169_v18 = vmax.f32 %v5069_v7, 0.0  ;;  %v5081_v30 = vpop.f32.mrb[141].mxu0  ;;  %9465 = vmatprep.mubr.bf16.mxu0 %v12124_v23 }
 0x2db   : > { %v5333_v50 = vrot.slane %v5331_v56, 7  ;;  %v14116_v44 = vrot.slane %v5374_v49, 7  ;;  %v5090_v41 = vadd.f32 %v11833_v48, %v14011_v40  ;;  %v5082_v42 = vadd.f32 %v5081_v30, %v14005_v24  ;;  %v11834_v46 = vpop.f32.mrb[142].mxu0  ;;  %v5636_v55 = vld [vmem:[#allocation2 + $0x3c] sm:$0xf]  ;;  %9466 = vmatmul.mubr.bf16.vlgmr.msra.gmra.mrb[160].mxu0 %v10604_v61  ;;  %v12156_v48 = vld [vmem:[#allocation9 + $0x1c8] sm:$0xff]  }
 0x2dc   : > { %v14118_v20 = vrot.slane %v5357_v36, 7  ;;  %v5353_v8 = vor.u32 %v5351_v1, %v5350_v16  ;;  %v5355_v37 = vrot.slane %v5350_v16, 4  ;;  %v5084_v28 = vpop.f32.mrb[143].mxu0  ;;  %9473 = vmatprep.mubr.bf16.mxu0 %v12125_v25  ;;  %11668 = vmatpush3.bf16.msra.mxu0 %v12149_v32  ;;  %v10835_v1 = vpack.c.bf16 %v5169_v18, %v5169_v18  ;;  %v5647_v23 = vld [vmem:[#allocation2 + $0x50] sm:$0x1] }
 0x2dd   : > { %v5336_v34 = vor.u32 %v5334_v45, %v5333_v50  ;;  %v5338_v57 = vrot.slane %v5333_v50, 4  ;;  %v5379_v29 = vor.u32 %v5377_v31, %v14116_v44  ;;  %v5380_v14 = vrot.slane %v14116_v44, 4  ;;  %v5640_v16 = vld [vmem:[#allocation2 + $0x44] sm:$0x1]  ;;  %11669 = vmatprep.subr.bf16.mxu0 %v12156_v48 }
 0x2de   : > { %v5362_v43 = vor.u32 %v5360_v63, %v14118_v20  ;;  %v5363_v40 = vrot.slane %v14118_v20, 4  ;;  %v5354_v24 = vsel %vm12621_vm12, %v5346_v12, %v5353_v8  ;;  %v5634_v35 = vsel %vm12597_vm3, %v5355_v37, %v5633_v4  ;;  %v12157_v44 = vld [vmem:[#allocation9 + $0x188] sm:$0xff]  }
 0x2df   : > { %v5337_v7 = vsel %vm12621_vm12, %v5329_v58, %v5336_v34  ;;  %v5627_v61 = vsel %vm12597_vm3, %v5338_v57, %v5626_v39  ;;  %5632 = vst [vmem:[#allocation2 + $0x34] sm:$0xf] %v5354_v24  ;;  %5635 = vst [vmem:[#allocation2 + $0x38] sm:$0x1] %v5634_v35  ;;  %v5644_v59 = vsel %vm12627_vm13, %v5379_v29, %v5643_v17  ;;  %v5174_v56 = vmax.f32 %v5090_v41, 0.0 }
 0x2e0   : > { %5625 = vst [vmem:[#allocation2 + $0x28] sm:$0xf] %v5337_v7  ;;  %5628 = vst [vmem:[#allocation2 + $0x2c] sm:$0x1] %v5627_v61  ;;  %v5637_v32 = vsel %vm12627_vm13, %v5362_v43, %v5636_v55  ;;  %v10837_v12 = vpack.c.bf16 %v5171_v5, %v5171_v5  ;;  %v5172_v45 = vmax.f32 %v5082_v42, 0.0  ;;  %v5093_v58 = vadd.f32 %v11834_v46, %v14013_v51  ;;  %v12160_v46 = vld [vmem:[#allocation9 + $0x168] sm:$0xff]  }
 0x2e1   : > { %5645 = vst [vmem:[#allocation2 + $0x48] sm:$0xf] %v5644_v59  ;;  %5638 = vst [vmem:[#allocation2 + $0x3c] sm:$0xf] %v5637_v32  ;;  %v5085_v4 = vadd.f32 %v5084_v28, %v14007_v9  ;;  %v5365_v31 = vshrl.u32 %v10835_v1, 16  ;;  %v5368_v36 = vshll.u32 %v10835_v1, 16  ;;  %v10840_v50 = vpack.c.bf16 %v5174_v56, %v5174_v56  ;;  %11670 = vmatpush3.bf16.msra.mxu0 %v12157_v44 }
 0x2e2   : > { %v5382_v39 = vshrl.u32 %v10837_v12, 16  ;;  %v5385_v49 = vshll.u32 %v10837_v12, 16  ;;  %v11837_v63 = vpop.f32.mrb[144].mxu0  ;;  %v10838_v17 = vpack.c.bf16 %v5172_v45, %v5172_v45  ;;  %v5175_v5 = vmax.f32 %v5093_v58, 0.0  ;;  %v12161_v55 = vld [vmem:[#allocation9 + $0x128] sm:$0xff]   ;;  %11565 = vmatprep.subr.bf16.mxu1 %v12160_v46 }
 0x2e3   : > { %v5173_v18 = vmax.f32 %v5085_v4, 0.0  ;;  %v5097_v30 = vpop.f32.mrb[145].mxu0  ;;  %v5367_v41 = vrot.slane %v5365_v31, 7  ;;  %v5106_v51 = vadd.f32 %v11837_v63, %v14027_v27  ;;  %v5408_v25 = vshrl.u32 %v10840_v50, 16  ;;  %11566 = vmatpush3.bf16.msra.mxu1 %v12161_v55  ;;  %v5657_v1 = vld [vmem:[#allocation2 + $0x60] sm:$0xf] }
 0x2e4   : > { %v5384_v20 = vrot.slane %v5382_v39, 7  ;;  %v5098_v9 = vadd.f32 %v5097_v30, %v14017_v54  ;;  %v11838_v42 = vpop.f32.mrb[146].mxu0  ;;  %v5411_v8 = vshll.u32 %v10840_v50, 16  ;;  %v5391_v37 = vshrl.u32 %v10838_v17, 16  ;;  %v5650_v56 = vld [vmem:[#allocation2 + $0x54] sm:$0xf] }
 0x2e5   : > { %v5394_v34 = vshll.u32 %v10838_v17, 16  ;;  %v5100_v57 = vpop.f32.mrb[147].mxu0  ;;  %v5370_v43 = vor.u32 %v5368_v36, %v5367_v41  ;;  %v5372_v24 = vrot.slane %v5367_v41, 4  ;;  %v5410_v35 = vrot.slane %v5408_v25, 7  ;;  %v5654_v50 = vld [vmem:[#allocation2 + $0x5c] sm:$0x1] }
 0x2e6   : > { %v5387_v28 = vor.u32 %v5385_v49, %v5384_v20  ;;  %v5389_v29 = vrot.slane %v5384_v20, 4  ;;  %v5393_v7 = vrot.slane %v5391_v37, 7  ;;  %v10841_v27 = vpack.c.bf16 %v5175_v5, %v5175_v5  ;;  %v12164_v25 = vld [vmem:[#allocation9 + $0x1d0] sm:$0xff]  }
 0x2e7   : > { %v10839_v61 = vpack.c.bf16 %v5173_v18, %v5173_v18  ;;  %v5371_v32 = vsel %vm12621_vm12, %v5363_v40, %v5370_v43  ;;  %v5641_v12 = vsel %vm12597_vm3, %v5372_v24, %v5640_v16  ;;  %v5413_v45 = vor.u32 %v5411_v8, %v5410_v35  ;;  %v5661_v16 = vld [vmem:[#allocation2 + $0x68] sm:$0x1]  ;;  %11671 = vmatprep.subr.bf16.mxu0 %v12164_v25  ;;  %v5870_v25 = vld [vmem:[#allocation2 + $0x18] sm:$0xf] }
 0x2e8   : > { %v5388_v54 = vsel %vm12621_vm12, %v5380_v14, %v5387_v28  ;;  %v5648_v59 = vsel %vm12597_vm3, %v5389_v29, %v5647_v23  ;;  %5639 = vst [vmem:[#allocation2 + $0x40] sm:$0xf] %v5371_v32  ;;  %5642 = vst [vmem:[#allocation2 + $0x44] sm:$0x1] %v5641_v12  ;;  %v5414_v58 = vrot.slane %v5410_v35, 4  ;;  %v5396_v4 = vor.u32 %v5394_v34, %v5393_v7 }
 0x2e9   : > { %5646 = vst [vmem:[#allocation2 + $0x4c] sm:$0xf] %v5388_v54  ;;  %5649 = vst [vmem:[#allocation2 + $0x50] sm:$0x1] %v5648_v59  ;;  %v5397_v39 = vrot.slane %v5393_v7, 4  ;;  %v5416_v49 = vshrl.u32 %v10841_v27, 16  ;;  %v5658_v40 = vsel %vm12627_vm13, %v5413_v45, %v5657_v1  ;;  %v5109_v20 = vadd.f32 %v11838_v42, %v14029_v52 }
 0x2ea   : > { %v5867_v14 = vld [vmem:[#allocation2 + $0xc] sm:$0xf]  ;;  %v5419_v31 = vshll.u32 %v10841_v27, 16  ;;  %v5399_v36 = vshrl.u32 %v10839_v61, 16  ;;  %v5402_v63 = vshll.u32 %v10839_v61, 16  ;;  %v14150_v48 = vpop.f32.mrb[148].mxu0  ;;  %v5651_v23 = vsel %vm12627_vm13, %v5396_v4, %v5650_v56 }
 0x2eb   : > { %v5178_v17 = vmax.f32 %v5106_v51, 0.0  ;;  %v5176_v5 = vmax.f32 %v5098_v9, 0.0  ;;  %v14156_v18 = vpop.f32.mrb[149].mxu0  ;;  %5659 = vst [vmem:[#allocation2 + $0x60] sm:$0xf] %v5658_v40  ;;  %v5418_v30 = vrot.slane %v5416_v49, 7  ;;  %v5101_v41 = vadd.f32 %v5100_v57, %v14019_v10 }
 0x2ec   : > { %5652 = vst [vmem:[#allocation2 + $0x54] sm:$0xf] %v5651_v23  ;;  %v5401_v44 = vrot.slane %v5399_v36, 7  ;;  %v14160_v46 = vpop.f32.mrb[150].mxu0  ;;  %v5937_v34 = vshrl.u32 %v5867_v14, 16  ;;  %v5940_v55 = vshll.u32 %v5867_v14, 16 }
 0x2ed   : > { %v10844_v8 = vpack.c.bf16 %v5178_v17, %v5178_v17  ;;  %v10842_v37 = vpack.c.bf16 %v5176_v5, %v5176_v5  ;;  %v14162_v28 = vpop.f32.mrb[151].mxu0  ;;  %v12165_v51 = vld [vmem:[#allocation9 + $0x190] sm:$0xff]   ;;  %v5421_v9 = vor.u32 %v5419_v31, %v5418_v30  ;;  %v5423_v29 = vrot.slane %v5418_v30, 4  ;;  %v5868_v10 = vld [vmem:[#allocation2 + $0x10] sm:$0xf] }
 0x2ee   : > { %v5404_v43 = vor.u32 %v5402_v63, %v5401_v44  ;;  %v5406_v24 = vrot.slane %v5401_v44, 4  ;;  %11672 = vmatpush3.bf16.msra.mxu0 %v12165_v51  ;;  %v5671_v59 = vld [vmem:[#allocation2 + $0x78] sm:$0xf]  ;;  %v5664_v32 = vld [vmem:[#allocation2 + $0x6c] sm:$0xf]  ;;  %v5179_v56 = vmax.f32 %v5109_v20, 0.0 }
 0x2ef   : > { %v5442_v35 = vshrl.u32 %v10844_v8, 16  ;;  %v5445_v7 = vshll.u32 %v10844_v8, 16  ;;  %v5425_v52 = vshrl.u32 %v10842_v37, 16  ;;  %v5428_v42 = vshll.u32 %v10842_v37, 16  ;;  %v6379_v31 = vld [vmem:[#allocation2 + $0xc] sm:$0xe] }
 0x2f0   : > { %v5422_v57 = vsel %vm12621_vm12, %v5414_v58, %v5421_v9  ;;  %v5662_v27 = vsel %vm12597_vm3, %v5423_v29, %v5661_v16  ;;  %v5405_v61 = vsel %vm12621_vm12, %v5397_v39, %v5404_v43  ;;  %v5655_v54 = vsel %vm12597_vm3, %v5406_v24, %v5654_v50  ;;  %v5869_v58 = vld [vmem:[#allocation2 + $0x14] sm:$0x1]  ;;  %v6380_v50 = vld [vmem:[#allocation2 + $0x10] sm:$0xf]  ;;  %v6394_v33 = vld [vmem:[#allocation2 + $0x48] sm:$0xe] }
 0x2f1   : > { %5660 = vst [vmem:[#allocation2 + $0x64] sm:$0xf] %v5422_v57  ;;  %5663 = vst [vmem:[#allocation2 + $0x68] sm:$0x1] %v5662_v27  ;;  %v14172_v12 = vrot.slane %v5442_v35, 7  ;;  %v14174_v1 = vrot.slane %v5425_v52, 7  ;;  %v10845_v5 = vpack.c.bf16 %v5179_v56, %v5179_v56 }
 0x2f2   : > { %5653 = vst [vmem:[#allocation2 + $0x58] sm:$0xf] %v5405_v61  ;;  %5656 = vst [vmem:[#allocation2 + $0x5c] sm:$0x1] %v5655_v54  ;;  %v5177_v45 = vmax.f32 %v5101_v41, 0.0  ;;  %v5939_v4 = vrot.slane %v5937_v34, 4 }
 0x2f3   : > { %v5942_v14 = vrot.slane %v5940_v55, 5  ;;  %v5946_v49 = vshll.u32 %v5868_v10, 16  ;;  %v5950_v39 = vshrl.u32 %v5868_v10, 16  ;;  %v14176_v36 = vpop.f32.mrb[152].mxu0  ;;  %v5447_v63 = vor.u32 %v5445_v7, %v14172_v12  ;;  %v6381_v41 = vld [vmem:[#allocation2 + $0x14] sm:$0x1] }
 0x2f4   : > { %v5448_v40 = vrot.slane %v14172_v12, 4  ;;  %v5430_v23 = vor.u32 %v5428_v42, %v14174_v1  ;;  %v5431_v16 = vrot.slane %v14174_v1, 4  ;;  %v14182_v17 = vpop.f32.mrb[153].mxu0  ;;  %v10843_v30 = vpack.c.bf16 %v5177_v45, %v5177_v45  ;;  %v12168_v57 = vld [vmem:[#allocation9 + $0x170] sm:$0xff]   ;;  %v5675_v61 = vld [vmem:[#allocation2 + $0x80] sm:$0x1] }
 0x2f5   : > { %v5943_v44 = vor.u32 %v5942_v14, %v5939_v4  ;;  %v5948_v20 = vrot.slane %v5946_v49, 5  ;;  %v14184_v8 = vpop.f32.mrb[154].mxu0  ;;  %v5672_v37 = vsel %vm12627_vm13, %v5447_v63, %v5671_v59  ;;  %v5952_v55 = vrot.slane %v5950_v39, 4  ;;  %v5668_v12 = vld [vmem:[#allocation2 + $0x74] sm:$0x1]  ;;  %11567 = vmatprep.subr.bf16.mxu1 %v12168_v57 }
 0x2f6   : > { %v5665_v34 = vsel %vm12627_vm13, %v5430_v23, %v5664_v32  ;;  %v5956_v51 = vshll.u32 %v5869_v58, 16  ;;  %v14190_v9 = vpop.f32.mrb[155].mxu0  ;;  %5673 = vst [vmem:[#allocation2 + $0x78] sm:$0xf] %v5672_v37  ;;  %v5450_v29 = vshrl.u32 %v10845_v5, 16  ;;  %v5453_v43 = vshll.u32 %v10845_v5, 16 }
 0x2f7   : > { %5666 = vst [vmem:[#allocation2 + $0x6c] sm:$0xf] %v5665_v34  ;;  %v5433_v24 = vshrl.u32 %v10843_v30, 16  ;;  %v5436_v35 = vshll.u32 %v10843_v30, 16  ;;  %v5944_v7 = vrot.slane %v5943_v44, 4  ;;  %v5953_v52 = vor.u32 %v5952_v55, %v5948_v20  ;;  %v12128_v55 = vld [vmem:[#allocation2 + $0xc] sm:$0xff]  }
 0x2f8   : > { %v5958_v42 = vrot.slane %v5956_v51, 5  ;;  %v10589_v10 = vrot.slane %v6379_v31, 9  ;;  %v5452_v27 = vrot.slane %v5450_v29, 7  ;;  %v6481_v59 = vrot.slane %v6380_v50, 5  ;;  %v5871_v63 = vld [vmem:[#allocation2 + $0x1c] sm:$0xf] }
 0x2f9   : > { %v5435_v54 = vrot.slane %v5433_v24, 7  ;;  %v6484_v32 = vrot.slane %v6381_v41, 5  ;;  %v5949_v1 = vsel %vm12615_vm11, %v5944_v7, %v5948_v20  ;;  %v5954_v56 = vrot.slane %v5953_v52, 4  ;;  %v14194_v31 = vpop.f32.mrb[156].mxu0  ;;  %v5872_v30 = vld [vmem:[#allocation2 + $0x20] sm:$0x1] }
 0x2fa   : > { %v5961_v45 = vshrl.u32 %v5870_v25, 16  ;;  %v5964_v58 = vshll.u32 %v5870_v25, 16  ;;  %v5455_v4 = vor.u32 %v5453_v43, %v5452_v27  ;;  %v5457_v14 = vrot.slane %v5452_v27, 4  ;;  %v14200_v20 = vpop.f32.mrb[157].mxu0  ;;  %v14210_v51 = vld [vmem:[#allocation2 + $0x18] sm:$0xe] }
 0x2fb   : > { %v5438_v49 = vor.u32 %v5436_v35, %v5435_v54  ;;  %v5440_v39 = vrot.slane %v5435_v54, 4  ;;  %v5959_v23 = vsel %vm12615_vm11, %v5954_v56, %v5958_v42  ;;  %v6482_v50 = vsel %vm12633_vm14, %v10589_v10, %v6481_v59  ;;  %v14212_v29 = vpop.f32.mrb[158].mxu0  ;;  %v14216_v7 = vld [vmem:[#allocation2 + $0x1c] sm:$0xf]  ;;  %v12169_v52 = vld [vmem:[#allocation9 + $0x130] sm:$0xff]  }
 0x2fc   : > { %v6483_v5 = vrot.slane %v6481_v59, 4  ;;  %v5963_v44 = vrot.slane %v5961_v45, 4  ;;  %v5456_v41 = vsel %vm12621_vm12, %v5448_v40, %v5455_v4  ;;  %v5676_v25 = vsel %vm12597_vm3, %v5457_v14, %v5675_v61  ;;  %v12129_v61 = vld [vmem:[#allocation2 + $0x24] sm:$0xff]   ;;  %11568 = vmatpush3.bf16.msra.mxu1 %v12169_v52  ;;  %v12173_v4 = vld [vmem:[#allocation9 + $0x198] sm:$0xff]  }
 0x2fd   : > { %v5439_v37 = vsel %vm12621_vm12, %v5431_v16, %v5438_v49  ;;  %v5669_v34 = vsel %vm12597_vm3, %v5440_v39, %v5668_v12  ;;  %5674 = vst [vmem:[#allocation2 + $0x7c] sm:$0xf] %v5456_v41  ;;  %5677 = vst [vmem:[#allocation2 + $0x80] sm:$0x1] %v5676_v25  ;;  %v10573_v43 = vcombine.low %v5949_v1, %v5959_v23  ;;  %v5966_v24 = vrot.slane %v5964_v58, 5  ;;  %v14218_v16 = vpop.f32.mrb[159].mxu0 }
 0x2fe   : > { %5667 = vst [vmem:[#allocation2 + $0x70] sm:$0xf] %v5439_v37  ;;  %5670 = vst [vmem:[#allocation2 + $0x74] sm:$0x1] %v5669_v34  ;;  %v6485_v40 = vsel %vm12633_vm14, %v6483_v5, %v6484_v32  ;;  %v5970_v35 = vshll.u32 %v5871_v63, 16  ;;  %v5974_v10 = vshrl.u32 %v5871_v63, 16  ;;  %v5122_v27 = vadd.f32 %v14150_v48, %v14039_v62 }
 0x2ff   : > { %v10605_v42 = vcombine.low %v6482_v50, %v6485_v40  ;;  %v5980_v57 = vshll.u32 %v5872_v30, 16  ;;  %9312 = vmatprep.mubr.bf16.mxu1 %v10573_v43  ;;  %v5967_v54 = vor.u32 %v5966_v24, %v5963_v44  ;;  %v5114_v32 = vadd.f32 %v14156_v18, %v14033_v2  ;;  %v12172_v1 = vld [vmem:[#allocation9 + $0x1d8] sm:$0xff]   ;;  %v6384_v48 = vld [vmem:[#allocation2 + $0x20] sm:$0x1]  ;;  %v12174_v5 = vld [vmem:[#allocation9 + $0x1e0] sm:$0xff]  }
 0x300   : > { %v5972_v59 = vrot.slane %v5970_v35, 5  ;;  %v5125_v12 = vadd.f32 %v14160_v46, %v14041_v22  ;;  %9313 = vmatmul.mubr.bf16.gmra.mrb[132].mxu1 %v12128_v55  ;;  %v5976_v56 = vrot.slane %v5974_v10, 4  ;;  %v5182_v58 = vmax.f32 %v5122_v27, 0.0  ;;  %11673 = vmatprep.subr.bf16.mxu0 %v12172_v1  ;;  %v5685_v37 = vld [vmem:[#allocation2 + $0x90] sm:$0xf] }
 0x301   : > { %9474 = vmatmul.mubr.bf16.gmra.mrb[164].mxu0 %v10605_v42  ;;  %v5982_v45 = vrot.slane %v5980_v57, 5  ;;  %v5117_v62 = vadd.f32 %v14162_v28, %v14035_v19  ;;  %v5968_v14 = vrot.slane %v5967_v54, 4  ;;  %v5180_v49 = vmax.f32 %v5114_v32, 0.0  ;;  %v5678_v10 = vld [vmem:[#allocation2 + $0x84] sm:$0xf] }
 0x302   : > { %9481 = vmatprep.mubr.bf16.mxu0 %v12129_v61  ;;  %v5183_v39 = vmax.f32 %v5125_v12, 0.0  ;;  %v10590_v2 = vrot.slane %v14210_v51, 9  ;;  %v5977_v22 = vor.u32 %v5976_v56, %v5972_v59  ;;  %v10848_v18 = vpack.c.bf16 %v5182_v58, %v5182_v58  ;;  %11674 = vmatpush3.bf16.msra.mxu0 %v12173_v4  ;;  %v5689_v27 = vld [vmem:[#allocation2 + $0x98] sm:$0x1]  ;;  %v5682_v12 = vld [vmem:[#allocation2 + $0x8c] sm:$0x1] }
 0x303   : > { %v5181_v46 = vmax.f32 %v5117_v62, 0.0  ;;  %v6488_v63 = vrot.slane %v14216_v7, 5  ;;  %v5973_v23 = vsel %vm12615_vm11, %v5968_v14, %v5972_v59  ;;  %v10846_v50 = vpack.c.bf16 %v5180_v49, %v5180_v49  ;;  %11675 = vmatprep.subr.bf16.mxu0 %v12174_v5  ;;  %v12130_v56 = vld [vmem:[#allocation2 + $0x18] sm:$0xff]   ;;  %v5873_v4 = vld [vmem:[#allocation2 + $0x24] sm:$0xf]  ;;  %v12131_v5 = vld [vmem:[#allocation2 + $0x30] sm:$0xff]  }
 0x304   : > { %v10849_v19 = vpack.c.bf16 %v5183_v39, %v5183_v39  ;;  %v6491_v28 = vrot.slane %v6384_v48, 5  ;;  %v5978_v30 = vrot.slane %v5977_v22, 4  ;;  %v5476_v44 = vshrl.u32 %v10848_v18, 16  ;;  %v5874_v14 = vld [vmem:[#allocation2 + $0x28] sm:$0xf] }
 0x305   : > { %v5479_v41 = vshll.u32 %v10848_v18, 16  ;;  %v10847_v25 = vpack.c.bf16 %v5181_v46, %v5181_v46  ;;  %v5459_v34 = vshrl.u32 %v10846_v50, 16  ;;  %v5462_v55 = vshll.u32 %v10846_v50, 16  ;;  %v5875_v18 = vld [vmem:[#allocation2 + $0x2c] sm:$0x1] }
 0x306   : > { %v5484_v51 = vshrl.u32 %v10849_v19, 16  ;;  %v5487_v43 = vshll.u32 %v10849_v19, 16  ;;  %v5983_v40 = vsel %vm12615_vm11, %v5978_v30, %v5982_v45  ;;  %v5478_v24 = vrot.slane %v5476_v44, 7 }
 0x307   : > { %v5467_v35 = vshrl.u32 %v10847_v25, 16  ;;  %v5470_v7 = vshll.u32 %v10847_v25, 16  ;;  %v10574_v52 = vcombine.low %v5973_v23, %v5983_v40  ;;  %v5461_v42 = vrot.slane %v5459_v34, 7 }
 0x308   : > { %v5486_v57 = vrot.slane %v5484_v51, 7  ;;  %v6489_v61 = vsel %vm12633_vm14, %v10590_v2, %v6488_v63  ;;  %v5481_v54 = vor.u32 %v5479_v41, %v5478_v24  ;;  %v5482_v59 = vrot.slane %v5478_v24, 4 }
 0x309   : > { %v5469_v32 = vrot.slane %v5467_v35, 7  ;;  %v6490_v1 = vrot.slane %v6488_v63, 4  ;;  %9320 = vmatprep.mubr.bf16.mxu1 %v10574_v52  ;;  %v5464_v58 = vor.u32 %v5462_v55, %v5461_v42  ;;  %v5465_v45 = vrot.slane %v5461_v42, 4  ;;  %v12177_v55 = vld [vmem:[#allocation9 + $0x178] sm:$0xff]   ;;  %v6385_v35 = vld [vmem:[#allocation2 + $0x24] sm:$0xe] }
 0x30a   : > { %v5489_v62 = vor.u32 %v5487_v43, %v5486_v57  ;;  %v5491_v48 = vrot.slane %v5486_v57, 4  ;;  %v5686_v49 = vsel %vm12627_vm13, %v5481_v54, %v5685_v37  ;;  %9321 = vmatmul.mubr.bf16.gmra.mrb[136].mxu1 %v12130_v56  ;;  %v5985_v30 = vshrl.u32 %v5873_v4, 16  ;;  %11569 = vmatprep.subr.bf16.mxu1 %v12177_v55 }
 0x30b   : > { %v5472_v39 = vor.u32 %v5470_v7, %v5469_v32  ;;  %v5474_v22 = vrot.slane %v5469_v32, 4  ;;  %v6492_v2 = vsel %vm12633_vm14, %v6490_v1, %v6491_v28  ;;  %5687 = vst [vmem:[#allocation2 + $0x90] sm:$0xf] %v5686_v49  ;;  %v5679_v46 = vsel %vm12627_vm13, %v5464_v58, %v5678_v10  ;;  %v6386_v7 = vld [vmem:[#allocation2 + $0x28] sm:$0xf] }
 0x30c   : > { %v5490_v63 = vsel %vm12621_vm12, %v5482_v59, %v5489_v62  ;;  %v5690_v23 = vsel %vm12597_vm3, %v5491_v48, %v5689_v27  ;;  %v10606_v50 = vcombine.low %v6489_v61, %v6492_v2  ;;  %5680 = vst [vmem:[#allocation2 + $0x84] sm:$0xf] %v5679_v46  ;;  %v5988_v44 = vshll.u32 %v5873_v4, 16  ;;  %v5699_v48 = vld [vmem:[#allocation2 + $0xa8] sm:$0xf] }
 0x30d   : > { %5688 = vst [vmem:[#allocation2 + $0x94] sm:$0xf] %v5490_v63  ;;  %5691 = vst [vmem:[#allocation2 + $0x98] sm:$0x1] %v5690_v23  ;;  %v5473_v19 = vsel %vm12621_vm12, %v5465_v45, %v5472_v39  ;;  %v5683_v28 = vsel %vm12597_vm3, %v5474_v22, %v5682_v12  ;;  %v5994_v41 = vshll.u32 %v5874_v14, 16  ;;  %v5998_v25 = vshrl.u32 %v5874_v14, 16 }
 0x30e   : > { %5681 = vst [vmem:[#allocation2 + $0x88] sm:$0xf] %v5473_v19  ;;  %5684 = vst [vmem:[#allocation2 + $0x8c] sm:$0x1] %v5683_v28  ;;  %9482 = vmatmul.mubr.bf16.gmra.mrb[168].mxu0 %v10606_v50  ;;  %v6004_v37 = vshll.u32 %v5875_v18, 16  ;;  %v5138_v34 = vadd.f32 %v14176_v36, %v14051_v15  ;;  %v5987_v51 = vrot.slane %v5985_v30, 4  ;;  %v5130_v40 = vadd.f32 %v14182_v17, %v14045_v13 }
 0x30f   : > { %9489 = vmatprep.mubr.bf16.mxu0 %v12131_v5  ;;  %v5990_v43 = vrot.slane %v5988_v44, 5  ;;  %v5141_v24 = vadd.f32 %v14184_v8, %v14053_v21  ;;  %v5996_v52 = vrot.slane %v5994_v41, 5  ;;  %v6000_v42 = vrot.slane %v5998_v25, 4  ;;  %v5692_v39 = vld [vmem:[#allocation2 + $0x9c] sm:$0xf]  ;;  %v12134_v25 = vld [vmem:[#allocation2 + $0x24] sm:$0xff]  }
 0x310   : > { %v6006_v10 = vrot.slane %v6004_v37, 5  ;;  %v5186_v57 = vmax.f32 %v5138_v34, 0.0  ;;  %v5184_v61 = vmax.f32 %v5130_v40, 0.0  ;;  %v5133_v36 = vadd.f32 %v14190_v9, %v14047_v47  ;;  %v5703_v2 = vld [vmem:[#allocation2 + $0xb0] sm:$0x1] }
 0x311   : > { %v5991_v27 = vor.u32 %v5990_v43, %v5987_v51  ;;  %v5187_v15 = vmax.f32 %v5141_v24, 0.0  ;;  %v6001_v54 = vor.u32 %v6000_v42, %v5996_v52  ;;  %v10591_v32 = vrot.slane %v6385_v35, 9  ;;  %v6387_v46 = vld [vmem:[#allocation2 + $0x2c] sm:$0x1]  ;;  %v5876_v63 = vld [vmem:[#allocation2 + $0x30] sm:$0xf] }
 0x312   : > { %v10852_v59 = vpack.c.bf16 %v5186_v57, %v5186_v57  ;;  %v6495_v13 = vrot.slane %v6386_v7, 5  ;;  %v10850_v12 = vpack.c.bf16 %v5184_v61, %v5184_v61  ;;  %v5185_v8 = vmax.f32 %v5133_v36, 0.0  ;;  %v5877_v35 = vld [vmem:[#allocation2 + $0x34] sm:$0xf]  ;;  %v5878_v61 = vld [vmem:[#allocation2 + $0x38] sm:$0x1] }
 0x313   : > { %v5992_v17 = vrot.slane %v5991_v27, 4  ;;  %v10853_v21 = vpack.c.bf16 %v5187_v15, %v5187_v15  ;;  %v6002_v1 = vrot.slane %v6001_v54, 4  ;;  %v6498_v24 = vrot.slane %v6387_v46, 5  ;;  %v5696_v27 = vld [vmem:[#allocation2 + $0xa4] sm:$0x1]  ;;  %v12179_v36 = vld [vmem:[#allocation9 + $0x138] sm:$0xff]  }
 0x314   : > { %v5510_v56 = vshrl.u32 %v10852_v59, 16  ;;  %v5513_v58 = vshll.u32 %v10852_v59, 16  ;;  %v14260_v45 = vsel %vm12633_vm14, %v10591_v32, %v6495_v13  ;;  %v5493_v47 = vshrl.u32 %v10850_v12, 16  ;;  %11570 = vmatpush3.bf16.msra.mxu1 %v12179_v36 }
 0x315   : > { %v5997_v62 = vsel %vm12615_vm11, %v5992_v17, %v5996_v52  ;;  %v5496_v9 = vshll.u32 %v10850_v12, 16  ;;  %v5518_v4 = vshrl.u32 %v10853_v21, 16  ;;  %v6007_v14 = vsel %vm12615_vm11, %v6002_v1, %v6006_v10  ;;  %v12178_v52 = vld [vmem:[#allocation9 + $0x1a0] sm:$0xff]   ;;  %v6388_v12 = vld [vmem:[#allocation2 + $0x30] sm:$0xe] }
 0x316   : > { %v5512_v49 = vrot.slane %v5510_v56, 7  ;;  %v5521_v22 = vshll.u32 %v10853_v21, 16  ;;  %v10851_v18 = vpack.c.bf16 %v5185_v8, %v5185_v8  ;;  %v10575_v23 = vcombine.low %v5997_v62, %v6007_v14  ;;  %11676 = vmatpush3.bf16.msra.mxu0 %v12178_v52  ;;  %v12180_v62 = vld [vmem:[#allocation9 + $0x1e8] sm:$0xff]  }
 0x317   : > { %v5495_v50 = vrot.slane %v5493_v47, 7  ;;  %v5520_v19 = vrot.slane %v5518_v4, 7  ;;  %v6497_v28 = vrot.slane %v6495_v13, 4  ;;  %v6009_v7 = vshrl.u32 %v5876_v63, 16  ;;  %v12135_v13 = vld [vmem:[#allocation2 + $0x3c] sm:$0xff]   ;;  %11677 = vmatprep.subr.bf16.mxu0 %v12180_v62 }
 0x318   : > { %v5515_v5 = vor.u32 %v5513_v58, %v5512_v49  ;;  %v5516_v30 = vrot.slane %v5512_v49, 4  ;;  %v5501_v44 = vshrl.u32 %v10851_v18, 16  ;;  %v5504_v41 = vshll.u32 %v10851_v18, 16  ;;  %9328 = vmatprep.mubr.bf16.mxu1 %v10575_v23  ;;  %v6389_v58 = vld [vmem:[#allocation2 + $0x34] sm:$0xf]  ;;  %v12181_v14 = vld [vmem:[#allocation9 + $0x1a8] sm:$0xff]  }
 0x319   : > { %v5498_v37 = vor.u32 %v5496_v9, %v5495_v50  ;;  %v5499_v34 = vrot.slane %v5495_v50, 4  ;;  %v5523_v55 = vor.u32 %v5521_v22, %v5520_v19  ;;  %v5525_v51 = vrot.slane %v5520_v19, 4  ;;  %9329 = vmatmul.mubr.bf16.gmra.mrb[140].mxu1 %v12134_v25 }
 0x31a   : > { %v5700_v43 = vsel %vm12627_vm13, %v5515_v5, %v5699_v48  ;;  %v5503_v40 = vrot.slane %v5501_v44, 7  ;;  %v6012_v15 = vshll.u32 %v5876_v63, 16  ;;  %v6499_v32 = vsel %vm12633_vm14, %v6497_v28, %v6498_v24  ;;  %11678 = vmatpush3.bf16.msra.mxu0 %v12181_v14  ;;  %v12182_v28 = vld [vmem:[#allocation9 + $0x1f0] sm:$0xff]  }
 0x31b   : > { %5701 = vst [vmem:[#allocation2 + $0xa8] sm:$0xf] %v5700_v43  ;;  %v5693_v42 = vsel %vm12627_vm13, %v5498_v37, %v5692_v39  ;;  %v5524_v10 = vsel %vm12621_vm12, %v5516_v30, %v5523_v55  ;;  %v5704_v57 = vsel %vm12597_vm3, %v5525_v51, %v5703_v2  ;;  %v6011_v17 = vrot.slane %v6009_v7, 4  ;;  %v12184_v44 = vld [vmem:[#allocation9 + $0x1b0] sm:$0xff]   ;;  %11679 = vmatprep.subr.bf16.mxu0 %v12182_v28  ;;  %v5713_v51 = vld [vmem:[#allocation2 + $0xc0] sm:$0xf] }
 0x31c   : > { %5694 = vst [vmem:[#allocation2 + $0x9c] sm:$0xf] %v5693_v42  ;;  %5702 = vst [vmem:[#allocation2 + $0xac] sm:$0xf] %v5524_v10  ;;  %v5506_v54 = vor.u32 %v5504_v41, %v5503_v40  ;;  %v5508_v59 = vrot.slane %v5503_v40, 4  ;;  %v10607_v21 = vcombine.low %v14260_v45, %v6499_v32  ;;  %v6014_v8 = vrot.slane %v6012_v15, 5 }
 0x31d   : > { %5705 = vst [vmem:[#allocation2 + $0xb0] sm:$0x1] %v5704_v57  ;;  %v6018_v1 = vshll.u32 %v5877_v35, 16  ;;  %v6022_v56 = vshrl.u32 %v5877_v35, 16  ;;  %v6028_v9 = vshll.u32 %v5878_v61, 16  ;;  %v5154_v4 = vadd.f32 %v14194_v31, %v14069_v60 }
 0x31e   : > { %v5507_v48 = vsel %vm12621_vm12, %v5499_v34, %v5506_v54  ;;  %v5697_v47 = vsel %vm12597_vm3, %v5508_v59, %v5696_v27  ;;  %9490 = vmatmul.mubr.bf16.gmra.mrb[172].mxu0 %v10607_v21  ;;  %v6015_v45 = vor.u32 %v6014_v8, %v6011_v17  ;;  %v5146_v22 = vadd.f32 %v14200_v20, %v14058_v6  ;;  %v6390_v31 = vld [vmem:[#allocation2 + $0x38] sm:$0x1]  ;;  %v5879_v35 = vld [vmem:[#allocation2 + $0x3c] sm:$0xf]  ;;  %v5706_v42 = vld [vmem:[#allocation2 + $0xb4] sm:$0xf] }
 0x31f   : > { %5695 = vst [vmem:[#allocation2 + $0xa0] sm:$0xf] %v5507_v48  ;;  %5698 = vst [vmem:[#allocation2 + $0xa4] sm:$0x1] %v5697_v47  ;;  %v6020_v49 = vrot.slane %v6018_v1, 5  ;;  %v6024_v39 = vrot.slane %v6022_v56, 4  ;;  %9497 = vmatprep.mubr.bf16.mxu0 %v12135_v13  ;;  %v5157_v46 = vadd.f32 %v14212_v29, %v14076_v53  ;;  %v5149_v60 = vadd.f32 %v14218_v16, %v14061_v26 }
 0x320   : > { %v6030_v2 = vrot.slane %v6028_v9, 5  ;;  %v5190_v18 = vmax.f32 %v5154_v4, 0.0  ;;  %v6016_v63 = vrot.slane %v6015_v45, 4  ;;  %v5188_v50 = vmax.f32 %v5146_v22, 0.0  ;;  %11680 = vmatpush3.bf16.msra.mxu0 %v12184_v44  ;;  %v12136_v27 = vld [vmem:[#allocation2 + $0x30] sm:$0xff]  }
 0x321   : > { %v6025_v23 = vor.u32 %v6024_v39, %v6020_v49  ;;  %v10592_v19 = vrot.slane %v6388_v12, 9  ;;  %v5191_v30 = vmax.f32 %v5157_v46, 0.0  ;;  %v5189_v6 = vmax.f32 %v5149_v60, 0.0  ;;  %v5717_v15 = vld [vmem:[#allocation2 + $0xc8] sm:$0x1] }
 0x322   : > { %v10856_v5 = vpack.c.bf16 %v5190_v18, %v5190_v18  ;;  %v6502_v20 = vrot.slane %v6389_v58, 5  ;;  %v6021_v41 = vsel %vm12615_vm11, %v6016_v63, %v6020_v49  ;;  %v10854_v53 = vpack.c.bf16 %v5188_v50, %v5188_v50  ;;  %v5880_v32 = vld [vmem:[#allocation2 + $0x40] sm:$0xf]  ;;  %v5710_v21 = vld [vmem:[#allocation2 + $0xbc] sm:$0x1]  ;;  %v12137_v39 = vld [vmem:[#allocation2 + $0x48] sm:$0xff]  }
 0x323   : > { %v6026_v25 = vrot.slane %v6025_v23, 4  ;;  %v6505_v29 = vrot.slane %v6390_v31, 5  ;;  %v10857_v37 = vpack.c.bf16 %v5191_v30, %v5191_v30  ;;  %v10855_v34 = vpack.c.bf16 %v5189_v6, %v5189_v6  ;;  %v5881_v8 = vld [vmem:[#allocation2 + $0x44] sm:$0x1]  ;;  %v6391_v47 = vld [vmem:[#allocation2 + $0x3c] sm:$0xe] }
 0x324   : > { %v5544_v26 = vshrl.u32 %v10856_v5, 16  ;;  %v5547_v16 = vshll.u32 %v10856_v5, 16  ;;  %v5527_v43 = vshrl.u32 %v10854_v53, 16  ;;  %v5530_v40 = vshll.u32 %v10854_v53, 16  ;;  %v6392_v9 = vld [vmem:[#allocation2 + $0x40] sm:$0xf] }
 0x325   : > { %v6031_v55 = vsel %vm12615_vm11, %v6026_v25, %v6030_v2  ;;  %v6503_v24 = vsel %vm12633_vm14, %v10592_v19, %v6502_v20  ;;  %v5552_v10 = vshrl.u32 %v10857_v37, 16  ;;  %v5555_v57 = vshll.u32 %v10857_v37, 16  ;;  %v6393_v22 = vld [vmem:[#allocation2 + $0x44] sm:$0x1]  ;;  %v5882_v19 = vld [vmem:[#allocation2 + $0x48] sm:$0xf] }
 0x326   : > { %v10576_v7 = vcombine.low %v6021_v41, %v6031_v55  ;;  %v5546_v52 = vrot.slane %v5544_v26, 7  ;;  %v5529_v61 = vrot.slane %v5527_v43, 7  ;;  %v5535_v36 = vshrl.u32 %v10855_v34, 16  ;;  %v5883_v6 = vld [vmem:[#allocation2 + $0x4c] sm:$0xf] }
 0x327   : > { %v5538_v54 = vshll.u32 %v10855_v34, 16  ;;  %v6504_v59 = vrot.slane %v6502_v20, 4  ;;  %v5554_v12 = vrot.slane %v5552_v10, 7  ;;  %v6033_v1 = vshrl.u32 %v5879_v35, 16  ;;  %v5884_v53 = vld [vmem:[#allocation2 + $0x50] sm:$0x1] }
 0x328   : > { %9336 = vmatprep.mubr.bf16.mxu1 %v10576_v7  ;;  %v5549_v13 = vor.u32 %v5547_v16, %v5546_v52  ;;  %v5550_v17 = vrot.slane %v5546_v52, 4  ;;  %v5532_v56 = vor.u32 %v5530_v40, %v5529_v61  ;;  %v5533_v58 = vrot.slane %v5529_v61, 4  ;;  %v6395_v43 = vld [vmem:[#allocation2 + $0x4c] sm:$0xf]  ;;  %v6396_v40 = vld [vmem:[#allocation2 + $0x50] sm:$0x1] }
 0x329   : > { %v5537_v62 = vrot.slane %v5535_v36, 7  ;;  %v6506_v48 = vsel %vm12633_vm14, %v6504_v59, %v6505_v29  ;;  %9337 = vmatmul.mubr.bf16.gmra.mrb[144].mxu1 %v12136_v27  ;;  %v5557_v14 = vor.u32 %v5555_v57, %v5554_v12  ;;  %v5559_v45 = vrot.slane %v5554_v12, 4  ;;  %v5885_v61 = vld [vmem:[#allocation2 + $0x54] sm:$0xf] }
 0x32a   : > { %v5714_v4 = vsel %vm12627_vm13, %v5549_v13, %v5713_v51  ;;  %v10608_v49 = vcombine.low %v6503_v24, %v6506_v48  ;;  %v5707_v2 = vsel %vm12627_vm13, %v5532_v56, %v5706_v42  ;;  %v6035_v60 = vrot.slane %v6033_v1, 4  ;;  %v12186_v13 = vld [vmem:[#allocation9 + $0x1b8] sm:$0xff]   ;;  %v5886_v56 = vld [vmem:[#allocation2 + $0x58] sm:$0xf] }
 0x32b   : > { %5715 = vst [vmem:[#allocation2 + $0xc0] sm:$0xf] %v5714_v4  ;;  %v5540_v18 = vor.u32 %v5538_v54, %v5537_v62  ;;  %v5542_v46 = vrot.slane %v5537_v62, 4  ;;  %5708 = vst [vmem:[#allocation2 + $0xb4] sm:$0xf] %v5707_v2  ;;  %v5558_v31 = vsel %vm12621_vm12, %v5550_v17, %v5557_v14  ;;  %v5718_v63 = vsel %vm12597_vm3, %v5559_v45, %v5717_v15  ;;  %v12185_v15 = vld [vmem:[#allocation9 + $0x1f8] sm:$0xff]  }
 0x32c   : > { %9498 = vmatmul.mubr.bf16.gmra.mrb[176].mxu0 %v10608_v49  ;;  %v6036_v23 = vshll.u32 %v5879_v35, 16  ;;  %v6042_v50 = vshll.u32 %v5880_v32, 16  ;;  %5716 = vst [vmem:[#allocation2 + $0xc4] sm:$0xf] %v5558_v31  ;;  %5719 = vst [vmem:[#allocation2 + $0xc8] sm:$0x1] %v5718_v63  ;;  %11681 = vmatprep.subr.bf16.mxu0 %v12185_v15 }
 0x32d   : > { %v5541_v0 = vsel %vm12621_vm12, %v5533_v58, %v5540_v18  ;;  %v5711_v28 = vsel %vm12597_vm3, %v5542_v46, %v5710_v21  ;;  %9505 = vmatprep.mubr.bf16.mxu0 %v12137_v39  ;;  %v6046_v5 = vshrl.u32 %v5880_v32, 16  ;;  %v6052_v30 = vshll.u32 %v5881_v8, 16  ;;  %v12141_v12 = vld [vmem:[#allocation2 + $0x54] sm:$0xff]   ;;  %v6399_v2 = vld [vmem:[#allocation2 + $0x5c] sm:$0x1]  ;;  %11682 = vmatpush3.bf16.msra.mxu0 %v12186_v13 }
 0x32e   : > { %5709 = vst [vmem:[#allocation2 + $0xb8] sm:$0xf] %v5541_v0  ;;  %5712 = vst [vmem:[#allocation2 + $0xbc] sm:$0x1] %v5711_v28  ;;  %v6038_v20 = vrot.slane %v6036_v23, 5  ;;  %v6044_v44 = vrot.slane %v6042_v50, 5 }
 0x32f   : > { %v10593_v41 = vrot.slane %v6391_v47, 9  ;;  %v6509_v25 = vrot.slane %v6392_v9, 5  ;;  %v6048_v29 = vrot.slane %v6046_v5, 4  ;;  %v6054_v26 = vrot.slane %v6052_v30, 5  ;;  %v5887_v9 = vld [vmem:[#allocation2 + $0x5c] sm:$0x1] }
 0x330   : > { %v6512_v16 = vrot.slane %v6393_v22, 5  ;;  %v6057_v37 = vshrl.u32 %v5882_v19, 16  ;;  %v6039_v34 = vor.u32 %v6038_v20, %v6035_v60  ;;  %v6060_v51 = vshll.u32 %v5882_v19, 16  ;;  %v6397_v39 = vld [vmem:[#allocation2 + $0x54] sm:$0xe]  ;;  %v12140_v18 = vld [vmem:[#allocation2 + $0x3c] sm:$0xff]  }
 0x331   : > { %v6510_v3 = vsel %vm12633_vm14, %v10593_v41, %v6509_v25  ;;  %v6511_v55 = vrot.slane %v6509_v25, 4  ;;  %v6049_v24 = vor.u32 %v6048_v29, %v6044_v44  ;;  %v6066_v7 = vshll.u32 %v5883_v6, 16  ;;  %v6398_v22 = vld [vmem:[#allocation2 + $0x58] sm:$0xf]  ;;  %v5888_v23 = vld [vmem:[#allocation2 + $0x60] sm:$0xf] }
 0x332   : > { %v6059_v35 = vrot.slane %v6057_v37, 4  ;;  %v6070_v52 = vshrl.u32 %v5883_v6, 16  ;;  %v6040_v42 = vrot.slane %v6039_v34, 4  ;;  %v6062_v57 = vrot.slane %v6060_v51, 5  ;;  %v5889_v5 = vld [vmem:[#allocation2 + $0x64] sm:$0xf] }
 0x333   : > { %v6513_v10 = vsel %vm12633_vm14, %v6511_v55, %v6512_v16  ;;  %v6076_v27 = vshll.u32 %v5884_v53, 16  ;;  %v6050_v36 = vrot.slane %v6049_v24, 4  ;;  %v6068_v59 = vrot.slane %v6066_v7, 5  ;;  %v12188_v30 = vld [vmem:[#allocation9 + $0x200] sm:$0xff]   ;;  %v12143_v55 = vld [vmem:[#allocation2 + $0x60] sm:$0xff]  }
 0x334   : > { %v10609_v54 = vcombine.low %v6510_v3, %v6513_v10  ;;  %v6072_v32 = vrot.slane %v6070_v52, 4  ;;  %v6045_v17 = vsel %vm12615_vm11, %v6040_v42, %v6044_v44  ;;  %v6063_v21 = vor.u32 %v6062_v57, %v6059_v35  ;;  %11851 = vmatprep.subr.bf16.mxu1 %v12188_v30  ;;  %v5890_v3 = vld [vmem:[#allocation2 + $0x68] sm:$0x1]  ;;  %v6400_v35 = vld [vmem:[#allocation2 + $0x60] sm:$0xe] }
 0x335   : > { %v6078_v8 = vrot.slane %v6076_v27, 5  ;;  %v10594_v1 = vrot.slane %v6394_v33, 9  ;;  %v6055_v58 = vsel %vm12615_vm11, %v6050_v36, %v6054_v26  ;;  %v6516_v48 = vrot.slane %v6395_v43, 5  ;;  %v6401_v57 = vld [vmem:[#allocation2 + $0x64] sm:$0xf] }
 0x336   : > { %9506 = vmatmul.mubr.bf16.gmra.mrb[180].mxu0 %v10609_v54  ;;  %v6073_v62 = vor.u32 %v6072_v32, %v6068_v59  ;;  %v6519_v47 = vrot.slane %v6396_v40, 5  ;;  %v10577_v4 = vcombine.low %v6045_v17, %v6055_v58  ;;  %v6064_v14 = vrot.slane %v6063_v21, 4  ;;  %v6402_v54 = vld [vmem:[#allocation2 + $0x68] sm:$0x1]  ;;  %v5891_v21 = vld [vmem:[#allocation2 + $0x6c] sm:$0xf] }
 0x337   : > { %9513 = vmatprep.mubr.bf16.mxu0 %v12141_v12  ;;  %v6081_v45 = vshrl.u32 %v5885_v61, 16  ;;  %v6084_v49 = vshll.u32 %v5885_v61, 16  ;;  %v6517_v60 = vsel %vm12633_vm14, %v10594_v1, %v6516_v48  ;;  %v6518_v31 = vrot.slane %v6516_v48, 4 }
 0x338   : > { %v6074_v46 = vrot.slane %v6073_v62, 4  ;;  %v6090_v63 = vshll.u32 %v5886_v56, 16  ;;  %9344 = vmatprep.mubr.bf16.mxu1 %v10577_v4  ;;  %v6069_v50 = vsel %vm12615_vm11, %v6064_v14, %v6068_v59  ;;  %v6094_v28 = vshrl.u32 %v5886_v56, 16  ;;  %v12142_v59 = vld [vmem:[#allocation2 + $0x48] sm:$0xff]   ;;  %v5892_v62 = vld [vmem:[#allocation2 + $0x70] sm:$0xf] }
 0x339   : > { %v6083_v19 = vrot.slane %v6081_v45, 4  ;;  %v6086_v0 = vrot.slane %v6084_v49, 5  ;;  %9345 = vmatmul.mubr.bf16.gmra.mrb[148].mxu1 %v12140_v18  ;;  %v6520_v20 = vsel %vm12633_vm14, %v6518_v31, %v6519_v47  ;;  %v6100_v41 = vshll.u32 %v5887_v9, 16  ;;  %v5893_v14 = vld [vmem:[#allocation2 + $0x74] sm:$0x1] }
 0x33a   : > { %v6079_v6 = vsel %vm12615_vm11, %v6074_v46, %v6078_v8  ;;  %v6092_v44 = vrot.slane %v6090_v63, 5  ;;  %v10610_v53 = vcombine.low %v6517_v60, %v6520_v20  ;;  %v6096_v26 = vrot.slane %v6094_v28, 4  ;;  %v6404_v63 = vld [vmem:[#allocation2 + $0x70] sm:$0xf] }
 0x33b   : > { %v10578_v25 = vcombine.low %v6069_v50, %v6079_v6  ;;  %v6087_v29 = vor.u32 %v6086_v0, %v6083_v19  ;;  %v6102_v16 = vrot.slane %v6100_v41, 5  ;;  %v10595_v37 = vrot.slane %v6397_v39, 9  ;;  %v5894_v41 = vld [vmem:[#allocation2 + $0x78] sm:$0xf] }
 0x33c   : > { %v6523_v33 = vrot.slane %v6398_v22, 5  ;;  %v6526_v34 = vrot.slane %v6399_v2, 5  ;;  %v6097_v43 = vor.u32 %v6096_v26, %v6092_v44  ;;  %v6105_v40 = vshrl.u32 %v5888_v23, 16  ;;  %v6403_v2 = vld [vmem:[#allocation2 + $0x6c] sm:$0xe] }
 0x33d   : > { %9352 = vmatprep.mubr.bf16.mxu1 %v10578_v25  ;;  %v6088_v51 = vrot.slane %v6087_v29, 4  ;;  %v6108_v24 = vshll.u32 %v5888_v23, 16  ;;  %v6114_v42 = vshll.u32 %v5889_v5, 16  ;;  %v6118_v10 = vshrl.u32 %v5889_v5, 16  ;;  %v12147_v23 = vld [vmem:[#allocation2 + $0x6c] sm:$0xff]  }
 0x33e   : > { %9514 = vmatmul.mubr.bf16.gmra.mrb[184].mxu0 %v10610_v53  ;;  %v6524_v7 = vsel %vm12633_vm14, %v10595_v37, %v6523_v33  ;;  %v6525_v52 = vrot.slane %v6523_v33, 4  ;;  %v6098_v61 = vrot.slane %v6097_v43, 4  ;;  %v6107_v15 = vrot.slane %v6105_v40, 4  ;;  %v6405_v5 = vld [vmem:[#allocation2 + $0x74] sm:$0x1] }
 0x33f   : > { %9521 = vmatprep.mubr.bf16.mxu0 %v12143_v55  ;;  %v6093_v27 = vsel %vm12615_vm11, %v6088_v51, %v6092_v44  ;;  %v6110_v36 = vrot.slane %v6108_v24, 5  ;;  %v6116_v13 = vrot.slane %v6114_v42, 5  ;;  %v6120_v17 = vrot.slane %v6118_v10, 4  ;;  %v5895_v25 = vld [vmem:[#allocation2 + $0x7c] sm:$0xf]  ;;  %v12146_v53 = vld [vmem:[#allocation2 + $0x54] sm:$0xff]  }
 0x340   : > { %v6527_v32 = vsel %vm12633_vm14, %v6525_v52, %v6526_v34  ;;  %v6124_v12 = vshll.u32 %v5890_v3, 16  ;;  %v6103_v8 = vsel %vm12615_vm11, %v6098_v61, %v6102_v16  ;;  %v10596_v58 = vrot.slane %v6400_v35, 9  ;;  %v5896_v51 = vld [vmem:[#allocation2 + $0x80] sm:$0x1] }
 0x341   : > { %v10611_v1 = vcombine.low %v6524_v7, %v6527_v32  ;;  %v6111_v56 = vor.u32 %v6110_v36, %v6107_v15  ;;  %9353 = vmatmul.mubr.bf16.gmra.mrb[152].mxu1 %v12142_v59  ;;  %v10579_v48 = vcombine.low %v6093_v27, %v6103_v8  ;;  %v6121_v47 = vor.u32 %v6120_v17, %v6116_v13  ;;  %v6406_v7 = vld [vmem:[#allocation2 + $0x78] sm:$0xe]  ;;  %v6407_v27 = vld [vmem:[#allocation2 + $0x7c] sm:$0xf]  ;;  %v6408_v59 = vld [vmem:[#allocation2 + $0x80] sm:$0x1] }
 0x342   : > { %v6126_v9 = vrot.slane %v6124_v12, 5  ;;  %v6530_v4 = vrot.slane %v6401_v57, 5  ;;  %v6533_v49 = vrot.slane %v6402_v54, 5  ;;  %v6129_v39 = vshrl.u32 %v5891_v21, 16  ;;  %v12151_v8 = vld [vmem:[#allocation2 + $0x78] sm:$0xff]  }
 0x343   : > { %v6112_v45 = vrot.slane %v6111_v56, 4  ;;  %v6132_v22 = vshll.u32 %v5891_v21, 16  ;;  %9360 = vmatprep.mubr.bf16.mxu1 %v10579_v48  ;;  %v6122_v18 = vrot.slane %v6121_v47, 4  ;;  %v6138_v31 = vshll.u32 %v5892_v62, 16  ;;  %v5897_v21 = vld [vmem:[#allocation2 + $0x84] sm:$0xf] }
 0x344   : > { %v6531_v46 = vsel %vm12633_vm14, %v10596_v58, %v6530_v4  ;;  %v6532_v60 = vrot.slane %v6530_v4, 4  ;;  %v6131_v19 = vrot.slane %v6129_v39, 4  ;;  %v6142_v28 = vshrl.u32 %v5892_v62, 16  ;;  %v5898_v48 = vld [vmem:[#allocation2 + $0x88] sm:$0xf] }
 0x345   : > { %v6117_v50 = vsel %vm12615_vm11, %v6112_v45, %v6116_v13  ;;  %v6134_v0 = vrot.slane %v6132_v22, 5  ;;  %v6127_v30 = vsel %vm12615_vm11, %v6122_v18, %v6126_v9  ;;  %v6140_v20 = vrot.slane %v6138_v31, 5  ;;  %v5899_v45 = vld [vmem:[#allocation2 + $0x8c] sm:$0x1]  ;;  %v6409_v18 = vld [vmem:[#allocation2 + $0x84] sm:$0xe] }
 0x346   : > { %9522 = vmatmul.mubr.bf16.gmra.mrb[188].mxu0 %v10611_v1  ;;  %v6534_v6 = vsel %vm12633_vm14, %v6532_v60, %v6533_v49  ;;  %v6148_v44 = vshll.u32 %v5893_v14, 16  ;;  %v10580_v29 = vcombine.low %v6117_v50, %v6127_v30  ;;  %v6144_v37 = vrot.slane %v6142_v28, 4  ;;  %v12150_v60 = vld [vmem:[#allocation2 + $0x60] sm:$0xff]   ;;  %v6411_v30 = vld [vmem:[#allocation2 + $0x8c] sm:$0x1] }
 0x347   : > { %9529 = vmatprep.mubr.bf16.mxu0 %v12147_v23  ;;  %v10612_v26 = vcombine.low %v6531_v46, %v6534_v6  ;;  %v6135_v16 = vor.u32 %v6134_v0, %v6131_v19  ;;  %v10597_v34 = vrot.slane %v6403_v2, 9  ;;  %v6537_v3 = vrot.slane %v6404_v63, 5  ;;  %v6410_v46 = vld [vmem:[#allocation2 + $0x88] sm:$0xf] }
 0x348   : > { %v6150_v33 = vrot.slane %v6148_v44, 5  ;;  %v6540_v55 = vrot.slane %v6405_v5, 5  ;;  %v6145_v40 = vor.u32 %v6144_v37, %v6140_v20  ;;  %v6153_v24 = vshrl.u32 %v5894_v41, 16  ;;  %v5901_v37 = vld [vmem:[#allocation2 + $0x94] sm:$0xf] }
 0x349   : > { %v6136_v43 = vrot.slane %v6135_v16, 4  ;;  %v6156_v35 = vshll.u32 %v5894_v41, 16  ;;  %9361 = vmatmul.mubr.bf16.gmra.mrb[156].mxu1 %v12146_v53  ;;  %v14343_v52 = vsel %vm12633_vm14, %v10597_v34, %v6537_v3  ;;  %v6539_v42 = vrot.slane %v6537_v3, 4 }
 0x34a   : > { %v6162_v10 = vshll.u32 %v5895_v25, 16  ;;  %v6166_v57 = vshrl.u32 %v5895_v25, 16  ;;  %9368 = vmatprep.mubr.bf16.mxu1 %v10580_v29  ;;  %v6146_v15 = vrot.slane %v6145_v40, 4  ;;  %v6155_v36 = vrot.slane %v6153_v24, 4  ;;  %v5900_v25 = vld [vmem:[#allocation2 + $0x90] sm:$0xf] }
 0x34b   : > { %v6141_v61 = vsel %vm12615_vm11, %v6136_v43, %v6140_v20  ;;  %v6158_v54 = vrot.slane %v6156_v35, 5  ;;  %v6541_v32 = vsel %vm12633_vm14, %v6539_v42, %v6540_v55  ;;  %v6172_v12 = vshll.u32 %v5896_v51, 16  ;;  %v6412_v43 = vld [vmem:[#allocation2 + $0x90] sm:$0xe]  ;;  %v12155_v40 = vld [vmem:[#allocation2 + $0x84] sm:$0xff]  }
 0x34c   : > { %v6164_v13 = vrot.slane %v6162_v10, 5  ;;  %v6168_v17 = vrot.slane %v6166_v57, 4  ;;  %v6151_v1 = vsel %vm12615_vm11, %v6146_v15, %v6150_v33  ;;  %v10613_v56 = vcombine.low %v14343_v52, %v6541_v32  ;;  %v5902_v33 = vld [vmem:[#allocation2 + $0x98] sm:$0x1]  ;;  %v6413_v42 = vld [vmem:[#allocation2 + $0x94] sm:$0xf] }
 0x34d   : > { %v6159_v58 = vor.u32 %v6158_v54, %v6155_v36  ;;  %v10598_v62 = vrot.slane %v6406_v7, 9  ;;  %v10581_v47 = vcombine.low %v6141_v61, %v6151_v1  ;;  %v6174_v4 = vrot.slane %v6172_v12, 5  ;;  %v6414_v15 = vld [vmem:[#allocation2 + $0x98] sm:$0x1] }
 0x34e   : > { %9530 = vmatmul.mubr.bf16.gmra.mrb[192].mxu0 %v10612_v26  ;;  %v6169_v9 = vor.u32 %v6168_v17, %v6164_v13  ;;  %v6544_v14 = vrot.slane %v6407_v27, 5  ;;  %v6547_v39 = vrot.slane %v6408_v59, 5  ;;  %v6177_v22 = vshrl.u32 %v5897_v21, 16  ;;  %v12154_v17 = vld [vmem:[#allocation2 + $0x6c] sm:$0xff]  }
 0x34f   : > { %9537 = vmatprep.mubr.bf16.mxu0 %v12151_v8  ;;  %v6160_v49 = vrot.slane %v6159_v58, 4  ;;  %v6180_v2 = vshll.u32 %v5897_v21, 16  ;;  %v6186_v50 = vshll.u32 %v5898_v48, 16  ;;  %v6190_v5 = vshrl.u32 %v5898_v48, 16 }
 0x350   : > { %v6170_v31 = vrot.slane %v6169_v9, 4  ;;  %v14354_v63 = vsel %vm12633_vm14, %v10598_v62, %v6544_v14  ;;  %v6546_v23 = vrot.slane %v6544_v14, 4  ;;  %v6179_v0 = vrot.slane %v6177_v22, 4 }
 0x351   : > { %v6165_v19 = vsel %vm12615_vm11, %v6160_v49, %v6164_v13  ;;  %v6182_v28 = vrot.slane %v6180_v2, 5  ;;  %9369 = vmatmul.mubr.bf16.gmra.mrb[160].mxu1 %v12150_v60  ;;  %v6188_v44 = vrot.slane %v6186_v50, 5  ;;  %v6196_v41 = vshll.u32 %v5899_v45, 16  ;;  %v5903_v13 = vld [vmem:[#allocation2 + $0x9c] sm:$0xf] }
 0x352   : > { %v6175_v6 = vsel %vm12615_vm11, %v6170_v31, %v6174_v4  ;;  %v14362_v20 = vsel %vm12633_vm14, %v6546_v23, %v6547_v39  ;;  %9376 = vmatprep.mubr.bf16.mxu1 %v10581_v47  ;;  %v6192_v16 = vrot.slane %v6190_v5, 4  ;;  %v10599_v3 = vrot.slane %v6409_v18, 9  ;;  %v5904_v47 = vld [vmem:[#allocation2 + $0xa0] sm:$0xf]  ;;  %v5905_v49 = vld [vmem:[#allocation2 + $0xa4] sm:$0x1] }
 0x353   : > { %v10582_v53 = vcombine.low %v6165_v19, %v6175_v6  ;;  %v10614_v29 = vcombine.low %v14354_v63, %v14362_v20  ;;  %v6183_v26 = vor.u32 %v6182_v28, %v6179_v0  ;;  %v6198_v34 = vrot.slane %v6196_v41, 5  ;;  %v6416_v50 = vld [vmem:[#allocation2 + $0xa0] sm:$0xf]  ;;  %v12159_v19 = vld [vmem:[#allocation2 + $0x90] sm:$0xff]   ;;  %v6417_v6 = vld [vmem:[#allocation2 + $0xa4] sm:$0x1] }
 0x354   : > { %v6551_v55 = vrot.slane %v6410_v46, 5  ;;  %v6554_v51 = vrot.slane %v6411_v30, 5  ;;  %v6193_v35 = vor.u32 %v6192_v16, %v6188_v44  ;;  %v6201_v7 = vshrl.u32 %v5900_v25, 16  ;;  %v6415_v46 = vld [vmem:[#allocation2 + $0x9c] sm:$0xe] }
 0x355   : > { %v6184_v24 = vrot.slane %v6183_v26, 4  ;;  %v6204_v52 = vshll.u32 %v5900_v25, 16  ;;  %v6210_v27 = vshll.u32 %v5901_v37, 16  ;;  %v6214_v61 = vshrl.u32 %v5901_v37, 16  ;;  %v5907_v26 = vld [vmem:[#allocation2 + $0xac] sm:$0xf] }
 0x356   : > { %9538 = vmatmul.mubr.bf16.gmra.mrb[196].mxu0 %v10613_v56  ;;  %v14368_v10 = vsel %vm12633_vm14, %v10599_v3, %v6551_v55  ;;  %v6553_v57 = vrot.slane %v6551_v55, 4  ;;  %v6194_v54 = vrot.slane %v6193_v35, 4  ;;  %v6203_v59 = vrot.slane %v6201_v7, 4  ;;  %v12158_v16 = vld [vmem:[#allocation2 + $0x78] sm:$0xff]   ;;  %v5908_v3 = vld [vmem:[#allocation2 + $0xb0] sm:$0x1] }
 0x357   : > { %9545 = vmatprep.mubr.bf16.mxu0 %v12155_v40  ;;  %v6189_v36 = vsel %vm12615_vm11, %v6184_v24, %v6188_v44  ;;  %v6206_v32 = vrot.slane %v6204_v52, 5  ;;  %v6212_v21 = vrot.slane %v6210_v27, 5  ;;  %v6216_v8 = vrot.slane %v6214_v61, 4 }
 0x358   : > { %v14374_v12 = vsel %vm12633_vm14, %v6553_v57, %v6554_v51  ;;  %v6220_v1 = vshll.u32 %v5902_v33, 16  ;;  %v6199_v56 = vsel %vm12615_vm11, %v6194_v54, %v6198_v34  ;;  %v10600_v48 = vrot.slane %v6412_v43, 9 }
 0x359   : > { %v10615_v58 = vcombine.low %v14368_v10, %v14374_v12  ;;  %v6207_v62 = vor.u32 %v6206_v32, %v6203_v59  ;;  %9377 = vmatmul.mubr.bf16.gmra.mrb[164].mxu1 %v12154_v17  ;;  %v10583_v9 = vcombine.low %v6189_v36, %v6199_v56  ;;  %v6217_v4 = vor.u32 %v6216_v8, %v6212_v21  ;;  %v6419_v36 = vld [vmem:[#allocation2 + $0xac] sm:$0xf]  ;;  %v6420_v17 = vld [vmem:[#allocation2 + $0xb0] sm:$0x1] }
 0x35a   : > { %v6222_v14 = vrot.slane %v6220_v1, 5  ;;  %v6558_v45 = vrot.slane %v6413_v42, 5  ;;  %9384 = vmatprep.mubr.bf16.mxu1 %v10582_v53  ;;  %v6561_v22 = vrot.slane %v6414_v15, 5  ;;  %v6225_v2 = vshrl.u32 %v5903_v13, 16  ;;  %v5906_v53 = vld [vmem:[#allocation2 + $0xa8] sm:$0xf] }
 0x35b   : > { %v6208_v39 = vrot.slane %v6207_v62, 4  ;;  %v6228_v18 = vshll.u32 %v5903_v13, 16  ;;  %v6218_v60 = vrot.slane %v6217_v4, 4  ;;  %v6234_v23 = vshll.u32 %v5904_v47, 16  ;;  %v6418_v42 = vld [vmem:[#allocation2 + $0xa8] sm:$0xe] }
 0x35c   : > { %v14382_v31 = vsel %vm12633_vm14, %v10600_v48, %v6558_v45  ;;  %v6560_v63 = vrot.slane %v6558_v45, 4  ;;  %v6227_v28 = vrot.slane %v6225_v2, 4  ;;  %v6238_v30 = vshrl.u32 %v5904_v47, 16  ;;  %v5909_v62 = vld [vmem:[#allocation2 + $0xb4] sm:$0xf]  ;;  %v12163_v48 = vld [vmem:[#allocation2 + $0x9c] sm:$0xff]  }
 0x35d   : > { %v6213_v0 = vsel %vm12615_vm11, %v6208_v39, %v6212_v21  ;;  %v6230_v5 = vrot.slane %v6228_v18, 5  ;;  %v6223_v20 = vsel %vm12615_vm11, %v6218_v60, %v6222_v14  ;;  %v6236_v41 = vrot.slane %v6234_v23, 5  ;;  %v5910_v45 = vld [vmem:[#allocation2 + $0xb8] sm:$0xf]  ;;  %v5911_v18 = vld [vmem:[#allocation2 + $0xbc] sm:$0x1] }
 0x35e   : > { %9546 = vmatmul.mubr.bf16.gmra.mrb[200].mxu0 %v10614_v29  ;;  %v14390_v44 = vsel %vm12633_vm14, %v6560_v63, %v6561_v22  ;;  %v6244_v25 = vshll.u32 %v5905_v49, 16  ;;  %v14392_v37 = vcombine.low %v6213_v0, %v6223_v20  ;;  %v6240_v29 = vrot.slane %v6238_v30, 4  ;;  %v6423_v0 = vld [vmem:[#allocation2 + $0xbc] sm:$0x1] }
 0x35f   : > { %9553 = vmatprep.mubr.bf16.mxu0 %v12159_v19  ;;  %v10616_v33 = vcombine.low %v14382_v31, %v14390_v44  ;;  %v6231_v34 = vor.u32 %v6230_v5, %v6227_v28  ;;  %v10601_v51 = vrot.slane %v6415_v46, 9  ;;  %v6565_v43 = vrot.slane %v6416_v50, 5  ;;  %v6421_v50 = vld [vmem:[#allocation2 + $0xb4] sm:$0xe]  ;;  %v6422_v19 = vld [vmem:[#allocation2 + $0xb8] sm:$0xf] }
 0x360   : > { %v6246_v55 = vrot.slane %v6244_v25, 5  ;;  %v6568_v40 = vrot.slane %v6417_v6, 5  ;;  %v6241_v35 = vor.u32 %v6240_v29, %v6236_v41  ;;  %v6249_v7 = vshrl.u32 %v5906_v53, 16  ;;  %v12162_v28 = vld [vmem:[#allocation2 + $0x84] sm:$0xff]   ;;  %v6808_v31 = vld [vmem:[#allocation2 + $0xc] sm:$0xf] }
 0x361   : > { %v6232_v24 = vrot.slane %v6231_v34, 4  ;;  %v6252_v52 = vshll.u32 %v5906_v53, 16  ;;  %9385 = vmatmul.mubr.bf16.gmra.mrb[168].mxu1 %v12158_v16  ;;  %v14398_v57 = vsel %vm12633_vm14, %v10601_v51, %v6565_v43  ;;  %v6567_v27 = vrot.slane %v6565_v43, 4  ;;  %v7752_v34 = vld [vmem:[#allocation2 + $0x18] sm:$0xf]  ;;  %v12167_v29 = vld [vmem:[#allocation2 + $0xa8] sm:$0xff]  }
 0x362   : > { %v6258_v61 = vshll.u32 %v5907_v26, 16  ;;  %v6262_v15 = vshrl.u32 %v5907_v26, 16  ;;  %9392 = vmatprep.mubr.bf16.mxu1 %v10583_v9  ;;  %v6242_v59 = vrot.slane %v6241_v35, 4  ;;  %v6251_v32 = vrot.slane %v6249_v7, 4 }
 0x363   : > { %v6237_v54 = vsel %vm12615_vm11, %v6232_v24, %v6236_v41  ;;  %v6254_v13 = vrot.slane %v6252_v52, 5  ;;  %v14404_v21 = vsel %vm12633_vm14, %v6567_v27, %v6568_v40  ;;  %v6268_v56 = vshll.u32 %v5908_v3, 16  ;;  %v7753_v40 = vld [vmem:[#allocation2 + $0x1c] sm:$0xf]  ;;  %v7754_v24 = vld [vmem:[#allocation2 + $0x20] sm:$0x1] }
 0x364   : > { %v6260_v8 = vrot.slane %v6258_v61, 5  ;;  %v6264_v1 = vrot.slane %v6262_v15, 4  ;;  %v6247_v47 = vsel %vm12615_vm11, %v6242_v59, %v6246_v55  ;;  %v10617_v9 = vcombine.low %v14398_v57, %v14404_v21  ;;  %v7320_v27 = vld [vmem:[#allocation2 + $0xc] sm:$0xe]  ;;  %v14432_v59 = vpop.f32.mrb[128].mxu1 }
 0x365   : > { %v6255_v4 = vor.u32 %v6254_v13, %v6251_v32  ;;  %v10602_v14 = vrot.slane %v6418_v42, 9  ;;  %v14413_v49 = vcombine.low %v6237_v54, %v6247_v47  ;;  %v6270_v22 = vrot.slane %v6268_v56, 5  ;;  %v12166_v32 = vld [vmem:[#allocation2 + $0x90] sm:$0xff]  }
 0x366   : > { %9554 = vmatmul.mubr.bf16.gmra.mrb[204].mxu0 %v10615_v58  ;;  %v6265_v39 = vor.u32 %v6264_v1, %v6260_v8  ;;  %v6572_v2 = vrot.slane %v6419_v36, 5  ;;  %v6575_v60 = vrot.slane %v6420_v17, 5  ;;  %v6273_v63 = vshrl.u32 %v5909_v62, 16  ;;  %v7322_v56 = vld [vmem:[#allocation2 + $0x14] sm:$0x1] }
 0x367   : > { %9561 = vmatprep.mubr.bf16.mxu0 %v12163_v48  ;;  %v6256_v46 = vrot.slane %v6255_v4, 4  ;;  %v6276_v23 = vshll.u32 %v5909_v62, 16  ;;  %v6282_v58 = vshll.u32 %v5910_v45, 16  ;;  %v6286_v41 = vshrl.u32 %v5910_v45, 16  ;;  %v14441_v62 = vpop.f32.mrb[129].mxu1 }
 0x368   : > { %v6266_v5 = vrot.slane %v6265_v39, 4  ;;  %v14417_v10 = vsel %vm12633_vm14, %v10602_v14, %v6572_v2  ;;  %v6574_v12 = vrot.slane %v6572_v2, 4  ;;  %v6275_v6 = vrot.slane %v6273_v63, 4  ;;  %v14445_v44 = vpop.f32.mrb[130].mxu1  ;;  %v6809_v2 = vld [vmem:[#allocation2 + $0x10] sm:$0xf] }
 0x369   : > { %v6261_v30 = vsel %vm12615_vm11, %v6256_v46, %v6260_v8  ;;  %v6278_v20 = vrot.slane %v6276_v23, 5  ;;  %9393 = vmatmul.mubr.bf16.gmra.mrb[172].mxu1 %v12162_v28  ;;  %v6284_v26 = vrot.slane %v6282_v58, 5  ;;  %v6292_v16 = vshll.u32 %v5911_v18, 16  ;;  %v14451_v18 = vpop.f32.mrb[131].mxu1  ;;  %v6810_v58 = vld [vmem:[#allocation2 + $0x14] sm:$0x1] }
 0x36a   : > { %v6271_v25 = vsel %vm12615_vm11, %v6266_v5, %v6270_v22  ;;  %v14425_v53 = vsel %vm12633_vm14, %v6574_v12, %v6575_v60  ;;  %9400 = vmatprep.mubr.bf16.mxu1 %v14392_v37  ;;  %v6288_v43 = vrot.slane %v6286_v41, 4  ;;  %v10603_v7 = vrot.slane %v6421_v50, 9  ;;  %v7321_v37 = vld [vmem:[#allocation2 + $0x10] sm:$0xf] }
 0x36b   : > { %v14428_v3 = vcombine.low %v6261_v30, %v6271_v25  ;;  %v10618_v55 = vcombine.low %v14417_v10, %v14425_v53  ;;  %v6279_v51 = vor.u32 %v6278_v20, %v6275_v6  ;;  %v6294_v35 = vrot.slane %v6292_v16, 5  ;;  %v7755_v16 = vld [vmem:[#allocation2 + $0x24] sm:$0xf] }
 0x36c   : > { %v6579_v52 = vrot.slane %v6422_v19, 5  ;;  %v6582_v42 = vrot.slane %v6423_v0, 5  ;;  %v6289_v15 = vor.u32 %v6288_v43, %v6284_v26  ;;  %v7801_v36 = vshrl.u32 %v7752_v34, 16 }
 0x36d   : > { %v6280_v61 = vrot.slane %v6279_v51, 4  ;;  %v7804_v54 = vshll.u32 %v7752_v34, 16  ;;  %v7810_v8 = vshll.u32 %v7753_v40, 16  ;;  %v7814_v1 = vshrl.u32 %v7753_v40, 16  ;;  %v12171_v34 = vld [vmem:[#allocation2 + $0xb4] sm:$0xff]  }
 0x36e   : > { %9562 = vmatmul.mubr.bf16.gmra.mrb[208].mxu0 %v10616_v33  ;;  %v14439_v13 = vsel %vm12633_vm14, %v10603_v7, %v6579_v52  ;;  %v6581_v17 = vrot.slane %v6579_v52, 4  ;;  %v6290_v47 = vrot.slane %v6289_v15, 4  ;;  %v7803_v4 = vrot.slane %v7801_v36, 4  ;;  %v7756_v40 = vld [vmem:[#allocation2 + $0x28] sm:$0xf] }
 0x36f   : > { %9569 = vmatprep.mubr.bf16.mxu0 %v12167_v29  ;;  %v6285_v48 = vsel %vm12615_vm11, %v6280_v61, %v6284_v26  ;;  %v7806_v14 = vrot.slane %v7804_v54, 5  ;;  %v7812_v45 = vrot.slane %v7810_v8, 5  ;;  %v7816_v39 = vrot.slane %v7814_v1, 4  ;;  %v12170_v61 = vld [vmem:[#allocation2 + $0x9c] sm:$0xff]  }
 0x370   : > { %v14449_v33 = vsel %vm12633_vm14, %v6581_v17, %v6582_v42  ;;  %v7820_v22 = vshll.u32 %v7754_v24, 16  ;;  %v6295_v46 = vsel %vm12615_vm11, %v6290_v47, %v6294_v35  ;;  %v10652_v23 = vrot.slane %v7320_v27, 9  ;;  %v7757_v42 = vld [vmem:[#allocation2 + $0x2c] sm:$0x1]  ;;  %v7323_v27 = vld [vmem:[#allocation2 + $0x18] sm:$0xe] }
 0x371   : > { %v10619_v60 = vcombine.low %v14439_v13, %v14449_v33  ;;  %v7807_v63 = vor.u32 %v7806_v14, %v7803_v4  ;;  %9401 = vmatmul.mubr.bf16.gmra.mrb[176].mxu1 %v12166_v32  ;;  %v14457_v50 = vcombine.low %v6285_v48, %v6295_v46  ;;  %v7817_v19 = vor.u32 %v7816_v39, %v7812_v45  ;;  %v7325_v54 = vld [vmem:[#allocation2 + $0x20] sm:$0x1] }
 0x372   : > { %v7822_v0 = vrot.slane %v7820_v22, 5  ;;  %v7418_v28 = vrot.slane %v7321_v37, 5  ;;  %9408 = vmatprep.mubr.bf16.mxu1 %v14413_v49  ;;  %v7421_v12 = vrot.slane %v7322_v56, 5  ;;  %v6857_v30 = vshrl.u32 %v6808_v31, 16  ;;  %v6811_v37 = vld [vmem:[#allocation2 + $0x18] sm:$0xf] }
 0x373   : > { %v7808_v5 = vrot.slane %v7807_v63, 4  ;;  %v6860_v6 = vshll.u32 %v6808_v31, 16  ;;  %v7818_v20 = vrot.slane %v7817_v19, 4  ;;  %v6866_v26 = vshll.u32 %v6809_v2, 16  ;;  %v6812_v22 = vld [vmem:[#allocation2 + $0x1c] sm:$0xf] }
 0x374   : > { %v14462_v41 = vsel %vm12633_vm14, %v10652_v23, %v7418_v28  ;;  %v7420_v25 = vrot.slane %v7418_v28, 4  ;;  %v6859_v51 = vrot.slane %v6857_v30, 4  ;;  %v6870_v49 = vshrl.u32 %v6809_v2, 16 }
 0x375   : > { %v7813_v29 = vsel %vm12615_vm11, %v7808_v5, %v7812_v45  ;;  %v6862_v43 = vrot.slane %v6860_v6, 5  ;;  %v7823_v24 = vsel %vm12615_vm11, %v7818_v20, %v7822_v0  ;;  %v6868_v7 = vrot.slane %v6866_v26, 5  ;;  %v6813_v6 = vld [vmem:[#allocation2 + $0x20] sm:$0x1] }
 0x376   : > { %9570 = vmatmul.mubr.bf16.gmra.mrb[212].mxu0 %v10617_v9  ;;  %v14473_v35 = vsel %vm12633_vm14, %v7420_v25, %v7421_v12  ;;  %v6876_v52 = vshll.u32 %v6810_v58, 16  ;;  %v14475_v15 = vcombine.low %v7813_v29, %v7823_v24  ;;  %v6872_v21 = vrot.slane %v6870_v49, 4  ;;  %v7324_v9 = vld [vmem:[#allocation2 + $0x1c] sm:$0xf]  ;;  %v12176_v12 = vld [vmem:[#allocation2 + $0xc0] sm:$0xff]  }
 0x377   : > { %9577 = vmatprep.mubr.bf16.mxu0 %v12171_v34  ;;  %v10668_v36 = vcombine.low %v14462_v41, %v14473_v35  ;;  %v6863_v57 = vor.u32 %v6862_v43, %v6859_v51  ;;  %v7825_v17 = vshrl.u32 %v7755_v16, 16  ;;  %v7828_v8 = vshll.u32 %v7755_v16, 16  ;;  %v7758_v51 = vld [vmem:[#allocation2 + $0x30] sm:$0xf]  ;;  %v7331_v35 = vld [vmem:[#allocation2 + $0x38] sm:$0x1] }
 0x378   : > { %v6878_v32 = vrot.slane %v6876_v52, 5  ;;  %v7834_v1 = vshll.u32 %v7756_v40, 16  ;;  %v6873_v48 = vor.u32 %v6872_v21, %v6868_v7  ;;  %v7838_v47 = vshrl.u32 %v7756_v40, 16 }
 0x379   : > { %v6864_v56 = vrot.slane %v6863_v57, 4  ;;  %v7844_v4 = vshll.u32 %v7757_v42, 16  ;;  %9409 = vmatmul.mubr.bf16.gmra.mrb[180].mxu1 %v12170_v61  ;;  %v7827_v14 = vrot.slane %v7825_v17, 4  ;;  %v7830_v31 = vrot.slane %v7828_v8, 5  ;;  %v7760_v42 = vld [vmem:[#allocation2 + $0x38] sm:$0x1] }
 0x37a   : > { %v7836_v45 = vrot.slane %v7834_v1, 5  ;;  %v10653_v39 = vrot.slane %v7323_v27, 9  ;;  %9416 = vmatprep.mubr.bf16.mxu1 %v14428_v3  ;;  %v6874_v46 = vrot.slane %v6873_v48, 4  ;;  %v7840_v63 = vrot.slane %v7838_v47, 4  ;;  %v12175_v3 = vld [vmem:[#allocation2 + $0xa8] sm:$0xff]  }
 0x37b   : > { %v6869_v2 = vsel %vm12615_vm11, %v6864_v56, %v6868_v7  ;;  %v7846_v23 = vrot.slane %v7844_v4, 5  ;;  %v7831_v19 = vor.u32 %v7830_v31, %v7827_v14  ;;  %v7425_v0 = vrot.slane %v7324_v9, 5  ;;  %v7759_v7 = vld [vmem:[#allocation2 + $0x34] sm:$0xf]  ;;  %v7326_v9 = vld [vmem:[#allocation2 + $0x24] sm:$0xe] }
 0x37c   : > { %v7428_v28 = vrot.slane %v7325_v54, 5  ;;  %v6881_v5 = vshrl.u32 %v6811_v37, 16  ;;  %v6879_v58 = vsel %vm12615_vm11, %v6874_v46, %v6878_v32  ;;  %v7841_v30 = vor.u32 %v7840_v63, %v7836_v45  ;;  %v7327_v8 = vld [vmem:[#allocation2 + $0x28] sm:$0xf]  ;;  %v7328_v4 = vld [vmem:[#allocation2 + $0x2c] sm:$0x1] }
 0x37d   : > { %v6884_v20 = vshll.u32 %v6811_v37, 16  ;;  %v6890_v25 = vshll.u32 %v6812_v22, 16  ;;  %v14487_v26 = vcombine.low %v6869_v2, %v6879_v58  ;;  %v7832_v16 = vrot.slane %v7831_v19, 4  ;;  %v6815_v19 = vld [vmem:[#allocation2 + $0x28] sm:$0xf] }
 0x37e   : > { %9578 = vmatmul.mubr.bf16.gmra.mrb[216].mxu0 %v10618_v55  ;;  %v14491_v34 = vsel %vm12633_vm14, %v10653_v39, %v7425_v0  ;;  %v7427_v29 = vrot.slane %v7425_v0, 4  ;;  %v7842_v43 = vrot.slane %v7841_v30, 4  ;;  %v6883_v49 = vrot.slane %v6881_v5, 4 }
 0x37f   : > { %9585 = vmatprep.mubr.bf16.mxu0 %v12176_v12  ;;  %v6886_v40 = vrot.slane %v6884_v20, 5  ;;  %v6892_v24 = vrot.slane %v6890_v25, 5  ;;  %v7837_v10 = vsel %vm12615_vm11, %v7832_v16, %v7836_v45  ;;  %v6894_v55 = vshrl.u32 %v6812_v22, 16  ;;  %v6814_v22 = vld [vmem:[#allocation2 + $0x24] sm:$0xf] }
 0x380   : > { %v14497_v53 = vsel %vm12633_vm14, %v7427_v29, %v7428_v28  ;;  %v6900_v52 = vshll.u32 %v6813_v6, 16  ;;  %v7847_v27 = vsel %vm12615_vm11, %v7842_v43, %v7846_v23  ;;  %v7849_v21 = vshrl.u32 %v7758_v51, 16  ;;  %v6816_v6 = vld [vmem:[#allocation2 + $0x2c] sm:$0x1]  ;;  %v7761_v25 = vld [vmem:[#allocation2 + $0x3c] sm:$0xf] }
 0x381   : > { %v10669_v61 = vcombine.low %v14491_v34, %v14497_v53  ;;  %v6887_v57 = vor.u32 %v6886_v40, %v6883_v49  ;;  %9417 = vmatmul.mubr.bf16.gmra.mrb[184].mxu1 %v12175_v3  ;;  %v14503_v54 = vcombine.low %v7837_v10, %v7847_v27  ;;  %v6896_v37 = vrot.slane %v6894_v55, 4  ;;  %v12183_v3 = vld [vmem:[#allocation2 + $0xb4] sm:$0xff]   ;;  %v7762_v29 = vld [vmem:[#allocation2 + $0x40] sm:$0xf] }
 0x382   : > { %v6902_v32 = vrot.slane %v6900_v52, 5  ;;  %v7852_v17 = vshll.u32 %v7758_v51, 16  ;;  %9424 = vmatprep.mubr.bf16.mxu1 %v14457_v50  ;;  %v7851_v56 = vrot.slane %v7849_v21, 4  ;;  %v7858_v48 = vshll.u32 %v7759_v7, 16  ;;  %v12187_v55 = vld [vmem:[#allocation2 + $0x18] sm:$0xff]  }
 0x383   : > { %v6888_v1 = vrot.slane %v6887_v57, 4  ;;  %v7862_v47 = vshrl.u32 %v7759_v7, 16  ;;  %v6897_v14 = vor.u32 %v6896_v37, %v6892_v24  ;;  %v7868_v45 = vshll.u32 %v7760_v42, 16  ;;  %v7763_v57 = vld [vmem:[#allocation2 + $0x44] sm:$0x1] }
 0x384   : > { %v7854_v31 = vrot.slane %v7852_v17, 5  ;;  %v10654_v39 = vrot.slane %v7326_v9, 9  ;;  %v7860_v46 = vrot.slane %v7858_v48, 5  ;;  %v7432_v23 = vrot.slane %v7327_v8, 5  ;;  %v7329_v8 = vld [vmem:[#allocation2 + $0x30] sm:$0xe] }
 0x385   : > { %v6893_v2 = vsel %vm12615_vm11, %v6888_v1, %v6892_v24  ;;  %v7864_v63 = vrot.slane %v7862_v47, 4  ;;  %v6898_v50 = vrot.slane %v6897_v14, 4  ;;  %v7870_v28 = vrot.slane %v7868_v45, 5  ;;  %v7330_v1 = vld [vmem:[#allocation2 + $0x34] sm:$0xf] }
 0x386   : > { %9586 = vmatmul.mubr.bf16.gmra.mrb[220].mxu0 %v10619_v60  ;;  %v7855_v0 = vor.u32 %v7854_v31, %v7851_v56  ;;  %v7435_v5 = vrot.slane %v7328_v4, 5  ;;  %v14514_v58 = vsel %vm12633_vm14, %v10654_v39, %v7432_v23  ;;  %v7434_v30 = vrot.slane %v7432_v23, 4  ;;  %v6817_v45 = vld [vmem:[#allocation2 + $0x30] sm:$0xf] }
 0x387   : > { %9787 = vmatprep.mubr.bf16.mxu0 %v14475_v15  ;;  %v7865_v12 = vor.u32 %v7864_v63, %v7860_v46  ;;  %v6905_v20 = vshrl.u32 %v6814_v22, 16  ;;  %v6903_v13 = vsel %vm12615_vm11, %v6898_v50, %v6902_v32  ;;  %v6908_v60 = vshll.u32 %v6814_v22, 16  ;;  %v6818_v63 = vld [vmem:[#allocation2 + $0x34] sm:$0xf] }
 0x388   : > { %v7856_v33 = vrot.slane %v7855_v0, 4  ;;  %v6914_v16 = vshll.u32 %v6815_v19, 16  ;;  %v14518_v51 = vcombine.low %v6893_v2, %v6903_v13  ;;  %v14522_v43 = vsel %vm12633_vm14, %v7434_v30, %v7435_v5  ;;  %v12191_v0 = vld [vmem:[#allocation9 + $0x208] sm:$0xff]  }
 0x389   : > { %v7866_v15 = vrot.slane %v7865_v12, 4  ;;  %v6907_v49 = vrot.slane %v6905_v20, 4  ;;  %9425 = vmatmul.mubr.bf16.gmra.mrb[188].mxu1 %v12183_v3  ;;  %v10670_v24 = vcombine.low %v14514_v58, %v14522_v43  ;;  %v6910_v7 = vrot.slane %v6908_v60, 5  ;;  %v7767_v43 = vld [vmem:[#allocation2 + $0x54] sm:$0xf] }
 0x38a   : > { %v7861_v40 = vsel %vm12615_vm11, %v7856_v33, %v7860_v46  ;;  %v6916_v10 = vrot.slane %v6914_v16, 5  ;;  %9626 = vmatprep.mubr.bf16.mxu1 %v10668_v36  ;;  %v6918_v42 = vshrl.u32 %v6815_v19, 16  ;;  %v6924_v27 = vshll.u32 %v6816_v6, 16  ;;  %v12212_v33 = vld [vmem:[#allocation9 + $0x200] sm:$0xff]  }
 0x38b   : > { %v7871_v52 = vsel %vm12615_vm11, %v7866_v15, %v7870_v28  ;;  %v7873_v21 = vshrl.u32 %v7761_v25, 16  ;;  %v6911_v37 = vor.u32 %v6910_v7, %v6907_v49  ;;  %v7876_v32 = vshll.u32 %v7761_v25, 16  ;;  %v7764_v49 = vld [vmem:[#allocation2 + $0x48] sm:$0xf] }
 0x38c   : > { %v14533_v9 = vcombine.low %v7861_v40, %v7871_v52  ;;  %v7882_v17 = vshll.u32 %v7762_v29, 16  ;;  %v6920_v56 = vrot.slane %v6918_v42, 4  ;;  %v6926_v48 = vrot.slane %v6924_v27, 5 }
 0x38d   : > { %v7875_v47 = vrot.slane %v7873_v21, 4  ;;  %v7886_v41 = vshrl.u32 %v7762_v29, 16  ;;  %v6912_v36 = vrot.slane %v6911_v37, 4  ;;  %v7878_v4 = vrot.slane %v7876_v32, 5  ;;  %v7332_v21 = vld [vmem:[#allocation2 + $0x3c] sm:$0xe] }
 0x38e   : > { %9788 = vmatmul.mubr.bf16.vlgmr.msra.gmra.mrb[224].mxu0 %v12187_v55  ;;  %v7884_v14 = vrot.slane %v7882_v17, 5  ;;  %v7892_v31 = vshll.u32 %v7763_v57, 16  ;;  %v6921_v39 = vor.u32 %v6920_v56, %v6916_v10  ;;  %v10655_v2 = vrot.slane %v7329_v8, 9  ;;  %v12194_v55 = vld [vmem:[#allocation9 + $0x210] sm:$0xff]   ;;  %v12197_v56 = vld [vmem:[#allocation9 + $0x218] sm:$0xff]  }
 0x38f   : > { %9795 = vmatprep.mubr.bf16.mxu0 %v14503_v54  ;;  %v7888_v22 = vrot.slane %v7886_v41, 4  ;;  %v7439_v46 = vrot.slane %v7330_v1, 5  ;;  %v6917_v23 = vsel %vm12615_vm11, %v6912_v36, %v6916_v10  ;;  %v7879_v19 = vor.u32 %v7878_v4, %v7875_v47  ;;  %v12189_v54 = vld [vmem:[#allocation2 + $0x24] sm:$0xff]   ;;  %v7766_v10 = vld [vmem:[#allocation2 + $0x50] sm:$0x1] }
 0x390   : > { %v7894_v50 = vrot.slane %v7892_v31, 5  ;;  %v7442_v28 = vrot.slane %v7331_v35, 5  ;;  %v6922_v5 = vrot.slane %v6921_v39, 4  ;;  %v6929_v25 = vshrl.u32 %v6817_v45, 16  ;;  %v7333_v1 = vld [vmem:[#allocation2 + $0x40] sm:$0xf] }
 0x391   : > { %v7889_v12 = vor.u32 %v7888_v22, %v7884_v14  ;;  %v14540_v30 = vsel %vm12633_vm14, %v10655_v2, %v7439_v46  ;;  %v7441_v6 = vrot.slane %v7439_v46, 4  ;;  %9627 = vmatmul.mubr.bf16.vlgmr.msra.gmra.mrb[192].mxu1 %v14487_v26  ;;  %v7880_v20 = vrot.slane %v7879_v19, 4  ;;  %v6819_v26 = vld [vmem:[#allocation2 + $0x38] sm:$0x1]  ;;  %v7334_v36 = vld [vmem:[#allocation2 + $0x44] sm:$0x1] }
 0x392   : > { %v6932_v3 = vshll.u32 %v6817_v45, 16  ;;  %v6938_v13 = vshll.u32 %v6818_v63, 16  ;;  %9634 = vmatprep.mubr.bf16.mxu1 %v10669_v61  ;;  %11852 = vmatpush3.bf16.msra.mxu1 %v12212_v33  ;;  %v6927_v60 = vsel %vm12615_vm11, %v6922_v5, %v6926_v48  ;;  %v6942_v15 = vshrl.u32 %v6818_v63, 16  ;;  %v7765_v61 = vld [vmem:[#allocation2 + $0x4c] sm:$0xf] }
 0x393   : > { %v7890_v16 = vrot.slane %v7889_v12, 4  ;;  %v14550_v29 = vsel %vm12633_vm14, %v7441_v6, %v7442_v28  ;;  %v14552_v40 = vcombine.low %v6917_v23, %v6927_v60  ;;  %v7885_v7 = vsel %vm12615_vm11, %v7880_v20, %v7884_v14  ;;  %11853 = vmatprep.subr.bf16.mxu1 %v12191_v0  ;;  %v6820_v63 = vld [vmem:[#allocation2 + $0x3c] sm:$0xf] }
 0x394   : > { %v10671_v34 = vcombine.low %v14540_v30, %v14550_v29  ;;  %v6931_v53 = vrot.slane %v6929_v25, 4  ;;  %v6934_v42 = vrot.slane %v6932_v3, 5  ;;  %v6940_v27 = vrot.slane %v6938_v13, 5 }
 0x395   : > { %v7895_v52 = vsel %vm12615_vm11, %v7890_v16, %v7894_v50  ;;  %v6944_v57 = vrot.slane %v6942_v15, 4  ;;  %v6948_v32 = vshll.u32 %v6819_v26, 16  ;;  %v7897_v17 = vshrl.u32 %v7764_v49, 16  ;;  %v7768_v26 = vld [vmem:[#allocation2 + $0x58] sm:$0xf] }
 0x396   : > { %9796 = vmatmul.mubr.bf16.gmra.mrb[228].mxu0 %v12189_v54  ;;  %v10703_v37 = vcombine.low %v7885_v7, %v7895_v52  ;;  %v7900_v8 = vshll.u32 %v7764_v49, 16  ;;  %11854 = vmatpush3.bf16.msra.mxu1 %v12191_v0  ;;  %v6935_v48 = vor.u32 %v6934_v42, %v6931_v53  ;;  %v7906_v41 = vshll.u32 %v7765_v61, 16  ;;  %v6821_v0 = vld [vmem:[#allocation2 + $0x40] sm:$0xf]  ;;  %v6822_v54 = vld [vmem:[#allocation2 + $0x44] sm:$0x1] }
 0x397   : > { %9803 = vmatprep.mubr.bf16.mxu0 %v14533_v9  ;;  %v6945_v47 = vor.u32 %v6944_v57, %v6940_v27  ;;  %v7910_v35 = vshrl.u32 %v7765_v61, 16  ;;  %v6950_v4 = vrot.slane %v6948_v32, 5  ;;  %v7899_v14 = vrot.slane %v7897_v17, 4  ;;  %11855 = vmatprep.subr.bf16.mxu1 %v12194_v55  ;;  %v7769_v61 = vld [vmem:[#allocation2 + $0x5c] sm:$0x1] }
 0x398   : > { %v7902_v31 = vrot.slane %v7900_v8, 5  ;;  %v7916_v45 = vshll.u32 %v7766_v10, 16  ;;  %v6936_v39 = vrot.slane %v6935_v48, 4  ;;  %v7908_v2 = vrot.slane %v7906_v41, 5  ;;  %v7335_v10 = vld [vmem:[#allocation2 + $0x48] sm:$0xe] }
 0x399   : > { %v6946_v22 = vrot.slane %v6945_v47, 4  ;;  %v7912_v46 = vrot.slane %v7910_v35, 4  ;;  %9635 = vmatmul.mubr.bf16.gmra.mrb[196].mxu1 %v14518_v51  ;;  %v10656_v19 = vrot.slane %v7332_v21, 9  ;;  %v7446_v50 = vrot.slane %v7333_v1, 5  ;;  %v12190_v51 = vld [vmem:[#allocation2 + $0x30] sm:$0xff]   ;;  %v12203_v1 = vld [vmem:[#allocation9 + $0x228] sm:$0xff]  }
 0x39a   : > { %v7903_v23 = vor.u32 %v7902_v31, %v7899_v14  ;;  %v7918_v9 = vrot.slane %v7916_v45, 5  ;;  %9642 = vmatprep.mubr.bf16.mxu1 %v10670_v24  ;;  %v6941_v28 = vsel %vm12615_vm11, %v6936_v39, %v6940_v27  ;;  %v7449_v6 = vrot.slane %v7334_v36, 5  ;;  %11856 = vmatpush3.bf16.msra.mxu1 %v12194_v55  ;;  %v12200_v24 = vld [vmem:[#allocation9 + $0x220] sm:$0xff]   ;;  %v7336_v8 = vld [vmem:[#allocation2 + $0x4c] sm:$0xf] }
 0x39b   : > { %v6951_v5 = vsel %vm12615_vm11, %v6946_v22, %v6950_v4  ;;  %v7913_v12 = vor.u32 %v7912_v46, %v7908_v2  ;;  %v14573_v3 = vsel %vm12633_vm14, %v10656_v19, %v7446_v50  ;;  %v7448_v58 = vrot.slane %v7446_v50, 4  ;;  %11857 = vmatprep.subr.bf16.mxu1 %v12197_v56  ;;  %v7337_v35 = vld [vmem:[#allocation2 + $0x50] sm:$0x1]  ;;  %v6823_v45 = vld [vmem:[#allocation2 + $0x48] sm:$0xf]  ;;  %v12192_v46 = vld [vmem:[#allocation2 + $0x3c] sm:$0xff]  }
 0x39c   : > { %v14569_v20 = vcombine.low %v6941_v28, %v6951_v5  ;;  %v7904_v25 = vrot.slane %v7903_v23, 4  ;;  %v6953_v33 = vshrl.u32 %v6820_v63, 16  ;;  %v6956_v60 = vshll.u32 %v6820_v63, 16  ;;  %v6824_v5 = vld [vmem:[#allocation2 + $0x4c] sm:$0xf] }
 0x39d   : > { %v7914_v13 = vrot.slane %v7913_v12, 4  ;;  %v6962_v16 = vshll.u32 %v6821_v0, 16  ;;  %v14579_v49 = vsel %vm12633_vm14, %v7448_v58, %v7449_v6  ;;  %v6966_v7 = vshrl.u32 %v6821_v0, 16 }
 0x39e   : > { %9804 = vmatmul.mubr.bf16.gmra.mrb[232].mxu0 %v12190_v51  ;;  %v7909_v15 = vsel %vm12615_vm11, %v7904_v25, %v7908_v2  ;;  %v6972_v53 = vshll.u32 %v6822_v54, 16  ;;  %v10672_v52 = vcombine.low %v14573_v3, %v14579_v49  ;;  %v6955_v42 = vrot.slane %v6953_v33, 4  ;;  %11858 = vmatpush3.bf16.msra.mxu1 %v12197_v56  ;;  %v6825_v54 = vld [vmem:[#allocation2 + $0x50] sm:$0x1]  ;;  %v7770_v51 = vld [vmem:[#allocation2 + $0x60] sm:$0xf] }
 0x39f   : > { %9811 = vmatprep.mubr.bf16.mxu0 %v10703_v37  ;;  %v7919_v55 = vsel %vm12615_vm11, %v7914_v13, %v7918_v9  ;;  %v6958_v27 = vrot.slane %v6956_v60, 5  ;;  %v6964_v21 = vrot.slane %v6962_v16, 5  ;;  %v6968_v32 = vrot.slane %v6966_v7, 4  ;;  %11859 = vmatprep.subr.bf16.mxu1 %v12200_v24 }
 0x3a0   : > { %v10704_v57 = vcombine.low %v7909_v15, %v7919_v55  ;;  %v6974_v17 = vrot.slane %v6972_v53, 5  ;;  %v7921_v47 = vshrl.u32 %v7767_v43, 16  ;;  %v7924_v41 = vshll.u32 %v7767_v43, 16  ;;  %v7772_v55 = vld [vmem:[#allocation2 + $0x68] sm:$0x1] }
 0x3a1   : > { %v6959_v48 = vor.u32 %v6958_v27, %v6955_v42  ;;  %v7930_v37 = vshll.u32 %v7768_v26, 16  ;;  %9643 = vmatmul.mubr.bf16.gmra.mrb[200].mxu1 %v14552_v40  ;;  %v6969_v36 = vor.u32 %v6968_v32, %v6964_v21  ;;  %v7934_v4 = vshrl.u32 %v7768_v26, 16  ;;  %v12206_v40 = vld [vmem:[#allocation9 + $0x230] sm:$0xff]   ;;  %v12209_v26 = vld [vmem:[#allocation9 + $0x238] sm:$0xff]  }
 0x3a2   : > { %v7940_v14 = vshll.u32 %v7769_v61, 16  ;;  %v10657_v31 = vrot.slane %v7335_v10, 9  ;;  %9650 = vmatprep.mubr.bf16.mxu1 %v10671_v34  ;;  %v7923_v39 = vrot.slane %v7921_v47, 4  ;;  %v7926_v22 = vrot.slane %v7924_v41, 5  ;;  %11860 = vmatpush3.bf16.msra.mxu1 %v12200_v24  ;;  %v7771_v10 = vld [vmem:[#allocation2 + $0x64] sm:$0xf] }
 0x3a3   : > { %v6960_v56 = vrot.slane %v6959_v48, 4  ;;  %v7932_v2 = vrot.slane %v7930_v37, 5  ;;  %v6970_v63 = vrot.slane %v6969_v36, 4  ;;  %v7936_v23 = vrot.slane %v7934_v4, 4  ;;  %11861 = vmatprep.subr.bf16.mxu1 %v12203_v1  ;;  %v7338_v32 = vld [vmem:[#allocation2 + $0x54] sm:$0xe] }
 0x3a4   : > { %v7942_v9 = vrot.slane %v7940_v14, 5  ;;  %v7453_v19 = vrot.slane %v7336_v8, 5  ;;  %v7927_v0 = vor.u32 %v7926_v22, %v7923_v39  ;;  %v7456_v28 = vrot.slane %v7337_v35, 5  ;;  %v7339_v47 = vld [vmem:[#allocation2 + $0x58] sm:$0xf]  ;;  %v12193_v41 = vld [vmem:[#allocation2 + $0x48] sm:$0xff]  }
 0x3a5   : > { %v6965_v50 = vsel %vm12615_vm11, %v6960_v56, %v6964_v21  ;;  %v6977_v30 = vshrl.u32 %v6823_v45, 16  ;;  %v6975_v29 = vsel %vm12615_vm11, %v6970_v63, %v6974_v17  ;;  %v7937_v34 = vor.u32 %v7936_v23, %v7932_v2  ;;  %v7340_v4 = vld [vmem:[#allocation2 + $0x5c] sm:$0x1]  ;;  %v6826_v22 = vld [vmem:[#allocation2 + $0x54] sm:$0xf] }
 0x3a6   : > { %9812 = vmatmul.mubr.bf16.gmra.mrb[236].mxu0 %v12192_v46  ;;  %v14595_v12 = vsel %vm12633_vm14, %v10657_v31, %v7453_v19  ;;  %v7455_v6 = vrot.slane %v7453_v19, 4  ;;  %v14597_v25 = vcombine.low %v6965_v50, %v6975_v29  ;;  %v7928_v58 = vrot.slane %v7927_v0, 4  ;;  %11862 = vmatpush3.bf16.msra.mxu1 %v12203_v1 }
 0x3a7   : > { %9819 = vmatprep.mubr.bf16.mxu0 %v10704_v57  ;;  %v6979_v43 = vrot.slane %v6977_v30, 4  ;;  %v6980_v24 = vshll.u32 %v6823_v45, 16  ;;  %v7938_v13 = vrot.slane %v7937_v34, 4  ;;  %v6986_v60 = vshll.u32 %v6824_v5, 16  ;;  %11863 = vmatprep.subr.bf16.mxu1 %v12206_v40 }
 0x3a8   : > { %v14601_v33 = vsel %vm12633_vm14, %v7455_v6, %v7456_v28  ;;  %v6990_v16 = vshrl.u32 %v6824_v5, 16  ;;  %v7933_v15 = vsel %vm12615_vm11, %v7928_v58, %v7932_v2  ;;  %v6996_v61 = vshll.u32 %v6825_v54, 16  ;;  %v6828_v28 = vld [vmem:[#allocation2 + $0x5c] sm:$0x1] }
 0x3a9   : > { %v10673_v7 = vcombine.low %v14595_v12, %v14601_v33  ;;  %v6982_v53 = vrot.slane %v6980_v24, 5  ;;  %9651 = vmatmul.mubr.bf16.gmra.mrb[204].mxu1 %v14569_v20  ;;  %v7943_v42 = vsel %vm12615_vm11, %v7938_v13, %v7942_v9  ;;  %v6988_v27 = vrot.slane %v6986_v60, 5  ;;  %v6827_v9 = vld [vmem:[#allocation2 + $0x58] sm:$0xf]  ;;  %v7773_v12 = vld [vmem:[#allocation2 + $0x6c] sm:$0xf] }
 0x3aa   : > { %v6992_v57 = vrot.slane %v6990_v16, 4  ;;  %v7945_v21 = vshrl.u32 %v7770_v51, 16  ;;  %9658 = vmatprep.mubr.bf16.mxu1 %v10672_v52  ;;  %v10705_v17 = vcombine.low %v7933_v15, %v7943_v42  ;;  %v6998_v1 = vrot.slane %v6996_v61, 5  ;;  %11864 = vmatpush3.bf16.msra.mxu1 %v12206_v40  ;;  %v12195_v13 = vld [vmem:[#allocation2 + $0x54] sm:$0xff]   ;;  %v7341_v42 = vld [vmem:[#allocation2 + $0x60] sm:$0xe] }
 0x3ab   : > { %v6983_v8 = vor.u32 %v6982_v53, %v6979_v43  ;;  %v7948_v48 = vshll.u32 %v7770_v51, 16  ;;  %v7954_v35 = vshll.u32 %v7771_v10, 16  ;;  %v7958_v36 = vshrl.u32 %v7771_v10, 16  ;;  %11865 = vmatprep.subr.bf16.mxu1 %v12209_v26  ;;  %v7774_v43 = vld [vmem:[#allocation2 + $0x70] sm:$0xf] }
 0x3ac   : > { %v6993_v37 = vor.u32 %v6992_v57, %v6988_v27  ;;  %v7947_v20 = vrot.slane %v7945_v21, 4  ;;  %v7964_v45 = vshll.u32 %v7772_v55, 16  ;;  %v10658_v56 = vrot.slane %v7338_v32, 9  ;;  %v7775_v15 = vld [vmem:[#allocation2 + $0x74] sm:$0x1] }
 0x3ad   : > { %v6984_v14 = vrot.slane %v6983_v8, 4  ;;  %v7950_v31 = vrot.slane %v7948_v48, 5  ;;  %v7956_v49 = vrot.slane %v7954_v35, 5  ;;  %v7960_v52 = vrot.slane %v7958_v36, 4 }
 0x3ae   : > { %9820 = vmatmul.mubr.bf16.gmra.mrb[240].mxu0 %v12193_v41  ;;  %v6994_v3 = vrot.slane %v6993_v37, 4  ;;  %v7460_v39 = vrot.slane %v7339_v47, 5  ;;  %v7966_v63 = vrot.slane %v7964_v45, 5  ;;  %v7463_v23 = vrot.slane %v7340_v4, 5  ;;  %11866 = vmatpush3.bf16.msra.mxu1 %v12209_v26  ;;  %v14622_v24 = vpop.f32.mrb[160].mxu0 }
 0x3af   : > { %9827 = vmatprep.mubr.bf16.mxu0 %v10705_v17  ;;  %v6989_v2 = vsel %vm12615_vm11, %v6984_v14, %v6988_v27  ;;  %v7951_v46 = vor.u32 %v7950_v31, %v7947_v20  ;;  %v7961_v40 = vor.u32 %v7960_v52, %v7956_v49  ;;  %v7001_v29 = vshrl.u32 %v6826_v22, 16  ;;  %v14626_v53 = vpop.f32.mrb[161].mxu0  ;;  %v7342_v17 = vld [vmem:[#allocation2 + $0x64] sm:$0xf]  ;;  %v7343_v37 = vld [vmem:[#allocation2 + $0x68] sm:$0x1] }
 0x3b0   : > { %v6999_v19 = vsel %vm12615_vm11, %v6994_v3, %v6998_v1  ;;  %v7461_v50 = vsel %vm12633_vm14, %v10658_v56, %v7460_v39  ;;  %v7462_v0 = vrot.slane %v7460_v39, 4  ;;  %v7004_v34 = vshll.u32 %v6826_v22, 16  ;;  %v14630_v27 = vpop.f32.mrb[162].mxu0  ;;  %v6829_v14 = vld [vmem:[#allocation2 + $0x60] sm:$0xf] }
 0x3b1   : > { %v10641_v5 = vcombine.low %v6989_v2, %v6999_v19  ;;  %v7952_v30 = vrot.slane %v7951_v46, 4  ;;  %9659 = vmatmul.mubr.bf16.gmra.mrb[208].mxu1 %v14597_v25  ;;  %v7962_v6 = vrot.slane %v7961_v40, 4  ;;  %v7010_v51 = vshll.u32 %v6827_v9, 16  ;;  %v14632_v8 = vpop.f32.mrb[163].mxu0  ;;  %v12196_v40 = vld [vmem:[#allocation2 + $0x60] sm:$0xff]  }
 0x3b2   : > { %v7464_v54 = vsel %vm12633_vm14, %v7462_v0, %v7463_v23  ;;  %v7014_v58 = vshrl.u32 %v6827_v9, 16  ;;  %9666 = vmatprep.mubr.bf16.mxu1 %v10673_v7  ;;  %v7003_v16 = vrot.slane %v7001_v29, 4  ;;  %v7006_v26 = vrot.slane %v7004_v34, 5  ;;  %v6831_v9 = vld [vmem:[#allocation2 + $0x68] sm:$0x1] }
 0x3b3   : > { %v7957_v33 = vsel %vm12615_vm11, %v7952_v30, %v7956_v49  ;;  %v10674_v60 = vcombine.low %v7461_v50, %v7464_v54  ;;  %v7967_v25 = vsel %vm12615_vm11, %v7962_v6, %v7966_v63  ;;  %v7012_v61 = vrot.slane %v7010_v51, 5  ;;  %v6830_v49 = vld [vmem:[#allocation2 + $0x64] sm:$0xf] }
 0x3b4   : > { %v7016_v10 = vrot.slane %v7014_v58, 4  ;;  %v7020_v55 = vshll.u32 %v6828_v28, 16  ;;  %v10706_v7 = vcombine.low %v7957_v33, %v7967_v25  ;;  %v7007_v57 = vor.u32 %v7006_v26, %v7003_v16  ;;  %v7344_v25 = vld [vmem:[#allocation2 + $0x6c] sm:$0xe] }
 0x3b5   : > { %v7969_v21 = vshrl.u32 %v7773_v12, 16  ;;  %v7972_v32 = vshll.u32 %v7773_v12, 16  ;;  %v7978_v47 = vshll.u32 %v7774_v43, 16  ;;  %v7982_v41 = vshrl.u32 %v7774_v43, 16 }
 0x3b6   : > { %9828 = vmatmul.mubr.bf16.gmra.mrb[244].mxu0 %v12195_v13  ;;  %v7017_v1 = vor.u32 %v7016_v10, %v7012_v61  ;;  %v7022_v48 = vrot.slane %v7020_v55, 5  ;;  %v7008_v20 = vrot.slane %v7007_v57, 4  ;;  %v7988_v4 = vshll.u32 %v7775_v15, 16  ;;  %v7777_v13 = vld [vmem:[#allocation2 + $0x7c] sm:$0xf] }
 0x3b7   : > { %9835 = vmatprep.mubr.bf16.mxu0 %v10706_v7  ;;  %v7971_v35 = vrot.slane %v7969_v21, 4  ;;  %v7974_v36 = vrot.slane %v7972_v32, 5  ;;  %v7980_v45 = vrot.slane %v7978_v47, 5  ;;  %v7984_v56 = vrot.slane %v7982_v41, 4  ;;  %v7778_v15 = vld [vmem:[#allocation2 + $0x80] sm:$0x1] }
 0x3b8   : > { %v7018_v31 = vrot.slane %v7017_v1, 4  ;;  %v10659_v3 = vrot.slane %v7341_v42, 9  ;;  %v7013_v52 = vsel %vm12615_vm11, %v7008_v20, %v7012_v61  ;;  %v7990_v22 = vrot.slane %v7988_v4, 5  ;;  %v7345_v7 = vld [vmem:[#allocation2 + $0x70] sm:$0xf] }
 0x3b9   : > { %v7975_v39 = vor.u32 %v7974_v36, %v7971_v35  ;;  %v7467_v2 = vrot.slane %v7342_v17, 5  ;;  %9667 = vmatmul.mubr.bf16.gmra.mrb[212].mxu1 %v10641_v5  ;;  %v7985_v63 = vor.u32 %v7984_v56, %v7980_v45  ;;  %v7470_v23 = vrot.slane %v7343_v37, 5  ;;  %v7776_v5 = vld [vmem:[#allocation2 + $0x78] sm:$0xf]  ;;  %v7346_v1 = vld [vmem:[#allocation2 + $0x74] sm:$0x1] }
 0x3ba   : > { %v7023_v46 = vsel %vm12615_vm11, %v7018_v31, %v7022_v48  ;;  %v7025_v19 = vshrl.u32 %v6829_v14, 16  ;;  %9674 = vmatprep.mubr.bf16.mxu1 %v10674_v60  ;;  %v7028_v12 = vshll.u32 %v6829_v14, 16  ;;  %v7034_v6 = vshll.u32 %v6830_v49, 16  ;;  %v6832_v20 = vld [vmem:[#allocation2 + $0x6c] sm:$0xf] }
 0x3bb   : > { %v10642_v50 = vcombine.low %v7013_v52, %v7023_v46  ;;  %v7976_v0 = vrot.slane %v7975_v39, 4  ;;  %v7468_v28 = vsel %vm12633_vm14, %v10659_v3, %v7467_v2  ;;  %v7469_v30 = vrot.slane %v7467_v2, 4  ;;  %v6833_v2 = vld [vmem:[#allocation2 + $0x70] sm:$0xf] }
 0x3bc   : > { %v7986_v29 = vrot.slane %v7985_v63, 4  ;;  %v7027_v34 = vrot.slane %v7025_v19, 4  ;;  %v7038_v58 = vshrl.u32 %v6830_v49, 16  ;;  %v7044_v43 = vshll.u32 %v6831_v9, 16  ;;  %v12198_v49 = vld [vmem:[#allocation2 + $0x6c] sm:$0xff]  }
 0x3bd   : > { %v7981_v54 = vsel %vm12615_vm11, %v7976_v0, %v7980_v45  ;;  %v7471_v51 = vsel %vm12633_vm14, %v7469_v30, %v7470_v23  ;;  %v7030_v16 = vrot.slane %v7028_v12, 5  ;;  %v7036_v26 = vrot.slane %v7034_v6, 5  ;;  %v6834_v19 = vld [vmem:[#allocation2 + $0x74] sm:$0x1] }
 0x3be   : > { %9836 = vmatmul.mubr.bf16.gmra.mrb[248].mxu0 %v12196_v40  ;;  %v7991_v33 = vsel %vm12615_vm11, %v7986_v29, %v7990_v22  ;;  %v10675_v60 = vcombine.low %v7468_v28, %v7471_v51  ;;  %v7040_v10 = vrot.slane %v7038_v58, 4  ;;  %v7046_v55 = vrot.slane %v7044_v43, 5  ;;  %v7779_v29 = vld [vmem:[#allocation2 + $0x84] sm:$0xf] }
 0x3bf   : > { %v10707_v61 = vcombine.low %v7981_v54, %v7991_v33  ;;  %v7993_v42 = vshrl.u32 %v7776_v5, 16  ;;  %v7031_v57 = vor.u32 %v7030_v16, %v7027_v34  ;;  %v7996_v21 = vshll.u32 %v7776_v5, 16  ;;  %v7780_v54 = vld [vmem:[#allocation2 + $0x88] sm:$0xf]  ;;  %v7781_v33 = vld [vmem:[#allocation2 + $0x8c] sm:$0x1] }
 0x3c0   : > { %v8002_v32 = vshll.u32 %v7777_v13, 16  ;;  %v8006_v17 = vshrl.u32 %v7777_v13, 16  ;;  %v7041_v48 = vor.u32 %v7040_v10, %v7036_v26  ;;  %v8012_v41 = vshll.u32 %v7778_v15, 16 }
 0x3c1   : > { %9843 = vmatprep.mubr.bf16.mxu0 %v10707_v61  ;;  %v7995_v47 = vrot.slane %v7993_v42, 4  ;;  %v10660_v37 = vrot.slane %v7344_v25, 9  ;;  %9675 = vmatmul.mubr.bf16.gmra.mrb[216].mxu1 %v10642_v50  ;;  %v7032_v35 = vrot.slane %v7031_v57, 4  ;;  %v7998_v36 = vrot.slane %v7996_v21, 5  ;;  %v7347_v25 = vld [vmem:[#allocation2 + $0x78] sm:$0xe] }
 0x3c2   : > { %v8004_v4 = vrot.slane %v8002_v32, 5  ;;  %v8008_v14 = vrot.slane %v8006_v17, 4  ;;  %9682 = vmatprep.mubr.bf16.mxu1 %v10675_v60  ;;  %v7042_v31 = vrot.slane %v7041_v48, 4  ;;  %v8014_v45 = vrot.slane %v8012_v41, 5  ;;  %v7348_v61 = vld [vmem:[#allocation2 + $0x7c] sm:$0xf] }
 0x3c3   : > { %v7474_v56 = vrot.slane %v7345_v7, 5  ;;  %v7477_v3 = vrot.slane %v7346_v1, 5  ;;  %v7037_v52 = vsel %vm12615_vm11, %v7032_v35, %v7036_v26  ;;  %v7999_v39 = vor.u32 %v7998_v36, %v7995_v47  ;;  %v7349_v57 = vld [vmem:[#allocation2 + $0x80] sm:$0x1]  ;;  %v12199_v21 = vld [vmem:[#allocation2 + $0x78] sm:$0xff]  }
 0x3c4   : > { %v8009_v22 = vor.u32 %v8008_v14, %v8004_v4  ;;  %v7049_v46 = vshrl.u32 %v6832_v20, 16  ;;  %v7047_v63 = vsel %vm12615_vm11, %v7042_v31, %v7046_v55  ;;  %v7052_v40 = vshll.u32 %v6832_v20, 16  ;;  %v6835_v47 = vld [vmem:[#allocation2 + $0x78] sm:$0xf]  ;;  %v6836_v36 = vld [vmem:[#allocation2 + $0x7c] sm:$0xf] }
 0x3c5   : > { %v7475_v23 = vsel %vm12633_vm14, %v10660_v37, %v7474_v56  ;;  %v7476_v9 = vrot.slane %v7474_v56, 4  ;;  %v10643_v50 = vcombine.low %v7037_v52, %v7047_v63  ;;  %v8000_v0 = vrot.slane %v7999_v39, 4 }
 0x3c6   : > { %9844 = vmatmul.mubr.bf16.gmra.mrb[252].mxu0 %v12198_v49  ;;  %v8010_v28 = vrot.slane %v8009_v22, 4  ;;  %v7051_v30 = vrot.slane %v7049_v46, 4  ;;  %v7054_v12 = vrot.slane %v7052_v40, 5  ;;  %v7058_v6 = vshll.u32 %v6833_v2, 16 }
 0x3c7   : > { %v7478_v34 = vsel %vm12633_vm14, %v7476_v9, %v7477_v3  ;;  %v7062_v5 = vshrl.u32 %v6833_v2, 16  ;;  %v8005_v51 = vsel %vm12615_vm11, %v8000_v0, %v8004_v4  ;;  %v7068_v13 = vshll.u32 %v6834_v19, 16  ;;  %v6837_v2 = vld [vmem:[#allocation2 + $0x80] sm:$0x1] }
 0x3c8   : > { %v8015_v58 = vsel %vm12615_vm11, %v8010_v28, %v8014_v45  ;;  %v10676_v43 = vcombine.low %v7475_v23, %v7478_v34  ;;  %v7055_v16 = vor.u32 %v7054_v12, %v7051_v30  ;;  %v7060_v26 = vrot.slane %v7058_v6, 5  ;;  %v7783_v34 = vld [vmem:[#allocation2 + $0x94] sm:$0xf] }
 0x3c9   : > { %v10708_v60 = vcombine.low %v8005_v51, %v8015_v58  ;;  %v7064_v15 = vrot.slane %v7062_v5, 4  ;;  %9683 = vmatmul.mubr.bf16.gmra.mrb[220].mxu1 %v10643_v50  ;;  %v7070_v10 = vrot.slane %v7068_v13, 5  ;;  %v8017_v55 = vshrl.u32 %v7779_v29, 16  ;;  %v7782_v50 = vld [vmem:[#allocation2 + $0x90] sm:$0xf] }
 0x3ca   : > { %v8020_v42 = vshll.u32 %v7779_v29, 16  ;;  %v8026_v7 = vshll.u32 %v7780_v54, 16  ;;  %9690 = vmatprep.mubr.bf16.mxu1 %v10676_v43  ;;  %v7056_v32 = vrot.slane %v7055_v16, 4  ;;  %v8030_v1 = vshrl.u32 %v7780_v54, 16  ;;  %v7784_v51 = vld [vmem:[#allocation2 + $0x98] sm:$0x1] }
 0x3cb   : > { %9851 = vmatprep.mubr.bf16.mxu0 %v10708_v60  ;;  %v7065_v17 = vor.u32 %v7064_v15, %v7060_v26  ;;  %v8036_v48 = vshll.u32 %v7781_v33, 16  ;;  %v8019_v41 = vrot.slane %v8017_v55, 4  ;;  %v10661_v35 = vrot.slane %v7347_v25, 9  ;;  %v7350_v58 = vld [vmem:[#allocation2 + $0x84] sm:$0xe] }
 0x3cc   : > { %v8022_v37 = vrot.slane %v8020_v42, 5  ;;  %v8028_v20 = vrot.slane %v8026_v7, 5  ;;  %v7061_v4 = vsel %vm12615_vm11, %v7056_v32, %v7060_v26  ;;  %v8032_v31 = vrot.slane %v8030_v1, 4  ;;  %v7351_v16 = vld [vmem:[#allocation2 + $0x88] sm:$0xf] }
 0x3cd   : > { %v7066_v14 = vrot.slane %v7065_v17, 4  ;;  %v8038_v45 = vrot.slane %v8036_v48, 5  ;;  %v7481_v3 = vrot.slane %v7348_v61, 5  ;;  %v7484_v49 = vrot.slane %v7349_v57, 5  ;;  %v7352_v26 = vld [vmem:[#allocation2 + $0x8c] sm:$0x1] }
 0x3ce   : > { %9852 = vmatmul.mubr.bf16.gmra.mrb[0].mxu0 %v12199_v21  ;;  %v8023_v56 = vor.u32 %v8022_v37, %v8019_v41  ;;  %v7073_v52 = vshrl.u32 %v6835_v47, 16  ;;  %v8033_v22 = vor.u32 %v8032_v31, %v8028_v20  ;;  %v7076_v46 = vshll.u32 %v6835_v47, 16  ;;  %v12201_v25 = vld [vmem:[#allocation2 + $0x84] sm:$0xff]  }
 0x3cf   : > { %v7071_v39 = vsel %vm12615_vm11, %v7066_v14, %v7070_v10  ;;  %v7082_v63 = vshll.u32 %v6836_v36, 16  ;;  %v7482_v19 = vsel %vm12633_vm14, %v10661_v35, %v7481_v3  ;;  %v7483_v40 = vrot.slane %v7481_v3, 4  ;;  %v6838_v42 = vld [vmem:[#allocation2 + $0x84] sm:$0xf]  ;;  %v6839_v17 = vld [vmem:[#allocation2 + $0x88] sm:$0xf] }
 0x3d0   : > { %v10644_v23 = vcombine.low %v7061_v4, %v7071_v39  ;;  %v8024_v9 = vrot.slane %v8023_v56, 4  ;;  %v8034_v0 = vrot.slane %v8033_v22, 4  ;;  %v7075_v28 = vrot.slane %v7073_v52, 4 }
 0x3d1   : > { %v7078_v30 = vrot.slane %v7076_v46, 5  ;;  %v7084_v29 = vrot.slane %v7082_v63, 5  ;;  %v7485_v6 = vsel %vm12633_vm14, %v7483_v40, %v7484_v49  ;;  %v7086_v5 = vshrl.u32 %v6836_v36, 16 }
 0x3d2   : > { %9691 = vmatmul.mubr.bf16.gmra.mrb[224].mxu1 %v10644_v23  ;;  %v8029_v12 = vsel %vm12615_vm11, %v8024_v9, %v8028_v20  ;;  %v7092_v54 = vshll.u32 %v6837_v2, 16  ;;  %v8039_v43 = vsel %vm12615_vm11, %v8034_v0, %v8038_v45  ;;  %v10677_v13 = vcombine.low %v7482_v19, %v7485_v6  ;;  %v6840_v19 = vld [vmem:[#allocation2 + $0x8c] sm:$0x1] }
 0x3d3   : > { %v7079_v33 = vor.u32 %v7078_v30, %v7075_v28  ;;  %v8041_v60 = vshrl.u32 %v7782_v50, 16  ;;  %v10709_v15 = vcombine.low %v8029_v12, %v8039_v43  ;;  %v7088_v61 = vrot.slane %v7086_v5, 4  ;;  %v14672_v48 = vpop.f32.mrb[132].mxu1 }
 0x3d4   : > { %v7094_v10 = vrot.slane %v7092_v54, 5  ;;  %v8044_v55 = vshll.u32 %v7782_v50, 16  ;;  %9698 = vmatprep.mubr.bf16.mxu1 %v10677_v13  ;;  %v8050_v21 = vshll.u32 %v7783_v34, 16  ;;  %v8054_v32 = vshrl.u32 %v7783_v34, 16  ;;  %v14670_v1 = vpop.f32.mrb[164].mxu0  ;;  %v14676_v36 = vpop.f32.mrb[133].mxu1 }
 0x3d5   : > { %v7080_v7 = vrot.slane %v7079_v33, 4  ;;  %v8043_v57 = vrot.slane %v8041_v60, 4  ;;  %9859 = vmatprep.mubr.bf16.mxu0 %v10709_v15  ;;  %v7089_v47 = vor.u32 %v7088_v61, %v7084_v29  ;;  %v8060_v37 = vshll.u32 %v7784_v51, 16  ;;  %v14674_v35 = vpop.f32.mrb[165].mxu0  ;;  %v14682_v3 = vpop.f32.mrb[134].mxu1 }
 0x3d6   : > { %v8046_v41 = vrot.slane %v8044_v55, 5  ;;  %v10662_v20 = vrot.slane %v7350_v58, 9  ;;  %9860 = vmatmul.mubr.bf16.gmra.mrb[4].mxu0 %v12201_v25  ;;  %v8052_v14 = vrot.slane %v8050_v21, 5  ;;  %v8056_v31 = vrot.slane %v8054_v32, 4  ;;  %v14680_v56 = vpop.f32.mrb[166].mxu0  ;;  %v14686_v46 = vpop.f32.mrb[135].mxu1 }
 0x3d7   : > { %v7085_v4 = vsel %vm12615_vm11, %v7080_v7, %v7084_v29  ;;  %v7488_v45 = vrot.slane %v7351_v16, 5  ;;  %v7090_v49 = vrot.slane %v7089_v47, 4  ;;  %v8062_v39 = vrot.slane %v8060_v37, 5  ;;  %v14684_v2 = vpop.f32.mrb[167].mxu0  ;;  %v7785_v29 = vld [vmem:[#allocation2 + $0x9c] sm:$0xf] }
 0x3d8   : > { %v8047_v52 = vor.u32 %v8046_v41, %v8043_v57  ;;  %v7491_v22 = vrot.slane %v7352_v26, 5  ;;  %v8057_v63 = vor.u32 %v8056_v31, %v8052_v14  ;;  %v7097_v40 = vshrl.u32 %v6838_v42, 16  ;;  %v7786_v54 = vld [vmem:[#allocation2 + $0xa0] sm:$0xf]  ;;  %v7787_v33 = vld [vmem:[#allocation2 + $0xa4] sm:$0x1] }
 0x3d9   : > { %v7489_v23 = vsel %vm12633_vm14, %v10662_v20, %v7488_v45  ;;  %v7490_v9 = vrot.slane %v7488_v45, 4  ;;  %v7095_v50 = vsel %vm12615_vm11, %v7090_v49, %v7094_v10  ;;  %v7100_v28 = vshll.u32 %v6838_v42, 16  ;;  %v7353_v25 = vld [vmem:[#allocation2 + $0x90] sm:$0xe]  ;;  %v7354_v7 = vld [vmem:[#allocation2 + $0x94] sm:$0xf] }
 0x3da   : > { %v8048_v0 = vrot.slane %v8047_v52, 4  ;;  %v7106_v30 = vshll.u32 %v6839_v17, 16  ;;  %v10645_v34 = vcombine.low %v7085_v4, %v7095_v50  ;;  %v8058_v12 = vrot.slane %v8057_v63, 4  ;;  %v7355_v57 = vld [vmem:[#allocation2 + $0x98] sm:$0x1]  ;;  %v12202_v21 = vld [vmem:[#allocation2 + $0x90] sm:$0xff]  }
 0x3db   : > { %v7492_v6 = vsel %vm12633_vm14, %v7490_v9, %v7491_v22  ;;  %v7099_v5 = vrot.slane %v7097_v40, 4  ;;  %v7102_v43 = vrot.slane %v7100_v28, 5  ;;  %v7110_v16 = vshrl.u32 %v6839_v17, 16 }
 0x3dc   : > { %v8053_v51 = vsel %vm12615_vm11, %v8048_v0, %v8052_v14  ;;  %v10678_v58 = vcombine.low %v7489_v23, %v7492_v6  ;;  %v7108_v13 = vrot.slane %v7106_v30, 5  ;;  %9699 = vmatmul.mubr.bf16.gmra.mrb[228].mxu1 %v10645_v34  ;;  %v8063_v60 = vsel %vm12615_vm11, %v8058_v12, %v8062_v39 }
 0x3dd   : > { %v7116_v26 = vshll.u32 %v6840_v19, 16  ;;  %v8065_v15 = vshrl.u32 %v7785_v29, 16  ;;  %v10710_v61 = vcombine.low %v8053_v51, %v8063_v60  ;;  %v7103_v10 = vor.u32 %v7102_v43, %v7099_v5  ;;  %v14698_v20 = vpop.f32.mrb[136].mxu1 }
 0x3de   : > { %9706 = vmatprep.mubr.bf16.mxu1 %v10678_v58  ;;  %v8068_v55 = vshll.u32 %v7785_v29, 16  ;;  %v8074_v42 = vshll.u32 %v7786_v54, 16  ;;  %v7112_v32 = vrot.slane %v7110_v16, 4  ;;  %v8078_v37 = vshrl.u32 %v7786_v54, 16  ;;  %v14700_v45 = vpop.f32.mrb[137].mxu1 }
 0x3df   : > { %v7118_v47 = vrot.slane %v7116_v26, 5  ;;  %v8067_v41 = vrot.slane %v8065_v15, 4  ;;  %9867 = vmatprep.mubr.bf16.mxu0 %v10710_v61  ;;  %v7104_v4 = vrot.slane %v7103_v10, 4  ;;  %v8084_v31 = vshll.u32 %v7787_v33, 16  ;;  %v14702_v63 = vpop.f32.mrb[138].mxu1 }
 0x3e0   : > { %v8070_v17 = vrot.slane %v8068_v55, 5  ;;  %v8076_v14 = vrot.slane %v8074_v42, 5  ;;  %9868 = vmatmul.mubr.bf16.gmra.mrb[8].mxu0 %v12202_v21  ;;  %v7113_v49 = vor.u32 %v7112_v32, %v7108_v13  ;;  %v8080_v52 = vrot.slane %v8078_v37, 4  ;;  %v14708_v0 = vpop.f32.mrb[139].mxu1  ;;  %v6841_v58 = vld [vmem:[#allocation2 + $0x90] sm:$0xf] }
 0x3e1   : > { %v10663_v39 = vrot.slane %v7353_v25, 9  ;;  %v7495_v22 = vrot.slane %v7354_v7, 5  ;;  %v7109_v23 = vsel %vm12615_vm11, %v7104_v4, %v7108_v13  ;;  %v8086_v19 = vrot.slane %v8084_v31, 5  ;;  %v14706_v50 = vpop.f32.mrb[168].mxu0  ;;  %v7788_v15 = vld [vmem:[#allocation2 + $0xa8] sm:$0xf] }
 0x3e2   : > { %v8071_v9 = vor.u32 %v8070_v17, %v8067_v41  ;;  %v7498_v40 = vrot.slane %v7355_v57, 5  ;;  %v7114_v28 = vrot.slane %v7113_v49, 4  ;;  %v8081_v30 = vor.u32 %v8080_v52, %v8076_v14  ;;  %v14712_v12 = vpop.f32.mrb[169].mxu0  ;;  %v12204_v42 = vld [vmem:[#allocation2 + $0x9c] sm:$0xff]   ;;  %v7790_v32 = vld [vmem:[#allocation2 + $0xb0] sm:$0x1] }
 0x3e3   : > { %v7496_v29 = vsel %vm12633_vm14, %v10663_v39, %v7495_v22  ;;  %v7497_v34 = vrot.slane %v7495_v22, 4  ;;  %v11349_v5 = vadd.f32 %v14441_v62, %v14432_v59  ;;  %v11461_v54 = vadd.f32 %v14626_v53, %v14622_v24  ;;  %v14720_v43 = vpop.f32.mrb[170].mxu0  ;;  %v6842_v59 = vld [vmem:[#allocation2 + $0x94] sm:$0xf]  ;;  %v6843_v62 = vld [vmem:[#allocation2 + $0x98] sm:$0x1] }
 0x3e4   : > { %v8072_v6 = vrot.slane %v8071_v9, 4  ;;  %v11352_v51 = vadd.f32 %v14451_v18, %v14445_v44  ;;  %v7119_v13 = vsel %vm12615_vm11, %v7114_v28, %v7118_v47  ;;  %v8082_v33 = vrot.slane %v8081_v30, 4  ;;  %v14728_v26 = vpop.f32.mrb[171].mxu0  ;;  %v7356_v17 = vld [vmem:[#allocation2 + $0x9c] sm:$0xe] }
 0x3e5   : > { %v7499_v60 = vsel %vm12633_vm14, %v7497_v34, %v7498_v40  ;;  %v11464_v16 = vadd.f32 %v14632_v8, %v14630_v27  ;;  %v10646_v24 = vcombine.low %v7109_v23, %v7119_v13  ;;  %v14732_v53 = vadd.f32 %v11461_v54, %v11349_v5  ;;  %v7789_v27 = vld [vmem:[#allocation2 + $0xac] sm:$0xf]  ;;  %v7357_v39 = vld [vmem:[#allocation2 + $0xa0] sm:$0xf]  ;;  %v7358_v40 = vld [vmem:[#allocation2 + $0xa4] sm:$0x1] }
 0x3e6   : > { %v8077_v44 = vsel %vm12615_vm11, %v8072_v6, %v8076_v14  ;;  %v10679_v18 = vcombine.low %v7496_v29, %v7499_v60  ;;  %v8087_v25 = vsel %vm12615_vm11, %v8082_v33, %v8086_v19  ;;  %v7121_v10 = vshrl.u32 %v6841_v58, 16 }
 0x3e7   : > { %v14736_v61 = vadd.f32 %v11464_v16, %v11352_v51  ;;  %v7124_v55 = vshll.u32 %v6841_v58, 16  ;;  %9707 = vmatmul.mubr.bf16.gmra.mrb[232].mxu1 %v10646_v24  ;;  %v10711_v8 = vcombine.low %v8077_v44, %v8087_v25  ;;  %v7130_v7 = vshll.u32 %v6842_v59, 16 }
 0x3e8   : > { %v7134_v57 = vshrl.u32 %v6842_v59, 16  ;;  %v7140_v21 = vshll.u32 %v6843_v62, 16  ;;  %9714 = vmatprep.mubr.bf16.mxu1 %v10679_v18  ;;  %v7123_v47 = vrot.slane %v7121_v10, 4  ;;  %v8089_v37 = vshrl.u32 %v7788_v15, 16  ;;  %v6844_v18 = vld [vmem:[#allocation2 + $0x9c] sm:$0xf] }
 0x3e9   : > { %v7126_v41 = vrot.slane %v7124_v55, 5  ;;  %v8092_v4 = vshll.u32 %v7788_v15, 16  ;;  %9875 = vmatprep.mubr.bf16.mxu0 %v10711_v8  ;;  %v7132_v14 = vrot.slane %v7130_v7, 5  ;;  %v8098_v52 = vshll.u32 %v7789_v27, 16  ;;  %v6845_v55 = vld [vmem:[#allocation2 + $0xa0] sm:$0xf] }
 0x3ea   : > { %v7136_v31 = vrot.slane %v7134_v57, 4  ;;  %v7142_v49 = vrot.slane %v7140_v21, 5  ;;  %9876 = vmatmul.mubr.bf16.gmra.mrb[12].mxu0 %v12204_v42  ;;  %v8091_v23 = vrot.slane %v8089_v37, 4  ;;  %v8102_v19 = vshrl.u32 %v7789_v27, 16 }
 0x3eb   : > { %v7127_v22 = vor.u32 %v7126_v41, %v7123_v47  ;;  %v8094_v9 = vrot.slane %v8092_v4, 5  ;;  %v8100_v30 = vrot.slane %v8098_v52, 5  ;;  %v8108_v29 = vshll.u32 %v7790_v32, 16  ;;  %v7791_v47 = vld [vmem:[#allocation2 + $0xb4] sm:$0xf] }
 0x3ec   : > { %v7137_v28 = vor.u32 %v7136_v31, %v7132_v14  ;;  %v10664_v34 = vrot.slane %v7356_v17, 9  ;;  %v8104_v54 = vrot.slane %v8102_v19, 4  ;;  %v7502_v51 = vrot.slane %v7357_v39, 5  ;;  %v14740_v16 = vpop.f32.mrb[140].mxu1 }
 0x3ed   : > { %v7128_v6 = vrot.slane %v7127_v22, 4  ;;  %v8095_v5 = vor.u32 %v8094_v9, %v8091_v23  ;;  %v8110_v13 = vrot.slane %v8108_v29, 5  ;;  %v7505_v33 = vrot.slane %v7358_v40, 5  ;;  %v14746_v15 = vpop.f32.mrb[141].mxu1  ;;  %v7359_v22 = vld [vmem:[#allocation2 + $0xa8] sm:$0xe] }
 0x3ee   : > { %v7138_v58 = vrot.slane %v7137_v28, 4  ;;  %v11467_v60 = vadd.f32 %v14674_v35, %v14670_v1  ;;  %v8105_v24 = vor.u32 %v8104_v54, %v8100_v30  ;;  %v7503_v44 = vsel %vm12633_vm14, %v10664_v34, %v7502_v51  ;;  %v14754_v27 = vpop.f32.mrb[142].mxu1  ;;  %v12205_v9 = vld [vmem:[#allocation2 + $0xa8] sm:$0xff]  }
 0x3ef   : > { %v7133_v59 = vsel %vm12615_vm11, %v7128_v6, %v7132_v14  ;;  %v8096_v62 = vrot.slane %v8095_v5, 4  ;;  %v7504_v10 = vrot.slane %v7502_v51, 4  ;;  %v11355_v1 = vadd.f32 %v14676_v36, %v14672_v48  ;;  %v14760_v21 = vpop.f32.mrb[143].mxu1  ;;  %v6846_v36 = vld [vmem:[#allocation2 + $0xa4] sm:$0x1] }
 0x3f0   : > { %v7143_v25 = vsel %vm12615_vm11, %v7138_v58, %v7142_v49  ;;  %v11470_v35 = vadd.f32 %v14684_v2, %v14680_v56  ;;  %v8106_v7 = vrot.slane %v8105_v24, 4  ;;  %v11358_v57 = vadd.f32 %v14686_v46, %v14682_v3  ;;  %v7792_v3 = vld [vmem:[#allocation2 + $0xb8] sm:$0xf]  ;;  %v7793_v46 = vld [vmem:[#allocation2 + $0xbc] sm:$0x1] }
 0x3f1   : > { %v10647_v8 = vcombine.low %v7133_v59, %v7143_v25  ;;  %v8101_v42 = vsel %vm12615_vm11, %v8096_v62, %v8100_v30  ;;  %v7506_v32 = vsel %vm12633_vm14, %v7504_v10, %v7505_v33  ;;  %v14764_v48 = vadd.f32 %v11467_v60, %v11355_v1  ;;  %v14770_v14 = vpop.f32.mrb[172].mxu0  ;;  %v7360_v51 = vld [vmem:[#allocation2 + $0xac] sm:$0xf]  ;;  %v7361_v62 = vld [vmem:[#allocation2 + $0xb0] sm:$0x1] }
 0x3f2   : > { %v7145_v56 = vshrl.u32 %v6844_v18, 16  ;;  %v7148_v2 = vshll.u32 %v6844_v18, 16  ;;  %v8111_v41 = vsel %vm12615_vm11, %v8106_v7, %v8110_v13  ;;  %v10680_v37 = vcombine.low %v7503_v44, %v7506_v32  ;;  %v14772_v23 = vpop.f32.mrb[173].mxu0 }
 0x3f3   : > { %9715 = vmatmul.mubr.bf16.gmra.mrb[236].mxu1 %v10647_v8  ;;  %v14768_v4 = vadd.f32 %v11470_v35, %v11358_v57  ;;  %v7154_v17 = vshll.u32 %v6845_v55, 16  ;;  %v10712_v31 = vcombine.low %v8101_v42, %v8111_v41  ;;  %v7158_v39 = vshrl.u32 %v6845_v55, 16  ;;  %v14774_v29 = vpop.f32.mrb[174].mxu0 }
 0x3f4   : > { %v7147_v49 = vrot.slane %v7145_v56, 4  ;;  %v7150_v52 = vrot.slane %v7148_v2, 5  ;;  %9722 = vmatprep.mubr.bf16.mxu1 %v10680_v37  ;;  %v7164_v40 = vshll.u32 %v6846_v36, 16  ;;  %v8113_v28 = vshrl.u32 %v7791_v47, 16  ;;  %v14776_v58 = vpop.f32.mrb[175].mxu0 }
 0x3f5   : > { %v7156_v19 = vrot.slane %v7154_v17, 5  ;;  %v8116_v30 = vshll.u32 %v7791_v47, 16  ;;  %9883 = vmatprep.mubr.bf16.mxu0 %v10712_v31  ;;  %v7160_v6 = vrot.slane %v7158_v39, 4  ;;  %v8122_v5 = vshll.u32 %v7792_v3, 16  ;;  %v6847_v47 = vld [vmem:[#allocation2 + $0xa8] sm:$0xf] }
 0x3f6   : > { %v7151_v34 = vor.u32 %v7150_v52, %v7147_v49  ;;  %v8126_v54 = vshrl.u32 %v7792_v3, 16  ;;  %9884 = vmatmul.mubr.bf16.gmra.mrb[16].mxu0 %v12205_v9  ;;  %v7166_v13 = vrot.slane %v7164_v40, 5  ;;  %v8115_v33 = vrot.slane %v8113_v28, 4  ;;  %v7794_v39 = vld [vmem:[#allocation2 + $0xc0] sm:$0xf] }
 0x3f7   : > { %v8118_v60 = vrot.slane %v8116_v30, 5  ;;  %v8132_v59 = vshll.u32 %v7793_v46, 16  ;;  %v7161_v44 = vor.u32 %v7160_v6, %v7156_v19  ;;  %v8124_v18 = vrot.slane %v8122_v5, 5  ;;  %v6848_v46 = vld [vmem:[#allocation2 + $0xac] sm:$0xf] }
 0x3f8   : > { %v7152_v24 = vrot.slane %v7151_v34, 4  ;;  %v8128_v25 = vrot.slane %v8126_v54, 4  ;;  %v10665_v35 = vrot.slane %v7359_v22, 9  ;;  %v7509_v55 = vrot.slane %v7360_v51, 5  ;;  %v7795_v9 = vld [vmem:[#allocation2 + $0xc4] sm:$0xf] }
 0x3f9   : > { %v8119_v10 = vor.u32 %v8118_v60, %v8115_v33  ;;  %v8134_v1 = vrot.slane %v8132_v59, 5  ;;  %v7162_v42 = vrot.slane %v7161_v44, 4  ;;  %v7512_v57 = vrot.slane %v7361_v62, 5  ;;  %v7362_v6 = vld [vmem:[#allocation2 + $0xb4] sm:$0xe] }
 0x3fa   : > { %v7157_v8 = vsel %vm12615_vm11, %v7152_v24, %v7156_v19  ;;  %v8129_v7 = vor.u32 %v8128_v25, %v8124_v18  ;;  %v7510_v36 = vsel %vm12633_vm14, %v10665_v35, %v7509_v55  ;;  %v7511_v56 = vrot.slane %v7509_v55, 4  ;;  %v7796_v19 = vld [vmem:[#allocation2 + $0xc8] sm:$0x1]  ;;  %v7363_v5 = vld [vmem:[#allocation2 + $0xb8] sm:$0xf] }
 0x3fb   : > { %v8120_v32 = vrot.slane %v8119_v10, 4  ;;  %v11473_v2 = vadd.f32 %v14712_v12, %v14706_v50  ;;  %v7167_v41 = vsel %vm12615_vm11, %v7162_v42, %v7166_v13  ;;  %v11361_v17 = vadd.f32 %v14700_v45, %v14698_v20  ;;  %v6849_v12 = vld [vmem:[#allocation2 + $0xb0] sm:$0x1]  ;;  %v7364_v59 = vld [vmem:[#allocation2 + $0xbc] sm:$0x1] }
 0x3fc   : > { %v8130_v37 = vrot.slane %v8129_v7, 4  ;;  %v11476_v3 = vadd.f32 %v14728_v26, %v14720_v43  ;;  %v10648_v31 = vcombine.low %v7157_v8, %v7167_v41  ;;  %v7513_v52 = vsel %vm12633_vm14, %v7511_v56, %v7512_v57  ;;  %v14796_v22 = vpop.f32.mrb[144].mxu1 }
 0x3fd   : > { %v8125_v49 = vsel %vm12615_vm11, %v8120_v32, %v8124_v18  ;;  %v11364_v50 = vadd.f32 %v14708_v0, %v14702_v63  ;;  %v10681_v45 = vcombine.low %v7510_v36, %v7513_v52  ;;  %v14800_v43 = vadd.f32 %v11473_v2, %v11361_v17  ;;  %v14802_v40 = vpop.f32.mrb[145].mxu1  ;;  %v12207_v63 = vld [vmem:[#allocation2 + $0xb4] sm:$0xff]  }
 0x3fe   : > { %v8135_v20 = vsel %vm12615_vm11, %v8130_v37, %v8134_v1  ;;  %v7169_v26 = vshrl.u32 %v6847_v47, 16  ;;  %9723 = vmatmul.mubr.bf16.gmra.mrb[240].mxu1 %v10648_v31  ;;  %v7172_v0 = vshll.u32 %v6847_v47, 16  ;;  %v7178_v34 = vshll.u32 %v6848_v46, 16  ;;  %v14806_v54 = vpop.f32.mrb[146].mxu1 }
 0x3ff   : > { %v10713_v28 = vcombine.low %v8125_v49, %v8135_v20  ;;  %v14804_v30 = vadd.f32 %v11476_v3, %v11364_v50  ;;  %9730 = vmatprep.mubr.bf16.mxu1 %v10681_v45  ;;  %v7182_v13 = vshrl.u32 %v6848_v46, 16  ;;  %v7188_v33 = vshll.u32 %v6849_v12, 16  ;;  %v14808_v62 = vpop.f32.mrb[176].mxu0  ;;  %v14810_v24 = vpop.f32.mrb[147].mxu1 }
 0x400   : > { %v7171_v51 = vrot.slane %v7169_v26, 4  ;;  %v8137_v60 = vshrl.u32 %v7794_v39, 16  ;;  %v7174_v44 = vrot.slane %v7172_v0, 5  ;;  %v7180_v18 = vrot.slane %v7178_v34, 5  ;;  %v14812_v1 = vpop.f32.mrb[177].mxu0 }
 0x401   : > { %9891 = vmatprep.mubr.bf16.mxu0 %v10713_v28  ;;  %v8140_v25 = vshll.u32 %v7794_v39, 16  ;;  %v8146_v10 = vshll.u32 %v7795_v9, 16  ;;  %v7184_v35 = vrot.slane %v7182_v13, 4  ;;  %v7190_v55 = vrot.slane %v7188_v33, 5  ;;  %v14814_v7 = vpop.f32.mrb[178].mxu0 }
 0x402   : > { %9892 = vmatmul.mubr.bf16.gmra.mrb[20].mxu0 %v12207_v63  ;;  %v8139_v8 = vrot.slane %v8137_v60, 4  ;;  %v8150_v42 = vshrl.u32 %v7795_v9, 16  ;;  %v7175_v57 = vor.u32 %v7174_v44, %v7171_v51  ;;  %v8156_v56 = vshll.u32 %v7796_v19, 16  ;;  %v14816_v2 = vpop.f32.mrb[179].mxu0  ;;  %v6850_v19 = vld [vmem:[#allocation2 + $0xb4] sm:$0xf] }
 0x403   : > { %v8142_v32 = vrot.slane %v8140_v25, 5  ;;  %v8148_v36 = vrot.slane %v8146_v10, 5  ;;  %v7185_v47 = vor.u32 %v7184_v35, %v7180_v18  ;;  %v10666_v37 = vrot.slane %v7362_v6, 9  ;;  %v6851_v6 = vld [vmem:[#allocation2 + $0xb8] sm:$0xf] }
 0x404   : > { %v8152_v41 = vrot.slane %v8150_v42, 4  ;;  %v7516_v17 = vrot.slane %v7363_v5, 5  ;;  %v7176_v3 = vrot.slane %v7175_v57, 4  ;;  %v8158_v31 = vrot.slane %v8156_v56, 5  ;;  %v6852_v5 = vld [vmem:[#allocation2 + $0xbc] sm:$0x1] }
 0x405   : > { %v8143_v46 = vor.u32 %v8142_v32, %v8139_v8  ;;  %v7519_v49 = vrot.slane %v7364_v59, 5  ;;  %v7186_v52 = vrot.slane %v7185_v47, 4  ;;  %v11479_v26 = vadd.f32 %v14772_v23, %v14770_v14  ;;  %v12208_v59 = vld [vmem:[#allocation2 + $0xc0] sm:$0xff]   ;;  %v7367_v8 = vld [vmem:[#allocation2 + $0xc8] sm:$0x1] }
 0x406   : > { %v8153_v50 = vor.u32 %v8152_v41, %v8148_v36  ;;  %v7517_v12 = vsel %vm12633_vm14, %v10666_v37, %v7516_v17  ;;  %v7518_v39 = vrot.slane %v7516_v17, 4  ;;  %v7181_v20 = vsel %vm12615_vm11, %v7176_v3, %v7180_v18  ;;  %v7366_v44 = vld [vmem:[#allocation2 + $0xc4] sm:$0xf] }
 0x407   : > { %v8144_v45 = vrot.slane %v8143_v46, 4  ;;  %v11367_v9 = vadd.f32 %v14746_v15, %v14740_v16  ;;  %v7191_v28 = vsel %vm12615_vm11, %v7186_v52, %v7190_v55  ;;  %v11482_v34 = vadd.f32 %v14776_v58, %v14774_v29  ;;  %v7365_v16 = vld [vmem:[#allocation2 + $0xc0] sm:$0xe] }
 0x408   : > { %v8154_v63 = vrot.slane %v8153_v50, 4  ;;  %v7520_v0 = vsel %vm12633_vm14, %v7518_v39, %v7519_v49  ;;  %v10649_v51 = vcombine.low %v7181_v20, %v7191_v28  ;;  %v11370_v60 = vadd.f32 %v14760_v21, %v14754_v27  ;;  %v6853_v21 = vld [vmem:[#allocation2 + $0xc0] sm:$0xf]  ;;  %v6854_v50 = vld [vmem:[#allocation2 + $0xc4] sm:$0xf] }
 0x409   : > { %v8149_v14 = vsel %vm12615_vm11, %v8144_v45, %v8148_v36  ;;  %v10682_v23 = vcombine.low %v7517_v12, %v7520_v0  ;;  %v14834_v13 = vadd.f32 %v11479_v26, %v11367_v9  ;;  %v14836_v15 = vpop.f32.mrb[180].mxu0  ;;  %v7193_v29 = vshrl.u32 %v6850_v19, 16 }
 0x40a   : > { %v8159_v33 = vsel %vm12615_vm11, %v8154_v63, %v8158_v31  ;;  %v7196_v58 = vshll.u32 %v6850_v19, 16  ;;  %v14842_v18 = vpop.f32.mrb[181].mxu0  ;;  %9731 = vmatmul.mubr.bf16.gmra.mrb[244].mxu1 %v10649_v51  ;;  %v7202_v10 = vshll.u32 %v6851_v6, 16  ;;  %v7206_v35 = vshrl.u32 %v6851_v6, 16 }
 0x40b   : > { %v10714_v25 = vcombine.low %v8149_v14, %v8159_v33  ;;  %v7212_v55 = vshll.u32 %v6852_v5, 16  ;;  %v14844_v42 = vpop.f32.mrb[182].mxu0  ;;  %9738 = vmatprep.mubr.bf16.mxu1 %v10682_v23  ;;  %v14846_v57 = vadd.f32 %v11482_v34, %v11370_v60  ;;  %v7195_v32 = vrot.slane %v7193_v29, 4  ;;  %v7797_v5 = vld [vmem:[#allocation2 + $0xcc] sm:$0xf] }
 0x40c   : > { %v7198_v36 = vrot.slane %v7196_v58, 5  ;;  %v10667_v27 = vrot.slane %v7365_v16, 9  ;;  %v14848_v56 = vpop.f32.mrb[183].mxu0  ;;  %v7204_v47 = vrot.slane %v7202_v10, 5  ;;  %v7208_v41 = vrot.slane %v7206_v35, 4  ;;  %v14850_v3 = vpop.f32.mrb[148].mxu1 }
 0x40d   : > { %9899 = vmatprep.mubr.bf16.mxu0 %v10714_v25  ;;  %v7214_v37 = vrot.slane %v7212_v55, 5  ;;  %v7523_v17 = vrot.slane %v7366_v44, 5  ;;  %v7526_v31 = vrot.slane %v7367_v8, 5  ;;  %v11485_v49 = vadd.f32 %v14812_v1, %v14808_v62  ;;  %v14856_v12 = vpop.f32.mrb[149].mxu1  ;;  %v7799_v23 = vld [vmem:[#allocation2 + $0xd4] sm:$0x1] }
 0x40e   : > { %9900 = vmatmul.mubr.bf16.gmra.mrb[24].mxu0 %v12208_v59  ;;  %v7199_v46 = vor.u32 %v7198_v36, %v7195_v32  ;;  %v11373_v52 = vadd.f32 %v14802_v40, %v14796_v22  ;;  %v7209_v39 = vor.u32 %v7208_v41, %v7204_v47  ;;  %v11488_v26 = vadd.f32 %v14816_v2, %v14814_v7  ;;  %v14862_v9 = vpop.f32.mrb[150].mxu1  ;;  %v6855_v22 = vld [vmem:[#allocation2 + $0xc8] sm:$0x1]  ;;  %v8264_v58 = vld [vmem:[#allocation2 + $0x18] sm:$0xe] }
 0x40f   : > { %v7524_v20 = vsel %vm12633_vm14, %v10667_v27, %v7523_v17  ;;  %v7525_v45 = vrot.slane %v7523_v17, 4  ;;  %v11376_v62 = vadd.f32 %v14810_v24, %v14806_v54  ;;  %v7217_v40 = vshrl.u32 %v6853_v21, 16  ;;  %v14868_v1 = vpop.f32.mrb[151].mxu1  ;;  %v7798_v24 = vld [vmem:[#allocation2 + $0xd0] sm:$0xf] }
 0x410   : > { %v7200_v19 = vrot.slane %v7199_v46, 4  ;;  %v14864_v28 = vadd.f32 %v11485_v49, %v11373_v52  ;;  %v7210_v63 = vrot.slane %v7209_v39, 4  ;;  %v7220_v34 = vshll.u32 %v6853_v21, 16  ;;  %v8265_v8 = vld [vmem:[#allocation2 + $0x1c] sm:$0xf] }
 0x411   : > { %v7527_v0 = vsel %vm12633_vm14, %v7525_v45, %v7526_v31  ;;  %v7226_v6 = vshll.u32 %v6854_v50, 16  ;;  %v14872_v7 = vpop.f32.mrb[184].mxu0  ;;  %v14876_v14 = vadd.f32 %v11488_v26, %v11376_v62  ;;  %v7219_v54 = vrot.slane %v7217_v40, 4  ;;  %v8266_v41 = vld [vmem:[#allocation2 + $0x20] sm:$0x1] }
 0x412   : > { %v7205_v2 = vsel %vm12615_vm11, %v7200_v19, %v7204_v47  ;;  %v10683_v51 = vcombine.low %v7524_v20, %v7527_v0  ;;  %v14878_v16 = vpop.f32.mrb[185].mxu0  ;;  %v7215_v33 = vsel %vm12615_vm11, %v7210_v63, %v7214_v37  ;;  %v7222_v60 = vrot.slane %v7220_v34, 5 }
 0x413   : > { %v7228_v59 = vrot.slane %v7226_v6, 5  ;;  %v7230_v29 = vshrl.u32 %v6854_v50, 16  ;;  %v14882_v44 = vpop.f32.mrb[186].mxu0  ;;  %v10650_v25 = vcombine.low %v7205_v2, %v7215_v33  ;;  %v7236_v10 = vshll.u32 %v6855_v22, 16 }
 0x414   : > { %v8161_v35 = vshrl.u32 %v7797_v5, 16  ;;  %v8164_v55 = vshll.u32 %v7797_v5, 16  ;;  %v14884_v32 = vpop.f32.mrb[187].mxu0  ;;  %v7223_v36 = vor.u32 %v7222_v60, %v7219_v54  ;;  %v8170_v21 = vshll.u32 %v7798_v24, 16  ;;  %v14886_v17 = vpop.f32.mrb[152].mxu1 }
 0x415   : > { %v7232_v27 = vrot.slane %v7230_v29, 4  ;;  %v8174_v47 = vshrl.u32 %v7798_v24, 16  ;;  %9739 = vmatmul.mubr.bf16.gmra.mrb[248].mxu1 %v10650_v25  ;;  %v7238_v37 = vrot.slane %v7236_v10, 5  ;;  %v8180_v49 = vshll.u32 %v7799_v23, 16  ;;  %v11384_v52 = vpop.f32.mrb[153].mxu1 }
 0x416   : > { %v8163_v46 = vrot.slane %v8161_v35, 4  ;;  %v8166_v31 = vrot.slane %v8164_v55, 5  ;;  %9746 = vmatprep.mubr.bf16.mxu1 %v10683_v51  ;;  %v7224_v50 = vrot.slane %v7223_v36, 4  ;;  %v8172_v20 = vrot.slane %v8170_v21, 5  ;;  %v11386_v26 = vpop.f32.mrb[154].mxu1 }
 0x417   : > { %v7233_v39 = vor.u32 %v7232_v27, %v7228_v59  ;;  %v8176_v45 = vrot.slane %v8174_v47, 4  ;;  %v8182_v62 = vrot.slane %v8180_v49, 5  ;;  %v10716_v22 = vrot.slane %v8264_v58, 9  ;;  %v11387_v63 = vpop.f32.mrb[155].mxu1  ;;  %v8268_v25 = vld [vmem:[#allocation2 + $0x28] sm:$0xf] }
 0x418   : > { %v8167_v19 = vor.u32 %v8166_v31, %v8163_v46  ;;  %v8362_v40 = vrot.slane %v8265_v8, 5  ;;  %v7229_v0 = vsel %vm12615_vm11, %v7224_v50, %v7228_v59  ;;  %v8365_v5 = vrot.slane %v8266_v41, 5  ;;  %v8267_v8 = vld [vmem:[#allocation2 + $0x24] sm:$0xe]  ;;  %v8271_v36 = vld [vmem:[#allocation2 + $0x34] sm:$0xf] }
 0x419   : > { %v7234_v34 = vrot.slane %v7233_v39, 4  ;;  %v8177_v6 = vor.u32 %v8176_v45, %v8172_v20  ;;  %v14890_v2 = vpop.f32.mrb[188].mxu0  ;;  %v11491_v23 = vadd.f32 %v14842_v18, %v14836_v15  ;;  %v11379_v59 = vadd.f32 %v14856_v12, %v14850_v3  ;;  %v8269_v21 = vld [vmem:[#allocation2 + $0x2c] sm:$0x1]  ;;  %v8270_v31 = vld [vmem:[#allocation2 + $0x30] sm:$0xe] }
 0x41a   : > { %v8168_v54 = vrot.slane %v8167_v19, 4  ;;  %v8363_v51 = vsel %vm12633_vm14, %v10716_v22, %v8362_v40  ;;  %v8364_v24 = vrot.slane %v8362_v40, 4  ;;  %v14896_v33 = vpop.f32.mrb[189].mxu0  ;;  %v11494_v58 = vadd.f32 %v14848_v56, %v14844_v42  ;;  %v12210_v42 = vld [vmem:[#allocation2 + $0xcc] sm:$0xff]   ;;  %v8272_v49 = vld [vmem:[#allocation2 + $0x38] sm:$0x1] }
 0x41b   : > { %v7239_v60 = vsel %vm12615_vm11, %v7234_v34, %v7238_v37  ;;  %v8178_v29 = vrot.slane %v8177_v6, 4  ;;  %v11504_v10 = vpop.f32.mrb[190].mxu0  ;;  %v11382_v18 = vadd.f32 %v14868_v1, %v14862_v9  ;;  %v14912_v56 = vadd.f32 %v11491_v23, %v11379_v59  ;;  %v14918_v39 = vld [vmem:[#allocation2 + $0x40] sm:$0xf]  ;;  %v8278_v59 = vld [vmem:[#allocation2 + $0x50] sm:$0x1] }
 0x41c   : > { %v10651_v35 = vcombine.low %v7229_v0, %v7239_v60  ;;  %v8173_v55 = vsel %vm12615_vm11, %v8168_v54, %v8172_v20  ;;  %v8366_v15 = vsel %vm12633_vm14, %v8364_v24, %v8365_v5  ;;  %v11505_v27 = vpop.f32.mrb[191].mxu0  ;;  %v11389_v47 = vpop.f32.mrb[156].mxu1  ;;  %v8369_v46 = vrot.slane %v8268_v25, 5  ;;  %v8277_v54 = vld [vmem:[#allocation2 + $0x4c] sm:$0xf] }
 0x41d   : > { %v8183_v3 = vsel %vm12615_vm11, %v8178_v29, %v8182_v62  ;;  %v10732_v12 = vcombine.low %v8363_v51, %v8366_v15  ;;  %v14914_v37 = vadd.f32 %v11494_v58, %v11382_v18  ;;  %v11390_v9 = vpop.f32.mrb[157].mxu1  ;;  %v10717_v1 = vrot.slane %v8267_v8, 9  ;;  %v8275_v29 = vld [vmem:[#allocation2 + $0x44] sm:$0x1] }
 0x41e   : > { %9747 = vmatmul.mubr.bf16.gmra.mrb[252].mxu1 %v10651_v35  ;;  %v10715_v41 = vcombine.low %v8173_v55, %v8183_v3  ;;  %v8376_v50 = vrot.slane %v8271_v36, 5  ;;  %v11497_v38 = vadd.f32 %v14878_v16, %v14872_v7  ;;  %v11392_v20 = vpop.f32.mrb[158].mxu1  ;;  %v8371_v45 = vrot.slane %v8369_v46, 4  ;;  %v8273_v35 = vld [vmem:[#allocation2 + $0x3c] sm:$0xe] }
 0x41f   : > { %11867 = vmatprep.mubr.bf16.mxu1 %v10732_v12  ;;  %v8372_v19 = vrot.slane %v8269_v21, 5  ;;  %v11385_v62 = vadd.f32 %v11384_v52, %v14886_v17  ;;  %v11500_v22 = vadd.f32 %v14884_v32, %v14882_v44  ;;  %v11393_v40 = vpop.f32.mrb[159].mxu1  ;;  %v10718_v0 = vrot.slane %v8270_v31, 9  ;;  %v8276_v3 = vld [vmem:[#allocation2 + $0x48] sm:$0xe] }
 0x420   : > { %9907 = vmatprep.mubr.bf16.mxu0 %v10715_v41  ;;  %v8378_v34 = vrot.slane %v8376_v50, 4  ;;  %v8379_v6 = vrot.slane %v8272_v49, 5  ;;  %v11388_v5 = vadd.f32 %v11387_v63, %v11386_v26  ;;  %v8383_v24 = vrot.slane %v14918_v39, 5  ;;  %v8280_v21 = vld [vmem:[#allocation2 + $0x58] sm:$0xf] }
 0x421   : > { %9908 = vmatmul.mubr.bf16.gmra.mrb[28].mxu0 %v12210_v42  ;;  %v11507_v51 = vpop.f32.mrb[192].mxu0  ;;  %v8373_v7 = vsel %vm12633_vm14, %v8371_v45, %v8372_v19  ;;  %v14925_v16 = vadd.f32 %v11497_v38, %v11385_v62  ;;  %v8370_v17 = vsel %vm12633_vm14, %v10717_v1, %v8369_v46  ;;  %v8377_v44 = vsel %vm12633_vm14, %v10718_v0, %v8376_v50  ;;  %v8283_v1 = vld [vmem:[#allocation2 + $0x64] sm:$0xf] }
 0x422   : > { %v11508_v23 = vpop.f32.mrb[193].mxu0  ;;  %v8380_v32 = vsel %vm12633_vm14, %v8378_v34, %v8379_v6  ;;  %v14934_v52 = vadd.f32 %v11500_v22, %v11388_v5  ;;  %v10733_v63 = vcombine.low %v8370_v17, %v8373_v7  ;;  %v8390_v58 = vrot.slane %v8277_v54, 5  ;;  %v8281_v54 = vld [vmem:[#allocation2 + $0x5c] sm:$0x1] }
 0x423   : > { %v11510_v26 = vpop.f32.mrb[194].mxu0  ;;  %v10734_v60 = vcombine.low %v8377_v44, %v8380_v32  ;;  %v8385_v55 = vrot.slane %v8383_v24, 4  ;;  %v11503_v15 = vadd.f32 %v14896_v33, %v14890_v2  ;;  %v11391_v18 = vadd.f32 %v11390_v9, %v11389_v47  ;;  %v8279_v32 = vld [vmem:[#allocation2 + $0x54] sm:$0xe] }
 0x424   : > { %v11511_v25 = vpop.f32.mrb[195].mxu0  ;;  %v11506_v8 = vadd.f32 %v11505_v27, %v11504_v10  ;;  %v11395_v36 = vpop.f32.mrb[160].mxu1  ;;  %v8392_v12 = vrot.slane %v8390_v58, 4  ;;  %v11394_v42 = vadd.f32 %v11393_v40, %v11392_v20  ;;  %v8386_v46 = vrot.slane %v8275_v29, 5 }
 0x425   : > { %v11396_v41 = vpop.f32.mrb[161].mxu1  ;;  %v8393_v31 = vrot.slane %v8278_v59, 5  ;;  %v14938_v49 = vadd.f32 %v11503_v15, %v11391_v18  ;;  %v10719_v38 = vrot.slane %v8273_v35, 9  ;;  %v10720_v10 = vrot.slane %v8276_v3, 9  ;;  %v8289_v35 = vld [vmem:[#allocation2 + $0x7c] sm:$0xf] }
 0x426   : > { %11868 = vmatmul.mubr.bf16.vlgmr.msra.gmra.mrb[0].mxu1 %v10733_v63  ;;  %v11398_v50 = vpop.f32.mrb[162].mxu1  ;;  %v14940_v39 = vadd.f32 %v11506_v8, %v11394_v42  ;;  %v8387_v33 = vsel %vm12633_vm14, %v8385_v55, %v8386_v46  ;;  %v8397_v47 = vrot.slane %v8280_v21, 5  ;;  %v8404_v20 = vrot.slane %v8283_v1, 5 }
 0x427   : > { %11871 = vmatprep.mubr.bf16.mxu1 %v10734_v60  ;;  %v11399_v2 = vpop.f32.mrb[163].mxu1  ;;  %v8394_v27 = vsel %vm12633_vm14, %v8392_v12, %v8393_v31  ;;  %v11509_v45 = vadd.f32 %v11508_v23, %v11507_v51  ;;  %v11397_v19 = vadd.f32 %v11396_v41, %v11395_v36  ;;  %v11512_v62 = vadd.f32 %v11511_v25, %v11510_v26  ;;  %v8284_v51 = vld [vmem:[#allocation2 + $0x68] sm:$0x1]  ;;  %v8282_v25 = vld [vmem:[#allocation2 + $0x60] sm:$0xe] }
 0x428   : > { %v8384_v40 = vsel %vm12633_vm14, %v10719_v38, %v8383_v24  ;;  %v11400_v0 = vadd.f32 %v11399_v2, %v11398_v50  ;;  %v8391_v5 = vsel %vm12633_vm14, %v10720_v10, %v8390_v58  ;;  %v8399_v63 = vrot.slane %v8397_v47, 4  ;;  %v8286_v24 = vld [vmem:[#allocation2 + $0x70] sm:$0xf] }
 0x429   : > { %v11513_v9 = vpop.f32.mrb[196].mxu0  ;;  %v10735_v6 = vcombine.low %v8384_v40, %v8387_v33  ;;  %v14950_v7 = vadd.f32 %v11509_v45, %v11397_v19  ;;  %v10736_v44 = vcombine.low %v8391_v5, %v8394_v27  ;;  %v8406_v60 = vrot.slane %v8404_v20, 4  ;;  %v8287_v45 = vld [vmem:[#allocation2 + $0x74] sm:$0x1]  ;;  %v8285_v40 = vld [vmem:[#allocation2 + $0x6c] sm:$0xe] }
 0x42a   : > { %v11514_v22 = vpop.f32.mrb[197].mxu0  ;;  %v14952_v23 = vadd.f32 %v11512_v62, %v11400_v0  ;;  %v8400_v59 = vrot.slane %v8281_v54, 5  ;;  %v10721_v8 = vrot.slane %v8279_v32, 9  ;;  %v8407_v36 = vrot.slane %v8284_v51, 5  ;;  %v8288_v32 = vld [vmem:[#allocation2 + $0x78] sm:$0xe] }
 0x42b   : > { %v11516_v34 = vpop.f32.mrb[198].mxu0  ;;  %v11515_v58 = vadd.f32 %v11514_v22, %v11513_v9  ;;  %v8411_v42 = vrot.slane %v8286_v24, 5  ;;  %v10722_v31 = vrot.slane %v8282_v25, 9  ;;  %v8418_v50 = vrot.slane %v8289_v35, 5 }
 0x42c   : > { %v11517_v17 = vpop.f32.mrb[199].mxu0  ;;  %v11401_v26 = vpop.f32.mrb[164].mxu1  ;;  %v8401_v12 = vsel %vm12633_vm14, %v8399_v63, %v8400_v59  ;;  %v8408_v1 = vsel %vm12633_vm14, %v8406_v60, %v8407_v36  ;;  %v8398_v2 = vsel %vm12633_vm14, %v10721_v8, %v8397_v47  ;;  %v8295_v63 = vld [vmem:[#allocation2 + $0x94] sm:$0xf] }
 0x42d   : > { %v11402_v29 = vpop.f32.mrb[165].mxu1  ;;  %v11518_v18 = vadd.f32 %v11517_v17, %v11516_v34  ;;  %v10737_v27 = vcombine.low %v8398_v2, %v8401_v12  ;;  %v8405_v9 = vsel %vm12633_vm14, %v10722_v31, %v8404_v20  ;;  %v8413_v0 = vrot.slane %v8411_v42, 4  ;;  %v8290_v34 = vld [vmem:[#allocation2 + $0x80] sm:$0x1]  ;;  %v8292_v17 = vld [vmem:[#allocation2 + $0x88] sm:$0xf] }
 0x42e   : > { %11872 = vmatmul.mubr.bf16.gmra.mrb[4].mxu1 %v10735_v6  ;;  %v11403_v55 = vadd.f32 %v11402_v29, %v11401_v26  ;;  %v11404_v15 = vpop.f32.mrb[166].mxu1  ;;  %v10738_v22 = vcombine.low %v8405_v9, %v8408_v1  ;;  %v8420_v54 = vrot.slane %v8418_v50, 4  ;;  %v10723_v20 = vrot.slane %v8285_v40, 9  ;;  %v8293_v1 = vld [vmem:[#allocation2 + $0x8c] sm:$0x1] }
 0x42f   : > { %11875 = vmatprep.mubr.bf16.mxu1 %v10736_v44  ;;  %v11405_v3 = vpop.f32.mrb[167].mxu1  ;;  %v8414_v44 = vrot.slane %v8287_v45, 5  ;;  %v8421_v60 = vrot.slane %v8290_v34, 5  ;;  %v8425_v59 = vrot.slane %v8292_v17, 5  ;;  %v8296_v9 = vld [vmem:[#allocation2 + $0x98] sm:$0x1] }
 0x430   : > { %v14956_v21 = vadd.f32 %v11515_v58, %v11403_v55  ;;  %v11406_v41 = vadd.f32 %v11405_v3, %v11404_v15  ;;  %v10724_v55 = vrot.slane %v8288_v32, 9  ;;  %v8412_v36 = vsel %vm12633_vm14, %v10723_v20, %v8411_v42  ;;  %v8301_v34 = vld [vmem:[#allocation2 + $0xac] sm:$0xf] }
 0x431   : > { %v11519_v46 = vpop.f32.mrb[200].mxu0  ;;  %v8415_v29 = vsel %vm12633_vm14, %v8413_v0, %v8414_v44  ;;  %v8422_v15 = vsel %vm12633_vm14, %v8420_v54, %v8421_v60  ;;  %v8428_v40 = vrot.slane %v8293_v1, 5  ;;  %v8294_v0 = vld [vmem:[#allocation2 + $0x90] sm:$0xe]  ;;  %v8446_v60 = vrot.slane %v8301_v34, 5 }
 0x432   : > { %v11520_v38 = vpop.f32.mrb[201].mxu0  ;;  %v14962_v33 = vadd.f32 %v11518_v18, %v11406_v41  ;;  %v8432_v18 = vrot.slane %v8295_v63, 5  ;;  %v8419_v31 = vsel %vm12633_vm14, %v10724_v55, %v8418_v50  ;;  %v8435_v50 = vrot.slane %v8296_v9, 5  ;;  %v8302_v1 = vld [vmem:[#allocation2 + $0xb0] sm:$0x1] }
 0x433   : > { %v11522_v10 = vpop.f32.mrb[202].mxu0  ;;  %v11521_v19 = vadd.f32 %v11520_v38, %v11519_v46  ;;  %v10739_v46 = vcombine.low %v8412_v36, %v8415_v29  ;;  %v10740_v2 = vcombine.low %v8419_v31, %v8422_v15  ;;  %v8299_v36 = vld [vmem:[#allocation2 + $0xa4] sm:$0x1] }
 0x434   : > { %v11523_v62 = vpop.f32.mrb[203].mxu0  ;;  %v11407_v6 = vpop.f32.mrb[168].mxu1  ;;  %v8442_v9 = vrot.slane %v8299_v36, 5 }
 0x435   : > { %v11524_v5 = vadd.f32 %v11523_v62, %v11522_v10  ;;  %v11408_v47 = vpop.f32.mrb[169].mxu1  ;;  %v8291_v10 = vld [vmem:[#allocation2 + $0x84] sm:$0xe]  ;;  %v8434_v62 = vrot.slane %v8432_v18, 4 }
 0x436   : > { %11876 = vmatmul.mubr.bf16.gmra.mrb[8].mxu1 %v10737_v27  ;;  %v11409_v51 = vadd.f32 %v11408_v47, %v11407_v6  ;;  %v11410_v26 = vpop.f32.mrb[170].mxu1  ;;  %v8427_v27 = vrot.slane %v8425_v59, 4  ;;  %v10725_v54 = vrot.slane %v8291_v10, 9  ;;  %v8448_v10 = vrot.slane %v8446_v60, 4 }
 0x437   : > { %11879 = vmatprep.mubr.bf16.mxu1 %v10738_v22  ;;  %v11411_v24 = vpop.f32.mrb[171].mxu1  ;;  %v8298_v22 = vld [vmem:[#allocation2 + $0xa0] sm:$0xf]  ;;  %v8436_v20 = vsel %vm12633_vm14, %v8434_v62, %v8435_v50 }
 0x438   : > { %v14968_v25 = vadd.f32 %v11521_v19, %v11409_v51  ;;  %v11412_v35 = vadd.f32 %v11411_v24, %v11410_v26  ;;  %v8429_v47 = vsel %vm12633_vm14, %v8427_v27, %v8428_v40  ;;  %v8439_v44 = vrot.slane %v8298_v22, 5  ;;  %v8304_v27 = vld [vmem:[#allocation2 + $0xb8] sm:$0xf] }
 0x439   : > { %v11525_v58 = vpop.f32.mrb[204].mxu0  ;;  %v10726_v26 = vrot.slane %v8294_v0, 9  ;;  %v8426_v29 = vsel %vm12633_vm14, %v10725_v54, %v8425_v59  ;;  %v8453_v34 = vrot.slane %v8304_v27, 5  ;;  %v8309_v27 = vld [vmem:[#allocation2 + $0xcc] sm:$0xe] }
 0x43a   : > { %v11526_v8 = vpop.f32.mrb[205].mxu0  ;;  %v14974_v3 = vadd.f32 %v11524_v5, %v11412_v35  ;;  %v10741_v15 = vcombine.low %v8426_v29, %v8429_v47  ;;  %v8441_v31 = vrot.slane %v8439_v44, 4 }
 0x43b   : > { %v11527_v12 = vadd.f32 %v11526_v8, %v11525_v58  ;;  %v11528_v41 = vpop.f32.mrb[206].mxu0  ;;  %v8433_v8 = vsel %vm12633_vm14, %v10726_v26, %v8432_v18  ;;  %v8449_v18 = vrot.slane %v8302_v1, 5 }
 0x43c   : > { %v11529_v38 = vpop.f32.mrb[207].mxu0  ;;  %v11413_v45 = vpop.f32.mrb[172].mxu1  ;;  %v8443_v0 = vsel %vm12633_vm14, %v8441_v31, %v8442_v9 }
 0x43d   : > { %v11530_v19 = vadd.f32 %v11529_v38, %v11528_v41  ;;  %v11414_v42 = vpop.f32.mrb[173].mxu1  ;;  %v10742_v41 = vcombine.low %v8433_v8, %v8436_v20 }
 0x43e   : > { %11880 = vmatmul.mubr.bf16.gmra.mrb[12].mxu1 %v10739_v46  ;;  %v11415_v6 = vadd.f32 %v11414_v42, %v11413_v45  ;;  %v11416_v5 = vpop.f32.mrb[174].mxu1  ;;  %v8297_v46 = vld [vmem:[#allocation2 + $0x9c] sm:$0xe]  ;;  %v8300_v45 = vld [vmem:[#allocation2 + $0xa8] sm:$0xe] }
 0x43f   : > { %11883 = vmatprep.mubr.bf16.mxu1 %v10740_v2  ;;  %v11417_v17 = vpop.f32.mrb[175].mxu1  ;;  %v10727_v42 = vrot.slane %v8297_v46, 9  ;;  %v10728_v50 = vrot.slane %v8300_v45, 9  ;;  %v8308_v46 = vld [vmem:[#allocation2 + $0xc8] sm:$0x1] }
 0x440   : > { %v14980_v32 = vadd.f32 %v11527_v12, %v11415_v6  ;;  %v11418_v63 = vadd.f32 %v11417_v17, %v11416_v5  ;;  %v8450_v17 = vsel %vm12633_vm14, %v8448_v10, %v8449_v18 }
 0x441   : > { %v11531_v51 = vpop.f32.mrb[208].mxu0 }
 0x442   : > { %v11532_v24 = vpop.f32.mrb[209].mxu0  ;;  %v14986_v35 = vadd.f32 %v11530_v19, %v11418_v63  ;;  %v8307_v19 = vld [vmem:[#allocation2 + $0xc4] sm:$0xf] }
 0x443   : > { %v11533_v58 = vadd.f32 %v11532_v24, %v11531_v51  ;;  %v11534_v55 = vpop.f32.mrb[210].mxu0  ;;  %v8460_v47 = vrot.slane %v8307_v19, 5  ;;  %v8440_v51 = vsel %vm12633_vm14, %v10727_v42, %v8439_v44  ;;  %v8463_v19 = vrot.slane %v8308_v46, 5 }
 0x444   : > { %v11535_v12 = vpop.f32.mrb[211].mxu0  ;;  %v11419_v38 = vpop.f32.mrb[176].mxu1  ;;  %v10743_v29 = vcombine.low %v8440_v51, %v8443_v0 }
 0x445   : > { %v11536_v2 = vadd.f32 %v11535_v12, %v11534_v55  ;;  %v11420_v59 = vpop.f32.mrb[177].mxu1  ;;  %v8305_v55 = vld [vmem:[#allocation2 + $0xbc] sm:$0x1]  ;;  %v8303_v12 = vld [vmem:[#allocation2 + $0xb4] sm:$0xe]  ;;  %v8462_v44 = vrot.slane %v8460_v47, 4 }
 0x446   : > { %11884 = vmatmul.mubr.bf16.gmra.mrb[16].mxu1 %v10741_v15  ;;  %v11421_v62 = vadd.f32 %v11420_v59, %v11419_v38  ;;  %v11422_v22 = vpop.f32.mrb[178].mxu1  ;;  %v8310_v15 = vld [vmem:[#allocation2 + $0xd0] sm:$0xf]  ;;  %v8306_v38 = vld [vmem:[#allocation2 + $0xc0] sm:$0xe]  ;;  %v8456_v10 = vrot.slane %v8305_v55, 5 }
 0x447   : > { %11887 = vmatprep.mubr.bf16.mxu1 %v10742_v41  ;;  %v11423_v40 = vpop.f32.mrb[179].mxu1  ;;  %v8455_v41 = vrot.slane %v8453_v34, 4  ;;  %v8467_v59 = vrot.slane %v8310_v15, 5 }
 0x448   : > { %v14992_v6 = vadd.f32 %v11533_v58, %v11421_v62  ;;  %v11424_v5 = vadd.f32 %v11423_v40, %v11422_v22  ;;  %v8447_v58 = vsel %vm12633_vm14, %v10728_v50, %v8446_v60  ;;  %v10729_v60 = vrot.slane %v8303_v12, 9  ;;  %v8311_v62 = vld [vmem:[#allocation2 + $0xd4] sm:$0x1] }
 0x449   : > { %v11537_v54 = vpop.f32.mrb[212].mxu0  ;;  %v10744_v36 = vcombine.low %v8447_v58, %v8450_v17  ;;  %v8457_v42 = vsel %vm12633_vm14, %v8455_v41, %v8456_v10  ;;  %v8464_v50 = vsel %vm12633_vm14, %v8462_v44, %v8463_v19  ;;  %v10731_v17 = vrot.slane %v8309_v27, 9 }
 0x44a   : > { %v11538_v63 = vpop.f32.mrb[213].mxu0  ;;  %v14998_v26 = vadd.f32 %v11536_v2, %v11424_v5  ;;  %v8454_v5 = vsel %vm12633_vm14, %v10729_v60, %v8453_v34  ;;  %v8469_v51 = vrot.slane %v8467_v59, 4 }
 0x44b   : > { %v11539_v20 = vadd.f32 %v11538_v63, %v11537_v54  ;;  %v11540_v24 = vpop.f32.mrb[214].mxu0  ;;  %v10730_v54 = vrot.slane %v8306_v38, 9  ;;  %v10745_v15 = vcombine.low %v8454_v5, %v8457_v42  ;;  %v8468_v46 = vsel %vm12633_vm14, %v10731_v17, %v8467_v59 }
 0x44c   : > { %v11541_v8 = vpop.f32.mrb[215].mxu0  ;;  %v11425_v31 = vpop.f32.mrb[180].mxu1 }
 0x44d   : > { %v11542_v1 = vadd.f32 %v11541_v8, %v11540_v24  ;;  %v11426_v2 = vpop.f32.mrb[181].mxu1  ;;  %v8470_v24 = vrot.slane %v8311_v62, 5 }
 0x44e   : > { %11888 = vmatmul.mubr.bf16.gmra.mrb[20].mxu1 %v10743_v29  ;;  %v11427_v9 = vadd.f32 %v11426_v2, %v11425_v31  ;;  %v11428_v45 = vpop.f32.mrb[182].mxu1 }
 0x44f   : > { %11891 = vmatprep.mubr.bf16.mxu1 %v10744_v36  ;;  %v11429_v22 = vpop.f32.mrb[183].mxu1  ;;  %v8471_v31 = vsel %vm12633_vm14, %v8469_v51, %v8470_v24 }
 0x450   : > { %v15004_v18 = vadd.f32 %v11539_v20, %v11427_v9  ;;  %v11430_v40 = vadd.f32 %v11429_v22, %v11428_v45  ;;  %v8461_v20 = vsel %vm12633_vm14, %v10730_v54, %v8460_v47  ;;  %v10747_v27 = vcombine.low %v8468_v46, %v8471_v31 }
 0x451   : > { %v11543_v0 = vpop.f32.mrb[216].mxu0  ;;  %v10746_v36 = vcombine.low %v8461_v20, %v8464_v50 }
 0x452   : > { %v11544_v63 = vpop.f32.mrb[217].mxu0  ;;  %v15010_v29 = vadd.f32 %v11542_v1, %v11430_v40 }
 0x453   : > { %v11545_v58 = vadd.f32 %v11544_v63, %v11543_v0  ;;  %v11546_v55 = vpop.f32.mrb[218].mxu0 }
 0x454   : > { %v11547_v8 = vpop.f32.mrb[219].mxu0  ;;  %v11431_v12 = vpop.f32.mrb[184].mxu1 }
 0x455   : > { %v11548_v34 = vadd.f32 %v11547_v8, %v11546_v55  ;;  %v11432_v41 = vpop.f32.mrb[185].mxu1 }
 0x456   : > { %11892 = vmatmul.mubr.bf16.gmra.mrb[24].mxu1 %v10745_v15  ;;  %v11433_v1 = vadd.f32 %v11432_v41, %v11431_v12  ;;  %v11434_v38 = vpop.f32.mrb[186].mxu1 }
 0x457   : > { %11895 = vmatprep.mubr.bf16.mxu1 %v10746_v36  ;;  %v11435_v44 = vpop.f32.mrb[187].mxu1 }
 0x458   : > { %v15018_v2 = vadd.f32 %v11545_v58, %v11433_v1  ;;  %v11436_v10 = vadd.f32 %v11435_v44, %v11434_v38 }
 0x459   : > { %v11549_v47 = vpop.f32.mrb[220].mxu0 }
 0x45a   : > { %v11550_v9 = vpop.f32.mrb[221].mxu0  ;;  %v15020_v45 = vadd.f32 %v11548_v34, %v11436_v10 }
 0x45b   : > { %v11551_v60 = vadd.f32 %v11550_v9, %v11549_v47  ;;  %v11552_v19 = vpop.f32.mrb[222].mxu0 }
 0x45c   : > { %v11553_v62 = vpop.f32.mrb[223].mxu0  ;;  %v11437_v22 = vpop.f32.mrb[188].mxu1 }
 0x45d   : > { %v11554_v42 = vadd.f32 %v11553_v62, %v11552_v19  ;;  %v11438_v59 = vpop.f32.mrb[189].mxu1 }
 0x45e   : > { %11896 = vmatmul.mubr.bf16.gmra.mrb[28].mxu1 %v10747_v27  ;;  %v11439_v11 = vadd.f32 %v11438_v59, %v11437_v22  ;;  %v11440_v40 = vpop.f32.mrb[190].mxu1 }
 0x45f   : > { %v11441_v0 = vpop.f32.mrb[191].mxu1 }
 0x460   : > { %v15022_v5 = vadd.f32 %v11551_v60, %v11439_v11  ;;  %v11442_v54 = vadd.f32 %v11441_v0, %v11440_v40 }
 0x461   : > { %v11683_v50 = vpop.f32.mrb[224].mxu0 }
 0x462   : > { %v11684_v17 = vpop.f32.mrb[225].mxu0  ;;  %v15024_v63 = vadd.f32 %v11554_v42, %v11442_v54 }
 0x463   : > { %v11685_v51 = vadd.f32 %v11684_v17, %v11683_v50  ;;  %v11686_v24 = vpop.f32.mrb[226].mxu0 }
 0x464   : > { %v11687_v58 = vpop.f32.mrb[227].mxu0  ;;  %v11571_v55 = vpop.f32.mrb[192].mxu1 }
 0x465   : > { %v11688_v15 = vadd.f32 %v11687_v58, %v11686_v24  ;;  %v11572_v20 = vpop.f32.mrb[193].mxu1 }
 0x466   : > { %v11573_v8 = vadd.f32 %v11572_v20, %v11571_v55  ;;  %v11574_v36 = vpop.f32.mrb[194].mxu1 }
 0x467   : > { %v11575_v12 = vpop.f32.mrb[195].mxu1 }
 0x468   : > { %v9629_v34 = vadd.f32 %v11573_v8, %v14732_v53  ;;  %v11576_v41 = vadd.f32 %v11575_v12, %v11574_v36 }
 0x469   : > { %v11689_v46 = vpop.f32.mrb[228].mxu0 }
 0x46a   : > { %v11690_v31 = vpop.f32.mrb[229].mxu0  ;;  %v9632_v1 = vadd.f32 %v11576_v41, %v14736_v61 }
 0x46b   : > { %v11691_v38 = vadd.f32 %v11690_v31, %v11689_v46  ;;  %v11692_v44 = vpop.f32.mrb[230].mxu0 }
 0x46c   : > { %v11693_v10 = vpop.f32.mrb[231].mxu0  ;;  %v11577_v47 = vpop.f32.mrb[196].mxu1 }
 0x46d   : > { %v11694_v27 = vadd.f32 %v11693_v10, %v11692_v44  ;;  %v11578_v9 = vpop.f32.mrb[197].mxu1 }
 0x46e   : > { %v11579_v60 = vadd.f32 %v11578_v9, %v11577_v47  ;;  %v11580_v19 = vpop.f32.mrb[198].mxu1  ;;  %v15034_v9 = vadd.f32 %v11685_v51, %v9629_v34 }
 0x46f   : > { %v11581_v62 = vpop.f32.mrb[199].mxu1 }
 0x470   : > { %v9637_v22 = vadd.f32 %v11579_v60, %v14764_v48  ;;  %v11582_v42 = vadd.f32 %v11581_v62, %v11580_v19 }
 0x471   : > { %v11695_v59 = vpop.f32.mrb[232].mxu0 }
 0x472   : > { %v11696_v11 = vpop.f32.mrb[233].mxu0  ;;  %v9640_v53 = vadd.f32 %v11582_v42, %v14768_v4  ;;  %v15030_v20 = vadd.f32 %v11691_v38, %v9637_v22  ;;  %v15038_v22 = vadd.f32 %v11688_v15, %v9632_v1 }
 0x473   : > { %v11697_v40 = vadd.f32 %v11696_v11, %v11695_v59  ;;  %v11698_v0 = vpop.f32.mrb[234].mxu0 }
 0x474   : > { %v11699_v54 = vpop.f32.mrb[235].mxu0  ;;  %v11583_v61 = vpop.f32.mrb[200].mxu1  ;;  %v15036_v62 = vadd.f32 %v11694_v27, %v9640_v53 }
 0x475   : > { %v11700_v50 = vadd.f32 %v11699_v54, %v11698_v0  ;;  %v11584_v17 = vpop.f32.mrb[201].mxu1 }
 0x476   : > { %v11585_v24 = vadd.f32 %v11584_v17, %v11583_v61  ;;  %v11586_v58 = vpop.f32.mrb[202].mxu1 }
 0x477   : > { %v11587_v55 = vpop.f32.mrb[203].mxu1 }
 0x478   : > { %v9645_v8 = vadd.f32 %v11585_v24, %v14800_v43  ;;  %v11588_v36 = vadd.f32 %v11587_v55, %v11586_v58 }
 0x479   : > { %v11701_v48 = vpop.f32.mrb[236].mxu0 }
 0x47a   : > { %v11702_v12 = vpop.f32.mrb[237].mxu0  ;;  %v9648_v41 = vadd.f32 %v11588_v36, %v14804_v30  ;;  %v15044_v27 = vadd.f32 %v11697_v40, %v9645_v8 }
 0x47b   : > { %v11703_v46 = vadd.f32 %v11702_v12, %v11701_v48  ;;  %v11704_v4 = vpop.f32.mrb[238].mxu0 }
 0x47c   : > { %v11705_v31 = vpop.f32.mrb[239].mxu0  ;;  %v11589_v44 = vpop.f32.mrb[204].mxu1  ;;  %v15048_v58 = vadd.f32 %v11700_v50, %v9648_v41 }
 0x47d   : > { %v11706_v10 = vadd.f32 %v11705_v31, %v11704_v4  ;;  %v11590_v47 = vpop.f32.mrb[205].mxu1 }
 0x47e   : > { %v11591_v60 = vadd.f32 %v11590_v47, %v11589_v44  ;;  %v11592_v19 = vpop.f32.mrb[206].mxu1 }
 0x47f   : > { %v11593_v38 = vpop.f32.mrb[207].mxu1 }
 0x480   : > { %v9653_v43 = vadd.f32 %v11591_v60, %v14834_v13  ;;  %v11594_v42 = vadd.f32 %v11593_v38, %v11592_v19 }
 0x481   : > { %v11707_v59 = vpop.f32.mrb[240].mxu0 }
 0x482   : > { %v11708_v30 = vpop.f32.mrb[241].mxu0  ;;  %v9656_v11 = vadd.f32 %v11594_v42, %v14846_v57  ;;  %v15042_v61 = vadd.f32 %v11703_v46, %v9653_v43 }
 0x483   : > { %v11709_v0 = vadd.f32 %v11708_v30, %v11707_v59  ;;  %v11710_v54 = vpop.f32.mrb[242].mxu0 }
 0x484   : > { %v11711_v51 = vpop.f32.mrb[243].mxu0  ;;  %v11595_v34 = vpop.f32.mrb[208].mxu1  ;;  %v15046_v1 = vadd.f32 %v11706_v10, %v9656_v11 }
 0x485   : > { %v11712_v17 = vadd.f32 %v11711_v51, %v11710_v54  ;;  %v11596_v24 = vpop.f32.mrb[209].mxu1 }
 0x486   : > { %v11597_v53 = vadd.f32 %v11596_v24, %v11595_v34  ;;  %v11598_v15 = vpop.f32.mrb[210].mxu1 }
 0x487   : > { %v11599_v13 = vpop.f32.mrb[211].mxu1 }
 0x488   : > { %v9661_v55 = vadd.f32 %v11597_v53, %v14864_v28  ;;  %v11600_v57 = vadd.f32 %v11599_v13, %v11598_v15 }
 0x489   : > { %v11713_v36 = vpop.f32.mrb[244].mxu0 }
 0x48a   : > { %v11714_v48 = vpop.f32.mrb[245].mxu0  ;;  %v9664_v12 = vadd.f32 %v11600_v57, %v14876_v14  ;;  %v15052_v47 = vadd.f32 %v11709_v0, %v9661_v55 }
 0x48b   : > { %v11715_v46 = vadd.f32 %v11714_v48, %v11713_v36  ;;  %v11716_v4 = vpop.f32.mrb[246].mxu0 }
 0x48c   : > { %v11717_v31 = vpop.f32.mrb[247].mxu0  ;;  %v11601_v44 = vpop.f32.mrb[212].mxu1  ;;  %v15054_v50 = vadd.f32 %v11712_v17, %v9664_v12 }
 0x48d   : > { %v11718_v40 = vadd.f32 %v11717_v31, %v11716_v4  ;;  %v11602_v8 = vpop.f32.mrb[213].mxu1 }
 0x48e   : > { %v11603_v10 = vadd.f32 %v11602_v8, %v11601_v44  ;;  %v11604_v60 = vpop.f32.mrb[214].mxu1 }
 0x48f   : > { %v11605_v19 = vpop.f32.mrb[215].mxu1 }
 0x490   : > { %v9669_v28 = vadd.f32 %v11603_v10, %v14912_v56  ;;  %v11606_v41 = vadd.f32 %v11605_v19, %v11604_v60 }
 0x491   : > { %v11719_v38 = vpop.f32.mrb[248].mxu0 }
 0x492   : > { %v11720_v43 = vpop.f32.mrb[249].mxu0  ;;  %v9672_v14 = vadd.f32 %v11606_v41, %v14914_v37  ;;  %v15058_v30 = vadd.f32 %v11715_v46, %v9669_v28 }
 0x493   : > { %v11721_v42 = vadd.f32 %v11720_v43, %v11719_v38  ;;  %v11722_v59 = vpop.f32.mrb[250].mxu0 }
 0x494   : > { %v11723_v11 = vpop.f32.mrb[251].mxu0  ;;  %v11607_v54 = vpop.f32.mrb[216].mxu1  ;;  %v15060_v51 = vadd.f32 %v11718_v40, %v9672_v14 }
 0x495   : > { %v11724_v0 = vadd.f32 %v11723_v11, %v11722_v59  ;;  %v11608_v34 = vpop.f32.mrb[217].mxu1 }
 0x496   : > { %v11609_v24 = vadd.f32 %v11608_v34, %v11607_v54  ;;  %v11610_v17 = vpop.f32.mrb[218].mxu1 }
 0x497   : > { %v11611_v53 = vpop.f32.mrb[219].mxu1 }
 0x498   : > { %v9677_v56 = vadd.f32 %v11609_v24, %v14925_v16  ;;  %v11612_v15 = vadd.f32 %v11611_v53, %v11610_v17 }
 0x499   : > { %v11725_v13 = vpop.f32.mrb[252].mxu0 }
 0x49a   : > { %v11726_v55 = vpop.f32.mrb[253].mxu0  ;;  %v9680_v37 = vadd.f32 %v11612_v15, %v14934_v52  ;;  %v15064_v48 = vadd.f32 %v11721_v42, %v9677_v56 }
 0x49b   : > { %v11727_v57 = vadd.f32 %v11726_v55, %v11725_v13  ;;  %v11728_v36 = vpop.f32.mrb[254].mxu0 }
 0x49c   : > { %v11729_v12 = vpop.f32.mrb[255].mxu0  ;;  %v11613_v46 = vpop.f32.mrb[220].mxu1  ;;  %v15066_v31 = vadd.f32 %v11724_v0, %v9680_v37 }
 0x49d   : > { %v11730_v4 = vadd.f32 %v11729_v12, %v11728_v36  ;;  %v11614_v44 = vpop.f32.mrb[221].mxu1 }
 0x49e   : > { %v11615_v40 = vadd.f32 %v11614_v44, %v11613_v46  ;;  %v11616_v8 = vpop.f32.mrb[222].mxu1 }
 0x49f   : > { %v11617_v10 = vpop.f32.mrb[223].mxu1 }
 0x4a0   : > { %v9685_v16 = vadd.f32 %v11615_v40, %v14938_v49  ;;  %v11618_v60 = vadd.f32 %v11617_v10, %v11616_v8 }
 0x4a1   : > { %v11731_v19 = vpop.f32.mrb[0].mxu0 }
 0x4a2   : > { %v11732_v28 = vpop.f32.mrb[1].mxu0  ;;  %v9688_v52 = vadd.f32 %v11618_v60, %v14940_v39  ;;  %v15070_v43 = vadd.f32 %v11727_v57, %v9685_v16 }
 0x4a3   : > { %v11733_v41 = vadd.f32 %v11732_v28, %v11731_v19  ;;  %v11734_v38 = vpop.f32.mrb[2].mxu0 }
 0x4a4   : > { %v11735_v14 = vpop.f32.mrb[3].mxu0  ;;  %v15072_v11 = vadd.f32 %v11730_v4, %v9688_v52 }
 0x4a5   : > { %v11619_v42 = vpop.f32.mrb[224].mxu1  ;;  %v11736_v59 = vadd.f32 %v11735_v14, %v11734_v38 }
 0x4a6   : > { %v11620_v54 = vpop.f32.mrb[225].mxu1 }
 0x4a7   : > { %v11621_v0 = vadd.f32 %v11620_v54, %v11619_v42  ;;  %v11622_v34 = vpop.f32.mrb[226].mxu1 }
 0x4a8   : > { %v11623_v24 = vpop.f32.mrb[227].mxu1 }
 0x4a9   : > { %v9693_v49 = vadd.f32 %v11621_v0, %v14950_v7  ;;  %v11624_v17 = vadd.f32 %v11623_v24, %v11622_v34  ;;  %v11737_v53 = vpop.f32.mrb[4].mxu0 }
 0x4aa   : > { %v11738_v39 = vpop.f32.mrb[5].mxu0 }
 0x4ab   : > { %v9696_v56 = vadd.f32 %v11624_v17, %v14952_v23  ;;  %v15076_v15 = vadd.f32 %v11733_v41, %v9693_v49  ;;  %v11739_v13 = vadd.f32 %v11738_v39, %v11737_v53  ;;  %v11740_v55 = vpop.f32.mrb[6].mxu0 }
 0x4ac   : > { %v11741_v37 = vpop.f32.mrb[7].mxu0 }
 0x4ad   : > { %v15078_v57 = vadd.f32 %v11736_v59, %v9696_v56  ;;  %v11742_v36 = vadd.f32 %v11741_v37, %v11740_v55 }
 0x4af   : > { %v11625_v12 = vpop.f32.mrb[228].mxu1 }
 0x4b0   : > { %v11626_v46 = vpop.f32.mrb[229].mxu1 }
 0x4b1   : > { %v11627_v4 = vadd.f32 %v11626_v46, %v11625_v12  ;;  %v11628_v44 = vpop.f32.mrb[230].mxu1 }
 0x4b2   : > { %v11629_v40 = vpop.f32.mrb[231].mxu1 }
 0x4b3   : > { %v9701_v7 = vadd.f32 %v11627_v4, %v14956_v21  ;;  %v11630_v8 = vadd.f32 %v11629_v40, %v11628_v44  ;;  %v11743_v10 = vpop.f32.mrb[8].mxu0 }
 0x4b4   : > { %v11744_v16 = vpop.f32.mrb[9].mxu0 }
 0x4b5   : > { %v9704_v23 = vadd.f32 %v11630_v8, %v14962_v33  ;;  %v11745_v60 = vadd.f32 %v11744_v16, %v11743_v10  ;;  %v11746_v19 = vpop.f32.mrb[10].mxu0  ;;  %v15082_v28 = vadd.f32 %v11739_v13, %v9701_v7 }
 0x4b6   : > { %v11747_v52 = vpop.f32.mrb[11].mxu0 }
 0x4b7   : > { %v11748_v41 = vadd.f32 %v11747_v52, %v11746_v19  ;;  %v15084_v38 = vadd.f32 %v11742_v36, %v9704_v23 }
 0x4ba   : > { %v11631_v14 = vpop.f32.mrb[232].mxu1 }
 0x4bb   : > { %v11632_v42 = vpop.f32.mrb[233].mxu1 }
 0x4bc   : > { %v11633_v59 = vadd.f32 %v11632_v42, %v11631_v14  ;;  %v11634_v54 = vpop.f32.mrb[234].mxu1 }
 0x4bd   : > { %v11635_v0 = vpop.f32.mrb[235].mxu1  ;;  %v11749_v34 = vpop.f32.mrb[12].mxu0 }
 0x4be   : > { %v9709_v21 = vadd.f32 %v11633_v59, %v14968_v25  ;;  %v11636_v24 = vadd.f32 %v11635_v0, %v11634_v54  ;;  %v11750_v49 = vpop.f32.mrb[13].mxu0 }
 0x4bf   : > { %v11751_v17 = vadd.f32 %v11750_v49, %v11749_v34  ;;  %v11752_v33 = vpop.f32.mrb[14].mxu0 }
 0x4c0   : > { %v9712_v53 = vadd.f32 %v11636_v24, %v14974_v3  ;;  %v11753_v56 = vpop.f32.mrb[15].mxu0  ;;  %v15088_v39 = vadd.f32 %v11745_v60, %v9709_v21 }
 0x4c1   : > { %v11754_v13 = vadd.f32 %v11753_v56, %v11752_v33 }
 0x4c2   : > { %v15090_v55 = vadd.f32 %v11748_v41, %v9712_v53 }
 0x4c6   : > { %v11637_v37 = vpop.f32.mrb[236].mxu1 }
 0x4c7   : > { %v11638_v36 = vpop.f32.mrb[237].mxu1 }
 0x4c8   : > { %v11639_v12 = vadd.f32 %v11638_v36, %v11637_v37  ;;  %v11640_v46 = vpop.f32.mrb[238].mxu1 }
 0x4c9   : > { %v11641_v4 = vpop.f32.mrb[239].mxu1  ;;  %v11755_v40 = vpop.f32.mrb[16].mxu0 }
 0x4ca   : > { %v9717_v44 = vadd.f32 %v11639_v12, %v14980_v32  ;;  %v11642_v25 = vadd.f32 %v11641_v4, %v11640_v46  ;;  %v11756_v7 = vpop.f32.mrb[17].mxu0 }
 0x4cb   : > { %v11757_v10 = vadd.f32 %v11756_v7, %v11755_v40  ;;  %v11758_v3 = vpop.f32.mrb[18].mxu0 }
 0x4cc   : > { %v9720_v8 = vadd.f32 %v11642_v25, %v14986_v35  ;;  %v15094_v16 = vadd.f32 %v11751_v17, %v9717_v44  ;;  %v11759_v23 = vpop.f32.mrb[19].mxu0 }
 0x4cd   : > { %v11760_v60 = vadd.f32 %v11759_v23, %v11758_v3 }
 0x4ce   : > { %v15096_v19 = vadd.f32 %v11754_v13, %v9720_v8 }
 0x4d1   : > { %v11643_v52 = vpop.f32.mrb[240].mxu1 }
 0x4d2   : > { %v11644_v41 = vpop.f32.mrb[241].mxu1 }
 0x4d3   : > { %v11645_v14 = vadd.f32 %v11644_v41, %v11643_v52  ;;  %v11646_v42 = vpop.f32.mrb[242].mxu1 }
 0x4d4   : > { %v11647_v59 = vpop.f32.mrb[243].mxu1 }
 0x4d5   : > { %v11761_v54 = vpop.f32.mrb[20].mxu0  ;;  %v9725_v32 = vadd.f32 %v11645_v14, %v14992_v6  ;;  %v11648_v0 = vadd.f32 %v11647_v59, %v11646_v42 }
 0x4d6   : > { %v11762_v34 = vpop.f32.mrb[21].mxu0 }
 0x4d7   : > { %v11763_v21 = vadd.f32 %v11762_v34, %v11761_v54  ;;  %v11764_v35 = vpop.f32.mrb[22].mxu0  ;;  %v9728_v24 = vadd.f32 %v11648_v0, %v14998_v26  ;;  %v15100_v17 = vadd.f32 %v11757_v10, %v9725_v32 }
 0x4d8   : > { %v11765_v49 = vpop.f32.mrb[23].mxu0 }
 0x4d9   : > { %v11766_v33 = vadd.f32 %v11765_v49, %v11764_v35  ;;  %v15102_v53 = vadd.f32 %v11760_v60, %v9728_v24 }
 0x4dd   : > { %v11649_v56 = vpop.f32.mrb[244].mxu1 }
 0x4de   : > { %v11650_v13 = vpop.f32.mrb[245].mxu1 }
 0x4df   : > { %v11651_v37 = vadd.f32 %v11650_v13, %v11649_v56  ;;  %v11652_v36 = vpop.f32.mrb[246].mxu1 }
 0x4e0   : > { %v11653_v12 = vpop.f32.mrb[247].mxu1 }
 0x4e1   : > { %v11767_v46 = vpop.f32.mrb[24].mxu0  ;;  %v9733_v6 = vadd.f32 %v11651_v37, %v15004_v18  ;;  %v11654_v4 = vadd.f32 %v11653_v12, %v11652_v36 }
 0x4e2   : > { %v11768_v44 = vpop.f32.mrb[25].mxu0 }
 0x4e3   : > { %v11769_v25 = vadd.f32 %v11768_v44, %v11767_v46  ;;  %v11770_v40 = vpop.f32.mrb[26].mxu0  ;;  %v9736_v26 = vadd.f32 %v11654_v4, %v15010_v29  ;;  %v15106_v8 = vadd.f32 %v11763_v21, %v9733_v6 }
 0x4e4   : > { %v11771_v7 = vpop.f32.mrb[27].mxu0 }
 0x4e5   : > { %v11772_v10 = vadd.f32 %v11771_v7, %v11770_v40  ;;  %v15108_v3 = vadd.f32 %v11766_v33, %v9736_v26 }
 0x4e8   : > { %v11655_v23 = vpop.f32.mrb[248].mxu1 }
 0x4e9   : > { %v11656_v60 = vpop.f32.mrb[249].mxu1 }
 0x4ea   : > { %v11657_v52 = vadd.f32 %v11656_v60, %v11655_v23  ;;  %v11658_v41 = vpop.f32.mrb[250].mxu1 }
 0x4eb   : > { %v11659_v14 = vpop.f32.mrb[251].mxu1 }
 0x4ec   : > { %v9741_v42 = vadd.f32 %v11657_v52, %v15018_v2  ;;  %v11660_v18 = vadd.f32 %v11659_v14, %v11658_v41 }
 0x4ee   : > { %v9744_v59 = vadd.f32 %v11660_v18, %v15020_v45  ;;  %v15112_v54 = vadd.f32 %v11769_v25, %v9741_v42 }
 0x4f0   : > { %v15114_v32 = vadd.f32 %v11772_v10, %v9744_v59 }
 0x4f1   : > { %v11661_v29 = vpop.f32.mrb[252].mxu1 }
 0x4f2   : > { %v11662_v0 = vpop.f32.mrb[253].mxu1 }
 0x4f3   : > { %v11663_v34 = vadd.f32 %v11662_v0, %v11661_v29  ;;  %v11664_v21 = vpop.f32.mrb[254].mxu1 }
 0x4f4   : > { %v11773_v35 = vpop.f32.mrb[28].mxu0  ;;  %v11665_v24 = vpop.f32.mrb[255].mxu1 }
 0x4f5   : > { %v9749_v49 = vadd.f32 %v11663_v34, %v15022_v5  ;;  %v11666_v33 = vadd.f32 %v11665_v24, %v11664_v21  ;;  %v11774_v56 = vpop.f32.mrb[29].mxu0 }
 0x4f6   : > { %v11775_v13 = vadd.f32 %v11774_v56, %v11773_v35  ;;  %v11776_v2 = vpop.f32.mrb[30].mxu0 }
 0x4f7   : > { %v9752_v37 = vadd.f32 %v11666_v33, %v15024_v63  ;;  %v11777_v45 = vpop.f32.mrb[31].mxu0 }
 0x4f8   : > { %v11778_v36 = vadd.f32 %v11777_v45, %v11776_v2  ;;  %v15119_v12 = vadd.f32 %v11775_v13, %v9749_v49 }
 0x4f9   : > { %v11869_v46 = vpop.f32.mrb[0].mxu1 }
 0x4fa   : > { %v9959_v6 = vadd.f32 %v11869_v46, %v15030_v20  ;;  %v9950_v4 = vpop.f32.mrb[1].mxu1  ;;  %v15122_v44 = vadd.f32 %v11778_v36, %v9752_v37 }
 0x4fb   : > { %v9951_v25 = vadd.f32 %v9950_v4, %v15034_v9  ;;  %v11870_v5 = vpop.f32.mrb[2].mxu1 }
 0x4fc   : > { %v10079_v40 = vmax.f32 %v9959_v6, 0.0  ;;  %v9962_v26 = vadd.f32 %v11870_v5, %v15036_v62  ;;  %v9953_v7 = vpop.f32.mrb[3].mxu1 }
 0x4fd   : > { %v10077_v10 = vmax.f32 %v9951_v25, 0.0  ;;  %v9954_v63 = vadd.f32 %v9953_v7, %v15038_v22 }
 0x4fe   : > { %10111 = vst [vmem:[%s15127_s20 + $0x10] sm:$0xff] %v10079_v40  ;;  %v10080_v20 = vmax.f32 %v9962_v26, 0.0 }
 0x4ff   : > { %10109 = vst [vmem:[%s15127_s20] sm:$0xff] %v10077_v10  ;;  %v10078_v9 = vmax.f32 %v9954_v63, 0.0 }
 0x500   : > { %10112 = vst [vmem:[%s15127_s20 + $0x18] sm:$0xff] %v10080_v20 }
 0x501   : > { %10110 = vst [vmem:[%s15127_s20 + $0x8] sm:$0xff] %v10078_v9  ;;  %v11873_v62 = vpop.f32.mrb[4].mxu1 }
 0x502   : > { %v9975_v23 = vadd.f32 %v11873_v62, %v15042_v61  ;;  %v9966_v22 = vpop.f32.mrb[5].mxu1 }
 0x503   : > { %v9967_v60 = vadd.f32 %v9966_v22, %v15044_v27  ;;  %v11874_v52 = vpop.f32.mrb[6].mxu1 }
 0x504   : > { %v10083_v41 = vmax.f32 %v9975_v23, 0.0  ;;  %v9978_v14 = vadd.f32 %v11874_v52, %v15046_v1  ;;  %v9969_v42 = vpop.f32.mrb[7].mxu1 }
 0x505   : > { %v10081_v18 = vmax.f32 %v9967_v60, 0.0  ;;  %v9970_v59 = vadd.f32 %v9969_v42, %v15048_v58 }
 0x506   : > { %10115 = vst [vmem:[%s15127_s20 + $0x30] sm:$0xff] %v10083_v41  ;;  %v10084_v29 = vmax.f32 %v9978_v14, 0.0 }
 0x507   : > { %10113 = vst [vmem:[%s15127_s20 + $0x20] sm:$0xff] %v10081_v18  ;;  %v10082_v0 = vmax.f32 %v9970_v59, 0.0 }
 0x508   : > { %10116 = vst [vmem:[%s15127_s20 + $0x38] sm:$0xff] %v10084_v29 }
 0x509   : > { %10114 = vst [vmem:[%s15127_s20 + $0x28] sm:$0xff] %v10082_v0  ;;  %v11877_v61 = vpop.f32.mrb[8].mxu1 }
 0x50a   : > { %v9991_v27 = vadd.f32 %v11877_v61, %v15058_v30  ;;  %v9982_v34 = vpop.f32.mrb[9].mxu1 }
 0x50b   : > { %v9983_v1 = vadd.f32 %v9982_v34, %v15052_v47  ;;  %v11878_v21 = vpop.f32.mrb[10].mxu1 }
 0x50c   : > { %v10087_v35 = vmax.f32 %v9991_v27, 0.0  ;;  %v9994_v58 = vadd.f32 %v11878_v21, %v15060_v51  ;;  %v9985_v24 = vpop.f32.mrb[11].mxu1 }
 0x50d   : > { %v10085_v49 = vmax.f32 %v9983_v1, 0.0  ;;  %v9986_v33 = vadd.f32 %v9985_v24, %v15054_v50 }
 0x50e   : > { %10119 = vst [vmem:[%s15127_s20 + $0x50] sm:$0xff] %v10087_v35  ;;  %v10088_v56 = vmax.f32 %v9994_v58, 0.0 }
 0x50f   : > { %10117 = vst [vmem:[%s15127_s20 + $0x40] sm:$0xff] %v10085_v49  ;;  %v10086_v13 = vmax.f32 %v9986_v33, 0.0 }
 0x510   : > { %10120 = vst [vmem:[%s15127_s20 + $0x58] sm:$0xff] %v10088_v56 }
 0x511   : > { %10118 = vst [vmem:[%s15127_s20 + $0x48] sm:$0xff] %v10086_v13  ;;  %v11881_v30 = vpop.f32.mrb[12].mxu1 }
 0x512   : > { %v10007_v47 = vadd.f32 %v11881_v30, %v15070_v43  ;;  %v9998_v2 = vpop.f32.mrb[13].mxu1 }
 0x513   : > { %v9999_v51 = vadd.f32 %v9998_v2, %v15064_v48  ;;  %v11882_v37 = vpop.f32.mrb[14].mxu1 }
 0x514   : > { %v10091_v45 = vmax.f32 %v10007_v47, 0.0  ;;  %v10010_v50 = vadd.f32 %v11882_v37, %v15072_v11  ;;  %v10001_v36 = vpop.f32.mrb[15].mxu1 }
 0x515   : > { %v10089_v46 = vmax.f32 %v9999_v51, 0.0  ;;  %v10002_v6 = vadd.f32 %v10001_v36, %v15066_v31 }
 0x516   : > { %10123 = vst [vmem:[%s15127_s20 + $0x70] sm:$0xff] %v10091_v45  ;;  %v10092_v4 = vmax.f32 %v10010_v50, 0.0 }
 0x517   : > { %10121 = vst [vmem:[%s15127_s20 + $0x60] sm:$0xff] %v10089_v46  ;;  %v10090_v25 = vmax.f32 %v10002_v6, 0.0 }
 0x518   : > { %10124 = vst [vmem:[%s15127_s20 + $0x78] sm:$0xff] %v10092_v4 }
 0x519   : > { %10122 = vst [vmem:[%s15127_s20 + $0x68] sm:$0xff] %v10090_v25  ;;  %v11885_v43 = vpop.f32.mrb[16].mxu1 }
 0x51a   : > { %v10023_v48 = vadd.f32 %v11885_v43, %v15082_v28  ;;  %v10014_v5 = vpop.f32.mrb[17].mxu1 }
 0x51b   : > { %v10015_v11 = vadd.f32 %v10014_v5, %v15076_v15  ;;  %v11886_v40 = vpop.f32.mrb[18].mxu1 }
 0x51c   : > { %v10095_v26 = vmax.f32 %v10023_v48, 0.0  ;;  %v10026_v31 = vadd.f32 %v11886_v40, %v15084_v38  ;;  %v10017_v7 = vpop.f32.mrb[19].mxu1 }
 0x51d   : > { %v10093_v10 = vmax.f32 %v10015_v11, 0.0  ;;  %v10018_v63 = vadd.f32 %v10017_v7, %v15078_v57 }
 0x51e   : > { %10127 = vst [vmem:[%s15127_s20 + $0x90] sm:$0xff] %v10095_v26  ;;  %v10096_v20 = vmax.f32 %v10026_v31, 0.0 }
 0x51f   : > { %10125 = vst [vmem:[%s15127_s20 + $0x80] sm:$0xff] %v10093_v10  ;;  %v10094_v9 = vmax.f32 %v10018_v63, 0.0 }
 0x520   : > { %10128 = vst [vmem:[%s15127_s20 + $0x98] sm:$0xff] %v10096_v20 }
 0x521   : > { %10126 = vst [vmem:[%s15127_s20 + $0x88] sm:$0xff] %v10094_v9  ;;  %v11889_v28 = vpop.f32.mrb[20].mxu1 }
 0x522   : > { %v10039_v15 = vadd.f32 %v11889_v28, %v15094_v16  ;;  %v10030_v62 = vpop.f32.mrb[21].mxu1 }
 0x523   : > { %v10031_v38 = vadd.f32 %v10030_v62, %v15088_v39  ;;  %v11890_v23 = vpop.f32.mrb[22].mxu1 }
 0x524   : > { %v10099_v22 = vmax.f32 %v10039_v15, 0.0  ;;  %v10042_v57 = vadd.f32 %v11890_v23, %v15096_v19  ;;  %v10033_v60 = vpop.f32.mrb[23].mxu1 }
 0x525   : > { %v10097_v52 = vmax.f32 %v10031_v38, 0.0  ;;  %v10034_v41 = vadd.f32 %v10033_v60, %v15090_v55 }
 0x526   : > { %10131 = vst [vmem:[%s15127_s20 + $0xb0] sm:$0xff] %v10099_v22  ;;  %v10100_v14 = vmax.f32 %v10042_v57, 0.0 }
 0x527   : > { %10129 = vst [vmem:[%s15127_s20 + $0xa0] sm:$0xff] %v10097_v52  ;;  %v10098_v42 = vmax.f32 %v10034_v41, 0.0 }
 0x528   : > { %10132 = vst [vmem:[%s15127_s20 + $0xb8] sm:$0xff] %v10100_v14 }
 0x529   : > { %10130 = vst [vmem:[%s15127_s20 + $0xa8] sm:$0xff] %v10098_v42  ;;  %v11893_v16 = vpop.f32.mrb[24].mxu1 }
 0x52a   : > { %v10055_v39 = vadd.f32 %v11893_v16, %v15106_v8  ;;  %v10046_v18 = vpop.f32.mrb[25].mxu1 }
 0x52b   : > { %v10047_v19 = vadd.f32 %v10046_v18, %v15100_v17  ;;  %v11894_v59 = vpop.f32.mrb[26].mxu1 }
 0x52c   : > { %v10103_v29 = vmax.f32 %v10055_v39, 0.0  ;;  %v10058_v55 = vadd.f32 %v11894_v59, %v15108_v3  ;;  %v10049_v0 = vpop.f32.mrb[27].mxu1 }
 0x52d   : > { %v10101_v61 = vmax.f32 %v10047_v19, 0.0  ;;  %v10050_v27 = vadd.f32 %v10049_v0, %v15102_v53 }
 0x52e   : > { %10135 = vst [vmem:[%s15127_s20 + $0xd0] sm:$0xff] %v10103_v29  ;;  %v10104_v34 = vmax.f32 %v10058_v55, 0.0 }
 0x52f   : > { %10133 = vst [vmem:[%s15127_s20 + $0xc0] sm:$0xff] %v10101_v61  ;;  %v10102_v1 = vmax.f32 %v10050_v27, 0.0 }
 0x530   : > { %10136 = vst [vmem:[%s15127_s20 + $0xd8] sm:$0xff] %v10104_v34 }
 0x531   : > { %10134 = vst [vmem:[%s15127_s20 + $0xc8] sm:$0xff] %v10102_v1  ;;  %v11897_v8 = vpop.f32.mrb[28].mxu1 }
 0x532   : > { %v10071_v17 = vadd.f32 %v11897_v8, %v15119_v12  ;;  %v10062_v21 = vpop.f32.mrb[29].mxu1 }
 0x533   : > { %v10063_v3 = vadd.f32 %v10062_v21, %v15112_v54  ;;  %v11898_v35 = vpop.f32.mrb[30].mxu1 }
 0x534   : > { %v10107_v53 = vmax.f32 %v10071_v17, 0.0  ;;  %v10074_v58 = vadd.f32 %v11898_v35, %v15122_v44  ;;  %v10065_v24 = vpop.f32.mrb[31].mxu1 }
 0x535   : > { %v10105_v49 = vmax.f32 %v10063_v3, 0.0  ;;  %v10066_v33 = vadd.f32 %v10065_v24, %v15114_v32 }
 0x536   : > { %10139 = vst [vmem:[%s15127_s20 + $0xf0] sm:$0xff] %v10107_v53  ;;  %v10108_v56 = vmax.f32 %v10074_v58, 0.0 }
 0x537   : > { %10137 = vst [vmem:[%s15127_s20 + $0xe0] sm:$0xff] %v10105_v49  ;;  %v10106_v54 = vmax.f32 %v10066_v33, 0.0 }
 0x538   : > { %10140 = vst [vmem:[%s15127_s20 + $0xf8] sm:$0xff] %v10108_v56 }
 0x539   : > { %10138 = vst [vmem:[%s15127_s20 + $0xe8] sm:$0xff] %v10106_v54 }
 0x53a   : > { %12312 = shalt.err (!%p12309_p1)
}
 0x53b   : > { %s12313_s17 = scalar_lea.hbm %s15191_s28, 4096  ;;  %s12317_s30 = scalar_lea.hbm %s15243_s3, 8192 }
 0x53c   : > { %p12314_p13 = scmp.ne.s32.totalorder %s15191_s28, %s12313_s17  ;;  %p12318_p4 = scmp.lt.u32.totalorder %s15191_s28, %s15243_s3 }
 0x53d   : > { %p12319_p5 = scmp.lt.u32.totalorder %s12317_s30, %s12313_s17  ;;  %p12321_p11 = scmp.lt.u32.totalorder %s12313_s17, %s15191_s28 }
 0x53e   : > { %p12315_p6 = pnand %p12314_p13, %p15387_p0 }
 0x53f   : > { %p12320_p8 = por %p12319_p5, %p12318_p4 }
 0x540   : > { %p12316_p10 = pneg %p12315_p6 }
 0x541   : > { %p12322_p2 = por %p12321_p11, %p12320_p8 }
 0x543   : > { %p12323_p3 = pnand %p12322_p2, %p12316_p10 }
 0x545   : > { %12326 = shalt.err (!%p12323_p3)
}
 0x546   : > { %s12378_s18 = smov 128   ;;  %s12379_s20 = smov 8  }
 0x547   : > { %11909 = dma.vmem_to_hbm [thread:$0]  (%p15387_p0), %s15193_s8, 4096, %s15191_s28, %s10142_s16, %s12378_s18, %s12378_s18, %s12379_s20  }
 0x548 PF: > { %s10170_s7 = sand.u32 1, %s12357_s12   ;;  %p15388_p7 = scmp.ne.s32.totalorder %s15258_s19, 0 }
 0x549   : > { %p15389_p9 = scmp.ge.s32.totalorder %s12369_s15, 2  ;;  %s10171_s24 = scalar_lea.sflag [#allocation6], %s10170_s7 }
 0x54b   : > { %p11923_p12 = pnand %p15389_p9, %p15388_p7 }
 0x54d   : > { %12352 = dma.done.wait (!%p11923_p12), %s10171_s24, 4096  }
 0x54e   : > { %12354 = vsyncadd (!%p11923_p12), %s10171_s24, 4294963200  ;;  %p17_p1 = scmp.ge.s32.totalorder %s12516_s23, 4   ;;  %s15390_s12 = smov %s12361_s13 }
 0x54f   : > { %s15391_s13 = smov %s12365_s14  ;;  %s15392_s14 = smov %s12532_s9 }
 0x550   : > { %s15393_s15 = smov %s12516_s23  ;;  %19 = sbr.rel (!%p17_p1) target bundleno = 6 (0x6), region = 88 }
 0x557   :  { %10176 = vsyncpa [#allocation5], 1 }
 0x558   :  { %10178 = vsyncpa [#allocation5 + $0x1], 1 }
 0x559   :  { %10179 = vsyncpa [#allocation8], 1 }
 0x55a   :  { %10180 = vsyncpa [#allocation6], 1 }
 0x55b   :  { %10182 = vsyncpa [#allocation6 + $0x1], 1 }

</bundles_post_ra>
